<compile_context>
chip_gen: v7x
topology: tpu7x:2x2x1
jax: 0.10.0
libtpu: 0.0.40
codegen_flags: <defaults>
</compile_context>

<pallas_src>
import jax
import jax.numpy as jnp
from jax.experimental import pallas as pl
from jax.experimental.pallas import tpu as pltpu


# ----------------------------------------------------------------------------
# Kernel 1: three length-masked single-layer LSTMs, one per grid step.
#   x_ref   : (T*B, E)  rows ordered t*B + b (time-major), stream selected by grid.
#   out_ref : (T*B, H)  rows ordered b*T + t (batch-major, handy for the head kernel).
#   hsum_ref: (B, H)    sum over (valid) timesteps of the hidden state.
# PyTorch gate order: i, f, g, o.
# ----------------------------------------------------------------------------
def _tri_lstm_kernel(lens_ref, x_ref, wih_ref, whh_ref, bias_ref, out_ref, hsum_ref):
    s = pl.program_id(0)
    H = whh_ref.shape[0]
    B = hsum_ref.shape[0]
    T = x_ref.shape[0] // B
    f32 = jnp.float32

    # Hoisted input projection: one MXU matmul covers every timestep of every row.
    xg = jnp.dot(x_ref[...], wih_ref[...], preferred_element_type=f32) + bias_ref[...]  # (T*B, 4H)
    whh = whh_ref[...]

    # Per-row sequence lengths (SMEM scalars -> (B, 1) vector used as the step mask).
    len_vec = jnp.concatenate(
        [jnp.full((1, 1), lens_ref[s, b], dtype=jnp.int32) for b in range(B)], axis=0)

    # Whole-vreg gate activation: tanh on the g lanes, sigmoid elsewhere.
    lane = jax.lax.broadcasted_iota(jnp.int32, (1, 4 * H), 1)
    is_g = jnp.logical_and(lane >= 2 * H, lane < 3 * H)

    h = jnp.zeros((B, H), f32)
    c = jnp.zeros((B, H), f32)
    hs = jnp.zeros((B, H), f32)
    for t in range(T):  # static unroll: tiny, strictly serial recurrence
        gx = xg[t * B:(t + 1) * B, :]                                        # (B, 4H)
        gates = gx + jnp.dot(h, whh, preferred_element_type=f32)             # (B, 4H)
        act = jnp.where(is_g, jnp.tanh(gates), jax.nn.sigmoid(gates))
        i_g = act[:, 0:H]
        f_g = act[:, H:2 * H]
        g_g = act[:, 2 * H:3 * H]
        o_g = act[:, 3 * H:4 * H]
        c_new = f_g * c + i_g * g_g
        h_new = o_g * jnp.tanh(c_new)
        mask = len_vec > t                                                   # (B, 1)
        h_out = jnp.where(mask, h_new, 0.0)
        for b in range(B):
            out_ref[b * T + t:b * T + t + 1, :] = h_out[b:b + 1, :]
        h = jnp.where(mask, h_new, h)
        c = jnp.where(mask, c_new, c)
        hs = hs + h_out
    hsum_ref[...] = hs


# ----------------------------------------------------------------------------
# Kernel 2: fused post-LSTM head (bilinear attentions + visual attention + gate + dense_4).
# ----------------------------------------------------------------------------
def _head_kernel(lens_ref, lstm_ref, hsum_ref, vis_ref,
                 awk_ref, abk_ref, awq_ref, abq_ref, abil_ref, awp_ref, abp_ref,
                 a2t_wt_ref, a2t_bc_ref,
                 vm2t_wt_ref, vm2t_bc_ref,
                 v2t_w_ref, v2t_b_ref,
                 gate_w_ref, gate_b_ref,
                 ma_w_ref, ma_b_ref,
                 d4_w_ref, d4_b_ref,
                 out_ref, attw_ref):
    f32 = jnp.float32
    B = hsum_ref.shape[1]
    H = hsum_ref.shape[2]
    T = lstm_ref.shape[1] // B
    D = vis_ref.shape[1]  # 2048

    # ---- avg_aspect (B, H): time-sum (from kernel 1) / aspect length.
    # TODO(synk): like the PyTorch module, a zero-length aspect would divide by zero here.
    sum_aspect = hsum_ref[0]
    avg_aspect = jnp.concatenate(
        [sum_aspect[b:b + 1, :] / lens_ref[0, b].astype(f32) for b in range(B)], axis=0)

    # ---- length-masked bilinear attention (ABSA Attention, n_head=1) over l / r contexts ----
    t_iota = jax.lax.broadcasted_iota(jnp.int32, (1, T), 1)

    def bilinear(a, ctx):  # a: 0 -> attention_l (lens row 1), 1 -> attention_r (lens row 2)
        kx = jnp.dot(ctx, awk_ref[a], preferred_element_type=f32) + abk_ref[a]        # (B*T, H)
        qx = jnp.dot(avg_aspect, awq_ref[a], preferred_element_type=f32) + abq_ref[a]  # (B, H)
        qw = jnp.dot(qx, abil_ref[a], preferred_element_type=f32)                      # (B, H)
        rows = []
        for b in range(B):
            kx_b = kx[b * T:(b + 1) * T, :]                                            # (T, H)
            score = jax.lax.dot_general(qw[b:b + 1, :], kx_b,
                                        (((1,), (1,)), ((), ())),
                                        preferred_element_type=f32)                    # (1, T)
            score = jnp.where(t_iota < lens_ref[a + 1, b], score, -1e30)
            attn = jax.nn.softmax(score, axis=-1)
            rows.append(jnp.dot(attn, kx_b, preferred_element_type=f32))               # (1, H)
        o = jnp.concatenate(rows, axis=0)                                              # (B, H)
        return jnp.dot(o, awp_ref[a], preferred_element_type=f32) + abp_ref[a]

    l_final = bilinear(0, lstm_ref[1])
    r_final = bilinear(1, lstm_ref[2])

    # ---- aspect2text, produced directly in column form (H, B) via an A@B^T contraction ----
    conv_asp_cols = jax.lax.dot_general(a2t_wt_ref[...], avg_aspect,
                                        (((1,), (1,)), ((), ())),
                                        preferred_element_type=f32) + a2t_bc_ref[...]  # (H, B)

    # ---- visual attention over the 7x7 map, consumed in NCHW-flat (B, 2048, 49) layout ----
    vm2t_wt = vm2t_wt_ref[...]    # (H, 2048), torch (out, in) layout
    vm2t_bc = vm2t_bc_ref[...]    # (H, 1)
    ma_w = ma_w_ref[...]          # (1, H)
    ma_b = ma_b_ref[...]          # (1, 1)
    av_rows = []
    for b in range(B):
        vb = vis_ref[b]                                                               # (2048, 49)
        convt = jnp.dot(vm2t_wt, vb, preferred_element_type=f32) + vm2t_bc            # (H, 49)
        inp = jnp.tanh(convt + conv_asp_cols[:, b:b + 1])                              # (H, 49)
        score = jnp.dot(ma_w, inp, preferred_element_type=f32) + ma_b                  # (1, 49)
        w = jax.nn.softmax(score, axis=-1)                                             # (1, 49)
        attw_ref[b:b + 1, :] = w
        av_rows.append(jax.lax.dot_general(w, vb, (((1,), (1,)), ((), ())),
                                           preferred_element_type=f32))                # (1, 2048)
    att_vector = jnp.concatenate(av_rows, axis=0)                                      # (B, 2048)

    conv_att_vis = (jnp.dot(jnp.tanh(att_vector), v2t_w_ref[...], preferred_element_type=f32)
                    + v2t_b_ref[...])                                                  # (B, H)

    # ---- gate over [l, r, aspect, att_vector]: split matmuls instead of lane concatenation ----
    gate_pre = (jnp.dot(l_final, gate_w_ref[0:H, :], preferred_element_type=f32)
                + jnp.dot(r_final, gate_w_ref[H:2 * H, :], preferred_element_type=f32)
                + jnp.dot(avg_aspect, gate_w_ref[2 * H:3 * H, :], preferred_element_type=f32)
                + jnp.dot(att_vector, gate_w_ref[3 * H:3 * H + D, :], preferred_element_type=f32)
                + gate_b_ref[...])
    gated = jax.nn.sigmoid(gate_pre) * conv_att_vis                                    # (B, H)

    # ---- dense_4 over [l, r, aspect, gated] ----
    out_ref[...] = (jnp.dot(l_final, d4_w_ref[0:H, :], preferred_element_type=f32)
                    + jnp.dot(r_final, d4_w_ref[H:2 * H, :], preferred_element_type=f32)
                    + jnp.dot(avg_aspect, d4_w_ref[2 * H:3 * H, :], preferred_element_type=f32)
                    + jnp.dot(gated, d4_w_ref[3 * H:4 * H, :], preferred_element_type=f32)
                    + d4_b_ref[...])


# ----------------------------------------------------------------------------
# Parameter construction (deterministic, synthetic).  Weight layouts:
#   *_w   : (in, out)      pre-transposed for x @ W
#   *_wT  : (out, in)      torch layout, used where the data is column-oriented
#   biases: (1, out) rows or (out, 1) columns to match their consumers.
# ----------------------------------------------------------------------------
def init_params(key, vocab, embed_dim, hidden_dim, polarities_dim):
    keys = iter(jax.random.split(key, 64))

    def mat(shape, scale=0.05):
        return (scale * jax.random.normal(next(keys), shape)).astype(jnp.float32)

    H, E = hidden_dim, embed_dim

    def lstm_params():
        return (mat((E, 4 * H)), mat((H, 4 * H)), mat((1, 4 * H)))

    la, ll, lr = lstm_params(), lstm_params(), lstm_params()

    def attn_params():
        # wk, bk, wq, bq, bilinear weight, proj weight, proj bias
        return [mat((H, H)), mat((1, H)), mat((H, H)), mat((1, H)),
                mat((H, H)), mat((H, H)), mat((1, H))]

    al, ar = attn_params(), attn_params()

    return {
        "embedding": mat((vocab, E), 0.1),
        "lstm_wih": jnp.stack([la[0], ll[0], lr[0]], axis=0),   # (3, E, 4H)
        "lstm_whh": jnp.stack([la[1], ll[1], lr[1]], axis=0),   # (3, H, 4H)
        "lstm_b":   jnp.stack([la[2], ll[2], lr[2]], axis=0),   # (3, 1, 4H)
        "attn_wk":  jnp.stack([al[0], ar[0]], axis=0),
        "attn_bk":  jnp.stack([al[1], ar[1]], axis=0),
        "attn_wq":  jnp.stack([al[2], ar[2]], axis=0),
        "attn_bq":  jnp.stack([al[3], ar[3]], axis=0),
        "attn_bil": jnp.stack([al[4], ar[4]], axis=0),
        "attn_wp":  jnp.stack([al[5], ar[5]], axis=0),
        "attn_bp":  jnp.stack([al[6], ar[6]], axis=0),
        "aspect2text_wT": mat((H, H)), "aspect2text_bC": mat((H, 1)),
        "vismap2text_wT": mat((H, 2048)), "vismap2text_bC": mat((H, 1)),
        "vis2text_w": mat((2048, H)), "vis2text_b": mat((1, H)),
        "gate_w": mat((3 * H + 2048, H)), "gate_b": mat((1, H)),   # rows: [l | r | aspect | att_vector]
        "ma_w": mat((1, H)), "ma_b": mat((1, 1)),
        "dense4_w": mat((4 * H, polarities_dim)), "dense4_b": mat((1, polarities_dim)),
    }


# ----------------------------------------------------------------------------
# Forward pass (att_mode == 'vis_concat_attimg_gate'), two pallas_calls total.
# ----------------------------------------------------------------------------
def mmfusion_forward(params, x_l, x_r, aspect_indices,
                     visual_embeds_global, visual_embeds_mean, visual_embeds_att):
    # visual_embeds_global / _mean are never consumed in this branch; the PyTorch module's
    # unused vis2text(tanh(visual_embeds_global)) projection is dropped as dead code.
    del visual_embeds_global, visual_embeds_mean

    B, T = x_l.shape
    T_asp = aspect_indices.shape[1]
    emb = params["embedding"]
    E = emb.shape[1]
    H = params["lstm_whh"].shape[1]
    P = params["dense4_w"].shape[1]

    len_asp = jnp.sum(aspect_indices != 0, axis=-1).astype(jnp.int32)
    len_l = jnp.sum(x_l != 0, axis=-1).astype(jnp.int32)
    len_r = jnp.sum(x_r != 0, axis=-1).astype(jnp.int32)
    lens = jnp.stack([len_asp, len_l, len_r], axis=0)               # (3, B) int32 -> SMEM

    asp_e = jnp.take(emb, aspect_indices, axis=0)                   # (B, T_asp, E)
    asp_e = jnp.pad(asp_e, ((0, 0), (0, T - T_asp), (0, 0)))        # pad to T (masked by length)
    xl_e = jnp.take(emb, x_l, axis=0)
    xr_e = jnp.take(emb, x_r, axis=0)
    x_btE = jnp.stack([asp_e, xl_e, xr_e], axis=0)                  # (3, B, T, E)
    x_tm = jnp.transpose(x_btE, (0, 2, 1, 3)).reshape(3, T * B, E)  # rows t*B + b (tiny, fused in XLA)

    lstm_out, hsum = pl.pallas_call(
        _tri_lstm_kernel,
        grid=(3,),
        out_shape=(jax.ShapeDtypeStruct((3, B * T, H), jnp.float32),
                   jax.ShapeDtypeStruct((3, B, H), jnp.float32)),
        in_specs=[
            pl.BlockSpec(memory_space=pltpu.MemorySpace.SMEM),                 # lengths
            pl.BlockSpec((None, B * T, E), lambda s: (s, 0, 0)),               # x (per stream)
            pl.BlockSpec((None, E, 4 * H), lambda s: (s, 0, 0)),               # W_ih
            pl.BlockSpec((None, H, 4 * H), lambda s: (s, 0, 0)),               # W_hh
            pl.BlockSpec((None, 1, 4 * H), lambda s: (s, 0, 0)),               # bias
        ],
        out_specs=(pl.BlockSpec((None, B * T, H), lambda s: (s, 0, 0)),
                   pl.BlockSpec((None, B, H), lambda s: (s, 0, 0))),
        compiler_params=pltpu.CompilerParams(dimension_semantics=("parallel",)),
    )(lens, x_tm, params["lstm_wih"], params["lstm_whh"], params["lstm_b"])

    # NCHW (B, 2048, 7, 7) -> (B, 2048, 49): free reshape, NO transpose.
    vis_map = visual_embeds_att.reshape(B, 2048, 49)

    out, att_weights = pl.pallas_call(
        _head_kernel,
        out_shape=(jax.ShapeDtypeStruct((B, P), jnp.float32),
                   jax.ShapeDtypeStruct((B, 49), jnp.float32)),
        in_specs=[pl.BlockSpec(memory_space=pltpu.MemorySpace.SMEM)]
                 + [pl.BlockSpec(memory_space=pltpu.MemorySpace.VMEM)] * 22,
        out_specs=(pl.BlockSpec(memory_space=pltpu.MemorySpace.VMEM),
                   pl.BlockSpec(memory_space=pltpu.MemorySpace.VMEM)),
    )(lens, lstm_out, hsum, vis_map,
      params["attn_wk"], params["attn_bk"], params["attn_wq"], params["attn_bq"],
      params["attn_bil"], params["attn_wp"], params["attn_bp"],
      params["aspect2text_wT"], params["aspect2text_bC"],
      params["vismap2text_wT"], params["vismap2text_bC"],
      params["vis2text_w"], params["vis2text_b"],
      params["gate_w"], params["gate_b"],
      params["ma_w"], params["ma_b"],
      params["dense4_w"], params["dense4_b"])
    return out, att_weights


if __name__ == "__main__":
    B, T, T_ASP = 2, 8, 4
    VOCAB, EMBED_DIM, HIDDEN_DIM, POLARITIES = 50, 32, 32, 3

    key = jax.random.PRNGKey(0)
    k_par, k_xl, k_xr, k_asp, k_vg, k_vm, k_va = jax.random.split(key, 7)

    params = init_params(k_par, VOCAB, EMBED_DIM, HIDDEN_DIM, POLARITIES)

    # integer token indices with zero padding (0 == pad)
    def make_ids(k, L, lens):
        ids = jax.random.randint(k, (B, L), 1, VOCAB, dtype=jnp.int32)
        pos = jnp.arange(L)[None, :]
        return jnp.where(pos < jnp.asarray(lens)[:, None], ids, 0)

    x_l = make_ids(k_xl, T, [6, 4])
    x_r = make_ids(k_xr, T, [5, 7])
    aspect_indices = make_ids(k_asp, T_ASP, [3, 2])

    visual_embeds_global = jax.random.normal(k_vg, (B, 2048), dtype=jnp.float32)
    visual_embeds_mean = jax.random.normal(k_vm, (B, 2048), dtype=jnp.float32)
    visual_embeds_att = jax.random.normal(k_va, (B, 2048, 7, 7), dtype=jnp.float32)

    fwd = jax.jit(mmfusion_forward)
    out, att_weights = fwd(params, x_l, x_r, aspect_indices,
                           visual_embeds_global, visual_embeds_mean, visual_embeds_att)
    jax.block_until_ready((out, att_weights))
    assert out.shape == (B, POLARITIES)
    assert att_weights.shape == (B, 49)
    assert bool(jnp.all(jnp.isfinite(out)))
    print("KERNEL_OK")
</pallas_src>

<mosaic_0001>
module attributes {stable_mosaic.version = 11 : i64} {
  func.func @_tri_lstm_kernel(%arg0: i32, %arg1: memref<3x2xi32, #tpu.memory_space<smem>>, %arg2: memref<1x16x32xf32, #tpu.memory_space<vmem>>, %arg3: memref<1x32x128xf32, #tpu.memory_space<vmem>>, %arg4: memref<1x32x128xf32, #tpu.memory_space<vmem>>, %arg5: memref<1x1x128xf32, #tpu.memory_space<vmem>>, %arg6: memref<1x16x32xf32, #tpu.memory_space<vmem>>, %arg7: memref<1x2x32xf32, #tpu.memory_space<vmem>>) attributes {dimension_semantics = [#tpu.dimension_semantics<parallel>], iteration_bounds = array<i64: 3>, scalar_prefetch = 0 : i64, scratch_operands = 0 : i64, tpu.core_type = #tpu.core_type<tc>, window_params = [{transform_indices = @transform_0, window_bounds = array<i64: 3, 2>}, {transform_indices = @transform_1, window_bounds = array<i64: 1, 16, 32>}, {transform_indices = @transform_2, window_bounds = array<i64: 1, 32, 128>}, {transform_indices = @transform_3, window_bounds = array<i64: 1, 32, 128>}, {transform_indices = @transform_4, window_bounds = array<i64: 1, 1, 128>}, {transform_indices = @transform_5, window_bounds = array<i64: 1, 16, 32>}, {transform_indices = @transform_6, window_bounds = array<i64: 1, 2, 32>}]} {
    %c0 = arith.constant 0 : index
    %c0_0 = arith.constant 0 : index
    %c0_1 = arith.constant 0 : index
    %0 = vector.load %arg2[%c0, %c0_0, %c0_1] : memref<1x16x32xf32, #tpu.memory_space<vmem>>, vector<1x16x32xf32>
    %1 = vector.shape_cast %0 : vector<1x16x32xf32> to vector<16x32xf32>
    %c0_2 = arith.constant 0 : index
    %c0_3 = arith.constant 0 : index
    %c0_4 = arith.constant 0 : index
    %2 = vector.load %arg3[%c0_2, %c0_3, %c0_4] : memref<1x32x128xf32, #tpu.memory_space<vmem>>, vector<1x32x128xf32>
    %3 = vector.shape_cast %2 : vector<1x32x128xf32> to vector<32x128xf32>
    %cst = arith.constant dense<0.000000e+00> : vector<16x128xf32>
    %4 = tpu.matmul %1, %3, %cst {dimension_numbers = #tpu.dot_dimension_numbers<[1], [0], [0], [1], [0, 0, 1, 1], [], []>} : vector<16x32xf32>, vector<32x128xf32>, vector<16x128xf32> -> vector<16x128xf32>
    %c0_5 = arith.constant 0 : index
    %c0_6 = arith.constant 0 : index
    %c0_7 = arith.constant 0 : index
    %5 = vector.load %arg5[%c0_5, %c0_6, %c0_7] : memref<1x1x128xf32, #tpu.memory_space<vmem>>, vector<1x1x128xf32>
    %6 = vector.shape_cast %5 : vector<1x1x128xf32> to vector<1x128xf32>
    %7 = vector.broadcast %6 : vector<1x128xf32> to vector<16x128xf32>
    %8 = arith.addf %4, %7 : vector<16x128xf32>
    %c0_8 = arith.constant 0 : index
    %c0_9 = arith.constant 0 : index
    %c0_10 = arith.constant 0 : index
    %9 = vector.load %arg4[%c0_8, %c0_9, %c0_10] : memref<1x32x128xf32, #tpu.memory_space<vmem>>, vector<1x32x128xf32>
    %10 = vector.shape_cast %9 : vector<1x32x128xf32> to vector<32x128xf32>
    %11 = arith.index_cast %arg0 : i32 to index
    %c0_11 = arith.constant 0 : index
    %12 = memref.load %arg1[%11, %c0_11] : memref<3x2xi32, #tpu.memory_space<smem>>
    %13 = vector.broadcast %12 : i32 to vector<1x1xi32>
    %14 = arith.index_cast %arg0 : i32 to index
    %c1 = arith.constant 1 : index
    %15 = memref.load %arg1[%14, %c1] : memref<3x2xi32, #tpu.memory_space<smem>>
    %16 = vector.broadcast %15 : i32 to vector<1x1xi32>
    %17 = tpu.concatenate %13, %16 in 0 : vector<1x1xi32>, vector<1x1xi32> -> vector<2x1xi32>
    %18 = tpu.iota {dimensions = array<i32: 1>} : vector<1x128xi32>
    %c64_i32 = arith.constant 64 : i32
    %19 = vector.broadcast %c64_i32 : i32 to vector<1x128xi32>
    %20 = arith.cmpi sge, %18, %19 : vector<1x128xi32>
    %c96_i32 = arith.constant 96 : i32
    %21 = vector.broadcast %c96_i32 : i32 to vector<1x128xi32>
    %22 = arith.cmpi slt, %18, %21 : vector<1x128xi32>
    %23 = arith.andi %20, %22 : vector<1x128xi1>
    %cst_12 = arith.constant 0.000000e+00 : f32
    %24 = vector.broadcast %cst_12 : f32 to vector<2x32xf32>
    %cst_13 = arith.constant 0.000000e+00 : f32
    %25 = vector.broadcast %cst_13 : f32 to vector<2x32xf32>
    %cst_14 = arith.constant 0.000000e+00 : f32
    %26 = vector.broadcast %cst_14 : f32 to vector<2x32xf32>
    %27 = vector.extract_strided_slice %8 {offsets = [0, 0], sizes = [2, 128], strides = [1, 1]} : vector<16x128xf32> to vector<2x128xf32>
    %cst_15 = arith.constant dense<0.000000e+00> : vector<2x128xf32>
    %28 = tpu.matmul %24, %10, %cst_15 {dimension_numbers = #tpu.dot_dimension_numbers<[1], [0], [0], [1], [0, 0, 1, 1], [], []>} : vector<2x32xf32>, vector<32x128xf32>, vector<2x128xf32> -> vector<2x128xf32>
    %29 = arith.addf %27, %28 : vector<2x128xf32>
    %30 = math.tanh %29 : vector<2x128xf32>
    %31 = arith.negf %29 : vector<2x128xf32>
    %32 = math.exp %31 : vector<2x128xf32>
    %cst_16 = arith.constant 1.000000e+00 : f32
    %33 = vector.broadcast %cst_16 : f32 to vector<2x128xf32>
    %34 = arith.addf %33, %32 : vector<2x128xf32>
    %35 = arith.divf %33, %34 : vector<2x128xf32>
    %36 = vector.shape_cast %23 : vector<1x128xi1> to vector<1x128xi1>
    %37 = vector.broadcast %36 : vector<1x128xi1> to vector<2x128xi1>
    %38 = arith.select %37, %30, %35 : vector<2x128xi1>, vector<2x128xf32>
    %39 = vector.extract_strided_slice %38 {offsets = [0, 0], sizes = [2, 32], strides = [1, 1]} : vector<2x128xf32> to vector<2x32xf32>
    %40 = vector.extract_strided_slice %38 {offsets = [0, 32], sizes = [2, 32], strides = [1, 1]} : vector<2x128xf32> to vector<2x32xf32>
    %41 = vector.extract_strided_slice %38 {offsets = [0, 64], sizes = [2, 32], strides = [1, 1]} : vector<2x128xf32> to vector<2x32xf32>
    %42 = vector.extract_strided_slice %38 {offsets = [0, 96], sizes = [2, 32], strides = [1, 1]} : vector<2x128xf32> to vector<2x32xf32>
    %43 = arith.mulf %40, %25 : vector<2x32xf32>
    %44 = arith.mulf %39, %41 : vector<2x32xf32>
    %45 = arith.addf %43, %44 : vector<2x32xf32>
    %46 = math.tanh %45 : vector<2x32xf32>
    %47 = arith.mulf %42, %46 : vector<2x32xf32>
    %c0_i32 = arith.constant 0 : i32
    %48 = vector.broadcast %c0_i32 : i32 to vector<2x1xi32>
    %49 = arith.cmpi sgt, %17, %48 : vector<2x1xi32>
    %cst_17 = arith.constant 0.000000e+00 : f32
    %50 = vector.shape_cast %49 : vector<2x1xi1> to vector<2x1xi1>
    %51 = vector.broadcast %50 : vector<2x1xi1> to vector<2x32xi1>
    %52 = vector.broadcast %cst_17 : f32 to vector<2x32xf32>
    %53 = arith.select %51, %47, %52 : vector<2x32xi1>, vector<2x32xf32>
    %54 = vector.extract_strided_slice %53 {offsets = [0, 0], sizes = [1, 32], strides = [1, 1]} : vector<2x32xf32> to vector<1x32xf32>
    %c0_18 = arith.constant 0 : index
    %c0_19 = arith.constant 0 : index
    %c0_20 = arith.constant 0 : index
    %55 = vector.load %arg6[%c0_18, %c0_19, %c0_20] : memref<1x16x32xf32, #tpu.memory_space<vmem>>, vector<1x1x32xf32>
    %56 = vector.shape_cast %55 : vector<1x1x32xf32> to vector<1x32xf32>
    %57 = vector.shape_cast %54 : vector<1x32xf32> to vector<1x1x32xf32>
    tpu.vector_store %arg6[%c0_18, %c0_19, %c0_20], %57 {strides = array<i32>} : memref<1x16x32xf32, #tpu.memory_space<vmem>>, vector<1x1x32xf32>,
    %58 = vector.extract_strided_slice %53 {offsets = [1, 0], sizes = [1, 32], strides = [1, 1]} : vector<2x32xf32> to vector<1x32xf32>
    %c0_21 = arith.constant 0 : index
    %c8 = arith.constant 8 : index
    %c0_22 = arith.constant 0 : index
    %59 = vector.load %arg6[%c0_21, %c8, %c0_22] : memref<1x16x32xf32, #tpu.memory_space<vmem>>, vector<1x1x32xf32>
    %60 = vector.shape_cast %59 : vector<1x1x32xf32> to vector<1x32xf32>
    %61 = vector.shape_cast %58 : vector<1x32xf32> to vector<1x1x32xf32>
    tpu.vector_store %arg6[%c0_21, %c8, %c0_22], %61 {strides = array<i32>} : memref<1x16x32xf32, #tpu.memory_space<vmem>>, vector<1x1x32xf32>,
    %62 = vector.shape_cast %49 : vector<2x1xi1> to vector<2x1xi1>
    %63 = vector.broadcast %62 : vector<2x1xi1> to vector<2x32xi1>
    %64 = arith.select %63, %47, %24 : vector<2x32xi1>, vector<2x32xf32>
    %65 = vector.shape_cast %49 : vector<2x1xi1> to vector<2x1xi1>
    %66 = vector.broadcast %65 : vector<2x1xi1> to vector<2x32xi1>
    %67 = arith.select %66, %45, %25 : vector<2x32xi1>, vector<2x32xf32>
    %68 = arith.addf %26, %53 : vector<2x32xf32>
    %69 = vector.extract_strided_slice %8 {offsets = [2, 0], sizes = [2, 128], strides = [1, 1]} : vector<16x128xf32> to vector<2x128xf32>
    %cst_23 = arith.constant dense<0.000000e+00> : vector<2x128xf32>
    %70 = tpu.matmul %64, %10, %cst_23 {dimension_numbers = #tpu.dot_dimension_numbers<[1], [0], [0], [1], [0, 0, 1, 1], [], []>} : vector<2x32xf32>, vector<32x128xf32>, vector<2x128xf32> -> vector<2x128xf32>
    %71 = arith.addf %69, %70 : vector<2x128xf32>
    %72 = math.tanh %71 : vector<2x128xf32>
    %73 = arith.negf %71 : vector<2x128xf32>
    %74 = math.exp %73 : vector<2x128xf32>
    %cst_24 = arith.constant 1.000000e+00 : f32
    %75 = vector.broadcast %cst_24 : f32 to vector<2x128xf32>
    %76 = arith.addf %75, %74 : vector<2x128xf32>
    %77 = arith.divf %75, %76 : vector<2x128xf32>
    %78 = vector.shape_cast %23 : vector<1x128xi1> to vector<1x128xi1>
    %79 = vector.broadcast %78 : vector<1x128xi1> to vector<2x128xi1>
    %80 = arith.select %79, %72, %77 : vector<2x128xi1>, vector<2x128xf32>
    %81 = vector.extract_strided_slice %80 {offsets = [0, 0], sizes = [2, 32], strides = [1, 1]} : vector<2x128xf32> to vector<2x32xf32>
    %82 = vector.extract_strided_slice %80 {offsets = [0, 32], sizes = [2, 32], strides = [1, 1]} : vector<2x128xf32> to vector<2x32xf32>
    %83 = vector.extract_strided_slice %80 {offsets = [0, 64], sizes = [2, 32], strides = [1, 1]} : vector<2x128xf32> to vector<2x32xf32>
    %84 = vector.extract_strided_slice %80 {offsets = [0, 96], sizes = [2, 32], strides = [1, 1]} : vector<2x128xf32> to vector<2x32xf32>
    %85 = arith.mulf %82, %67 : vector<2x32xf32>
    %86 = arith.mulf %81, %83 : vector<2x32xf32>
    %87 = arith.addf %85, %86 : vector<2x32xf32>
    %88 = math.tanh %87 : vector<2x32xf32>
    %89 = arith.mulf %84, %88 : vector<2x32xf32>
    %c1_i32 = arith.constant 1 : i32
    %90 = vector.broadcast %c1_i32 : i32 to vector<2x1xi32>
    %91 = arith.cmpi sgt, %17, %90 : vector<2x1xi32>
    %cst_25 = arith.constant 0.000000e+00 : f32
    %92 = vector.shape_cast %91 : vector<2x1xi1> to vector<2x1xi1>
    %93 = vector.broadcast %92 : vector<2x1xi1> to vector<2x32xi1>
    %94 = vector.broadcast %cst_25 : f32 to vector<2x32xf32>
    %95 = arith.select %93, %89, %94 : vector<2x32xi1>, vector<2x32xf32>
    %96 = vector.extract_strided_slice %95 {offsets = [0, 0], sizes = [1, 32], strides = [1, 1]} : vector<2x32xf32> to vector<1x32xf32>
    %c0_26 = arith.constant 0 : index
    %c1_27 = arith.constant 1 : index
    %c0_28 = arith.constant 0 : index
    %97 = vector.load %arg6[%c0_26, %c1_27, %c0_28] : memref<1x16x32xf32, #tpu.memory_space<vmem>>, vector<1x1x32xf32>
    %98 = vector.shape_cast %97 : vector<1x1x32xf32> to vector<1x32xf32>
    %99 = vector.shape_cast %96 : vector<1x32xf32> to vector<1x1x32xf32>
    tpu.vector_store %arg6[%c0_26, %c1_27, %c0_28], %99 {strides = array<i32>} : memref<1x16x32xf32, #tpu.memory_space<vmem>>, vector<1x1x32xf32>,
    %100 = vector.extract_strided_slice %95 {offsets = [1, 0], sizes = [1, 32], strides = [1, 1]} : vector<2x32xf32> to vector<1x32xf32>
    %c0_29 = arith.constant 0 : index
    %c9 = arith.constant 9 : index
    %c0_30 = arith.constant 0 : index
    %101 = vector.load %arg6[%c0_29, %c9, %c0_30] : memref<1x16x32xf32, #tpu.memory_space<vmem>>, vector<1x1x32xf32>
    %102 = vector.shape_cast %101 : vector<1x1x32xf32> to vector<1x32xf32>
    %103 = vector.shape_cast %100 : vector<1x32xf32> to vector<1x1x32xf32>
    tpu.vector_store %arg6[%c0_29, %c9, %c0_30], %103 {strides = array<i32>} : memref<1x16x32xf32, #tpu.memory_space<vmem>>, vector<1x1x32xf32>,
    %104 = vector.shape_cast %91 : vector<2x1xi1> to vector<2x1xi1>
    %105 = vector.broadcast %104 : vector<2x1xi1> to vector<2x32xi1>
    %106 = arith.select %105, %89, %64 : vector<2x32xi1>, vector<2x32xf32>
    %107 = vector.shape_cast %91 : vector<2x1xi1> to vector<2x1xi1>
    %108 = vector.broadcast %107 : vector<2x1xi1> to vector<2x32xi1>
    %109 = arith.select %108, %87, %67 : vector<2x32xi1>, vector<2x32xf32>
    %110 = arith.addf %68, %95 : vector<2x32xf32>
    %111 = vector.extract_strided_slice %8 {offsets = [4, 0], sizes = [2, 128], strides = [1, 1]} : vector<16x128xf32> to vector<2x128xf32>
    %cst_31 = arith.constant dense<0.000000e+00> : vector<2x128xf32>
    %112 = tpu.matmul %106, %10, %cst_31 {dimension_numbers = #tpu.dot_dimension_numbers<[1], [0], [0], [1], [0, 0, 1, 1], [], []>} : vector<2x32xf32>, vector<32x128xf32>, vector<2x128xf32> -> vector<2x128xf32>
    %113 = arith.addf %111, %112 : vector<2x128xf32>
    %114 = math.tanh %113 : vector<2x128xf32>
    %115 = arith.negf %113 : vector<2x128xf32>
    %116 = math.exp %115 : vector<2x128xf32>
    %cst_32 = arith.constant 1.000000e+00 : f32
    %117 = vector.broadcast %cst_32 : f32 to vector<2x128xf32>
    %118 = arith.addf %117, %116 : vector<2x128xf32>
    %119 = arith.divf %117, %118 : vector<2x128xf32>
    %120 = vector.shape_cast %23 : vector<1x128xi1> to vector<1x128xi1>
    %121 = vector.broadcast %120 : vector<1x128xi1> to vector<2x128xi1>
    %122 = arith.select %121, %114, %119 : vector<2x128xi1>, vector<2x128xf32>
    %123 = vector.extract_strided_slice %122 {offsets = [0, 0], sizes = [2, 32], strides = [1, 1]} : vector<2x128xf32> to vector<2x32xf32>
    %124 = vector.extract_strided_slice %122 {offsets = [0, 32], sizes = [2, 32], strides = [1, 1]} : vector<2x128xf32> to vector<2x32xf32>
    %125 = vector.extract_strided_slice %122 {offsets = [0, 64], sizes = [2, 32], strides = [1, 1]} : vector<2x128xf32> to vector<2x32xf32>
    %126 = vector.extract_strided_slice %122 {offsets = [0, 96], sizes = [2, 32], strides = [1, 1]} : vector<2x128xf32> to vector<2x32xf32>
    %127 = arith.mulf %124, %109 : vector<2x32xf32>
    %128 = arith.mulf %123, %125 : vector<2x32xf32>
    %129 = arith.addf %127, %128 : vector<2x32xf32>
    %130 = math.tanh %129 : vector<2x32xf32>
    %131 = arith.mulf %126, %130 : vector<2x32xf32>
    %c2_i32 = arith.constant 2 : i32
    %132 = vector.broadcast %c2_i32 : i32 to vector<2x1xi32>
    %133 = arith.cmpi sgt, %17, %132 : vector<2x1xi32>
    %cst_33 = arith.constant 0.000000e+00 : f32
    %134 = vector.shape_cast %133 : vector<2x1xi1> to vector<2x1xi1>
    %135 = vector.broadcast %134 : vector<2x1xi1> to vector<2x32xi1>
    %136 = vector.broadcast %cst_33 : f32 to vector<2x32xf32>
    %137 = arith.select %135, %131, %136 : vector<2x32xi1>, vector<2x32xf32>
    %138 = vector.extract_strided_slice %137 {offsets = [0, 0], sizes = [1, 32], strides = [1, 1]} : vector<2x32xf32> to vector<1x32xf32>
    %c0_34 = arith.constant 0 : index
    %c2 = arith.constant 2 : index
    %c0_35 = arith.constant 0 : index
    %139 = vector.load %arg6[%c0_34, %c2, %c0_35] : memref<1x16x32xf32, #tpu.memory_space<vmem>>, vector<1x1x32xf32>
    %140 = vector.shape_cast %139 : vector<1x1x32xf32> to vector<1x32xf32>
    %141 = vector.shape_cast %138 : vector<1x32xf32> to vector<1x1x32xf32>
    tpu.vector_store %arg6[%c0_34, %c2, %c0_35], %141 {strides = array<i32>} : memref<1x16x32xf32, #tpu.memory_space<vmem>>, vector<1x1x32xf32>,
    %142 = vector.extract_strided_slice %137 {offsets = [1, 0], sizes = [1, 32], strides = [1, 1]} : vector<2x32xf32> to vector<1x32xf32>
    %c0_36 = arith.constant 0 : index
    %c10 = arith.constant 10 : index
    %c0_37 = arith.constant 0 : index
    %143 = vector.load %arg6[%c0_36, %c10, %c0_37] : memref<1x16x32xf32, #tpu.memory_space<vmem>>, vector<1x1x32xf32>
    %144 = vector.shape_cast %143 : vector<1x1x32xf32> to vector<1x32xf32>
    %145 = vector.shape_cast %142 : vector<1x32xf32> to vector<1x1x32xf32>
    tpu.vector_store %arg6[%c0_36, %c10, %c0_37], %145 {strides = array<i32>} : memref<1x16x32xf32, #tpu.memory_space<vmem>>, vector<1x1x32xf32>,
    %146 = vector.shape_cast %133 : vector<2x1xi1> to vector<2x1xi1>
    %147 = vector.broadcast %146 : vector<2x1xi1> to vector<2x32xi1>
    %148 = arith.select %147, %131, %106 : vector<2x32xi1>, vector<2x32xf32>
    %149 = vector.shape_cast %133 : vector<2x1xi1> to vector<2x1xi1>
    %150 = vector.broadcast %149 : vector<2x1xi1> to vector<2x32xi1>
    %151 = arith.select %150, %129, %109 : vector<2x32xi1>, vector<2x32xf32>
    %152 = arith.addf %110, %137 : vector<2x32xf32>
    %153 = vector.extract_strided_slice %8 {offsets = [6, 0], sizes = [2, 128], strides = [1, 1]} : vector<16x128xf32> to vector<2x128xf32>
    %cst_38 = arith.constant dense<0.000000e+00> : vector<2x128xf32>
    %154 = tpu.matmul %148, %10, %cst_38 {dimension_numbers = #tpu.dot_dimension_numbers<[1], [0], [0], [1], [0, 0, 1, 1], [], []>} : vector<2x32xf32>, vector<32x128xf32>, vector<2x128xf32> -> vector<2x128xf32>
    %155 = arith.addf %153, %154 : vector<2x128xf32>
    %156 = math.tanh %155 : vector<2x128xf32>
    %157 = arith.negf %155 : vector<2x128xf32>
    %158 = math.exp %157 : vector<2x128xf32>
    %cst_39 = arith.constant 1.000000e+00 : f32
    %159 = vector.broadcast %cst_39 : f32 to vector<2x128xf32>
    %160 = arith.addf %159, %158 : vector<2x128xf32>
    %161 = arith.divf %159, %160 : vector<2x128xf32>
    %162 = vector.shape_cast %23 : vector<1x128xi1> to vector<1x128xi1>
    %163 = vector.broadcast %162 : vector<1x128xi1> to vector<2x128xi1>
    %164 = arith.select %163, %156, %161 : vector<2x128xi1>, vector<2x128xf32>
    %165 = vector.extract_strided_slice %164 {offsets = [0, 0], sizes = [2, 32], strides = [1, 1]} : vector<2x128xf32> to vector<2x32xf32>
    %166 = vector.extract_strided_slice %164 {offsets = [0, 32], sizes = [2, 32], strides = [1, 1]} : vector<2x128xf32> to vector<2x32xf32>
    %167 = vector.extract_strided_slice %164 {offsets = [0, 64], sizes = [2, 32], strides = [1, 1]} : vector<2x128xf32> to vector<2x32xf32>
    %168 = vector.extract_strided_slice %164 {offsets = [0, 96], sizes = [2, 32], strides = [1, 1]} : vector<2x128xf32> to vector<2x32xf32>
    %169 = arith.mulf %166, %151 : vector<2x32xf32>
    %170 = arith.mulf %165, %167 : vector<2x32xf32>
    %171 = arith.addf %169, %170 : vector<2x32xf32>
    %172 = math.tanh %171 : vector<2x32xf32>
    %173 = arith.mulf %168, %172 : vector<2x32xf32>
    %c3_i32 = arith.constant 3 : i32
    %174 = vector.broadcast %c3_i32 : i32 to vector<2x1xi32>
    %175 = arith.cmpi sgt, %17, %174 : vector<2x1xi32>
    %cst_40 = arith.constant 0.000000e+00 : f32
    %176 = vector.shape_cast %175 : vector<2x1xi1> to vector<2x1xi1>
    %177 = vector.broadcast %176 : vector<2x1xi1> to vector<2x32xi1>
    %178 = vector.broadcast %cst_40 : f32 to vector<2x32xf32>
    %179 = arith.select %177, %173, %178 : vector<2x32xi1>, vector<2x32xf32>
    %180 = vector.extract_strided_slice %179 {offsets = [0, 0], sizes = [1, 32], strides = [1, 1]} : vector<2x32xf32> to vector<1x32xf32>
    %c0_41 = arith.constant 0 : index
    %c3 = arith.constant 3 : index
    %c0_42 = arith.constant 0 : index
    %181 = vector.load %arg6[%c0_41, %c3, %c0_42] : memref<1x16x32xf32, #tpu.memory_space<vmem>>, vector<1x1x32xf32>
    %182 = vector.shape_cast %181 : vector<1x1x32xf32> to vector<1x32xf32>
    %183 = vector.shape_cast %180 : vector<1x32xf32> to vector<1x1x32xf32>
    tpu.vector_store %arg6[%c0_41, %c3, %c0_42], %183 {strides = array<i32>} : memref<1x16x32xf32, #tpu.memory_space<vmem>>, vector<1x1x32xf32>,
    %184 = vector.extract_strided_slice %179 {offsets = [1, 0], sizes = [1, 32], strides = [1, 1]} : vector<2x32xf32> to vector<1x32xf32>
    %c0_43 = arith.constant 0 : index
    %c11 = arith.constant 11 : index
    %c0_44 = arith.constant 0 : index
    %185 = vector.load %arg6[%c0_43, %c11, %c0_44] : memref<1x16x32xf32, #tpu.memory_space<vmem>>, vector<1x1x32xf32>
    %186 = vector.shape_cast %185 : vector<1x1x32xf32> to vector<1x32xf32>
    %187 = vector.shape_cast %184 : vector<1x32xf32> to vector<1x1x32xf32>
    tpu.vector_store %arg6[%c0_43, %c11, %c0_44], %187 {strides = array<i32>} : memref<1x16x32xf32, #tpu.memory_space<vmem>>, vector<1x1x32xf32>,
    %188 = vector.shape_cast %175 : vector<2x1xi1> to vector<2x1xi1>
    %189 = vector.broadcast %188 : vector<2x1xi1> to vector<2x32xi1>
    %190 = arith.select %189, %173, %148 : vector<2x32xi1>, vector<2x32xf32>
    %191 = vector.shape_cast %175 : vector<2x1xi1> to vector<2x1xi1>
    %192 = vector.broadcast %191 : vector<2x1xi1> to vector<2x32xi1>
    %193 = arith.select %192, %171, %151 : vector<2x32xi1>, vector<2x32xf32>
    %194 = arith.addf %152, %179 : vector<2x32xf32>
    %195 = vector.extract_strided_slice %8 {offsets = [8, 0], sizes = [2, 128], strides = [1, 1]} : vector<16x128xf32> to vector<2x128xf32>
    %cst_45 = arith.constant dense<0.000000e+00> : vector<2x128xf32>
    %196 = tpu.matmul %190, %10, %cst_45 {dimension_numbers = #tpu.dot_dimension_numbers<[1], [0], [0], [1], [0, 0, 1, 1], [], []>} : vector<2x32xf32>, vector<32x128xf32>, vector<2x128xf32> -> vector<2x128xf32>
    %197 = arith.addf %195, %196 : vector<2x128xf32>
    %198 = math.tanh %197 : vector<2x128xf32>
    %199 = arith.negf %197 : vector<2x128xf32>
    %200 = math.exp %199 : vector<2x128xf32>
    %cst_46 = arith.constant 1.000000e+00 : f32
    %201 = vector.broadcast %cst_46 : f32 to vector<2x128xf32>
    %202 = arith.addf %201, %200 : vector<2x128xf32>
    %203 = arith.divf %201, %202 : vector<2x128xf32>
    %204 = vector.shape_cast %23 : vector<1x128xi1> to vector<1x128xi1>
    %205 = vector.broadcast %204 : vector<1x128xi1> to vector<2x128xi1>
    %206 = arith.select %205, %198, %203 : vector<2x128xi1>, vector<2x128xf32>
    %207 = vector.extract_strided_slice %206 {offsets = [0, 0], sizes = [2, 32], strides = [1, 1]} : vector<2x128xf32> to vector<2x32xf32>
    %208 = vector.extract_strided_slice %206 {offsets = [0, 32], sizes = [2, 32], strides = [1, 1]} : vector<2x128xf32> to vector<2x32xf32>
    %209 = vector.extract_strided_slice %206 {offsets = [0, 64], sizes = [2, 32], strides = [1, 1]} : vector<2x128xf32> to vector<2x32xf32>
    %210 = vector.extract_strided_slice %206 {offsets = [0, 96], sizes = [2, 32], strides = [1, 1]} : vector<2x128xf32> to vector<2x32xf32>
    %211 = arith.mulf %208, %193 : vector<2x32xf32>
    %212 = arith.mulf %207, %209 : vector<2x32xf32>
    %213 = arith.addf %211, %212 : vector<2x32xf32>
    %214 = math.tanh %213 : vector<2x32xf32>
    %215 = arith.mulf %210, %214 : vector<2x32xf32>
    %c4_i32 = arith.constant 4 : i32
    %216 = vector.broadcast %c4_i32 : i32 to vector<2x1xi32>
    %217 = arith.cmpi sgt, %17, %216 : vector<2x1xi32>
    %cst_47 = arith.constant 0.000000e+00 : f32
    %218 = vector.shape_cast %217 : vector<2x1xi1> to vector<2x1xi1>
    %219 = vector.broadcast %218 : vector<2x1xi1> to vector<2x32xi1>
    %220 = vector.broadcast %cst_47 : f32 to vector<2x32xf32>
    %221 = arith.select %219, %215, %220 : vector<2x32xi1>, vector<2x32xf32>
    %222 = vector.extract_strided_slice %221 {offsets = [0, 0], sizes = [1, 32], strides = [1, 1]} : vector<2x32xf32> to vector<1x32xf32>
    %c0_48 = arith.constant 0 : index
    %c4 = arith.constant 4 : index
    %c0_49 = arith.constant 0 : index
    %223 = vector.load %arg6[%c0_48, %c4, %c0_49] : memref<1x16x32xf32, #tpu.memory_space<vmem>>, vector<1x1x32xf32>
    %224 = vector.shape_cast %223 : vector<1x1x32xf32> to vector<1x32xf32>
    %225 = vector.shape_cast %222 : vector<1x32xf32> to vector<1x1x32xf32>
    tpu.vector_store %arg6[%c0_48, %c4, %c0_49], %225 {strides = array<i32>} : memref<1x16x32xf32, #tpu.memory_space<vmem>>, vector<1x1x32xf32>,
    %226 = vector.extract_strided_slice %221 {offsets = [1, 0], sizes = [1, 32], strides = [1, 1]} : vector<2x32xf32> to vector<1x32xf32>
    %c0_50 = arith.constant 0 : index
    %c12 = arith.constant 12 : index
    %c0_51 = arith.constant 0 : index
    %227 = vector.load %arg6[%c0_50, %c12, %c0_51] : memref<1x16x32xf32, #tpu.memory_space<vmem>>, vector<1x1x32xf32>
    %228 = vector.shape_cast %227 : vector<1x1x32xf32> to vector<1x32xf32>
    %229 = vector.shape_cast %226 : vector<1x32xf32> to vector<1x1x32xf32>
    tpu.vector_store %arg6[%c0_50, %c12, %c0_51], %229 {strides = array<i32>} : memref<1x16x32xf32, #tpu.memory_space<vmem>>, vector<1x1x32xf32>,
    %230 = vector.shape_cast %217 : vector<2x1xi1> to vector<2x1xi1>
    %231 = vector.broadcast %230 : vector<2x1xi1> to vector<2x32xi1>
    %232 = arith.select %231, %215, %190 : vector<2x32xi1>, vector<2x32xf32>
    %233 = vector.shape_cast %217 : vector<2x1xi1> to vector<2x1xi1>
    %234 = vector.broadcast %233 : vector<2x1xi1> to vector<2x32xi1>
    %235 = arith.select %234, %213, %193 : vector<2x32xi1>, vector<2x32xf32>
    %236 = arith.addf %194, %221 : vector<2x32xf32>
    %237 = vector.extract_strided_slice %8 {offsets = [10, 0], sizes = [2, 128], strides = [1, 1]} : vector<16x128xf32> to vector<2x128xf32>
    %cst_52 = arith.constant dense<0.000000e+00> : vector<2x128xf32>
    %238 = tpu.matmul %232, %10, %cst_52 {dimension_numbers = #tpu.dot_dimension_numbers<[1], [0], [0], [1], [0, 0, 1, 1], [], []>} : vector<2x32xf32>, vector<32x128xf32>, vector<2x128xf32> -> vector<2x128xf32>
    %239 = arith.addf %237, %238 : vector<2x128xf32>
    %240 = math.tanh %239 : vector<2x128xf32>
    %241 = arith.negf %239 : vector<2x128xf32>
    %242 = math.exp %241 : vector<2x128xf32>
    %cst_53 = arith.constant 1.000000e+00 : f32
    %243 = vector.broadcast %cst_53 : f32 to vector<2x128xf32>
    %244 = arith.addf %243, %242 : vector<2x128xf32>
    %245 = arith.divf %243, %244 : vector<2x128xf32>
    %246 = vector.shape_cast %23 : vector<1x128xi1> to vector<1x128xi1>
    %247 = vector.broadcast %246 : vector<1x128xi1> to vector<2x128xi1>
    %248 = arith.select %247, %240, %245 : vector<2x128xi1>, vector<2x128xf32>
    %249 = vector.extract_strided_slice %248 {offsets = [0, 0], sizes = [2, 32], strides = [1, 1]} : vector<2x128xf32> to vector<2x32xf32>
    %250 = vector.extract_strided_slice %248 {offsets = [0, 32], sizes = [2, 32], strides = [1, 1]} : vector<2x128xf32> to vector<2x32xf32>
    %251 = vector.extract_strided_slice %248 {offsets = [0, 64], sizes = [2, 32], strides = [1, 1]} : vector<2x128xf32> to vector<2x32xf32>
    %252 = vector.extract_strided_slice %248 {offsets = [0, 96], sizes = [2, 32], strides = [1, 1]} : vector<2x128xf32> to vector<2x32xf32>
    %253 = arith.mulf %250, %235 : vector<2x32xf32>
    %254 = arith.mulf %249, %251 : vector<2x32xf32>
    %255 = arith.addf %253, %254 : vector<2x32xf32>
    %256 = math.tanh %255 : vector<2x32xf32>
    %257 = arith.mulf %252, %256 : vector<2x32xf32>
    %c5_i32 = arith.constant 5 : i32
    %258 = vector.broadcast %c5_i32 : i32 to vector<2x1xi32>
    %259 = arith.cmpi sgt, %17, %258 : vector<2x1xi32>
    %cst_54 = arith.constant 0.000000e+00 : f32
    %260 = vector.shape_cast %259 : vector<2x1xi1> to vector<2x1xi1>
    %261 = vector.broadcast %260 : vector<2x1xi1> to vector<2x32xi1>
    %262 = vector.broadcast %cst_54 : f32 to vector<2x32xf32>
    %263 = arith.select %261, %257, %262 : vector<2x32xi1>, vector<2x32xf32>
    %264 = vector.extract_strided_slice %263 {offsets = [0, 0], sizes = [1, 32], strides = [1, 1]} : vector<2x32xf32> to vector<1x32xf32>
    %c0_55 = arith.constant 0 : index
    %c5 = arith.constant 5 : index
    %c0_56 = arith.constant 0 : index
    %265 = vector.load %arg6[%c0_55, %c5, %c0_56] : memref<1x16x32xf32, #tpu.memory_space<vmem>>, vector<1x1x32xf32>
    %266 = vector.shape_cast %265 : vector<1x1x32xf32> to vector<1x32xf32>
    %267 = vector.shape_cast %264 : vector<1x32xf32> to vector<1x1x32xf32>
    tpu.vector_store %arg6[%c0_55, %c5, %c0_56], %267 {strides = array<i32>} : memref<1x16x32xf32, #tpu.memory_space<vmem>>, vector<1x1x32xf32>,
    %268 = vector.extract_strided_slice %263 {offsets = [1, 0], sizes = [1, 32], strides = [1, 1]} : vector<2x32xf32> to vector<1x32xf32>
    %c0_57 = arith.constant 0 : index
    %c13 = arith.constant 13 : index
    %c0_58 = arith.constant 0 : index
    %269 = vector.load %arg6[%c0_57, %c13, %c0_58] : memref<1x16x32xf32, #tpu.memory_space<vmem>>, vector<1x1x32xf32>
    %270 = vector.shape_cast %269 : vector<1x1x32xf32> to vector<1x32xf32>
    %271 = vector.shape_cast %268 : vector<1x32xf32> to vector<1x1x32xf32>
    tpu.vector_store %arg6[%c0_57, %c13, %c0_58], %271 {strides = array<i32>} : memref<1x16x32xf32, #tpu.memory_space<vmem>>, vector<1x1x32xf32>,
    %272 = vector.shape_cast %259 : vector<2x1xi1> to vector<2x1xi1>
    %273 = vector.broadcast %272 : vector<2x1xi1> to vector<2x32xi1>
    %274 = arith.select %273, %257, %232 : vector<2x32xi1>, vector<2x32xf32>
    %275 = vector.shape_cast %259 : vector<2x1xi1> to vector<2x1xi1>
    %276 = vector.broadcast %275 : vector<2x1xi1> to vector<2x32xi1>
    %277 = arith.select %276, %255, %235 : vector<2x32xi1>, vector<2x32xf32>
    %278 = arith.addf %236, %263 : vector<2x32xf32>
    %279 = vector.extract_strided_slice %8 {offsets = [12, 0], sizes = [2, 128], strides = [1, 1]} : vector<16x128xf32> to vector<2x128xf32>
    %cst_59 = arith.constant dense<0.000000e+00> : vector<2x128xf32>
    %280 = tpu.matmul %274, %10, %cst_59 {dimension_numbers = #tpu.dot_dimension_numbers<[1], [0], [0], [1], [0, 0, 1, 1], [], []>} : vector<2x32xf32>, vector<32x128xf32>, vector<2x128xf32> -> vector<2x128xf32>
    %281 = arith.addf %279, %280 : vector<2x128xf32>
    %282 = math.tanh %281 : vector<2x128xf32>
    %283 = arith.negf %281 : vector<2x128xf32>
    %284 = math.exp %283 : vector<2x128xf32>
    %cst_60 = arith.constant 1.000000e+00 : f32
    %285 = vector.broadcast %cst_60 : f32 to vector<2x128xf32>
    %286 = arith.addf %285, %284 : vector<2x128xf32>
    %287 = arith.divf %285, %286 : vector<2x128xf32>
    %288 = vector.shape_cast %23 : vector<1x128xi1> to vector<1x128xi1>
    %289 = vector.broadcast %288 : vector<1x128xi1> to vector<2x128xi1>
    %290 = arith.select %289, %282, %287 : vector<2x128xi1>, vector<2x128xf32>
    %291 = vector.extract_strided_slice %290 {offsets = [0, 0], sizes = [2, 32], strides = [1, 1]} : vector<2x128xf32> to vector<2x32xf32>
    %292 = vector.extract_strided_slice %290 {offsets = [0, 32], sizes = [2, 32], strides = [1, 1]} : vector<2x128xf32> to vector<2x32xf32>
    %293 = vector.extract_strided_slice %290 {offsets = [0, 64], sizes = [2, 32], strides = [1, 1]} : vector<2x128xf32> to vector<2x32xf32>
    %294 = vector.extract_strided_slice %290 {offsets = [0, 96], sizes = [2, 32], strides = [1, 1]} : vector<2x128xf32> to vector<2x32xf32>
    %295 = arith.mulf %292, %277 : vector<2x32xf32>
    %296 = arith.mulf %291, %293 : vector<2x32xf32>
    %297 = arith.addf %295, %296 : vector<2x32xf32>
    %298 = math.tanh %297 : vector<2x32xf32>
    %299 = arith.mulf %294, %298 : vector<2x32xf32>
    %c6_i32 = arith.constant 6 : i32
    %300 = vector.broadcast %c6_i32 : i32 to vector<2x1xi32>
    %301 = arith.cmpi sgt, %17, %300 : vector<2x1xi32>
    %cst_61 = arith.constant 0.000000e+00 : f32
    %302 = vector.shape_cast %301 : vector<2x1xi1> to vector<2x1xi1>
    %303 = vector.broadcast %302 : vector<2x1xi1> to vector<2x32xi1>
    %304 = vector.broadcast %cst_61 : f32 to vector<2x32xf32>
    %305 = arith.select %303, %299, %304 : vector<2x32xi1>, vector<2x32xf32>
    %306 = vector.extract_strided_slice %305 {offsets = [0, 0], sizes = [1, 32], strides = [1, 1]} : vector<2x32xf32> to vector<1x32xf32>
    %c0_62 = arith.constant 0 : index
    %c6 = arith.constant 6 : index
    %c0_63 = arith.constant 0 : index
    %307 = vector.load %arg6[%c0_62, %c6, %c0_63] : memref<1x16x32xf32, #tpu.memory_space<vmem>>, vector<1x1x32xf32>
    %308 = vector.shape_cast %307 : vector<1x1x32xf32> to vector<1x32xf32>
    %309 = vector.shape_cast %306 : vector<1x32xf32> to vector<1x1x32xf32>
    tpu.vector_store %arg6[%c0_62, %c6, %c0_63], %309 {strides = array<i32>} : memref<1x16x32xf32, #tpu.memory_space<vmem>>, vector<1x1x32xf32>,
    %310 = vector.extract_strided_slice %305 {offsets = [1, 0], sizes = [1, 32], strides = [1, 1]} : vector<2x32xf32> to vector<1x32xf32>
    %c0_64 = arith.constant 0 : index
    %c14 = arith.constant 14 : index
    %c0_65 = arith.constant 0 : index
    %311 = vector.load %arg6[%c0_64, %c14, %c0_65] : memref<1x16x32xf32, #tpu.memory_space<vmem>>, vector<1x1x32xf32>
    %312 = vector.shape_cast %311 : vector<1x1x32xf32> to vector<1x32xf32>
    %313 = vector.shape_cast %310 : vector<1x32xf32> to vector<1x1x32xf32>
    tpu.vector_store %arg6[%c0_64, %c14, %c0_65], %313 {strides = array<i32>} : memref<1x16x32xf32, #tpu.memory_space<vmem>>, vector<1x1x32xf32>,
    %314 = vector.shape_cast %301 : vector<2x1xi1> to vector<2x1xi1>
    %315 = vector.broadcast %314 : vector<2x1xi1> to vector<2x32xi1>
    %316 = arith.select %315, %299, %274 : vector<2x32xi1>, vector<2x32xf32>
    %317 = vector.shape_cast %301 : vector<2x1xi1> to vector<2x1xi1>
    %318 = vector.broadcast %317 : vector<2x1xi1> to vector<2x32xi1>
    %319 = arith.select %318, %297, %277 : vector<2x32xi1>, vector<2x32xf32>
    %320 = arith.addf %278, %305 : vector<2x32xf32>
    %321 = vector.extract_strided_slice %8 {offsets = [14, 0], sizes = [2, 128], strides = [1, 1]} : vector<16x128xf32> to vector<2x128xf32>
    %cst_66 = arith.constant dense<0.000000e+00> : vector<2x128xf32>
    %322 = tpu.matmul %316, %10, %cst_66 {dimension_numbers = #tpu.dot_dimension_numbers<[1], [0], [0], [1], [0, 0, 1, 1], [], []>} : vector<2x32xf32>, vector<32x128xf32>, vector<2x128xf32> -> vector<2x128xf32>
    %323 = arith.addf %321, %322 : vector<2x128xf32>
    %324 = math.tanh %323 : vector<2x128xf32>
    %325 = arith.negf %323 : vector<2x128xf32>
    %326 = math.exp %325 : vector<2x128xf32>
    %cst_67 = arith.constant 1.000000e+00 : f32
    %327 = vector.broadcast %cst_67 : f32 to vector<2x128xf32>
    %328 = arith.addf %327, %326 : vector<2x128xf32>
    %329 = arith.divf %327, %328 : vector<2x128xf32>
    %330 = vector.shape_cast %23 : vector<1x128xi1> to vector<1x128xi1>
    %331 = vector.broadcast %330 : vector<1x128xi1> to vector<2x128xi1>
    %332 = arith.select %331, %324, %329 : vector<2x128xi1>, vector<2x128xf32>
    %333 = vector.extract_strided_slice %332 {offsets = [0, 0], sizes = [2, 32], strides = [1, 1]} : vector<2x128xf32> to vector<2x32xf32>
    %334 = vector.extract_strided_slice %332 {offsets = [0, 32], sizes = [2, 32], strides = [1, 1]} : vector<2x128xf32> to vector<2x32xf32>
    %335 = vector.extract_strided_slice %332 {offsets = [0, 64], sizes = [2, 32], strides = [1, 1]} : vector<2x128xf32> to vector<2x32xf32>
    %336 = vector.extract_strided_slice %332 {offsets = [0, 96], sizes = [2, 32], strides = [1, 1]} : vector<2x128xf32> to vector<2x32xf32>
    %337 = arith.mulf %334, %319 : vector<2x32xf32>
    %338 = arith.mulf %333, %335 : vector<2x32xf32>
    %339 = arith.addf %337, %338 : vector<2x32xf32>
    %340 = math.tanh %339 : vector<2x32xf32>
    %341 = arith.mulf %336, %340 : vector<2x32xf32>
    %c7_i32 = arith.constant 7 : i32
    %342 = vector.broadcast %c7_i32 : i32 to vector<2x1xi32>
    %343 = arith.cmpi sgt, %17, %342 : vector<2x1xi32>
    %cst_68 = arith.constant 0.000000e+00 : f32
    %344 = vector.shape_cast %343 : vector<2x1xi1> to vector<2x1xi1>
    %345 = vector.broadcast %344 : vector<2x1xi1> to vector<2x32xi1>
    %346 = vector.broadcast %cst_68 : f32 to vector<2x32xf32>
    %347 = arith.select %345, %341, %346 : vector<2x32xi1>, vector<2x32xf32>
    %348 = vector.extract_strided_slice %347 {offsets = [0, 0], sizes = [1, 32], strides = [1, 1]} : vector<2x32xf32> to vector<1x32xf32>
    %c0_69 = arith.constant 0 : index
    %c7 = arith.constant 7 : index
    %c0_70 = arith.constant 0 : index
    %349 = vector.load %arg6[%c0_69, %c7, %c0_70] : memref<1x16x32xf32, #tpu.memory_space<vmem>>, vector<1x1x32xf32>
    %350 = vector.shape_cast %349 : vector<1x1x32xf32> to vector<1x32xf32>
    %351 = vector.shape_cast %348 : vector<1x32xf32> to vector<1x1x32xf32>
    tpu.vector_store %arg6[%c0_69, %c7, %c0_70], %351 {strides = array<i32>} : memref<1x16x32xf32, #tpu.memory_space<vmem>>, vector<1x1x32xf32>,
    %352 = vector.extract_strided_slice %347 {offsets = [1, 0], sizes = [1, 32], strides = [1, 1]} : vector<2x32xf32> to vector<1x32xf32>
    %c0_71 = arith.constant 0 : index
    %c15 = arith.constant 15 : index
    %c0_72 = arith.constant 0 : index
    %353 = vector.load %arg6[%c0_71, %c15, %c0_72] : memref<1x16x32xf32, #tpu.memory_space<vmem>>, vector<1x1x32xf32>
    %354 = vector.shape_cast %353 : vector<1x1x32xf32> to vector<1x32xf32>
    %355 = vector.shape_cast %352 : vector<1x32xf32> to vector<1x1x32xf32>
    tpu.vector_store %arg6[%c0_71, %c15, %c0_72], %355 {strides = array<i32>} : memref<1x16x32xf32, #tpu.memory_space<vmem>>, vector<1x1x32xf32>,
    %356 = arith.addf %320, %347 : vector<2x32xf32>
    %c0_73 = arith.constant 0 : index
    %c0_74 = arith.constant 0 : index
    %c0_75 = arith.constant 0 : index
    %357 = vector.load %arg7[%c0_73, %c0_74, %c0_75] : memref<1x2x32xf32, #tpu.memory_space<vmem>>, vector<1x2x32xf32>
    %358 = vector.shape_cast %357 : vector<1x2x32xf32> to vector<2x32xf32>
    %359 = vector.shape_cast %356 : vector<2x32xf32> to vector<1x2x32xf32>
    tpu.vector_store %arg7[%c0_73, %c0_74, %c0_75], %359 {strides = array<i32>} : memref<1x2x32xf32, #tpu.memory_space<vmem>>, vector<1x2x32xf32>,
    return
  }
  func.func @transform_0(%arg0: i32) -> (i32, i32) {
    %c0_i32 = arith.constant 0 : i32
    %c0_i32_0 = arith.constant 0 : i32
    %c0_i32_1 = arith.constant 0 : i32
    return %c0_i32, %c0_i32_0 : i32, i32
  }
  func.func @transform_1(%arg0: i32) -> (i32, i32, i32) {
    %c0_i32 = arith.constant 0 : i32
    %c0_i32_0 = arith.constant 0 : i32
    %c0_i32_1 = arith.constant 0 : i32
    return %arg0, %c0_i32, %c0_i32_0 : i32, i32, i32
  }
  func.func @transform_2(%arg0: i32) -> (i32, i32, i32) {
    %c0_i32 = arith.constant 0 : i32
    %c0_i32_0 = arith.constant 0 : i32
    %c0_i32_1 = arith.constant 0 : i32
    return %arg0, %c0_i32, %c0_i32_0 : i32, i32, i32
  }
  func.func @transform_3(%arg0: i32) -> (i32, i32, i32) {
    %c0_i32 = arith.constant 0 : i32
    %c0_i32_0 = arith.constant 0 : i32
    %c0_i32_1 = arith.constant 0 : i32
    return %arg0, %c0_i32, %c0_i32_0 : i32, i32, i32
  }
  func.func @transform_4(%arg0: i32) -> (i32, i32, i32) {
    %c0_i32 = arith.constant 0 : i32
    %c0_i32_0 = arith.constant 0 : i32
    %c0_i32_1 = arith.constant 0 : i32
    return %arg0, %c0_i32, %c0_i32_0 : i32, i32, i32
  }
  func.func @transform_5(%arg0: i32) -> (i32, i32, i32) {
    %c0_i32 = arith.constant 0 : i32
    %c0_i32_0 = arith.constant 0 : i32
    %c0_i32_1 = arith.constant 0 : i32
    return %arg0, %c0_i32, %c0_i32_0 : i32, i32, i32
  }
  func.func @transform_6(%arg0: i32) -> (i32, i32, i32) {
    %c0_i32 = arith.constant 0 : i32
    %c0_i32_0 = arith.constant 0 : i32
    %c0_i32_1 = arith.constant 0 : i32
    return %arg0, %c0_i32, %c0_i32_0 : i32, i32, i32
  }
}

module attributes {stable_mosaic.version = 11 : i64} {
  func.func @_head_kernel(%arg0: memref<3x2xi32, #tpu.memory_space<smem>>, %arg1: memref<3x16x32xf32, #tpu.memory_space<vmem>>, %arg2: memref<3x2x32xf32, #tpu.memory_space<vmem>>, %arg3: memref<2x2048x49xf32, #tpu.memory_space<vmem>>, %arg4: memref<2x32x32xf32, #tpu.memory_space<vmem>>, %arg5: memref<2x1x32xf32, #tpu.memory_space<vmem>>, %arg6: memref<2x32x32xf32, #tpu.memory_space<vmem>>, %arg7: memref<2x1x32xf32, #tpu.memory_space<vmem>>, %arg8: memref<2x32x32xf32, #tpu.memory_space<vmem>>, %arg9: memref<2x32x32xf32, #tpu.memory_space<vmem>>, %arg10: memref<2x1x32xf32, #tpu.memory_space<vmem>>, %arg11: memref<32x32xf32, #tpu.memory_space<vmem>>, %arg12: memref<32x1xf32, #tpu.memory_space<vmem>>, %arg13: memref<32x2048xf32, #tpu.memory_space<vmem>>, %arg14: memref<32x1xf32, #tpu.memory_space<vmem>>, %arg15: memref<2048x32xf32, #tpu.memory_space<vmem>>, %arg16: memref<1x32xf32, #tpu.memory_space<vmem>>, %arg17: memref<2144x32xf32, #tpu.memory_space<vmem>>, %arg18: memref<1x32xf32, #tpu.memory_space<vmem>>, %arg19: memref<1x32xf32, #tpu.memory_space<vmem>>, %arg20: memref<1x1xf32, #tpu.memory_space<vmem>>, %arg21: memref<128x3xf32, #tpu.memory_space<vmem>>, %arg22: memref<1x3xf32, #tpu.memory_space<vmem>>, %arg23: memref<2x3xf32, #tpu.memory_space<vmem>>, %arg24: memref<2x49xf32, #tpu.memory_space<vmem>>) attributes {dimension_semantics = [], scalar_prefetch = 0 : i64, scratch_operands = 0 : i64, tpu.core_type = #tpu.core_type<tc>} {
    %c0 = arith.constant 0 : index
    %c0_0 = arith.constant 0 : index
    %c0_1 = arith.constant 0 : index
    %0 = vector.load %arg2[%c0, %c0_0, %c0_1] : memref<3x2x32xf32, #tpu.memory_space<vmem>>, vector<1x2x32xf32>
    %1 = vector.shape_cast %0 : vector<1x2x32xf32> to vector<2x32xf32>
    %2 = vector.extract_strided_slice %1 {offsets = [0, 0], sizes = [1, 32], strides = [1, 1]} : vector<2x32xf32> to vector<1x32xf32>
    %c0_2 = arith.constant 0 : index
    %c0_3 = arith.constant 0 : index
    %3 = memref.load %arg0[%c0_2, %c0_3] : memref<3x2xi32, #tpu.memory_space<smem>>
    %4 = arith.sitofp %3 : i32 to f32
    %5 = vector.broadcast %4 : f32 to vector<1x32xf32>
    %6 = arith.divf %2, %5 : vector<1x32xf32>
    %7 = vector.extract_strided_slice %1 {offsets = [1, 0], sizes = [1, 32], strides = [1, 1]} : vector<2x32xf32> to vector<1x32xf32>
    %c0_4 = arith.constant 0 : index
    %c1 = arith.constant 1 : index
    %8 = memref.load %arg0[%c0_4, %c1] : memref<3x2xi32, #tpu.memory_space<smem>>
    %9 = arith.sitofp %8 : i32 to f32
    %10 = vector.broadcast %9 : f32 to vector<1x32xf32>
    %11 = arith.divf %7, %10 : vector<1x32xf32>
    %12 = tpu.concatenate %6, %11 in 0 : vector<1x32xf32>, vector<1x32xf32> -> vector<2x32xf32>
    %13 = tpu.iota {dimensions = array<i32: 1>} : vector<1x8xi32>
    %c1_5 = arith.constant 1 : index
    %c0_6 = arith.constant 0 : index
    %c0_7 = arith.constant 0 : index
    %14 = vector.load %arg1[%c1_5, %c0_6, %c0_7] : memref<3x16x32xf32, #tpu.memory_space<vmem>>, vector<1x16x32xf32>
    %15 = vector.shape_cast %14 : vector<1x16x32xf32> to vector<16x32xf32>
    %c0_8 = arith.constant 0 : index
    %c0_9 = arith.constant 0 : index
    %c0_10 = arith.constant 0 : index
    %16 = vector.load %arg4[%c0_8, %c0_9, %c0_10] : memref<2x32x32xf32, #tpu.memory_space<vmem>>, vector<1x32x32xf32>
    %17 = vector.shape_cast %16 : vector<1x32x32xf32> to vector<32x32xf32>
    %cst = arith.constant dense<0.000000e+00> : vector<16x32xf32>
    %18 = tpu.matmul %15, %17, %cst {dimension_numbers = #tpu.dot_dimension_numbers<[1], [0], [0], [1], [0, 0, 1, 1], [], []>} : vector<16x32xf32>, vector<32x32xf32>, vector<16x32xf32> -> vector<16x32xf32>
    %c0_11 = arith.constant 0 : index
    %c0_12 = arith.constant 0 : index
    %c0_13 = arith.constant 0 : index
    %19 = vector.load %arg5[%c0_11, %c0_12, %c0_13] : memref<2x1x32xf32, #tpu.memory_space<vmem>>, vector<1x1x32xf32>
    %20 = vector.shape_cast %19 : vector<1x1x32xf32> to vector<1x32xf32>
    %21 = vector.broadcast %20 : vector<1x32xf32> to vector<16x32xf32>
    %22 = arith.addf %18, %21 : vector<16x32xf32>
    %c0_14 = arith.constant 0 : index
    %c0_15 = arith.constant 0 : index
    %c0_16 = arith.constant 0 : index
    %23 = vector.load %arg6[%c0_14, %c0_15, %c0_16] : memref<2x32x32xf32, #tpu.memory_space<vmem>>, vector<1x32x32xf32>
    %24 = vector.shape_cast %23 : vector<1x32x32xf32> to vector<32x32xf32>
    %cst_17 = arith.constant dense<0.000000e+00> : vector<2x32xf32>
    %25 = tpu.matmul %12, %24, %cst_17 {dimension_numbers = #tpu.dot_dimension_numbers<[1], [0], [0], [1], [0, 0, 1, 1], [], []>} : vector<2x32xf32>, vector<32x32xf32>, vector<2x32xf32> -> vector<2x32xf32>
    %c0_18 = arith.constant 0 : index
    %c0_19 = arith.constant 0 : index
    %c0_20 = arith.constant 0 : index
    %26 = vector.load %arg7[%c0_18, %c0_19, %c0_20] : memref<2x1x32xf32, #tpu.memory_space<vmem>>, vector<1x1x32xf32>
    %27 = vector.shape_cast %26 : vector<1x1x32xf32> to vector<1x32xf32>
    %28 = vector.broadcast %27 : vector<1x32xf32> to vector<2x32xf32>
    %29 = arith.addf %25, %28 : vector<2x32xf32>
    %c0_21 = arith.constant 0 : index
    %c0_22 = arith.constant 0 : index
    %c0_23 = arith.constant 0 : index
    %30 = vector.load %arg8[%c0_21, %c0_22, %c0_23] : memref<2x32x32xf32, #tpu.memory_space<vmem>>, vector<1x32x32xf32>
    %31 = vector.shape_cast %30 : vector<1x32x32xf32> to vector<32x32xf32>
    %cst_24 = arith.constant dense<0.000000e+00> : vector<2x32xf32>
    %32 = tpu.matmul %29, %31, %cst_24 {dimension_numbers = #tpu.dot_dimension_numbers<[1], [0], [0], [1], [0, 0, 1, 1], [], []>} : vector<2x32xf32>, vector<32x32xf32>, vector<2x32xf32> -> vector<2x32xf32>
    %33 = vector.extract_strided_slice %22 {offsets = [0, 0], sizes = [8, 32], strides = [1, 1]} : vector<16x32xf32> to vector<8x32xf32>
    %34 = vector.extract_strided_slice %32 {offsets = [0, 0], sizes = [1, 32], strides = [1, 1]} : vector<2x32xf32> to vector<1x32xf32>
    %cst_25 = arith.constant dense<0.000000e+00> : vector<1x8xf32>
    %35 = tpu.matmul %34, %33, %cst_25 {dimension_numbers = #tpu.dot_dimension_numbers<[1], [1], [0], [0], [0, 0, 1, 0], [], []>} : vector<1x32xf32>, vector<8x32xf32>, vector<1x8xf32> -> vector<1x8xf32>
    %c1_26 = arith.constant 1 : index
    %c0_27 = arith.constant 0 : index
    %36 = memref.load %arg0[%c1_26, %c0_27] : memref<3x2xi32, #tpu.memory_space<smem>>
    %37 = vector.broadcast %36 : i32 to vector<1x8xi32>
    %38 = arith.cmpi slt, %13, %37 : vector<1x8xi32>
    %cst_28 = arith.constant -1.000000e+30 : f32
    %39 = vector.broadcast %cst_28 : f32 to vector<1x8xf32>
    %40 = arith.select %38, %35, %39 : vector<1x8xi1>, vector<1x8xf32>
    %cst_29 = arith.constant dense<0xFF800000> : vector<1xf32>
    %41 = vector.multi_reduction <maximumf>, %40, %cst_29 [1] : vector<1x8xf32> to vector<1xf32>
    %cst_30 = arith.constant 0xFF800000 : f32
    %42 = vector.broadcast %cst_30 : f32 to vector<1xf32>
    %43 = arith.maximumf %42, %41 : vector<1xf32>
    %44 = vector.shape_cast %43 : vector<1xf32> to vector<1x1xf32>
    %45 = vector.broadcast %44 : vector<1x1xf32> to vector<1x8xf32>
    %46 = arith.subf %40, %45 : vector<1x8xf32>
    %47 = math.exp %46 : vector<1x8xf32>
    %cst_31 = arith.constant dense<0.000000e+00> : vector<1xf32>
    %48 = vector.multi_reduction <add>, %47, %cst_31 [1] : vector<1x8xf32> to vector<1xf32>
    %49 = vector.shape_cast %48 : vector<1xf32> to vector<1x1xf32>
    %50 = vector.broadcast %49 : vector<1x1xf32> to vector<1x8xf32>
    %51 = arith.divf %47, %50 : vector<1x8xf32>
    %cst_32 = arith.constant dense<0.000000e+00> : vector<1x32xf32>
    %52 = tpu.matmul %51, %33, %cst_32 {dimension_numbers = #tpu.dot_dimension_numbers<[1], [0], [0], [1], [0, 0, 1, 1], [], []>} : vector<1x8xf32>, vector<8x32xf32>, vector<1x32xf32> -> vector<1x32xf32>
    %53 = vector.extract_strided_slice %22 {offsets = [8, 0], sizes = [8, 32], strides = [1, 1]} : vector<16x32xf32> to vector<8x32xf32>
    %54 = vector.extract_strided_slice %32 {offsets = [1, 0], sizes = [1, 32], strides = [1, 1]} : vector<2x32xf32> to vector<1x32xf32>
    %cst_33 = arith.constant dense<0.000000e+00> : vector<1x8xf32>
    %55 = tpu.matmul %54, %53, %cst_33 {dimension_numbers = #tpu.dot_dimension_numbers<[1], [1], [0], [0], [0, 0, 1, 0], [], []>} : vector<1x32xf32>, vector<8x32xf32>, vector<1x8xf32> -> vector<1x8xf32>
    %c1_34 = arith.constant 1 : index
    %c1_35 = arith.constant 1 : index
    %56 = memref.load %arg0[%c1_34, %c1_35] : memref<3x2xi32, #tpu.memory_space<smem>>
    %57 = vector.broadcast %56 : i32 to vector<1x8xi32>
    %58 = arith.cmpi slt, %13, %57 : vector<1x8xi32>
    %cst_36 = arith.constant -1.000000e+30 : f32
    %59 = vector.broadcast %cst_36 : f32 to vector<1x8xf32>
    %60 = arith.select %58, %55, %59 : vector<1x8xi1>, vector<1x8xf32>
    %cst_37 = arith.constant dense<0xFF800000> : vector<1xf32>
    %61 = vector.multi_reduction <maximumf>, %60, %cst_37 [1] : vector<1x8xf32> to vector<1xf32>
    %cst_38 = arith.constant 0xFF800000 : f32
    %62 = vector.broadcast %cst_38 : f32 to vector<1xf32>
    %63 = arith.maximumf %62, %61 : vector<1xf32>
    %64 = vector.shape_cast %63 : vector<1xf32> to vector<1x1xf32>
    %65 = vector.broadcast %64 : vector<1x1xf32> to vector<1x8xf32>
    %66 = arith.subf %60, %65 : vector<1x8xf32>
    %67 = math.exp %66 : vector<1x8xf32>
    %cst_39 = arith.constant dense<0.000000e+00> : vector<1xf32>
    %68 = vector.multi_reduction <add>, %67, %cst_39 [1] : vector<1x8xf32> to vector<1xf32>
    %69 = vector.shape_cast %68 : vector<1xf32> to vector<1x1xf32>
    %70 = vector.broadcast %69 : vector<1x1xf32> to vector<1x8xf32>
    %71 = arith.divf %67, %70 : vector<1x8xf32>
    %cst_40 = arith.constant dense<0.000000e+00> : vector<1x32xf32>
    %72 = tpu.matmul %71, %53, %cst_40 {dimension_numbers = #tpu.dot_dimension_numbers<[1], [0], [0], [1], [0, 0, 1, 1], [], []>} : vector<1x8xf32>, vector<8x32xf32>, vector<1x32xf32> -> vector<1x32xf32>
    %73 = tpu.concatenate %52, %72 in 0 : vector<1x32xf32>, vector<1x32xf32> -> vector<2x32xf32>
    %c0_41 = arith.constant 0 : index
    %c0_42 = arith.constant 0 : index
    %c0_43 = arith.constant 0 : index
    %74 = vector.load %arg9[%c0_41, %c0_42, %c0_43] : memref<2x32x32xf32, #tpu.memory_space<vmem>>, vector<1x32x32xf32>
    %75 = vector.shape_cast %74 : vector<1x32x32xf32> to vector<32x32xf32>
    %cst_44 = arith.constant dense<0.000000e+00> : vector<2x32xf32>
    %76 = tpu.matmul %73, %75, %cst_44 {dimension_numbers = #tpu.dot_dimension_numbers<[1], [0], [0], [1], [0, 0, 1, 1], [], []>} : vector<2x32xf32>, vector<32x32xf32>, vector<2x32xf32> -> vector<2x32xf32>
    %c0_45 = arith.constant 0 : index
    %c0_46 = arith.constant 0 : index
    %c0_47 = arith.constant 0 : index
    %77 = vector.load %arg10[%c0_45, %c0_46, %c0_47] : memref<2x1x32xf32, #tpu.memory_space<vmem>>, vector<1x1x32xf32>
    %78 = vector.shape_cast %77 : vector<1x1x32xf32> to vector<1x32xf32>
    %79 = vector.broadcast %78 : vector<1x32xf32> to vector<2x32xf32>
    %80 = arith.addf %76, %79 : vector<2x32xf32>
    %c2 = arith.constant 2 : index
    %c0_48 = arith.constant 0 : index
    %c0_49 = arith.constant 0 : index
    %81 = vector.load %arg1[%c2, %c0_48, %c0_49] : memref<3x16x32xf32, #tpu.memory_space<vmem>>, vector<1x16x32xf32>
    %82 = vector.shape_cast %81 : vector<1x16x32xf32> to vector<16x32xf32>
    %c1_50 = arith.constant 1 : index
    %c0_51 = arith.constant 0 : index
    %c0_52 = arith.constant 0 : index
    %83 = vector.load %arg4[%c1_50, %c0_51, %c0_52] : memref<2x32x32xf32, #tpu.memory_space<vmem>>, vector<1x32x32xf32>
    %84 = vector.shape_cast %83 : vector<1x32x32xf32> to vector<32x32xf32>
    %cst_53 = arith.constant dense<0.000000e+00> : vector<16x32xf32>
    %85 = tpu.matmul %82, %84, %cst_53 {dimension_numbers = #tpu.dot_dimension_numbers<[1], [0], [0], [1], [0, 0, 1, 1], [], []>} : vector<16x32xf32>, vector<32x32xf32>, vector<16x32xf32> -> vector<16x32xf32>
    %c1_54 = arith.constant 1 : index
    %c0_55 = arith.constant 0 : index
    %c0_56 = arith.constant 0 : index
    %86 = vector.load %arg5[%c1_54, %c0_55, %c0_56] : memref<2x1x32xf32, #tpu.memory_space<vmem>>, vector<1x1x32xf32>
    %87 = vector.shape_cast %86 : vector<1x1x32xf32> to vector<1x32xf32>
    %88 = vector.broadcast %87 : vector<1x32xf32> to vector<16x32xf32>
    %89 = arith.addf %85, %88 : vector<16x32xf32>
    %c1_57 = arith.constant 1 : index
    %c0_58 = arith.constant 0 : index
    %c0_59 = arith.constant 0 : index
    %90 = vector.load %arg6[%c1_57, %c0_58, %c0_59] : memref<2x32x32xf32, #tpu.memory_space<vmem>>, vector<1x32x32xf32>
    %91 = vector.shape_cast %90 : vector<1x32x32xf32> to vector<32x32xf32>
    %cst_60 = arith.constant dense<0.000000e+00> : vector<2x32xf32>
    %92 = tpu.matmul %12, %91, %cst_60 {dimension_numbers = #tpu.dot_dimension_numbers<[1], [0], [0], [1], [0, 0, 1, 1], [], []>} : vector<2x32xf32>, vector<32x32xf32>, vector<2x32xf32> -> vector<2x32xf32>
    %c1_61 = arith.constant 1 : index
    %c0_62 = arith.constant 0 : index
    %c0_63 = arith.constant 0 : index
    %93 = vector.load %arg7[%c1_61, %c0_62, %c0_63] : memref<2x1x32xf32, #tpu.memory_space<vmem>>, vector<1x1x32xf32>
    %94 = vector.shape_cast %93 : vector<1x1x32xf32> to vector<1x32xf32>
    %95 = vector.broadcast %94 : vector<1x32xf32> to vector<2x32xf32>
    %96 = arith.addf %92, %95 : vector<2x32xf32>
    %c1_64 = arith.constant 1 : index
    %c0_65 = arith.constant 0 : index
    %c0_66 = arith.constant 0 : index
    %97 = vector.load %arg8[%c1_64, %c0_65, %c0_66] : memref<2x32x32xf32, #tpu.memory_space<vmem>>, vector<1x32x32xf32>
    %98 = vector.shape_cast %97 : vector<1x32x32xf32> to vector<32x32xf32>
    %cst_67 = arith.constant dense<0.000000e+00> : vector<2x32xf32>
    %99 = tpu.matmul %96, %98, %cst_67 {dimension_numbers = #tpu.dot_dimension_numbers<[1], [0], [0], [1], [0, 0, 1, 1], [], []>} : vector<2x32xf32>, vector<32x32xf32>, vector<2x32xf32> -> vector<2x32xf32>
    %100 = vector.extract_strided_slice %89 {offsets = [0, 0], sizes = [8, 32], strides = [1, 1]} : vector<16x32xf32> to vector<8x32xf32>
    %101 = vector.extract_strided_slice %99 {offsets = [0, 0], sizes = [1, 32], strides = [1, 1]} : vector<2x32xf32> to vector<1x32xf32>
    %cst_68 = arith.constant dense<0.000000e+00> : vector<1x8xf32>
    %102 = tpu.matmul %101, %100, %cst_68 {dimension_numbers = #tpu.dot_dimension_numbers<[1], [1], [0], [0], [0, 0, 1, 0], [], []>} : vector<1x32xf32>, vector<8x32xf32>, vector<1x8xf32> -> vector<1x8xf32>
    %c2_69 = arith.constant 2 : index
    %c0_70 = arith.constant 0 : index
    %103 = memref.load %arg0[%c2_69, %c0_70] : memref<3x2xi32, #tpu.memory_space<smem>>
    %104 = vector.broadcast %103 : i32 to vector<1x8xi32>
    %105 = arith.cmpi slt, %13, %104 : vector<1x8xi32>
    %cst_71 = arith.constant -1.000000e+30 : f32
    %106 = vector.broadcast %cst_71 : f32 to vector<1x8xf32>
    %107 = arith.select %105, %102, %106 : vector<1x8xi1>, vector<1x8xf32>
    %cst_72 = arith.constant dense<0xFF800000> : vector<1xf32>
    %108 = vector.multi_reduction <maximumf>, %107, %cst_72 [1] : vector<1x8xf32> to vector<1xf32>
    %cst_73 = arith.constant 0xFF800000 : f32
    %109 = vector.broadcast %cst_73 : f32 to vector<1xf32>
    %110 = arith.maximumf %109, %108 : vector<1xf32>
    %111 = vector.shape_cast %110 : vector<1xf32> to vector<1x1xf32>
    %112 = vector.broadcast %111 : vector<1x1xf32> to vector<1x8xf32>
    %113 = arith.subf %107, %112 : vector<1x8xf32>
    %114 = math.exp %113 : vector<1x8xf32>
    %cst_74 = arith.constant dense<0.000000e+00> : vector<1xf32>
    %115 = vector.multi_reduction <add>, %114, %cst_74 [1] : vector<1x8xf32> to vector<1xf32>
    %116 = vector.shape_cast %115 : vector<1xf32> to vector<1x1xf32>
    %117 = vector.broadcast %116 : vector<1x1xf32> to vector<1x8xf32>
    %118 = arith.divf %114, %117 : vector<1x8xf32>
    %cst_75 = arith.constant dense<0.000000e+00> : vector<1x32xf32>
    %119 = tpu.matmul %118, %100, %cst_75 {dimension_numbers = #tpu.dot_dimension_numbers<[1], [0], [0], [1], [0, 0, 1, 1], [], []>} : vector<1x8xf32>, vector<8x32xf32>, vector<1x32xf32> -> vector<1x32xf32>
    %120 = vector.extract_strided_slice %89 {offsets = [8, 0], sizes = [8, 32], strides = [1, 1]} : vector<16x32xf32> to vector<8x32xf32>
    %121 = vector.extract_strided_slice %99 {offsets = [1, 0], sizes = [1, 32], strides = [1, 1]} : vector<2x32xf32> to vector<1x32xf32>
    %cst_76 = arith.constant dense<0.000000e+00> : vector<1x8xf32>
    %122 = tpu.matmul %121, %120, %cst_76 {dimension_numbers = #tpu.dot_dimension_numbers<[1], [1], [0], [0], [0, 0, 1, 0], [], []>} : vector<1x32xf32>, vector<8x32xf32>, vector<1x8xf32> -> vector<1x8xf32>
    %c2_77 = arith.constant 2 : index
    %c1_78 = arith.constant 1 : index
    %123 = memref.load %arg0[%c2_77, %c1_78] : memref<3x2xi32, #tpu.memory_space<smem>>
    %124 = vector.broadcast %123 : i32 to vector<1x8xi32>
    %125 = arith.cmpi slt, %13, %124 : vector<1x8xi32>
    %cst_79 = arith.constant -1.000000e+30 : f32
    %126 = vector.broadcast %cst_79 : f32 to vector<1x8xf32>
    %127 = arith.select %125, %122, %126 : vector<1x8xi1>, vector<1x8xf32>
    %cst_80 = arith.constant dense<0xFF800000> : vector<1xf32>
    %128 = vector.multi_reduction <maximumf>, %127, %cst_80 [1] : vector<1x8xf32> to vector<1xf32>
    %cst_81 = arith.constant 0xFF800000 : f32
    %129 = vector.broadcast %cst_81 : f32 to vector<1xf32>
    %130 = arith.maximumf %129, %128 : vector<1xf32>
    %131 = vector.shape_cast %130 : vector<1xf32> to vector<1x1xf32>
    %132 = vector.broadcast %131 : vector<1x1xf32> to vector<1x8xf32>
    %133 = arith.subf %127, %132 : vector<1x8xf32>
    %134 = math.exp %133 : vector<1x8xf32>
    %cst_82 = arith.constant dense<0.000000e+00> : vector<1xf32>
    %135 = vector.multi_reduction <add>, %134, %cst_82 [1] : vector<1x8xf32> to vector<1xf32>
    %136 = vector.shape_cast %135 : vector<1xf32> to vector<1x1xf32>
    %137 = vector.broadcast %136 : vector<1x1xf32> to vector<1x8xf32>
    %138 = arith.divf %134, %137 : vector<1x8xf32>
    %cst_83 = arith.constant dense<0.000000e+00> : vector<1x32xf32>
    %139 = tpu.matmul %138, %120, %cst_83 {dimension_numbers = #tpu.dot_dimension_numbers<[1], [0], [0], [1], [0, 0, 1, 1], [], []>} : vector<1x8xf32>, vector<8x32xf32>, vector<1x32xf32> -> vector<1x32xf32>
    %140 = tpu.concatenate %119, %139 in 0 : vector<1x32xf32>, vector<1x32xf32> -> vector<2x32xf32>
    %c1_84 = arith.constant 1 : index
    %c0_85 = arith.constant 0 : index
    %c0_86 = arith.constant 0 : index
    %141 = vector.load %arg9[%c1_84, %c0_85, %c0_86] : memref<2x32x32xf32, #tpu.memory_space<vmem>>, vector<1x32x32xf32>
    %142 = vector.shape_cast %141 : vector<1x32x32xf32> to vector<32x32xf32>
    %cst_87 = arith.constant dense<0.000000e+00> : vector<2x32xf32>
    %143 = tpu.matmul %140, %142, %cst_87 {dimension_numbers = #tpu.dot_dimension_numbers<[1], [0], [0], [1], [0, 0, 1, 1], [], []>} : vector<2x32xf32>, vector<32x32xf32>, vector<2x32xf32> -> vector<2x32xf32>
    %c1_88 = arith.constant 1 : index
    %c0_89 = arith.constant 0 : index
    %c0_90 = arith.constant 0 : index
    %144 = vector.load %arg10[%c1_88, %c0_89, %c0_90] : memref<2x1x32xf32, #tpu.memory_space<vmem>>, vector<1x1x32xf32>
    %145 = vector.shape_cast %144 : vector<1x1x32xf32> to vector<1x32xf32>
    %146 = vector.broadcast %145 : vector<1x32xf32> to vector<2x32xf32>
    %147 = arith.addf %143, %146 : vector<2x32xf32>
    %c0_91 = arith.constant 0 : index
    %c0_92 = arith.constant 0 : index
    %148 = vector.load %arg11[%c0_91, %c0_92] : memref<32x32xf32, #tpu.memory_space<vmem>>, vector<32x32xf32>
    %cst_93 = arith.constant dense<0.000000e+00> : vector<32x2xf32>
    %149 = tpu.matmul %148, %12, %cst_93 {dimension_numbers = #tpu.dot_dimension_numbers<[1], [1], [0], [0], [0, 0, 1, 0], [], []>} : vector<32x32xf32>, vector<2x32xf32>, vector<32x2xf32> -> vector<32x2xf32>
    %c0_94 = arith.constant 0 : index
    %c0_95 = arith.constant 0 : index
    %150 = vector.load %arg12[%c0_94, %c0_95] : memref<32x1xf32, #tpu.memory_space<vmem>>, vector<32x1xf32>
    %151 = vector.broadcast %150 : vector<32x1xf32> to vector<32x2xf32>
    %152 = arith.addf %149, %151 : vector<32x2xf32>
    %c0_96 = arith.constant 0 : index
    %c0_97 = arith.constant 0 : index
    %153 = vector.load %arg13[%c0_96, %c0_97] : memref<32x2048xf32, #tpu.memory_space<vmem>>, vector<32x2048xf32>
    %c0_98 = arith.constant 0 : index
    %c0_99 = arith.constant 0 : index
    %154 = vector.load %arg14[%c0_98, %c0_99] : memref<32x1xf32, #tpu.memory_space<vmem>>, vector<32x1xf32>
    %c0_100 = arith.constant 0 : index
    %c0_101 = arith.constant 0 : index
    %155 = vector.load %arg19[%c0_100, %c0_101] : memref<1x32xf32, #tpu.memory_space<vmem>>, vector<1x32xf32>
    %c0_102 = arith.constant 0 : index
    %c0_103 = arith.constant 0 : index
    %156 = vector.load %arg20[%c0_102, %c0_103] : memref<1x1xf32, #tpu.memory_space<vmem>>, vector<1x1xf32>
    %c0_104 = arith.constant 0 : index
    %c0_105 = arith.constant 0 : index
    %c0_106 = arith.constant 0 : index
    %157 = vector.load %arg3[%c0_104, %c0_105, %c0_106] : memref<2x2048x49xf32, #tpu.memory_space<vmem>>, vector<1x2048x49xf32>
    %158 = vector.shape_cast %157 : vector<1x2048x49xf32> to vector<2048x49xf32>
    %cst_107 = arith.constant dense<0.000000e+00> : vector<32x49xf32>
    %159 = tpu.matmul %153, %158, %cst_107 {dimension_numbers = #tpu.dot_dimension_numbers<[1], [0], [0], [1], [0, 0, 1, 1], [], []>} : vector<32x2048xf32>, vector<2048x49xf32>, vector<32x49xf32> -> vector<32x49xf32>
    %160 = vector.broadcast %154 : vector<32x1xf32> to vector<32x49xf32>
    %161 = arith.addf %159, %160 : vector<32x49xf32>
    %162 = vector.extract_strided_slice %152 {offsets = [0, 0], sizes = [32, 1], strides = [1, 1]} : vector<32x2xf32> to vector<32x1xf32>
    %163 = vector.broadcast %162 : vector<32x1xf32> to vector<32x49xf32>
    %164 = arith.addf %161, %163 : vector<32x49xf32>
    %165 = math.tanh %164 : vector<32x49xf32>
    %cst_108 = arith.constant dense<0.000000e+00> : vector<1x49xf32>
    %166 = tpu.matmul %155, %165, %cst_108 {dimension_numbers = #tpu.dot_dimension_numbers<[1], [0], [0], [1], [0, 0, 1, 1], [], []>} : vector<1x32xf32>, vector<32x49xf32>, vector<1x49xf32> -> vector<1x49xf32>
    %167 = vector.broadcast %156 : vector<1x1xf32> to vector<1x49xf32>
    %168 = arith.addf %166, %167 : vector<1x49xf32>
    %cst_109 = arith.constant dense<0xFF800000> : vector<1xf32>
    %169 = vector.multi_reduction <maximumf>, %168, %cst_109 [1] : vector<1x49xf32> to vector<1xf32>
    %cst_110 = arith.constant 0xFF800000 : f32
    %170 = vector.broadcast %cst_110 : f32 to vector<1xf32>
    %171 = arith.maximumf %170, %169 : vector<1xf32>
    %172 = vector.shape_cast %171 : vector<1xf32> to vector<1x1xf32>
    %173 = vector.broadcast %172 : vector<1x1xf32> to vector<1x49xf32>
    %174 = arith.subf %168, %173 : vector<1x49xf32>
    %175 = math.exp %174 : vector<1x49xf32>
    %cst_111 = arith.constant dense<0.000000e+00> : vector<1xf32>
    %176 = vector.multi_reduction <add>, %175, %cst_111 [1] : vector<1x49xf32> to vector<1xf32>
    %177 = vector.shape_cast %176 : vector<1xf32> to vector<1x1xf32>
    %178 = vector.broadcast %177 : vector<1x1xf32> to vector<1x49xf32>
    %179 = arith.divf %175, %178 : vector<1x49xf32>
    %c0_112 = arith.constant 0 : index
    %c0_113 = arith.constant 0 : index
    %180 = vector.load %arg24[%c0_112, %c0_113] : memref<2x49xf32, #tpu.memory_space<vmem>>, vector<1x49xf32>
    tpu.vector_store %arg24[%c0_112, %c0_113], %179 {strides = array<i32>} : memref<2x49xf32, #tpu.memory_space<vmem>>, vector<1x49xf32>,
    %cst_114 = arith.constant dense<0.000000e+00> : vector<1x2048xf32>
    %181 = tpu.matmul %179, %158, %cst_114 {dimension_numbers = #tpu.dot_dimension_numbers<[1], [1], [0], [0], [0, 0, 1, 0], [], []>} : vector<1x49xf32>, vector<2048x49xf32>, vector<1x2048xf32> -> vector<1x2048xf32>
    %c1_115 = arith.constant 1 : index
    %c0_116 = arith.constant 0 : index
    %c0_117 = arith.constant 0 : index
    %182 = vector.load %arg3[%c1_115, %c0_116, %c0_117] : memref<2x2048x49xf32, #tpu.memory_space<vmem>>, vector<1x2048x49xf32>
    %183 = vector.shape_cast %182 : vector<1x2048x49xf32> to vector<2048x49xf32>
    %cst_118 = arith.constant dense<0.000000e+00> : vector<32x49xf32>
    %184 = tpu.matmul %153, %183, %cst_118 {dimension_numbers = #tpu.dot_dimension_numbers<[1], [0], [0], [1], [0, 0, 1, 1], [], []>} : vector<32x2048xf32>, vector<2048x49xf32>, vector<32x49xf32> -> vector<32x49xf32>
    %185 = vector.broadcast %154 : vector<32x1xf32> to vector<32x49xf32>
    %186 = arith.addf %184, %185 : vector<32x49xf32>
    %187 = vector.extract_strided_slice %152 {offsets = [0, 1], sizes = [32, 1], strides = [1, 1]} : vector<32x2xf32> to vector<32x1xf32>
    %188 = vector.broadcast %187 : vector<32x1xf32> to vector<32x49xf32>
    %189 = arith.addf %186, %188 : vector<32x49xf32>
    %190 = math.tanh %189 : vector<32x49xf32>
    %cst_119 = arith.constant dense<0.000000e+00> : vector<1x49xf32>
    %191 = tpu.matmul %155, %190, %cst_119 {dimension_numbers = #tpu.dot_dimension_numbers<[1], [0], [0], [1], [0, 0, 1, 1], [], []>} : vector<1x32xf32>, vector<32x49xf32>, vector<1x49xf32> -> vector<1x49xf32>
    %192 = vector.broadcast %156 : vector<1x1xf32> to vector<1x49xf32>
    %193 = arith.addf %191, %192 : vector<1x49xf32>
    %cst_120 = arith.constant dense<0xFF800000> : vector<1xf32>
    %194 = vector.multi_reduction <maximumf>, %193, %cst_120 [1] : vector<1x49xf32> to vector<1xf32>
    %cst_121 = arith.constant 0xFF800000 : f32
    %195 = vector.broadcast %cst_121 : f32 to vector<1xf32>
    %196 = arith.maximumf %195, %194 : vector<1xf32>
    %197 = vector.shape_cast %196 : vector<1xf32> to vector<1x1xf32>
    %198 = vector.broadcast %197 : vector<1x1xf32> to vector<1x49xf32>
    %199 = arith.subf %193, %198 : vector<1x49xf32>
    %200 = math.exp %199 : vector<1x49xf32>
    %cst_122 = arith.constant dense<0.000000e+00> : vector<1xf32>
    %201 = vector.multi_reduction <add>, %200, %cst_122 [1] : vector<1x49xf32> to vector<1xf32>
    %202 = vector.shape_cast %201 : vector<1xf32> to vector<1x1xf32>
    %203 = vector.broadcast %202 : vector<1x1xf32> to vector<1x49xf32>
    %204 = arith.divf %200, %203 : vector<1x49xf32>
    %c1_123 = arith.constant 1 : index
    %c0_124 = arith.constant 0 : index
    %205 = vector.load %arg24[%c1_123, %c0_124] : memref<2x49xf32, #tpu.memory_space<vmem>>, vector<1x49xf32>
    tpu.vector_store %arg24[%c1_123, %c0_124], %204 {strides = array<i32>} : memref<2x49xf32, #tpu.memory_space<vmem>>, vector<1x49xf32>,
    %cst_125 = arith.constant dense<0.000000e+00> : vector<1x2048xf32>
    %206 = tpu.matmul %204, %183, %cst_125 {dimension_numbers = #tpu.dot_dimension_numbers<[1], [1], [0], [0], [0, 0, 1, 0], [], []>} : vector<1x49xf32>, vector<2048x49xf32>, vector<1x2048xf32> -> vector<1x2048xf32>
    %207 = tpu.concatenate %181, %206 in 0 : vector<1x2048xf32>, vector<1x2048xf32> -> vector<2x2048xf32>
    %208 = math.tanh %207 : vector<2x2048xf32>
    %c0_126 = arith.constant 0 : index
    %c0_127 = arith.constant 0 : index
    %209 = vector.load %arg15[%c0_126, %c0_127] : memref<2048x32xf32, #tpu.memory_space<vmem>>, vector<2048x32xf32>
    %cst_128 = arith.constant dense<0.000000e+00> : vector<2x32xf32>
    %210 = tpu.matmul %208, %209, %cst_128 {dimension_numbers = #tpu.dot_dimension_numbers<[1], [0], [0], [1], [0, 0, 1, 1], [], []>} : vector<2x2048xf32>, vector<2048x32xf32>, vector<2x32xf32> -> vector<2x32xf32>
    %c0_129 = arith.constant 0 : index
    %c0_130 = arith.constant 0 : index
    %211 = vector.load %arg16[%c0_129, %c0_130] : memref<1x32xf32, #tpu.memory_space<vmem>>, vector<1x32xf32>
    %212 = vector.broadcast %211 : vector<1x32xf32> to vector<2x32xf32>
    %213 = arith.addf %210, %212 : vector<2x32xf32>
    %c0_131 = arith.constant 0 : index
    %c0_132 = arith.constant 0 : index
    %214 = vector.load %arg17[%c0_131, %c0_132] : memref<2144x32xf32, #tpu.memory_space<vmem>>, vector<32x32xf32>
    %cst_133 = arith.constant dense<0.000000e+00> : vector<2x32xf32>
    %215 = tpu.matmul %80, %214, %cst_133 {dimension_numbers = #tpu.dot_dimension_numbers<[1], [0], [0], [1], [0, 0, 1, 1], [], []>} : vector<2x32xf32>, vector<32x32xf32>, vector<2x32xf32> -> vector<2x32xf32>
    %c32 = arith.constant 32 : index
    %c0_134 = arith.constant 0 : index
    %216 = vector.load %arg17[%c32, %c0_134] : memref<2144x32xf32, #tpu.memory_space<vmem>>, vector<32x32xf32>
    %cst_135 = arith.constant dense<0.000000e+00> : vector<2x32xf32>
    %217 = tpu.matmul %147, %216, %cst_135 {dimension_numbers = #tpu.dot_dimension_numbers<[1], [0], [0], [1], [0, 0, 1, 1], [], []>} : vector<2x32xf32>, vector<32x32xf32>, vector<2x32xf32> -> vector<2x32xf32>
    %218 = arith.addf %215, %217 : vector<2x32xf32>
    %c64 = arith.constant 64 : index
    %c0_136 = arith.constant 0 : index
    %219 = vector.load %arg17[%c64, %c0_136] : memref<2144x32xf32, #tpu.memory_space<vmem>>, vector<32x32xf32>
    %cst_137 = arith.constant dense<0.000000e+00> : vector<2x32xf32>
    %220 = tpu.matmul %12, %219, %cst_137 {dimension_numbers = #tpu.dot_dimension_numbers<[1], [0], [0], [1], [0, 0, 1, 1], [], []>} : vector<2x32xf32>, vector<32x32xf32>, vector<2x32xf32> -> vector<2x32xf32>
    %221 = arith.addf %218, %220 : vector<2x32xf32>
    %c96 = arith.constant 96 : index
    %c0_138 = arith.constant 0 : index
    %222 = vector.load %arg17[%c96, %c0_138] : memref<2144x32xf32, #tpu.memory_space<vmem>>, vector<2048x32xf32>
    %cst_139 = arith.constant dense<0.000000e+00> : vector<2x32xf32>
    %223 = tpu.matmul %207, %222, %cst_139 {dimension_numbers = #tpu.dot_dimension_numbers<[1], [0], [0], [1], [0, 0, 1, 1], [], []>} : vector<2x2048xf32>, vector<2048x32xf32>, vector<2x32xf32> -> vector<2x32xf32>
    %224 = arith.addf %221, %223 : vector<2x32xf32>
    %c0_140 = arith.constant 0 : index
    %c0_141 = arith.constant 0 : index
    %225 = vector.load %arg18[%c0_140, %c0_141] : memref<1x32xf32, #tpu.memory_space<vmem>>, vector<1x32xf32>
    %226 = vector.broadcast %225 : vector<1x32xf32> to vector<2x32xf32>
    %227 = arith.addf %224, %226 : vector<2x32xf32>
    %228 = arith.negf %227 : vector<2x32xf32>
    %229 = math.exp %228 : vector<2x32xf32>
    %cst_142 = arith.constant 1.000000e+00 : f32
    %230 = vector.broadcast %cst_142 : f32 to vector<2x32xf32>
    %231 = arith.addf %230, %229 : vector<2x32xf32>
    %232 = arith.divf %230, %231 : vector<2x32xf32>
    %233 = arith.mulf %232, %213 : vector<2x32xf32>
    %c0_143 = arith.constant 0 : index
    %c0_144 = arith.constant 0 : index
    %234 = vector.load %arg21[%c0_143, %c0_144] : memref<128x3xf32, #tpu.memory_space<vmem>>, vector<32x3xf32>
    %cst_145 = arith.constant dense<0.000000e+00> : vector<2x3xf32>
    %235 = tpu.matmul %80, %234, %cst_145 {dimension_numbers = #tpu.dot_dimension_numbers<[1], [0], [0], [1], [0, 0, 1, 1], [], []>} : vector<2x32xf32>, vector<32x3xf32>, vector<2x3xf32> -> vector<2x3xf32>
    %c32_146 = arith.constant 32 : index
    %c0_147 = arith.constant 0 : index
    %236 = vector.load %arg21[%c32_146, %c0_147] : memref<128x3xf32, #tpu.memory_space<vmem>>, vector<32x3xf32>
    %cst_148 = arith.constant dense<0.000000e+00> : vector<2x3xf32>
    %237 = tpu.matmul %147, %236, %cst_148 {dimension_numbers = #tpu.dot_dimension_numbers<[1], [0], [0], [1], [0, 0, 1, 1], [], []>} : vector<2x32xf32>, vector<32x3xf32>, vector<2x3xf32> -> vector<2x3xf32>
    %238 = arith.addf %235, %237 : vector<2x3xf32>
    %c64_149 = arith.constant 64 : index
    %c0_150 = arith.constant 0 : index
    %239 = vector.load %arg21[%c64_149, %c0_150] : memref<128x3xf32, #tpu.memory_space<vmem>>, vector<32x3xf32>
    %cst_151 = arith.constant dense<0.000000e+00> : vector<2x3xf32>
    %240 = tpu.matmul %12, %239, %cst_151 {dimension_numbers = #tpu.dot_dimension_numbers<[1], [0], [0], [1], [0, 0, 1, 1], [], []>} : vector<2x32xf32>, vector<32x3xf32>, vector<2x3xf32> -> vector<2x3xf32>
    %241 = arith.addf %238, %240 : vector<2x3xf32>
    %c96_152 = arith.constant 96 : index
    %c0_153 = arith.constant 0 : index
    %242 = vector.load %arg21[%c96_152, %c0_153] : memref<128x3xf32, #tpu.memory_space<vmem>>, vector<32x3xf32>
    %cst_154 = arith.constant dense<0.000000e+00> : vector<2x3xf32>
    %243 = tpu.matmul %233, %242, %cst_154 {dimension_numbers = #tpu.dot_dimension_numbers<[1], [0], [0], [1], [0, 0, 1, 1], [], []>} : vector<2x32xf32>, vector<32x3xf32>, vector<2x3xf32> -> vector<2x3xf32>
    %244 = arith.addf %241, %243 : vector<2x3xf32>
    %c0_155 = arith.constant 0 : index
    %c0_156 = arith.constant 0 : index
    %245 = vector.load %arg22[%c0_155, %c0_156] : memref<1x3xf32, #tpu.memory_space<vmem>>, vector<1x3xf32>
    %246 = vector.broadcast %245 : vector<1x3xf32> to vector<2x3xf32>
    %247 = arith.addf %244, %246 : vector<2x3xf32>
    %c0_157 = arith.constant 0 : index
    %c0_158 = arith.constant 0 : index
    %248 = vector.load %arg23[%c0_157, %c0_158] : memref<2x3xf32, #tpu.memory_space<vmem>>, vector<2x3xf32>
    tpu.vector_store %arg23[%c0_157, %c0_158], %247 {strides = array<i32>} : memref<2x3xf32, #tpu.memory_space<vmem>>, vector<2x3xf32>,
    return
  }
}

</mosaic_0001>

<bundles_post_ra>
// kernel: mmfusion_forward.2
= control target key start
LH: loop header
LB: loop body
LE: loop exit
PB: predicated region body
PF: predicated region fallthrough
CT: control target
= control target key end

     0   :  { %s2760_s0 = inlined_call_operand.vmem [shape: s32[3,2], index: 0, kind: input, shape index: {}]   ;;  %s2761_s1 = inlined_call_operand.vmem [shape: f32[3,16,32], index: 1, kind: input, shape index: {}]   ;;  %s2762_s2 = inlined_call_operand.hbm [shape: f32[3,32,128], index: 2, kind: input, shape index: {}]   ;;  %s2763_s3 = inlined_call_operand.hbm [shape: f32[3,32,128], index: 3, kind: input, shape index: {}]   ;;  %s2764_s4 = inlined_call_operand.hbm [shape: f32[3,1,128], index: 4, kind: input, shape index: {}]   ;;  %s2765_s5 = inlined_call_operand.vmem [shape: f32[3,16,32], index: 5, kind: output, shape index: {0}]   ;;  %s2766_s6 = inlined_call_operand.vmem [shape: f32[3,2,32], index: 6, kind: output, shape index: {1}]  }
   0x1   :  { %2774 = sst [smem:[#allocation12_spill]] %s2760_s0 }
   0x2   :  { %2775 = sst [smem:[#allocation13_spill]] %s2762_s2 }
   0x3   :  { %12 = vsyncpa [#allocation4], 0 }
   0x4   :  { %13 = vsyncpa [#allocation3], 0 }
   0x5   :  { %15 = vsyncpa [#allocation3 + $0x1], 0 }
   0x6   :  { %16 = vsyncpa [#allocation7], 0 }
   0x7   :  { %18 = vsyncpa [#allocation7 + $0x1], 0  ;;  %s2281_s21 = smov 0   ;;  %s2283_s22 = smov 0  }
   0x8   :  { %s2285_s23 = smov 0   ;;  %s2287_s24 = smov 0  }
   0x9 LB: > { %s2302_s25 = sadd.s32 1, %s2231_s24   ;;  %s78_s26 = sadd.s32 1, %s2227_s23  ;;  %s2231_s24 = sphi %s2287_s24, %s2796_s24   ;;  %s2227_s23 = sphi %s2285_s23, %s2795_s23   ;;  %s2223_s22 = sphi %s2283_s22, %s2794_s22   ;;  %s2219_s21 = sphi %s2281_s21, %s2793_s21  }
   0xa   : > { %s75_s27 = ssub.s32 %s2231_s24, %s2302_s25  ;;  %p85_p0 = scmp.ne.s32.totalorder %s2227_s23, %s2223_s22 }
   0xb   : > { %p76_p1 = scmp.eq.s32.totalorder %s75_s27, 0  ;;  %p86_p2 = scmp.eq.s32.totalorder %s2231_s24, 0 }
   0xc   : > { %p1974_p3 = scmp.lt.s32.totalorder %s2231_s24, 3  ;;  %s2315_s29 = sand.u32 1, %s2227_s23  }
   0xd   : > { %s2312_s28 = scalar_select %p76_p1, %s2227_s23, %s78_s26  }
   0xe   : > { %p87_p4 = por %p86_p2, %p85_p0  ;;  %s1707_s30 = sshll.u32 %s2315_s29, 5 }
   0xf   : > { %s1744_s7 = sshll.u32 %s2231_s24, 9  ;;  %s259_s9 = sand.u32 1, %s2231_s24  }
  0x10   : > { %p2319_p5 = pnand %p1974_p3, %p87_p4  ;;  %s2329_s12 = scalar_lea.hbm %s2763_s3, %s1744_s7 }
  0x11   : > { %s263_s13 = scalar_lea.vmem [#allocation6], %s1707_s30  ;;  %s2335_s15 = scalar_lea.sflag [#allocation7], %s259_s9 }
  0x12   : > { %s2776_s8 = scalar_select %p2319_p5, 1, 0 }
  0x13   : > { %s270_s14 = sshll.u32 %s263_s13, 4  ;;  %s2084_s16 = scalar_lea.hbm %s2329_s12, 512  ;;  %s2333_s14 = int_to_ptr.vmem [resolvable:$true] %s270_s14 }
  0x14   : > { %p2085_p6 = scmp.ne.s32.totalorder %s2329_s12, %s2084_s16  ;;  %p2341_p7 = pneg %p2319_p5 }
  0x15   : > { %s2089_s20 = scalar_lea.hbm %s2763_s3, 1536  ;;  %p2090_p10 = scmp.lt.u32.totalorder %s2329_s12, %s2763_s3 }
  0x16   : > { %p2087_p8 = pnand %p2341_p7, %p2085_p6  ;;  %p2091_p11 = scmp.lt.u32.totalorder %s2089_s20, %s2084_s16 }
  0x17   : > { %p2093_p13 = scmp.lt.u32.totalorder %s2084_s16, %s2329_s12 }
  0x18   : > { %p2088_p9 = pneg %p2087_p8  ;;  %p2092_p12 = por %p2091_p11, %p2090_p10 }
  0x1a   : > { %p2094_p0 = por %p2093_p13, %p2092_p12 }
  0x1c   : > { %p2095_p1 = pnand %p2094_p0, %p2088_p9 }
  0x1e   : > { %2098 = shalt.err (!%p2095_p1)
}
  0x1f   : > { %s2099_s9 = scalar_lea.vmem %s2333_s14, 512  ;;  %s2233_s10 = smov [#allocation6]  }
  0x20   : > { %p2100_p2 = scmp.ne.s32.totalorder %s2333_s14, %s2099_s9  ;;  %s2104_s11 = sshll.u32 %s2233_s10, 4  ;;  %s2105_s11 = int_to_ptr.vmem [resolvable:$false] %s2104_s11 }
  0x21   : > { %s2106_s13 = scalar_lea.vmem %s2105_s11, 1024  ;;  %p2107_p6 = scmp.lt.s32.totalorder %s2333_s14, %s2105_s11 }
  0x22   : > { %p2102_p3 = pnand %p2100_p2, %p2341_p7  ;;  %p2108_p8 = scmp.lt.s32.totalorder %s2106_s13, %s2099_s9 }
  0x24   : > { %p2103_p4 = pneg %p2102_p3  ;;  %p2109_p10 = por %p2108_p8, %p2107_p6 }
  0x26   : > { %p2110_p11 = pnand %p2109_p10, %p2103_p4 }
  0x28   : > { %2113 = shalt.err (!%p2110_p11)
}
  0x29   : > { %s2767_s16 = smov 128   ;;  %s2768_s18 = smov 8  }
  0x2a   : > { %1969 = dma.hbm_to_vmem [thread:$0]  (!%p2319_p5), %s2329_s12, 512, %s2333_s14, %s2335_s15, %s2767_s16, %s2767_s16, %s2768_s18  }
  0x2b   : > { %s2369_s19 = sadd.s32 4294967295, %s2231_s24   ;;  %p91_p9 = scmp.ne.s32.totalorder %s2223_s22, %s2219_s21 }
  0x2c   : > { %p2769_p12 = scmp.eq.s32.totalorder %s2369_s19, 0  ;;  %p1704_p13 = scmp.ge.s32.totalorder %s2231_s24, 1 }
  0x2d   : > { %p206_p0 = scmp.lt.s32.totalorder %s2231_s24, 4  ;;  %s2779_s0 = sld [smem:[#allocation12_spill]] }
  0x2e   : > { %p2378_p1 = por %p2769_p12, %p91_p9  ;;  %s2781_s2 = sld [smem:[#allocation13_spill]] }
  0x2f   : > { %p2385_p2 = pnand %p1704_p13, %p206_p0  ;;  %s242_s11 = scalar_lea.vmem [#allocation5], %s1707_s30 }
  0x30   : > { %s2778_s20 = scalar_select %p2378_p1, 1, 0 }
  0x31   : > { %s2780_s14 = scalar_select %p2385_p2, 1, 0 }
  0x32   : > { %p1959_p3 = pneg %p2385_p2  ;;  %s249_s13 = sshll.u32 %s242_s11, 4  ;;  %s2408_s13 = int_to_ptr.vmem [resolvable:$true] %s249_s13 }
  0x33   : > { %s219_s12 = sshll.u32 %s2779_s0, 4  ;;  %s239_s27 = scalar_lea.sflag [#allocation3], %s2315_s29  ;;  %s2389_s12 = int_to_ptr.vmem [resolvable:$true] %s219_s12 }
  0x34   : > { %s2398_s10 = scalar_lea.hbm %s2781_s2, %s1744_s7  ;;  %p2404_p4 = pnand %p1959_p3, %p2769_p12 }
  0x35   : > { %s2114_s16 = scalar_lea.hbm %s2398_s10, 512  ;;  %s2119_s9 = scalar_lea.hbm %s2781_s2, 1536 }
  0x36   : > { %s2782_s26 = scalar_select %p2404_p4, 1, 0 }
  0x37   : > { %p2115_p6 = scmp.ne.s32.totalorder %s2398_s10, %s2114_s16  ;;  %p2120_p11 = scmp.lt.u32.totalorder %s2398_s10, %s2781_s2 }
  0x38   : > { %p2121_p9 = scmp.lt.u32.totalorder %s2119_s9, %s2114_s16  ;;  %p2123_p0 = scmp.lt.u32.totalorder %s2114_s16, %s2398_s10 }
  0x39   : > { %p2117_p8 = pnand %p2115_p6, %p2341_p7 }
  0x3a   : > { %p2122_p13 = por %p2121_p9, %p2120_p11 }
  0x3b   : > { %p2118_p10 = pneg %p2117_p8 }
  0x3c   : > { %p2124_p3 = por %p2123_p0, %p2122_p13 }
  0x3e   : > { %p2125_p12 = pnand %p2124_p3, %p2118_p10 }
  0x40   : > { %2128 = shalt.err (!%p2125_p12)
}
  0x41   : > { %s2129_s11 = scalar_lea.vmem %s2408_s13, 512  ;;  %s2236_s7 = smov [#allocation5]  }
  0x42   : > { %p2130_p6 = scmp.ne.s32.totalorder %s2408_s13, %s2129_s11  ;;  %s2134_s21 = sshll.u32 %s2236_s7, 4  ;;  %s2135_s21 = int_to_ptr.vmem [resolvable:$false] %s2134_s21 }
  0x43   : > { %s2136_s18 = scalar_lea.vmem %s2135_s21, 1024  ;;  %p2137_p2 = scmp.lt.s32.totalorder %s2408_s13, %s2135_s21 }
  0x44   : > { %p2132_p8 = pnand %p2130_p6, %p2341_p7  ;;  %p2138_p4 = scmp.lt.s32.totalorder %s2136_s18, %s2129_s11 }
  0x46   : > { %p2133_p1 = pneg %p2132_p8  ;;  %p2139_p11 = por %p2138_p4, %p2137_p2 }
  0x48   : > { %p2140_p9 = pnand %p2139_p11, %p2133_p1 }
  0x4a   : > { %2143 = shalt.err (!%p2140_p9)
}
  0x4b   : > { %s2783_s16 = smov 8   ;;  %s2784_s9 = smov 128  }
  0x4c   : > { %1966 = dma.hbm_to_vmem [thread:$0]  (!%p2319_p5), %s2398_s10, 512, %s2408_s13, %s239_s27, %s2784_s9, %s2784_s9, %s2783_s16  }
  0x4d   : > { %s2144_s30 = scalar_lea.vmem %s2389_s12, 64  ;;  %p2785_p10 = scmp.ne.s32.totalorder %s2782_s26, 0 }
  0x4e   : > { %p2145_p12 = scmp.ne.s32.totalorder %s2389_s12, %s2144_s30  ;;  %p2152_p13 = scmp.lt.s32.totalorder %s2389_s12, %s2389_s12 }
  0x4f   : > { %p2146_p2 = pneg %p2785_p10  ;;  %p2153_p0 = scmp.lt.s32.totalorder %s2144_s30, %s2144_s30 }
  0x51   : > { %p2147_p1 = pnand %p2146_p2, %p2145_p12  ;;  %p2154_p3 = por %p2153_p0, %p2152_p13 }
  0x53   : > { %p2148_p4 = pneg %p2147_p1 }
  0x55   : > { %p2155_p6 = pnand %p2154_p3, %p2148_p4 }
  0x57   : > { %2158 = shalt.err (!%p2155_p6)
}
  0x58   : > { %s2237_s11 = smov [#allocation2]   ;;  %s1713_s10 = sshll.u32 %s2231_s24, 4 }
  0x59   : > { %1962 = dma.vmem_to_smem (!%p2785_p10), %s2389_s12, 64, %s2237_s11, [#allocation4]  }
  0x5a   : > { %s283_s13 = scalar_lea.vmem [#allocation8], %s2315_s29  ;;  %s288_s18 = scalar_lea.hbm %s2764_s4, %s1713_s10 }
  0x5b   : > { %s290_s27 = sshll.u32 %s283_s13, 4  ;;  %s2159_s16 = scalar_lea.hbm %s288_s18, 16  ;;  %s291_s27 = int_to_ptr.vmem [resolvable:$true] %s290_s27 }
  0x5c   : > { %p2160_p8 = scmp.ne.s32.totalorder %s288_s18, %s2159_s16  ;;  %s2164_s30 = scalar_lea.hbm %s2764_s4, 48 }
  0x5d   : > { %p2165_p12 = scmp.lt.u32.totalorder %s288_s18, %s2764_s4  ;;  %p2166_p10 = scmp.lt.u32.totalorder %s2164_s30, %s2159_s16 }
  0x5e   : > { %p2162_p11 = pnand %p2160_p8, %p2341_p7  ;;  %p2168_p1 = scmp.lt.u32.totalorder %s2159_s16, %s288_s18 }
  0x5f   : > { %p2167_p2 = por %p2166_p10, %p2165_p12 }
  0x60   : > { %p2163_p9 = pneg %p2162_p11 }
  0x61   : > { %p2169_p4 = por %p2168_p1, %p2167_p2 }
  0x63   : > { %p2170_p13 = pnand %p2169_p4, %p2163_p9 }
  0x65   : > { %2173 = shalt.err (!%p2170_p13)
}
  0x66   : > { %s2174_s24 = scalar_lea.vmem %s291_s27, 16  ;;  %s2238_s29 = smov [#allocation8]  }
  0x67   : > { %p2175_p0 = scmp.ne.s32.totalorder %s291_s27, %s2174_s24  ;;  %s2179_s12 = sshll.u32 %s2238_s29, 4  ;;  %s2180_s12 = int_to_ptr.vmem [resolvable:$false] %s2179_s12 }
  0x68   : > { %s2181_s11 = scalar_lea.vmem %s2180_s12, 32  ;;  %p2182_p8 = scmp.lt.s32.totalorder %s291_s27, %s2180_s12 }
  0x69   : > { %p2177_p3 = pnand %p2175_p0, %p2341_p7  ;;  %p2183_p11 = scmp.lt.s32.totalorder %s2181_s11, %s2174_s24 }
  0x6b   : > { %p2178_p6 = pneg %p2177_p3  ;;  %p2184_p5 = por %p2183_p11, %p2182_p8 }
  0x6d   : > { %p2185_p10 = pnand %p2184_p5, %p2178_p6 }
  0x6f   : > { %2188 = shalt.err (!%p2185_p10)
}
  0x70   : > { %p2786_p12 = scmp.ne.s32.totalorder %s2776_s8, 0  ;;  %p2787_p9 = scmp.ne.s32.totalorder %s2780_s14, 0 }
  0x71   : > { %p2788_p2 = scmp.eq.s32.totalorder (!%p2787_p9), %s2369_s19, 0 }
  0x72   : > { %1972 = dma.hbm_to_vmem [thread:$0]  (!%p2786_p12), %s288_s18, 16, %s291_s27, %s2335_s15  }
  0x73   : > { %299 = sbr.rel (%p2787_p9) target bundleno = 6155 (0x180b), region = 40 }
  0x7a   : > { %2206 = dma.done.wait (%p2788_p2), [#allocation4], 64   ;;  %p2789_p7 = pmov %p2788_p2 }
  0x7b   : > { %s2471_s0 = sand.u32 1, %s2223_s22   ;;  %p2790_p5 = scmp.ne.s32.totalorder %s2778_s20, 0 }
  0x7c   : > { %2208 = vsyncadd (%p2789_p7), [#allocation4], 4294967232  ;;  %s1716_s2 = sshll.u32 %s2471_s0, 5  ;;  %s306_s17 = scalar_lea.sflag [#allocation3], %s2471_s0 }
  0x7d   : > { %s309_s8 = scalar_lea.vmem [#allocation5], %s1716_s2 }
  0x7e   : > { %2210 = dma.done.wait (%p2790_p5), %s306_s17, 512  }
  0x7f   : > { %2212 = vsyncadd (%p2790_p5), %s306_s17, 4294966784  ;;  %s314_s15 = sand.u32 1, %s2369_s19   ;;  %s318_s10 = scalar_lea.vmem [#allocation6], %s1716_s2 }
  0x80   : > { %s315_s14 = scalar_lea.sflag [#allocation7], %s314_s15 }
  0x81   : > { %2214 = dma.done.wait (%p2790_p5), %s315_s14, 528  }
  0x82   : > { %2216 = vsyncadd (%p2790_p5), %s315_s14, 4294966768  ;;  %s326_s13 = scalar_lea.vmem [#allocation8], %s2471_s0 }
  0x83   : > { %331 = sfence }
  0x84   : > { %v390_v0 = vld [vmem:[%s309_s8] sm:$0xff]  ;;  %v391_v1 = vld [vmem:[%s309_s8 + $0x8] sm:$0xff]  ;;  %p374_p1 = scmp.lt.s32.totalorder %s2369_s19, 2  ;;  %v2239_v4 = vmov 0.0|0.0   ;;  %v392_v6 = vld [vmem:[%s309_s8 + $0x10] sm:$0xff]  ;;  %vm2240_vm0 = vmmov 0   ;;  %v495_v31 = vlaneseq }
  0x85   : > { %v483_v2 = vld [vmem:[%s318_s10] sm:$0xff]  ;;  %v1893_v3 = vpack.c.bf16 %v391_v1, %v390_v0  ;;  %1901 = vmatprep.subr.bf16.mxu1 %v2239_v4  ;;  %v484_v5 = vld [vmem:[%s318_s10 + $0x8] sm:$0xff]  ;;  %v393_v7 = vld [vmem:[%s309_s8 + $0x18] sm:$0xff]  ;;  %v2241_v12 = vmov 0.0   ;;  %vm401_vm1 = vcmask 261120   ;;  %s1726_s16 = sshll.u32 %s2369_s19, 7 }
  0x86   : > { %v2487_v8 = vpack.c.bf16 %v484_v5, %v483_v2  ;;  %v1897_v9 = vpack.c.bf16 %v393_v7, %v392_v6  ;;  %s2490_s20 = scalar_select %p374_p1, %s2369_s19, 2  ;;  %v485_v10 = vld [vmem:[%s318_s10 + $0x10] sm:$0xff]  ;;  %v486_v11 = vld [vmem:[%s318_s10 + $0x18] sm:$0xff]  ;;  %1813 = vmatprep.mubr.msk.f32.mxu1 %vm2240_vm0, %v2241_v12  ;;  %v2242_v16 = vmov 0   ;;  %vm493_vm2 = vcmask 1040384  }
  0x87   : > { %1894 = vmatprep.subr.bf16.mxu0 %v1893_v3  ;;  %v2496_v13 = vpack.c.bf16 %v486_v11, %v485_v10  ;;  %2018 = vset.pattern.permute.xlu1 %v2242_v16  ;;  %s488_s9 = sld [smem:[#allocation2 + %s1726_s16]]  ;;  %s490_s26 = sadd.s32 1, %s1726_s16  ;;  %v1723_v21 = vld [vmem:[%s326_s13] ss:$0 sm:$0xff]  ;;  %v496_v33 = vand.u32 127, %v495_v31  ;;  %vm612_vm8 = vcmask 253952  }
  0x88   : > { %1896 = vmatpush3.bf16.msra.mxu0 %v1893_v3  ;;  %1903 = vmatpush3.bf16.msra.mxu1 %v2487_v8  ;;  %s1746_s27 = sshll.u32 %s2490_s20, 4  ;;  %s491_s30 = sld [smem:[#allocation2 + %s490_s26]]  ;;  %vm614_vm9 = vcmask 254977  }
  0x89   : > { %1898 = vmatprep.subr.bf16.mxu0 %v1897_v9  ;;  %1904 = vmatprep.subr.bf16.mxu1 %v2239_v4  ;;  %s378_s18 = scalar_lea.vmem %s2761_s1, %s1746_s27  ;;  %vm497_vm4 = vcmp.ge.s32.totalorder %v496_v33, 64  ;;  %vm498_vm5 = vcmp.lt.s32.totalorder %v496_v33, 96  ;;  %s2243_s19 = smov 64  }
  0x8a   : > { %v388_v14 = vld [vmem:[%s378_s18] sm:$0xff]  ;;  %v389_v15 = vld [vmem:[%s378_s18 + $0x8] sm:$0xff]  ;;  %2019 = vset.pattern.permute.xlu0 %v2242_v16  ;;  %vm2536_vm6 = vmand %vm497_vm4, %vm498_vm5  ;;  %s2244_s24 = smov 32   ;;  %s2555_s11 = scalar_lea.vmem %s2765_s5, %s1746_s27 }
  0x8b   : > { %1802 = vmatprep.mubr.msk.f32.mxu0 %vm401_vm1, %v388_v14  ;;  %s2245_s0 = smov 96   ;;  %s1722_s2 = sshll.u32 %s2490_s20, 1 }
  0x8c   : > { %1900 = vmatpush3.bf16.msra.mxu0 %v1897_v9  ;;  %1906 = vmatpush3.bf16.msra.mxu1 %v2496_v13  ;;  %s387_s15 = scalar_lea.vmem %s2766_s6, %s1722_s2 }
  0x8d   : > { %1907 = vmatprep.subr.bf16.mxu0 %v2239_v4  ;;  %1913 = vmatprep.subr.bf16.mxu1 %v2239_v4  ;;  %v489_v17 = vstv %s488_s9 }
  0x8e   : > { %v492_v18 = vstv %s491_s30 }
  0x8f   : > { %1803 = vmatmul.mubr.msk.f32.vlgmr.msra.gmra.mrb[0].mxu0 %vm401_vm1, %v389_v15  ;;  %1814 = vmatmul.mubr.f32.vlgmr.msra.gmra.mrb[0].mxu1 %v2241_v12  ;;  %v2525_v19 = vsel %vm493_vm2, %v489_v17, %v492_v18 }
  0x90   : > { %1909 = vmatpush3.bf16.msra.mxu0 %v2487_v8  ;;  %1824 = vmatprep.mubr.msk.f32.mxu0 %vm2240_vm0, %v2241_v12  ;;  %vm601_vm3 = vcmp.gt.s32.totalorder %v2525_v19, 0  ;;  %vm722_vm10 = vcmp.gt.s32.totalorder %v2525_v19, 1  ;;  %vm858_vm12 = vcmp.gt.s32.totalorder %v2525_v19, 2  ;;  %vm991_vm14 = vcmp.gt.s32.totalorder %v2525_v19, 3 }
  0x91   : > { %1910 = vmatprep.subr.bf16.mxu0 %v2239_v4  ;;  %1915 = vmatpush3.bf16.msra.mxu1 %v2487_v8  ;;  %v602_v20 = vsel %vm601_vm3, 1, %v2242_v16  ;;  %v723_v61 = vsel %vm722_vm10, 1, %v2242_v16  ;;  %vm1120_vm2 = vcmp.gt.s32.totalorder %v2525_v19, 4  ;;  %vm1383_vm5 = vcmp.gt.s32.totalorder %v2525_v19, 6 }
  0x92   : > { %1916 = vmatprep.subr.bf16.mxu1 %v2239_v4  ;;  %1835 = vmatprep.mubr.msk.f32.mxu1 %vm2240_vm0, %v2241_v12 }
  0x93   : > { %604 = vperm.xlu1 %2018, %v602_v20  }
  0x94   : > { %1912 = vmatpush3.bf16.msra.mxu0 %v2496_v13 }
  0x95   : > { %1918 = vmatpush3.bf16.msra.mxu1 %v2496_v13  ;;  %1919 = vmatprep.subr.bf16.mxu0 %v2239_v4 }
  0x96   : > { %1925 = vmatprep.subr.bf16.mxu1 %v2239_v4 }
 0x112   : > { %v605_v44 = vpop.permute.xlu1 %604 }
 0x113   : > { %vm606_vm7 = vcmp.eq.s32.totalorder %v605_v44, 1 }
 0x162   : > { %v1804_v22 = vpop.f32.mrb[0].mxu0  ;;  %v569_v23 = vpop.f32.mrb[0].mxu1 }
 0x163   : > { %v2531_v24 = vadd.f32 %v1804_v22, %v1723_v21  ;;  %v474_v25 = vpop.f32.mrb[1].mxu0  ;;  %v1815_v26 = vpop.f32.mrb[1].mxu1 }
 0x164   : > { %v2533_v27 = vadd.f32 %v1723_v21, %v474_v25 }
 0x166   : > { %v573_v28 = vadd.f32 %v569_v23, %v2533_v27 }
 0x168   : > { %v1727_v29 = vmul.f32 -1.442695, %v573_v28 }
 0x16a   : > { %2020 = vpow2.f32 %v1727_v29 }
 0x16b   : > { %2022 = vtanh.f32 %v573_v28 }
 0x174   : > { %v2021_v30 = vpop.eup %2020 }
 0x175   : > { %v578_v32 = vadd.f32 1.0, %v2021_v30  ;;  %v2023_v35 = vpop.eup %2022 }
 0x177   : > { %2024 = vrcp.f32 %v578_v32 }
 0x181   : > { %v2025_v36 = vpop.eup %2024 }
 0x182   : > { %v583_v37 = vsel %vm2536_vm6, %v2023_v35, %v2025_v36 }
 0x183   : > { %586 = vrot.lane.b32.xlu0 %v583_v37, %s2243_s19  ;;  %v584_v40 = vmul.f32 0.0, %v583_v37 }
 0x1f5   : > { %v587_v38 = vpop.permute.xlu0 %586 }
 0x1f6   : > { %v589_v39 = vmul.f32 %v587_v38, %v583_v37 }
 0x1f8   : > { %591 = vrot.lane.b32.xlu0 %v589_v39, %s2244_s24 }
 0x26a   : > { %v592_v41 = vpop.permute.xlu0 %591 }
 0x26b   : > { %v594_v42 = vadd.f32 %v592_v41, %v584_v40 }
 0x26d   : > { %2026 = vtanh.f32 %v594_v42  ;;  %v616_v62 = vsel %vm606_vm7, %v594_v42, 0.0 }
 0x26e   : > { %v703_v63 = vrot.slane %v616_v62, 6 }
 0x277   : > { %v2027_v43 = vpop.eup %2026 }
 0x278   : > { %597 = vrot.lane.b32.xlu1 %v2027_v43, %s2243_s19 }
 0x2ea   : > { %v598_v45 = vpop.permute.xlu1 %597 }
 0x2eb   : > { %v600_v46 = vmul.f32 %v598_v45, %v583_v37  ;;  %v859_v37 = vsel %vm858_vm12, 1, %v2242_v16 }
 0x2ed   : > { %v2546_v47 = vsel %vm606_vm7, %v600_v46, 0.0 }
 0x2ee   : > { %609 = vrot.lane.b32.xlu0 %v2546_v47, %s2244_s24 }
 0x360   : > { %v610_v48 = vpop.permute.xlu0 %609 }
 0x361   : > { %613 = vst.msk [vmem:[%s2555_s11] sm:$0x1] %vm612_vm8, %v610_v48  ;;  %1825 = vmatmul.mubr.msk.f32.vlgmr.msra.gmra.mrb[2].mxu0 %vm401_vm1, %v610_v48 }
 0x362   : > { %615 = vst.msk [vmem:[%s2555_s11 + $0x7] sm:$0x2] %vm614_vm9, %v610_v48  ;;  %1921 = vmatpush3.bf16.msra.mxu0 %v2487_v8  ;;  %1846 = vmatprep.mubr.msk.f32.mxu0 %vm2240_vm0, %v2241_v12 }
 0x363   : > { %1922 = vmatprep.subr.bf16.mxu0 %v2239_v4 }
 0x366   : > { %1924 = vmatpush3.bf16.msra.mxu0 %v2496_v13 }
 0x367   : > { %1931 = vmatprep.subr.bf16.mxu0 %v2239_v4 }
 0x434   : > { %v686_v49 = vpop.f32.mrb[2].mxu0 }
 0x435   : > { %v691_v50 = vrot.slane %v686_v49, 6  ;;  %v1826_v51 = vpop.f32.mrb[3].mxu0 }
 0x437   : > { %v693_v52 = vadd.f32 %v691_v50, %v2533_v27 }
 0x439   : > { %v1729_v53 = vmul.f32 -1.442695, %v693_v52 }
 0x43b   : > { %2028 = vpow2.f32 %v1729_v53 }
 0x43c   : > { %2030 = vtanh.f32 %v693_v52 }
 0x445   : > { %v2029_v54 = vpop.eup %2028 }
 0x446   : > { %v698_v55 = vadd.f32 1.0, %v2029_v54  ;;  %v2031_v56 = vpop.eup %2030 }
 0x448   : > { %2032 = vrcp.f32 %v698_v55 }
 0x452   : > { %v2033_v57 = vpop.eup %2032 }
 0x453   : > { %v701_v58 = vsel %vm2536_vm6, %v2031_v56, %v2033_v57 }
 0x454   : > { %707 = vrot.lane.b32.xlu1 %v701_v58, %s2243_s19  ;;  %v705_v0 = vmul.f32 %v703_v63, %v701_v58 }
 0x4c6   : > { %v708_v59 = vpop.permute.xlu1 %707 }
 0x4c7   : > { %v710_v60 = vmul.f32 %v708_v59, %v701_v58 }
 0x4c9   : > { %712 = vrot.lane.b32.xlu0 %v710_v60, %s2244_s24 }
 0x4cd   : > { %725 = vperm.xlu0 %2019, %v723_v61  }
 0x4d1   : > { %742 = vrot.lane.b32.xlu0 %v616_v62, %s2245_s0 }
 0x53b   : > { %v713_v1 = vpop.permute.xlu0 %712 }
 0x53c   : > { %v715_v2 = vadd.f32 %v713_v1, %v705_v0 }
 0x53e   : > { %2034 = vtanh.f32 %v715_v2  ;;  %v738_v9 = vrot.slane %v715_v2, 2 }
 0x548   : > { %v2035_v3 = vpop.eup %2034 }
 0x549   : > { %718 = vrot.lane.b32.xlu1 %v2035_v3, %s2243_s19 }
 0x54c   : > { %v726_v10 = vpop.permute.xlu0 %725 }
 0x54d   : > { %vm727_vm11 = vcmp.eq.s32.totalorder %v726_v10, 1 }
 0x550   : > { %v743_v17 = vpop.permute.xlu0 %742 }
 0x5bb   : > { %v719_v5 = vpop.permute.xlu1 %718 }
 0x5bc   : > { %v721_v6 = vmul.f32 %v719_v5, %v701_v58 }
 0x5be   : > { %v729_v7 = vrot.slane %v721_v6, 2 }
 0x5c0   : > { %730 = vrot.lane.b32.xlu1 %v729_v7, %s2244_s24 }
 0x5c4   : > { %739 = vrot.lane.b32.xlu1 %v738_v9, %s2245_s0 }
 0x632   : > { %v731_v11 = vpop.permute.xlu1 %730 }
 0x633   : > { %v736_v14 = vsel %vm727_vm11, %v731_v11, %v610_v48  ;;  %v2580_v15 = vsel %vm727_vm11, %v731_v11, 0.0 }
 0x634   : > { %1836 = vmatmul.mubr.msk.f32.vlgmr.msra.gmra.mrb[2].mxu1 %vm401_vm1, %v736_v14  ;;  %734 = vst.msk [vmem:[%s2555_s11 + $0x1] sm:$0x1] %vm612_vm8, %v2580_v15 }
 0x635   : > { %735 = vst.msk [vmem:[%s2555_s11 + $0x8] sm:$0x2] %vm614_vm9, %v2580_v15  ;;  %1927 = vmatpush3.bf16.msra.mxu1 %v2487_v8  ;;  %1857 = vmatprep.mubr.msk.f32.mxu1 %vm2240_vm0, %v2241_v12 }
 0x636   : > { %v740_v18 = vpop.permute.xlu1 %739  ;;  %1928 = vmatprep.subr.bf16.mxu1 %v2239_v4 }
 0x637   : > { %v745_v20 = vsel %vm727_vm11, %v740_v18, %v743_v17  ;;  %v1121_v18 = vsel %vm1120_vm2, 1, %v2242_v16 }
 0x638   : > { %v837_v21 = vrot.slane %v745_v20, 4 }
 0x639   : > { %1930 = vmatpush3.bf16.msra.mxu1 %v2496_v13 }
 0x63a   : > { %838 = vrot.lane.b32.xlu0 %v837_v21, %s2244_s24  ;;  %1937 = vmatprep.subr.bf16.mxu1 %v2239_v4 }
 0x6ac   : > { %v839_v38 = vpop.permute.xlu0 %838 }
 0x707   : > { %v820_v22 = vpop.f32.mrb[2].mxu1 }
 0x708   : > { %v825_v23 = vrot.slane %v820_v22, 4  ;;  %v1837_v25 = vpop.f32.mrb[3].mxu1 }
 0x70a   : > { %v827_v26 = vadd.f32 %v825_v23, %v2533_v27 }
 0x70c   : > { %v1731_v28 = vmul.f32 -1.442695, %v827_v26 }
 0x70e   : > { %2036 = vpow2.f32 %v1731_v28 }
 0x70f   : > { %2038 = vtanh.f32 %v827_v26 }
 0x718   : > { %v2037_v29 = vpop.eup %2036 }
 0x719   : > { %v832_v30 = vadd.f32 1.0, %v2037_v29  ;;  %v2039_v31 = vpop.eup %2038 }
 0x71b   : > { %2040 = vrcp.f32 %v832_v30 }
 0x725   : > { %v2041_v32 = vpop.eup %2040 }
 0x726   : > { %v835_v33 = vsel %vm2536_vm6, %v2039_v31, %v2041_v32 }
 0x727   : > { %843 = vrot.lane.b32.xlu1 %v835_v33, %s2243_s19  ;;  %v841_v39 = vmul.f32 %v839_v38, %v835_v33 }
 0x799   : > { %v844_v35 = vpop.permute.xlu1 %843 }
 0x79a   : > { %v846_v36 = vmul.f32 %v844_v35, %v835_v33 }
 0x79c   : > { %848 = vrot.lane.b32.xlu1 %v846_v36, %s2244_s24 }
 0x7a0   : > { %861 = vperm.xlu1 %2018, %v859_v37  }
 0x80e   : > { %v849_v40 = vpop.permute.xlu1 %848 }
 0x80f   : > { %v851_v41 = vadd.f32 %v849_v40, %v841_v39 }
 0x811   : > { %2042 = vtanh.f32 %v851_v41  ;;  %v874_v42 = vrot.slane %v851_v41, 4 }
 0x813   : > { %875 = vrot.lane.b32.xlu1 %v874_v42, %s2245_s0 }
 0x81b   : > { %v2043_v43 = vpop.eup %2042 }
 0x81c   : > { %854 = vrot.lane.b32.xlu0 %v2043_v43, %s2243_s19 }
 0x81f   : > { %v862_v44 = vpop.permute.xlu1 %861 }
 0x820   : > { %vm863_vm13 = vcmp.eq.s32.totalorder %v862_v44, 1 }
 0x885   : > { %v876_v45 = vpop.permute.xlu1 %875 }
 0x886   : > { %v878_v46 = vsel %vm863_vm13, %v876_v45, %v745_v20 }
 0x887   : > { %v970_v48 = vrot.slane %v878_v46, 2 }
 0x889   : > { %971 = vrot.lane.b32.xlu1 %v970_v48, %s2244_s24 }
 0x88e   : > { %v855_v49 = vpop.permute.xlu0 %854 }
 0x88f   : > { %v857_v50 = vmul.f32 %v855_v49, %v835_v33 }
 0x891   : > { %v865_v51 = vrot.slane %v857_v50, 4 }
 0x893   : > { %866 = vrot.lane.b32.xlu0 %v865_v51, %s2244_s24 }
 0x8fb   : > { %v972_v3 = vpop.permute.xlu1 %971 }
 0x905   : > { %v867_v52 = vpop.permute.xlu0 %866 }
 0x906   : > { %v872_v53 = vsel %vm863_vm13, %v867_v52, %v736_v14  ;;  %v2607_v54 = vsel %vm863_vm13, %v867_v52, 0.0 }
 0x907   : > { %1847 = vmatmul.mubr.msk.f32.vlgmr.msra.gmra.mrb[4].mxu0 %vm401_vm1, %v872_v53  ;;  %870 = vst.msk [vmem:[%s2555_s11 + $0x2] sm:$0x1] %vm612_vm8, %v2607_v54 }
 0x908   : > { %871 = vst.msk [vmem:[%s2555_s11 + $0x9] sm:$0x2] %vm614_vm9, %v2607_v54  ;;  %1933 = vmatpush3.bf16.msra.mxu0 %v2487_v8  ;;  %1868 = vmatprep.mubr.msk.f32.mxu0 %vm2240_vm0, %v2241_v12 }
 0x909   : > { %1934 = vmatprep.subr.bf16.mxu0 %v2239_v4 }
 0x90c   : > { %1936 = vmatpush3.bf16.msra.mxu0 %v2496_v13 }
 0x90d   : > { %1943 = vmatprep.subr.bf16.mxu0 %v2239_v4 }
 0x9da   : > { %v953_v55 = vpop.f32.mrb[4].mxu0 }
 0x9db   : > { %v958_v56 = vrot.slane %v953_v55, 2  ;;  %v1848_v57 = vpop.f32.mrb[5].mxu0 }
 0x9dd   : > { %v960_v58 = vadd.f32 %v958_v56, %v2533_v27  ;;  %v992_v27 = vsel %vm991_vm14, 1, %v2242_v16 }
 0x9df   : > { %v1733_v59 = vmul.f32 -1.442695, %v960_v58 }
 0x9e1   : > { %2044 = vpow2.f32 %v1733_v59 }
 0x9e2   : > { %2046 = vtanh.f32 %v960_v58 }
 0x9eb   : > { %v2045_v60 = vpop.eup %2044 }
 0x9ec   : > { %v965_v61 = vadd.f32 1.0, %v2045_v60  ;;  %v2047_v62 = vpop.eup %2046 }
 0x9ee   : > { %2048 = vrcp.f32 %v965_v61 }
 0x9f8   : > { %v2049_v63 = vpop.eup %2048 }
 0x9f9   : > { %v968_v0 = vsel %vm2536_vm6, %v2047_v62, %v2049_v63 }
 0x9fa   : > { %976 = vrot.lane.b32.xlu0 %v968_v0, %s2243_s19  ;;  %v974_v5 = vmul.f32 %v972_v3, %v968_v0 }
 0xa6c   : > { %v977_v1 = vpop.permute.xlu0 %976 }
 0xa6d   : > { %v979_v2 = vmul.f32 %v977_v1, %v968_v0 }
 0xa6f   : > { %981 = vrot.lane.b32.xlu0 %v979_v2, %s2244_s24 }
 0xa73   : > { %994 = vperm.xlu0 %2019, %v992_v27  }
 0xae1   : > { %v982_v6 = vpop.permute.xlu0 %981 }
 0xae2   : > { %v984_v7 = vadd.f32 %v982_v6, %v974_v5 }
 0xae4   : > { %2050 = vtanh.f32 %v984_v7  ;;  %v1007_v9 = vrot.slane %v984_v7, 6 }
 0xae6   : > { %1008 = vrot.lane.b32.xlu0 %v1007_v9, %s2245_s0 }
 0xaee   : > { %v2051_v10 = vpop.eup %2050 }
 0xaef   : > { %987 = vrot.lane.b32.xlu1 %v2051_v10, %s2243_s19 }
 0xaf2   : > { %v995_v11 = vpop.permute.xlu0 %994 }
 0xaf3   : > { %vm996_vm15 = vcmp.eq.s32.totalorder %v995_v11, 1 }
 0xb58   : > { %v1009_v14 = vpop.permute.xlu0 %1008 }
 0xb59   : > { %v1011_v17 = vsel %vm996_vm15, %v1009_v14, %v878_v46 }
 0xb5a   : > { %1100 = vrot.lane.b32.xlu0 %v1011_v17, %s2244_s24 }
 0xb5e   : > { %1123 = vperm.xlu0 %2019, %v1121_v18  }
 0xb61   : > { %v988_v20 = vpop.permute.xlu1 %987 }
 0xb62   : > { %v990_v21 = vmul.f32 %v988_v20, %v968_v0 }
 0xb64   : > { %v998_v22 = vrot.slane %v990_v21, 6 }
 0xb66   : > { %999 = vrot.lane.b32.xlu1 %v998_v22, %s2244_s24 }
 0xbcc   : > { %v1101_v40 = vpop.permute.xlu0 %1100 }
 0xbd8   : > { %v1000_v23 = vpop.permute.xlu1 %999 }
 0xbd9   : > { %v1005_v25 = vsel %vm996_vm15, %v1000_v23, %v872_v53  ;;  %v2635_v26 = vsel %vm996_vm15, %v1000_v23, 0.0 }
 0xbda   : > { %1133 = vrot.lane.b32.xlu0 %v1005_v25, %s2245_s0  ;;  %1858 = vmatmul.mubr.msk.f32.vlgmr.msra.gmra.mrb[4].mxu1 %vm401_vm1, %v1005_v25  ;;  %1003 = vst.msk [vmem:[%s2555_s11 + $0x3] sm:$0x1] %vm612_vm8, %v2635_v26 }
 0xbdb   : > { %1004 = vst.msk [vmem:[%s2555_s11 + $0xa] sm:$0x2] %vm614_vm9, %v2635_v26  ;;  %1939 = vmatpush3.bf16.msra.mxu1 %v2487_v8  ;;  %1879 = vmatprep.mubr.msk.f32.mxu1 %vm2240_vm0, %v2241_v12 }
 0xbdc   : > { %1940 = vmatprep.subr.bf16.mxu1 %v2239_v4 }
 0xbdd   : > { %v2656_v45 = vpop.permute.xlu0 %1123 }
 0xbde   : > { %vm1125_vm3 = vcmp.eq.s32.totalorder %v2656_v45, 1 }
 0xbdf   : > { %1942 = vmatpush3.bf16.msra.mxu1 %v2496_v13 }
 0xc4c   : > { %v1134_v49 = vpop.permute.xlu0 %1133 }
 0xcad   : > { %v1086_v28 = vpop.f32.mrb[4].mxu1 }
 0xcae   : > { %v1090_v29 = vadd.f32 %v1086_v28, %v2531_v24  ;;  %v1859_v30 = vpop.f32.mrb[5].mxu1 }
 0xcb0   : > { %v1735_v31 = vmul.f32 -1.442695, %v1090_v29 }
 0xcb2   : > { %2052 = vpow2.f32 %v1735_v31 }
 0xcb3   : > { %2054 = vtanh.f32 %v1090_v29 }
 0xcbc   : > { %v2053_v32 = vpop.eup %2052 }
 0xcbd   : > { %v1095_v33 = vadd.f32 1.0, %v2053_v32  ;;  %v2055_v35 = vpop.eup %2054 }
 0xcbf   : > { %2056 = vrcp.f32 %v1095_v33 }
 0xcc9   : > { %v2057_v36 = vpop.eup %2056 }
 0xcca   : > { %v1098_v37 = vsel %vm2536_vm6, %v2055_v35, %v2057_v36 }
 0xccb   : > { %1105 = vrot.lane.b32.xlu1 %v1098_v37, %s2243_s19  ;;  %v1103_v41 = vmul.f32 %v1101_v40, %v1098_v37 }
 0xd3d   : > { %v1106_v38 = vpop.permute.xlu1 %1105 }
 0xd3e   : > { %v1108_v39 = vmul.f32 %v1106_v38, %v1098_v37  ;;  %v1384_v38 = vsel %vm1383_vm5, 1, %v2242_v16 }
 0xd40   : > { %1110 = vrot.lane.b32.xlu1 %v1108_v39, %s2244_s24 }
 0xdb2   : > { %v1111_v42 = vpop.permute.xlu1 %1110 }
 0xdb3   : > { %v1113_v43 = vadd.f32 %v1111_v42, %v1103_v41 }
 0xdb5   : > { %2058 = vtanh.f32 %v1113_v43  ;;  %v1137_v62 = vsel %vm1125_vm3, %v1113_v43, %v1101_v40 }
 0xdb6   : > { %v1227_v63 = vrot.slane %v1137_v62, 6 }
 0xdbf   : > { %v2059_v44 = vpop.eup %2058 }
 0xdc0   : > { %1116 = vrot.lane.b32.xlu1 %v2059_v44, %s2243_s19 }
 0xe32   : > { %v1117_v46 = vpop.permute.xlu1 %1116 }
 0xe33   : > { %v2658_v48 = vmul.f32 %v1117_v46, %v1098_v37 }
 0xe35   : > { %v1136_v50 = vsel %vm1125_vm3, %v2658_v48, %v1134_v49  ;;  %v1126_v34 = vsel %vm1125_vm3, %v2658_v48, 0.0 }
 0xe36   : > { %1140 = vrot.lane.b32.xlu1 %v1136_v50, %s2244_s24 }
 0xea8   : > { %v1141_v51 = vpop.permute.xlu1 %1140 }
 0xea9   : > { %1869 = vmatmul.mubr.msk.f32.vlgmr.msra.gmra.mrb[6].mxu0 %vm401_vm1, %v1141_v51 }
 0xeaa   : > { %1945 = vmatpush3.bf16.msra.mxu0 %v2487_v8  ;;  %1890 = vmatprep.mubr.msk.f32.mxu0 %vm2240_vm0, %v2241_v12  ;;  %vm1246_vm0 = vcmp.gt.s32.totalorder %v2525_v19, 5 }
 0xeab   : > { %1946 = vmatprep.subr.bf16.mxu0 %v2239_v4  ;;  %v1247_v61 = vsel %vm1246_vm0, 1, %v2242_v16 }
 0xeae   : > { %1948 = vmatpush3.bf16.msra.mxu0 %v2496_v13 }
 0xf7c   : > { %v1210_v52 = vpop.f32.mrb[6].mxu0 }
 0xf7d   : > { %v1215_v53 = vrot.slane %v1210_v52, 6  ;;  %v1870_v55 = vpop.f32.mrb[7].mxu0 }
 0xf7f   : > { %v1217_v56 = vadd.f32 %v1215_v53, %v2531_v24 }
 0xf81   : > { %v1737_v57 = vmul.f32 -1.442695, %v1217_v56 }
 0xf83   : > { %2060 = vpow2.f32 %v1737_v57 }
 0xf84   : > { %2062 = vtanh.f32 %v1217_v56 }
 0xf8d   : > { %v2061_v58 = vpop.eup %2060 }
 0xf8e   : > { %v1222_v59 = vadd.f32 1.0, %v2061_v58  ;;  %v2063_v60 = vpop.eup %2062 }
 0xf90   : > { %2064 = vrcp.f32 %v1222_v59 }
 0xf9a   : > { %v2065_v8 = vpop.eup %2064 }
 0xf9b   : > { %v1225_v12 = vsel %vm2536_vm6, %v2063_v60, %v2065_v8 }
 0xf9c   : > { %1231 = vrot.lane.b32.xlu0 %v1225_v12, %s2243_s19  ;;  %v1229_v0 = vmul.f32 %v1227_v63, %v1225_v12 }
0x100e   : > { %v1232_v4 = vpop.permute.xlu0 %1231 }
0x100f   : > { %v1234_v13 = vmul.f32 %v1232_v4, %v1225_v12 }
0x1011   : > { %1236 = vrot.lane.b32.xlu1 %v1234_v13, %s2244_s24 }
0x1015   : > { %1249 = vperm.xlu1 %2018, %v1247_v61  }
0x1083   : > { %v1237_v1 = vpop.permute.xlu1 %1236 }
0x1084   : > { %v1239_v2 = vadd.f32 %v1237_v1, %v1229_v0 }
0x1086   : > { %2066 = vtanh.f32 %v1239_v2  ;;  %v1263_v27 = vrot.slane %v1239_v2, 2 }
0x1088   : > { %1264 = vrot.lane.b32.xlu1 %v1263_v27, %s2245_s0 }
0x1090   : > { %v2067_v3 = vpop.eup %2066 }
0x1091   : > { %1242 = vrot.lane.b32.xlu0 %v2067_v3, %s2243_s19 }
0x1094   : > { %v1250_v9 = vpop.permute.xlu1 %1249 }
0x1095   : > { %vm1251_vm4 = vcmp.eq.s32.totalorder %v1250_v9, 1 }
0x10fa   : > { %v1265_v17 = vpop.permute.xlu1 %1264 }
0x1103   : > { %v1243_v5 = vpop.permute.xlu0 %1242 }
0x1104   : > { %v1245_v6 = vmul.f32 %v1243_v5, %v1225_v12 }
0x1106   : > { %v1253_v7 = vrot.slane %v1245_v6, 2 }
0x1108   : > { %1254 = vrot.lane.b32.xlu0 %v1253_v7, %s2244_s24 }
0x110c   : > { %1267 = vrot.lane.b32.xlu0 %v1137_v62, %s2245_s0 }
0x117a   : > { %v1255_v10 = vpop.permute.xlu0 %1254 }
0x117b   : > { %v1261_v11 = vsel %vm1251_vm4, %v1255_v10, %v1141_v51  ;;  %v2684_v14 = vsel %vm1251_vm4, %v1255_v10, 0.0 }
0x117c   : > { %1880 = vmatmul.mubr.msk.f32.vlgmr.msra.gmra.mrb[6].mxu1 %vm401_vm1, %v1261_v11  ;;  %1258 = vst.msk [vmem:[%s2555_s11 + $0x5] sm:$0x1] %vm612_vm8, %v2684_v14 }
0x117d   : > { %1259 = vst.msk [vmem:[%s2555_s11 + $0xc] sm:$0x2] %vm614_vm9, %v2684_v14 }
0x117e   : > { %v1268_v18 = vpop.permute.xlu0 %1267 }
0x117f   : > { %v1270_v20 = vsel %vm1251_vm4, %v1265_v17, %v1268_v18 }
0x1180   : > { %v1362_v21 = vrot.slane %v1270_v20, 4 }
0x1182   : > { %1363 = vrot.lane.b32.xlu0 %v1362_v21, %s2244_s24 }
0x11f4   : > { %v1364_v39 = vpop.permute.xlu0 %1363 }
0x124f   : > { %v1345_v22 = vpop.f32.mrb[6].mxu1 }
0x1250   : > { %v1350_v23 = vrot.slane %v1345_v22, 4  ;;  %v1881_v25 = vpop.f32.mrb[7].mxu1 }
0x1252   : > { %v1352_v28 = vadd.f32 %v1350_v23, %v2531_v24 }
0x1254   : > { %v1739_v29 = vmul.f32 -1.442695, %v1352_v28 }
0x1256   : > { %2068 = vpow2.f32 %v1739_v29 }
0x1257   : > { %2070 = vtanh.f32 %v1352_v28 }
0x1260   : > { %v2069_v30 = vpop.eup %2068 }
0x1261   : > { %v1357_v31 = vadd.f32 1.0, %v2069_v30  ;;  %v2071_v32 = vpop.eup %2070 }
0x1263   : > { %2072 = vrcp.f32 %v1357_v31 }
0x126d   : > { %v2073_v33 = vpop.eup %2072 }
0x126e   : > { %v1360_v35 = vsel %vm2536_vm6, %v2071_v32, %v2073_v33 }
0x126f   : > { %1368 = vrot.lane.b32.xlu1 %v1360_v35, %s2243_s19  ;;  %v1366_v40 = vmul.f32 %v1364_v39, %v1360_v35 }
0x12e1   : > { %v1369_v36 = vpop.permute.xlu1 %1368 }
0x12e2   : > { %v1371_v37 = vmul.f32 %v1369_v36, %v1360_v35 }
0x12e4   : > { %1373 = vrot.lane.b32.xlu1 %v1371_v37, %s2244_s24 }
0x12e8   : > { %1386 = vperm.xlu1 %2018, %v1384_v38  }
0x1356   : > { %v1374_v41 = vpop.permute.xlu1 %1373 }
0x1357   : > { %v1376_v42 = vadd.f32 %v1374_v41, %v1366_v40 }
0x1359   : > { %2074 = vtanh.f32 %v1376_v42  ;;  %v1399_v43 = vrot.slane %v1376_v42, 4 }
0x135b   : > { %1400 = vrot.lane.b32.xlu1 %v1399_v43, %s2245_s0 }
0x1363   : > { %v2075_v44 = vpop.eup %2074 }
0x1364   : > { %1379 = vrot.lane.b32.xlu0 %v2075_v44, %s2243_s19 }
0x1367   : > { %v1387_v46 = vpop.permute.xlu1 %1386 }
0x1368   : > { %vm1388_vm7 = vcmp.eq.s32.totalorder %v1387_v46, 1 }
0x13cd   : > { %v1401_v49 = vpop.permute.xlu1 %1400 }
0x13ce   : > { %v1403_v50 = vsel %vm1388_vm7, %v1401_v49, %v1270_v20 }
0x13cf   : > { %v1495_v51 = vrot.slane %v1403_v50, 2 }
0x13d1   : > { %1496 = vrot.lane.b32.xlu1 %v1495_v51, %s2244_s24 }
0x13d6   : > { %v1380_v52 = vpop.permute.xlu0 %1379 }
0x13d7   : > { %v1382_v53 = vmul.f32 %v1380_v52, %v1360_v35 }
0x13d9   : > { %v1390_v55 = vrot.slane %v1382_v53, 4 }
0x13db   : > { %1391 = vrot.lane.b32.xlu0 %v1390_v55, %s2244_s24 }
0x144d   : > { %v1392_v56 = vpop.permute.xlu0 %1391 }
0x144e   : > { %v1397_v57 = vsel %vm1388_vm7, %v1392_v56, %v1261_v11  ;;  %v1394_v58 = vsel %vm1388_vm7, %v1392_v56, 0.0 }
0x144f   : > { %1891 = vmatmul.mubr.msk.f32.vlgmr.msra.gmra.mrb[8].mxu0 %vm401_vm1, %v1397_v57  ;;  %1395 = vst.msk [vmem:[%s2555_s11 + $0x6] sm:$0x1] %vm612_vm8, %v1394_v58  ;;  %vm1516_vm1 = vcmp.gt.s32.totalorder %v2525_v19, 7  ;;  %v1497_v19 = vpop.permute.xlu1 %1496 }
0x1450   : > { %1396 = vst.msk [vmem:[%s2555_s11 + $0xd] sm:$0x2] %vm614_vm9, %v1394_v58 }
0x1522   : > { %v1478_v59 = vpop.f32.mrb[8].mxu0 }
0x1523   : > { %v1483_v60 = vrot.slane %v1478_v59, 2  ;;  %v1892_v8 = vpop.f32.mrb[9].mxu0 }
0x1525   : > { %v1485_v12 = vadd.f32 %v1483_v60, %v2531_v24  ;;  %v1517_v24 = vsel %vm1516_vm1, 1, %v2242_v16 }
0x1527   : > { %v1741_v4 = vmul.f32 -1.442695, %v1485_v12 }
0x1529   : > { %2076 = vpow2.f32 %v1741_v4 }
0x152a   : > { %2078 = vtanh.f32 %v1485_v12 }
0x1533   : > { %v2077_v13 = vpop.eup %2076 }
0x1534   : > { %v1490_v61 = vadd.f32 1.0, %v2077_v13  ;;  %v2079_v62 = vpop.eup %2078 }
0x1536   : > { %2080 = vrcp.f32 %v1490_v61 }
0x1540   : > { %v2081_v63 = vpop.eup %2080 }
0x1541   : > { %v1493_v0 = vsel %vm2536_vm6, %v2079_v62, %v2081_v63 }
0x1542   : > { %1501 = vrot.lane.b32.xlu0 %v1493_v0, %s2243_s19  ;;  %v1499_v27 = vmul.f32 %v1497_v19, %v1493_v0 }
0x15b4   : > { %v1502_v1 = vpop.permute.xlu0 %1501 }
0x15b5   : > { %v1504_v2 = vmul.f32 %v1502_v1, %v1493_v0 }
0x15b7   : > { %1506 = vrot.lane.b32.xlu0 %v1504_v2, %s2244_s24 }
0x15bb   : > { %1519 = vperm.xlu0 %2019, %v1517_v24  }
0x15bf   : > { %747 = vrot.lane.b32.xlu0 %v2580_v15, %s2245_s0 }
0x15c3   : > { %1013 = vrot.lane.b32.xlu0 %v2635_v26, %s2245_s0 }
0x15c7   : > { %1405 = vrot.lane.b32.xlu0 %v1394_v58, %s2245_s0 }
0x15cb   : > { %1128 = vrot.lane.b32.xlu0 %v1126_v34, %s2244_s24 }
0x1629   : > { %v1507_v16 = vpop.permute.xlu0 %1506 }
0x162a   : > { %v1509_v3 = vadd.f32 %v1507_v16, %v1499_v27 }
0x162c   : > { %2082 = vtanh.f32 %v1509_v3 }
0x1636   : > { %v2083_v5 = vpop.eup %2082 }
0x1637   : > { %1512 = vrot.lane.b32.xlu1 %v2083_v5, %s2243_s19 }
0x163a   : > { %v1520_v15 = vpop.permute.xlu0 %1519 }
0x163b   : > { %vm1521_vm6 = vcmp.eq.s32.totalorder %v1520_v15, 1 }
0x163e   : > { %v748_v26 = vpop.permute.xlu0 %747 }
0x163f   : > { %v750_v20 = vadd.f32 %v748_v26, %v2546_v47 }
0x1642   : > { %v1014_v6 = vpop.permute.xlu0 %1013 }
0x1646   : > { %v1406_v7 = vpop.permute.xlu0 %1405 }
0x164a   : > { %v1129_v9 = vpop.permute.xlu0 %1128 }
0x164b   : > { %1131 = vst.msk [vmem:[%s2555_s11 + $0x4] sm:$0x1] %vm612_vm8, %v1129_v9 }
0x164c   : > { %1132 = vst.msk [vmem:[%s2555_s11 + $0xb] sm:$0x2] %vm614_vm9, %v1129_v9 }
0x16a9   : > { %v1513_v45 = vpop.permute.xlu1 %1512 }
0x16aa   : > { %v1515_v48 = vmul.f32 %v1513_v45, %v1493_v0 }
0x16ac   : > { %v1523_v10 = vrot.slane %v1515_v48, 6 }
0x16ae   : > { %1524 = vrot.lane.b32.xlu1 %v1523_v10, %s2244_s24 }
0x16b2   : > { %880 = vrot.lane.b32.xlu1 %v2607_v54, %s2245_s0 }
0x16b6   : > { %1272 = vrot.lane.b32.xlu1 %v2684_v14, %s2245_s0 }
0x1720   : > { %v1525_v11 = vpop.permute.xlu1 %1524 }
0x1721   : > { %v1527_v17 = vsel %vm1521_vm6, %v1525_v11, 0.0 }
0x1722   : > { %1528 = vst.msk [vmem:[%s2555_s11 + $0x7] sm:$0x1] %vm612_vm8, %v1527_v17  ;;  %1531 = vrot.lane.b32.xlu1 %v1527_v17, %s2245_s0  ;;  %vm1539_vm8 = vcmask 254976  }
0x1723   : > { %1529 = vst.msk [vmem:[%s2555_s11 + $0xe] sm:$0x2] %vm614_vm9, %v1527_v17 }
0x1724   : > { %v881_v18 = vpop.permute.xlu1 %880 }
0x1725   : > { %v883_v21 = vadd.f32 %v881_v18, %v750_v20 }
0x1727   : > { %v1016_v22 = vadd.f32 %v1014_v6, %v883_v21 }
0x1728   : > { %v1273_v54 = vpop.permute.xlu1 %1272 }
0x1729   : > { %v1138_v23 = vadd.f32 %v1126_v34, %v1016_v22 }
0x172b   : > { %v1275_v25 = vadd.f32 %v1273_v54, %v1138_v23 }
0x172d   : > { %v1408_v28 = vadd.f32 %v1406_v7, %v1275_v25 }
0x1794   : > { %v1532_v14 = vpop.permute.xlu1 %1531 }
0x1795   : > { %v1534_v29 = vadd.f32 %v1532_v14, %v1408_v28 }
0x1797   : > { %1536 = vrot.lane.b32.xlu1 %v1534_v29, %s2244_s24 }
0x1809   : > { %v1537_v30 = vpop.permute.xlu1 %1536 }
0x180a   : > { %1540 = vst.msk [vmem:[%s387_s15] sm:$0x3] %vm1539_vm8, %v1537_v30 }
0x180b PF: > { %p21_p4 = scmp.ge.s32.totalorder %s2302_s25, 5   ;;  %s2793_s21 = smov %s2223_s22 }
0x180c   : > { %s2794_s22 = smov %s2227_s23  ;;  %s2795_s23 = smov %s2312_s28 }
0x180d   : > { %s2796_s24 = smov %s2302_s25  ;;  %23 = sbr.rel (!%p21_p4) target bundleno = 9 (0x9), region = 124 }
0x1814   :  { %1576 = vsyncpa [#allocation3], 1 }
0x1815   :  { %1578 = vsyncpa [#allocation3 + $0x1], 1 }
0x1816   :  { %1579 = vsyncpa [#allocation7], 1 }
0x1817   :  { %1581 = vsyncpa [#allocation7 + $0x1], 1 }
0x1818   :  { %1582 = vsyncpa [#allocation4], 1 }
0x1819   :  { %1584 = vsyncpa [#allocation4 + $0x1], 1 }

// kernel: mmfusion_forward.3
= control target key start
LH: loop header
LB: loop body
LE: loop exit
PB: predicated region body
PF: predicated region fallthrough
CT: control target
= control target key end

     0   :  { %s19758_s0 = inlined_call_operand.vmem [shape: s32[3,2], index: 0, kind: input, shape index: {}]   ;;  %s19759_s1 = inlined_call_operand.vmem [shape: f32[3,16,32], index: 1, kind: input, shape index: {}]   ;;  %s19760_s2 = inlined_call_operand.vmem [shape: f32[3,2,32], index: 2, kind: input, shape index: {}]   ;;  %s19761_s3 = inlined_call_operand.vmem [shape: f32[2,2048,49], index: 3, kind: input, shape index: {}]   ;;  %s19762_s4 = inlined_call_operand.vmem [shape: f32[2,32,32], index: 4, kind: input, shape index: {}]   ;;  %s19763_s5 = inlined_call_operand.vmem [shape: f32[2,1,32], index: 5, kind: input, shape index: {}]   ;;  %s19764_s6 = inlined_call_operand.vmem [shape: f32[2,32,32], index: 6, kind: input, shape index: {}]   ;;  %s19765_s7 = inlined_call_operand.vmem [shape: f32[2,1,32], index: 7, kind: input, shape index: {}]   ;;  %s19766_s8 = inlined_call_operand.vmem [shape: f32[2,32,32], index: 8, kind: input, shape index: {}]   ;;  %s19767_s9 = inlined_call_operand.vmem [shape: f32[2,32,32], index: 9, kind: input, shape index: {}]   ;;  %s19768_s10 = inlined_call_operand.vmem [shape: f32[2,1,32], index: 10, kind: input, shape index: {}]   ;;  %s19769_s11 = inlined_call_operand.vmem [shape: f32[32,32], index: 11, kind: input, shape index: {}]   ;;  %s19770_s12 = inlined_call_operand.vmem [shape: f32[32,1], index: 12, kind: input, shape index: {}]   ;;  %s19771_s13 = inlined_call_operand.vmem [shape: f32[32,2048], index: 13, kind: input, shape index: {}]   ;;  %s19772_s14 = inlined_call_operand.vmem [shape: f32[32,1], index: 14, kind: input, shape index: {}]   ;;  %s19773_s15 = inlined_call_operand.vmem [shape: f32[2048,32], index: 15, kind: input, shape index: {}]   ;;  %s19774_s16 = inlined_call_operand.vmem [shape: f32[1,32], index: 16, kind: input, shape index: {}]   ;;  %s19775_s17 = inlined_call_operand.vmem [shape: f32[2144,32], index: 17, kind: input, shape index: {}]   ;;  %s19776_s18 = inlined_call_operand.vmem [shape: f32[1,32], index: 18, kind: input, shape index: {}]   ;;  %s19777_s19 = inlined_call_operand.vmem [shape: f32[1,32], index: 19, kind: input, shape index: {}]   ;;  %s19778_s20 = inlined_call_operand.<no memory space> [shape: f32[1,1], index: 20, kind: input, shape index: {}]   ;;  %s19779_s21 = inlined_call_operand.vmem [shape: f32[128,3], index: 21, kind: input, shape index: {}]   ;;  %s19780_s22 = inlined_call_operand.vmem [shape: f32[1,3], index: 22, kind: input, shape index: {}]   ;;  %s19781_s23 = inlined_call_operand.hbm [shape: f32[2,3], index: 23, kind: output, shape index: {0}]   ;;  %s19782_s24 = inlined_call_operand.hbm [shape: f32[2,49], index: 24, kind: output, shape index: {1}]  }
   0x1   :  { %19984 = sst [smem:[#allocation124_spill]] %s19758_s0  ;;  %v30_v0 = vstv %s19778_s20 }
   0x2   :  { %19985 = sst [smem:[#allocation125_spill]] %s19759_s1  ;;  %31 = vst [vmem:[#allocation2] sm:$0x1] %v30_v0 }
   0x3   :  { %19986 = sst [smem:[#allocation126_spill]] %s19760_s2 }
   0x4   :  { %19987 = sst [smem:[#allocation127_spill]] %s19761_s3 }
   0x5   :  { %19988 = sst [smem:[#allocation128_spill]] %s19762_s4 }
   0x6   :  { %19989 = sst [smem:[#allocation129_spill]] %s19763_s5 }
   0x7   :  { %19990 = sst [smem:[#allocation130_spill]] %s19764_s6 }
   0x8   :  { %19991 = sst [smem:[#allocation131_spill]] %s19765_s7 }
   0x9   :  { %19992 = sst [smem:[#allocation132_spill]] %s19766_s8 }
   0xa   :  { %32 = vsyncpa [#allocation5], 0 }
   0xb   :  { %33 = vsyncpa [#allocation4], 0 }
   0xc   :  { %34 = vsyncpa [#allocation8], 0  ;;  %s19993_s6 = sld [smem:[#allocation124_spill]] }
  0x12   :  { %s41_s2 = sshll.u32 %s19993_s6, 4  ;;  %s42_s2 = int_to_ptr.vmem [resolvable:$true] %s41_s2 }
  0x13   :  { %s13823_s29 = scalar_lea.vmem %s42_s2, 64  ;;  %p13828_p1 = scmp.lt.s32.totalorder %s42_s2, %s42_s2 }
  0x14   :  { %p13824_p0 = scmp.ne.s32.totalorder %s42_s2, %s13823_s29  ;;  %p13829_p2 = scmp.lt.s32.totalorder %s13823_s29, %s13823_s29 }
  0x16   :  { %p13830_p3 = por %p13829_p2, %p13828_p1 }
  0x18   :  { %p13831_p4 = pnand %p13830_p3, %p13824_p0 }
  0x1a   :  { %13834 = shalt.err (!%p13831_p4)
}
  0x1b   :  { %s13885_s0 = smov [#allocation3]  }
  0x1c   :  { %44 = dma.vmem_to_smem %s42_s2, 64, %s13885_s0, [#allocation5]  }
  0x1d   :  { %13879 = dma.done.wait [#allocation5], 64  }
  0x1e   :  { %13880 = vsyncadd [#allocation5], 4294967232 }
  0x1f   :  { %92 = sfence }
  0x20   :  { %s19994_s30 = sld [smem:[#allocation130_spill]]  ;;  %v19793_v4 = vmov 0.0|0.0   ;;  %vm13887_vm0 = vmmov 0   ;;  %v19791_v7 = vmov 0.0   ;;  %s94_s26 = sld [smem:[#allocation3]]  ;;  %vm122_vm1 = vcmask 261120  }
  0x21   :  { %11776 = vmatprep.subr.bf16.mxu1 %v19793_v4  ;;  %11552 = vmatprep.mubr.msk.f32.mxu1 %vm13887_vm0, %v19791_v7  ;;  %s8759_s27 = sld [smem:[#allocation3 + $0x1]]  ;;  %s19995_s2 = sld [smem:[#allocation128_spill]]  ;;  %vm104_vm2 = vcmask 1040384   ;;  %v19790_v43 = vlaneseq  ;;  %vm445_vm4 = vcmask 57344   ;;  %vm457_vm6 = vcmask 64512  }
  0x22   :  { %s19996_s1 = sld [smem:[#allocation125_spill]]  ;;  %s19997_s29 = sld [smem:[#allocation132_spill]]  ;;  %vm2720_vm9 = vcmask 393216   ;;  %vm2733_vm10 = vcmask 400384  }
  0x23   :  { %s19998_s8 = sld [smem:[#allocation126_spill]]  ;;  %v14109_v44 = vand.u32 127, %v19790_v43  ;;  %vm15708_vm11 = vmpackc.low %vm2733_vm10, %vm2733_vm10  ;;  %s13891_s6 = smov [#allocation7]  }
  0x26   :  { %v204_v1 = vld [vmem:[%s19994_s30] sm:$0xff]  ;;  %v205_v2 = vld [vmem:[%s19994_s30 + $0x8] sm:$0xff]  ;;  %v206_v3 = vld [vmem:[%s19994_s30 + $0x10] sm:$0xff]  ;;  %s95_s5 = scvt.s32.f32 %s94_s26  ;;  %s20001_s26 = sld [smem:[#allocation131_spill]] }
  0x27   :  { %v11777_v5 = vpack.c.bf16 %v205_v2, %v204_v1  ;;  %v207_v6 = vld [vmem:[%s19994_s30 + $0x18] sm:$0xff]  ;;  %v111_v8 = vld [vmem:[%s19995_s2] sm:$0xff]  ;;  %v112_v9 = vld [vmem:[%s19995_s2 + $0x8] sm:$0xff]  ;;  %s100_s7 = scvt.s32.f32 %s8759_s27  ;;  %s8770_s27 = sld [smem:[#allocation3 + $0x80]] }
  0x28   :  { %v113_v10 = vld [vmem:[%s19995_s2 + $0x10] sm:$0xff]  ;;  %v11780_v11 = vpack.c.bf16 %v207_v6, %v206_v3  ;;  %v11768_v12 = vpack.c.bf16 %v112_v9, %v111_v8  ;;  %v114_v13 = vld [vmem:[%s19995_s2 + $0x18] sm:$0xff]  ;;  %v288_v16 = vld [vmem:[%s19997_s29] sm:$0xff]  ;;  %v96_v18 = vstv %s95_s5 }
  0x29   :  { %11778 = vmatpush3.bf16.msra.mxu1 %v11777_v5  ;;  %v8760_v14 = vld [vmem:[%s19996_s1 + $0x10] sm:$0xff]  ;;  %v11772_v15 = vpack.c.bf16 %v114_v13, %v113_v10  ;;  %v289_v17 = vld [vmem:[%s19997_s29 + $0x8] sm:$0xff]  ;;  %13678 = vrcp.f32 %v96_v18  ;;  %v101_v19 = vstv %s100_s7  ;;  %v8761_v20 = vld [vmem:[%s19996_s1 + $0x18] sm:$0xff]  ;;  %s20000_s7 = sld [smem:[#allocation129_spill]] }
  0x2a   :  { %11779 = vmatprep.subr.bf16.mxu1 %v19793_v4  ;;  %11541 = vmatprep.mubr.msk.f32.mxu0 %vm122_vm1, %v8760_v14  ;;  %v11783_v21 = vpack.c.bf16 %v289_v17, %v288_v16  ;;  %13680 = vrcp.f32 %v101_v19  ;;  %v93_v22 = vld [vmem:[%s19998_s8] sm:$0x3]  ;;  %v290_v28 = vld [vmem:[%s19997_s29 + $0x10] sm:$0xff]  ;;  %v291_v29 = vld [vmem:[%s19997_s29 + $0x18] sm:$0xff]  ;;  %s8774_s8 = sld [smem:[#allocation3 + $0x81]] }
  0x2b   :  { %11769 = vmatprep.subr.bf16.mxu0 %v11768_v12  ;;  %v11786_v30 = vpack.c.bf16 %v291_v29, %v290_v28  ;;  %v699_v9 = vld [vmem:[%s19767_s9] sm:$0xff]  ;;  %v700_v10 = vld [vmem:[%s19767_s9 + $0x8] sm:$0xff]  ;;  %v702_v13 = vld [vmem:[%s19767_s9 + $0x18] sm:$0xff] }
  0x2c   :  { %11771 = vmatpush3.bf16.msra.mxu0 %v11768_v12  ;;  %v8765_v35 = vld [vmem:[%s20001_s26] ss:$0 sm:$0xff]  ;;  %v701_v12 = vld [vmem:[%s19767_s9 + $0x10] sm:$0xff]  ;;  %v8781_v16 = vld [vmem:[%s19995_s2 + $0x28] sm:$0xff] }
  0x2d   :  { %11781 = vmatpush3.bf16.msra.mxu1 %v11780_v11  ;;  %11773 = vmatprep.subr.bf16.mxu0 %v11772_v15  ;;  %v442_v45 = vstv %s8770_s27  ;;  %v11789_v11 = vpack.c.bf16 %v700_v10, %v699_v9  ;;  %v11792_v14 = vpack.c.bf16 %v702_v13, %v701_v12  ;;  %v8782_v17 = vld [vmem:[%s19995_s2 + $0x30] sm:$0xff]  ;;  %v8783_v19 = vld [vmem:[%s19995_s2 + $0x38] sm:$0xff] }
  0x2e   :  { %11566 = vmatprep.subr.mxu1 %v19791_v7  ;;  %vm443_vm3 = vcmp.lt.s32.totalorder %v14109_v44, %v442_v45 }
  0x2f   :  { %v8762_v31 = vld [vmem:[%s20000_s7] ss:$0 sm:$0xff] }
  0x30   :  { %11775 = vmatpush3.bf16.msra.mxu0 %v11772_v15  ;;  %v608_v46 = vstv %s8774_s8  ;;  %v8780_v15 = vld [vmem:[%s19995_s2 + $0x20] sm:$0xff] }
  0x31   :  { %11782 = vmatprep.subr.bf16.mxu0 %v19793_v4  ;;  %vm609_vm5 = vcmp.lt.s32.totalorder %v14109_v44, %v608_v46  ;;  %v11794_v18 = vpack.c.bf16 %v8781_v16, %v8780_v15  ;;  %v8793_v46 = vld [vmem:[%s20001_s26 + $0x1] ss:$0 sm:$0xff]  ;;  %s8806_s26 = sld [smem:[#allocation3 + $0x101]]  ;;  %v1464_v16 = vld [vmem:[%s19770_s12 + $0x8] sm:$0xff] }
  0x32   :  { %v1463_v15 = vld [vmem:[%s19770_s12] sm:$0xff] }
  0x33   :  { %11542 = vmatmul.mubr.msk.f32.vlgmr.msra.gmra.mrb[0].mxu0 %vm122_vm1, %v8761_v20  ;;  %v13679_v23 = vpop.eup %13678  ;;  %v11798_v20 = vpack.c.bf16 %v8783_v19, %v8782_v17  ;;  %v13889_v17 = vmov 0   ;;  %v1466_v19 = vld [vmem:[%s19770_s12 + $0x18] sm:$0xff] }
  0x34   :  { %11784 = vmatpush3.bf16.msra.mxu0 %v11783_v21  ;;  %11563 = vmatprep.mubr.msk.f32.mxu0 %vm13887_vm0, %v19791_v7  ;;  %v13681_v24 = vpop.eup %13680  ;;  %v98_v25 = vmul.f32 %v13679_v23, %v93_v22  ;;  %v8788_v23 = vld [vmem:[%s19994_s30 + $0x20] sm:$0xff] }
  0x35   :  { %11785 = vmatprep.subr.bf16.mxu0 %v19793_v4  ;;  %v103_v26 = vmul.f32 %v13681_v24, %v93_v22  ;;  %v8789_v24 = vld [vmem:[%s19994_s30 + $0x28] sm:$0xff]  ;;  %13675 = vset.pattern.permute.xlu1 %v13889_v17 }
  0x36   :  { %v11803_v29 = vpack.c.bf16 %v8789_v24, %v8788_v23  ;;  %13674 = vset.pattern.permute.xlu0 %v13889_v17 }
  0x37   :  { %v14075_v27 = vsel %vm104_vm2, %v98_v25, %v103_v26 }
  0x38   :  { %19999 = vst [vmem:[#allocation12_spill] sm:$0xff] %v14075_v27  ;;  %11553 = vmatmul.mubr.msk.f32.vlgmr.msra.gmra.mrb[0].mxu1 %vm122_vm1, %v14075_v27  ;;  %11787 = vmatpush3.bf16.msra.mxu0 %v11786_v30  ;;  %v8790_v30 = vld [vmem:[%s19994_s30 + $0x30] sm:$0xff] }
  0x39   :  { %11568 = vmatprep.mubr.msk.f32.mxu1 %vm13887_vm0, %v19791_v7  ;;  %11576 = vmatprep.subr.mxu0 %v19791_v7 }
 0x106   :  { %v11543_v32 = vpop.f32.mrb[0].mxu0 }
 0x107   :  { %v195_v33 = vpop.f32.mrb[1].mxu0  ;;  %v201_v37 = vadd.f32 %v11543_v32, %v8762_v31 }
 0x108   :  { %v196_v34 = vadd.f32 %v8762_v31, %v195_v33  ;;  %v8791_v31 = vld [vmem:[%s19994_s30 + $0x38] sm:$0xff]  ;;  %s20003_s30 = sld [smem:[#allocation127_spill]] }
 0x109   :  { %v11806_v33 = vpack.c.bf16 %v8791_v31, %v8790_v30 }
 0x10a   :  { %11567 = vmatpush3.xpose.msk.msra.mxu1 %vm122_vm1, %v196_v34 }
 0x10b   :  { %11571 = vmatprep.subr.mxu1 %v19791_v7  ;;  %v284_v36 = vpop.f32.mrb[0].mxu1 }
 0x10c   :  { %v285_v38 = vadd.f32 %v8765_v35, %v284_v36  ;;  %v11554_v39 = vpop.f32.mrb[1].mxu1  ;;  %v8779_v35 = vld [vmem:[%s19996_s1 + $0x28] sm:$0xff]  ;;  %v8795_v36 = vld [vmem:[%s19997_s29 + $0x20] sm:$0xff] }
 0x10d   :  { %v8797_v39 = vld [vmem:[%s19997_s29 + $0x30] sm:$0xff] }
 0x10e   :  { %11564 = vmatmul.mubr.msk.f32.vlgmr.msra.gmra.mrb[2].mxu0 %vm122_vm1, %v285_v38  ;;  %v1654_v31 = vld [vmem:[%s20003_s30] sm:$0xff]  ;;  %v1668_v17 = vld [vmem:[%s20003_s30 + $0x70] sm:$0xff] }
 0x10f   :  { %11577 = vmatpush3.xpose.msk.msra.mxu0 %vm122_vm1, %v201_v37  ;;  %11578 = vmatprep.mubr.msk.f32.mxu0 %vm13887_vm0, %v19791_v7 }
 0x110   :  { %11788 = vmatprep.subr.bf16.mxu0 %v19793_v4 }
 0x1e1   :  { %v361_v40 = vpop.f32.mrb[2].mxu0 }
 0x1e2   :  { %v531_v41 = vrot.slane %v361_v40, 1  ;;  %v11565_v42 = vpop.f32.mrb[3].mxu0  ;;  %11569 = vmatmul.mubr.msk.f32.vlgmr.msra.gmra.mrb[2].mxu1 %vm122_vm1, %v361_v40  ;;  %v8798_v40 = vld [vmem:[%s19997_s29 + $0x38] sm:$0xff] }
 0x1e3   :  { %11572 = vmatpush3.msra.mxu1 %v196_v34  ;;  %11573 = vmatprep.mubr.msk.f32.mxu1 %vm13887_vm0, %v19791_v7  ;;  %v8778_v34 = vld [vmem:[%s19996_s1 + $0x20] sm:$0xff] }
 0x1e4   :  { %11579 = vmatmul.mubr.msk.f32.vlgmr.msra.gmra.mrb[4].mxu0 %vm122_vm1, %v531_v41  ;;  %11581 = vmatprep.subr.mxu1 %v19791_v7  ;;  %v11812_v41 = vpack.c.bf16 %v8798_v40, %v8797_v39  ;;  %v1656_v39 = vld [vmem:[%s20003_s30 + $0x10] sm:$0xff]  ;;  %v1657_v40 = vld [vmem:[%s20003_s30 + $0x18] sm:$0xff] }
 0x1e5   :  { %11594 = vmatprep.mubr.msk.f32.mxu0 %vm13887_vm0, %v19791_v7  ;;  %11790 = vmatpush3.bf16.msra.mxu0 %v11789_v11 }
 0x1e6   :  { %11791 = vmatprep.subr.bf16.mxu0 %v19793_v4 }
 0x1e9   :  { %11793 = vmatpush3.bf16.msra.mxu0 %v11792_v14 }
 0x1ea   :  { %11802 = vmatprep.subr.bf16.mxu0 %v19793_v4 }
 0x2b5   :  { %v437_v47 = vpop.f32.mrb[2].mxu1 }
 0x2b6   :  { %v444_v48 = vsel %vm443_vm3, %v437_v47, -1e+30  ;;  %v11570_v49 = vpop.f32.mrb[3].mxu1 }
 0x2b7   :  { %v603_v50 = vpop.f32.mrb[4].mxu0  ;;  %v446_v51 = vsel %vm445_vm4, %v444_v48, -inf }
 0x2b8   :  { %v610_v52 = vsel %vm609_vm5, %v603_v50, -1e+30  ;;  %v11580_v53 = vpop.f32.mrb[5].mxu0  ;;  %447 = vmax.xlane.f32.xlu0 %v446_v51  ;;  %v8785_v50 = vld [vmem:[%s20000_s7 + $0x1] ss:$0 sm:$0xff]  ;;  %s8802_s7 = sld [smem:[#allocation3 + $0x100]] }
 0x2b9   :  { %v611_v54 = vsel %vm445_vm4, %v610_v52, -inf }
 0x2bc   :  { %612 = vmax.xlane.f32.xlu0 %v611_v54 }
 0x345   :  { %v448_v55 = vpop.xlane.xlu0 %447 }
 0x346   :  { %v449_v56 = vsub.f32 %v444_v48, %v448_v55 }
 0x348   :  { %v450_v57 = vmul.f32 1.442695, %v449_v56 }
 0x349   :  { %v613_v58 = vpop.xlane.xlu0 %612 }
 0x34a   :  { %13682 = vpow2.f32 %v450_v57  ;;  %v614_v59 = vsub.f32 %v610_v52, %v613_v58  ;;  %v1118_v58 = vstv %s8802_s7 }
 0x34b   :  { %vm1119_vm7 = vcmp.lt.s32.totalorder %v14109_v44, %v1118_v58  ;;  %v1678_v58 = vld [vmem:[%s20003_s30 + $0xc0] sm:$0xff] }
 0x34c   :  { %v615_v60 = vmul.f32 1.442695, %v614_v59  ;;  %v1282_v59 = vstv %s8806_s26 }
 0x34d   :  { %vm1283_vm8 = vcmp.lt.s32.totalorder %v14109_v44, %v1282_v59  ;;  %v1679_v59 = vld [vmem:[%s20003_s30 + $0xc8] sm:$0xff] }
 0x34e   :  { %13684 = vpow2.f32 %v615_v60 }
 0x354   :  { %v13683_v61 = vpop.eup %13682 }
 0x355   :  { %v452_v62 = vsel %vm445_vm4, %v13683_v61, 0.0 }
 0x356   :  { %453 = vadd.xlane.f32.xlu1 %v452_v62 }
 0x358   :  { %v13685_v63 = vpop.eup %13684 }
 0x359   :  { %v617_v0 = vsel %vm445_vm4, %v13685_v63, 0.0 }
 0x35a   :  { %618 = vadd.xlane.f32.xlu1 %v617_v0 }
 0x3e3   :  { %v454_v1 = vpop.xlane.xlu1 %453 }
 0x3e4   :  { %13686 = vrcp.f32 %v454_v1 }
 0x3e7   :  { %v619_v2 = vpop.xlane.xlu1 %618 }
 0x3e8   :  { %13688 = vrcp.f32 %v619_v2 }
 0x3ee   :  { %v13687_v3 = vpop.eup %13686 }
 0x3ef   :  { %v456_v5 = vmul.f32 %v13687_v3, %v13683_v61 }
 0x3f1   :  { %11574 = vmatmul.mubr.msk.f32.vlgmr.msra.gmra.mrb[4].mxu1 %vm457_vm6, %v456_v5 }
 0x3f2   :  { %v13689_v6 = vpop.eup %13688  ;;  %11582 = vmatpush3.msra.mxu1 %v201_v37  ;;  %11583 = vmatprep.mubr.msk.f32.mxu1 %vm13887_vm0, %v19791_v7  ;;  %v8796_v37 = vld [vmem:[%s19997_s29 + $0x28] sm:$0xff] }
 0x3f3   :  { %v621_v8 = vmul.f32 %v13689_v6, %v13685_v63  ;;  %11795 = vmatprep.subr.bf16.mxu1 %v11794_v18  ;;  %v11809_v38 = vpack.c.bf16 %v8796_v37, %v8795_v36  ;;  %v1461_v37 = vld [vmem:[%s19769_s11 + $0x10] sm:$0xff] }
 0x3f5   :  { %11584 = vmatmul.mubr.msk.f32.vlgmr.msra.gmra.mrb[6].mxu1 %vm457_vm6, %v621_v8 }
 0x3f6   :  { %11797 = vmatpush3.bf16.msra.mxu1 %v11794_v18  ;;  %11605 = vmatprep.mubr.msk.f32.mxu1 %vm122_vm1, %v8778_v34  ;;  %v1465_v18 = vld [vmem:[%s19770_s12 + $0x10] sm:$0xff]  ;;  %v1673_v34 = vld [vmem:[%s20003_s30 + $0x98] sm:$0xff] }
 0x3f7   :  { %11799 = vmatprep.subr.bf16.mxu1 %v11798_v20 }
 0x3fa   :  { %11801 = vmatpush3.bf16.msra.mxu1 %v11798_v20 }
 0x3fb   :  { %11808 = vmatprep.subr.bf16.mxu1 %v19793_v4 }
 0x3fd   :  { %11606 = vmatmul.mubr.msk.f32.vlgmr.msra.gmra.mrb[8].mxu1 %vm122_vm1, %v8779_v35  ;;  %v1460_v35 = vld [vmem:[%s19769_s11 + $0x8] sm:$0xff] }
 0x3fe   :  { %11627 = vmatprep.mubr.msk.f32.mxu1 %vm13887_vm0, %v19791_v7  ;;  %11810 = vmatpush3.bf16.msra.mxu1 %v11809_v38 }
 0x3ff   :  { %11811 = vmatprep.subr.bf16.mxu1 %v19793_v4 }
 0x402   :  { %11813 = vmatpush3.bf16.msra.mxu1 %v11812_v41  ;;  %v1674_v41 = vld [vmem:[%s20003_s30 + $0xa0] sm:$0xff] }
 0x403   :  { %11635 = vmatprep.subr.mxu1 %v19791_v7 }
 0x4c4   :  { %v527_v21 = vpop.f32.mrb[4].mxu1 }
 0x4c5   :  { %v11575_v22 = vpop.f32.mrb[5].mxu1 }
 0x4c8   :  { %v691_v25 = vpop.f32.mrb[6].mxu1 }
 0x4c9   :  { %v696_v26 = vrot.slane %v691_v25, 7  ;;  %v11585_v28 = vpop.f32.mrb[7].mxu1 }
 0x4ca   :  { %v1670_v28 = vld [vmem:[%s20003_s30 + $0x80] sm:$0xff] }
 0x4cb   :  { %v698_v32 = vsel %vm104_vm2, %v527_v21, %v696_v26  ;;  %v1459_v26 = vld [vmem:[%s19769_s11] sm:$0xff] }
 0x4cc   :  { %11595 = vmatmul.mubr.msk.f32.vlgmr.msra.gmra.mrb[6].mxu0 %vm122_vm1, %v698_v32  ;;  %v1655_v32 = vld [vmem:[%s20003_s30 + $0x8] sm:$0xff] }
 0x4cd   :  { %11804 = vmatpush3.bf16.msra.mxu0 %v11803_v29  ;;  %11616 = vmatprep.mubr.msk.f32.mxu0 %vm13887_vm0, %v19791_v7  ;;  %v1671_v29 = vld [vmem:[%s20003_s30 + $0x88] sm:$0xff]  ;;  %v14273_v36 = vpack.c.bf16 %v1655_v32, %v1654_v31  ;;  %v1702_v31 = vld [vmem:[%s20003_s30 + $0x180] sm:$0xff] }
 0x4ce   :  { %11805 = vmatprep.subr.bf16.mxu0 %v19793_v4  ;;  %v14254_v30 = vpack.c.bf16 %v1671_v29, %v1670_v28  ;;  %v8811_v28 = vld [vmem:[%s19767_s9 + $0x38] sm:$0xff]  ;;  %v1703_v32 = vld [vmem:[%s20003_s30 + $0x188] sm:$0xff] }
 0x4d0   :  { %v11607_v51 = vpop.f32.mrb[8].mxu1 }
 0x4d1   :  { %11807 = vmatpush3.bf16.msra.mxu0 %v11806_v33  ;;  %v14205_v52 = vadd.f32 %v11607_v51, %v8785_v50  ;;  %v871_v53 = vpop.f32.mrb[9].mxu1  ;;  %v1672_v33 = vld [vmem:[%s20003_s30 + $0x90] sm:$0xff]  ;;  %v1585_v51 = vld [vmem:[%s19771_s13 + $0x8] sm:$0xff] }
 0x4d2   :  { %11630 = vmatprep.subr.mxu0 %v19791_v7  ;;  %v872_v54 = vadd.f32 %v8785_v50, %v871_v53  ;;  %v14279_v38 = vpack.c.bf16 %v1673_v34, %v1672_v33  ;;  %v1659_v50 = vld [vmem:[%s20003_s30 + $0x28] sm:$0xff]  ;;  %v1677_v53 = vld [vmem:[%s20003_s30 + $0xb8] sm:$0xff]  ;;  %v14440_v34 = vpack.c.bf16 %v1703_v32, %v1702_v31  ;;  %v1746_v31 = vld [vmem:[%s20003_s30 + $0x2e0] sm:$0xff] }
 0x4d3   :  { %v1617_v33 = vld [vmem:[%s19771_s13 + $0x108] sm:$0xff] }
 0x4d4   :  { %11617 = vmatmul.mubr.msk.f32.vlgmr.msra.gmra.mrb[8].mxu0 %vm122_vm1, %v14075_v27  ;;  %v1747_v32 = vld [vmem:[%s20003_s30 + $0x2e8] sm:$0xff] }
 0x4d5   :  { %11632 = vmatprep.mubr.msk.f32.mxu0 %vm13887_vm0, %v19791_v7 }
 0x4da   :  { %11631 = vmatpush3.xpose.msk.msra.mxu0 %vm122_vm1, %v872_v54 }
 0x4db   :  { %11640 = vmatprep.subr.mxu0 %v19791_v7 }
 0x59f   :  { %v14194_v42 = vpop.f32.mrb[6].mxu0 }
 0x5a0   :  { %20002 = vst [vmem:[#allocation13_spill] sm:$0xff] %v14194_v42  ;;  %v11596_v45 = vpop.f32.mrb[7].mxu0  ;;  %v1870_v42 = vld [vmem:[%s20003_s30 + $0x6c0] sm:$0xff] }
 0x5a1   :  { %v1675_v45 = vld [vmem:[%s20003_s30 + $0xa8] sm:$0xff] }
 0x5a7   :  { %v959_v47 = vpop.f32.mrb[8].mxu0 }
 0x5a8   :  { %v960_v48 = vadd.f32 %v8793_v46, %v959_v47  ;;  %v11618_v49 = vpop.f32.mrb[9].mxu0  ;;  %v1462_v46 = vld [vmem:[%s19769_s11 + $0x18] sm:$0xff]  ;;  %v14299_v47 = vpack.c.bf16 %v1657_v40, %v1656_v39  ;;  %v1735_v39 = vld [vmem:[%s20003_s30 + $0x288] sm:$0xff] }
 0x5a9   :  { %v1658_v49 = vld [vmem:[%s20003_s30 + $0x20] sm:$0xff] }
 0x5aa   :  { %11628 = vmatmul.mubr.msk.f32.vlgmr.msra.gmra.mrb[10].mxu1 %vm122_vm1, %v960_v48  ;;  %v14302_v48 = vpack.c.bf16 %v1675_v45, %v1674_v41  ;;  %v1718_v41 = vld [vmem:[%s20003_s30 + $0x200] sm:$0xff]  ;;  %v1719_v45 = vld [vmem:[%s20003_s30 + $0x208] sm:$0xff] }
 0x5ab   :  { %11637 = vmatprep.mubr.msk.f32.mxu1 %vm13887_vm0, %v19791_v7  ;;  %11636 = vmatpush3.msra.mxu1 %v872_v54  ;;  %v14321_v54 = vpack.c.bf16 %v1659_v50, %v1658_v49  ;;  %v14463_v49 = vpack.c.bf16 %v1719_v45, %v1718_v41  ;;  %v1632_v50 = vld [vmem:[%s19771_s13 + $0x180] sm:$0xff]  ;;  %v1748_v41 = vld [vmem:[%s20003_s30 + $0x2f0] sm:$0xff]  ;;  %v1749_v45 = vld [vmem:[%s20003_s30 + $0x2f8] sm:$0xff] }
 0x5ac   :  { %11645 = vmatprep.subr.mxu1 %v19791_v7 }
 0x5ad   :  { %20008 = vst [vmem:[#allocation18_spill] sm:$0xff] %v14463_v49 }
 0x67d   :  { %v1037_v55 = vpop.f32.mrb[10].mxu1 }
 0x67e   :  { %v11629_v56 = vpop.f32.mrb[11].mxu1  ;;  %11633 = vmatmul.mubr.msk.f32.vlgmr.msra.gmra.mrb[10].mxu0 %vm122_vm1, %v1037_v55  ;;  %v1205_v57 = vrot.slane %v1037_v55, 1 }
 0x67f   :  { %11641 = vmatpush3.xpose.msk.msra.mxu0 %vm122_vm1, %v14205_v52  ;;  %11642 = vmatprep.mubr.msk.f32.mxu0 %vm13887_vm0, %v19791_v7  ;;  %v1660_v56 = vld [vmem:[%s20003_s30 + $0x30] sm:$0xff] }
 0x680   :  { %11814 = vmatprep.subr.bf16.mxu0 %v19793_v4 }
 0x682   :  { %11643 = vmatmul.mubr.msk.f32.vlgmr.msra.gmra.mrb[12].mxu0 %vm122_vm1, %v1205_v57  ;;  %v1661_v57 = vld [vmem:[%s20003_s30 + $0x38] sm:$0xff] }
 0x683   :  { %11658 = vmatprep.mubr.msk.f32.mxu0 %vm13887_vm0, %v19791_v7 }
 0x751   :  { %v1113_v60 = vpop.f32.mrb[10].mxu0 }
 0x752   :  { %v1120_v61 = vsel %vm1119_vm7, %v1113_v60, -1e+30  ;;  %v11634_v62 = vpop.f32.mrb[11].mxu0  ;;  %v14339_v60 = vpack.c.bf16 %v1661_v57, %v1660_v56  ;;  %v1720_v56 = vld [vmem:[%s20003_s30 + $0x210] sm:$0xff]  ;;  %v1721_v57 = vld [vmem:[%s20003_s30 + $0x218] sm:$0xff] }
 0x753   :  { %v1121_v63 = vsel %vm445_vm4, %v1120_v61, -inf  ;;  %v1662_v62 = vld [vmem:[%s20003_s30 + $0x40] sm:$0xff] }
 0x754   :  { %1122 = vmax.xlane.f32.xlu0 %v1121_v63  ;;  %v1663_v63 = vld [vmem:[%s20003_s30 + $0x48] sm:$0xff] }
 0x755   :  { %v1277_v0 = vpop.f32.mrb[12].mxu0 }
 0x756   :  { %v1284_v1 = vsel %vm1283_vm8, %v1277_v0, -1e+30  ;;  %v11644_v2 = vpop.f32.mrb[13].mxu0  ;;  %v1680_v0 = vld [vmem:[%s20003_s30 + $0xd0] sm:$0xff] }
 0x757   :  { %v1285_v3 = vsel %vm445_vm4, %v1284_v1, -inf  ;;  %v14357_v2 = vpack.c.bf16 %v1663_v63, %v1662_v62  ;;  %v1739_v62 = vld [vmem:[%s20003_s30 + $0x2a8] sm:$0xff] }
 0x758   :  { %1286 = vmax.xlane.f32.xlu1 %v1285_v3 }
 0x7e1   :  { %v1123_v5 = vpop.xlane.xlu0 %1122 }
 0x7e2   :  { %v1124_v6 = vsub.f32 %v1120_v61, %v1123_v5  ;;  %v14342_v61 = vpack.c.bf16 %v1679_v59, %v1678_v58  ;;  %v1664_v5 = vld [vmem:[%s20003_s30 + $0x50] sm:$0xff]  ;;  %v14484_v58 = vpack.c.bf16 %v1721_v57, %v1720_v56  ;;  %v1738_v59 = vld [vmem:[%s20003_s30 + $0x2a0] sm:$0xff]  ;;  %v1799_v57 = vld [vmem:[%s20003_s30 + $0x488] sm:$0xff] }
 0x7e3   :  { %v14494_v63 = vpack.c.bf16 %v1739_v62, %v1738_v59  ;;  %v1798_v56 = vld [vmem:[%s20003_s30 + $0x480] sm:$0xff]  ;;  %v1589_v59 = vld [vmem:[%s19771_s13 + $0x28] sm:$0xff] }
 0x7e4   :  { %v1125_v8 = vmul.f32 1.442695, %v1124_v6  ;;  %v1665_v6 = vld [vmem:[%s20003_s30 + $0x58] sm:$0xff]  ;;  %20010 = vst [vmem:[#allocation20_spill] sm:$0xff] %v14484_v58  ;;  %v14605_v62 = vpack.c.bf16 %v1799_v57, %v1798_v56  ;;  %v1637_v56 = vld [vmem:[%s19771_s13 + $0x1a8] sm:$0xff] }
 0x7e5   :  { %v1287_v9 = vpop.xlane.xlu1 %1286  ;;  %20011 = vst [vmem:[#allocation21_spill] sm:$0xff] %v14494_v63 }
 0x7e6   :  { %13690 = vpow2.f32 %v1125_v8  ;;  %v1288_v10 = vsub.f32 %v1284_v1, %v1287_v9  ;;  %v1681_v1 = vld [vmem:[%s20003_s30 + $0xd8] sm:$0xff]  ;;  %v1682_v8 = vld [vmem:[%s20003_s30 + $0xe0] sm:$0xff]  ;;  %v1683_v9 = vld [vmem:[%s20003_s30 + $0xe8] sm:$0xff]  ;;  %20023 = vst [vmem:[#allocation33_spill] sm:$0xff] %v14605_v62 }
 0x7e7   :  { %v14360_v3 = vpack.c.bf16 %v1681_v1, %v1680_v0  ;;  %v1722_v0 = vld [vmem:[%s20003_s30 + $0x220] sm:$0xff]  ;;  %v1723_v1 = vld [vmem:[%s20003_s30 + $0x228] sm:$0xff] }
 0x7e8   :  { %v1289_v11 = vmul.f32 1.442695, %v1288_v10  ;;  %v14375_v10 = vpack.c.bf16 %v1665_v6, %v1664_v5  ;;  %v14502_v5 = vpack.c.bf16 %v1723_v1, %v1722_v0  ;;  %v1740_v6 = vld [vmem:[%s20003_s30 + $0x2b0] sm:$0xff]  ;;  %v1782_v0 = vld [vmem:[%s20003_s30 + $0x400] sm:$0xff]  ;;  %v1783_v1 = vld [vmem:[%s20003_s30 + $0x408] sm:$0xff] }
 0x7ea   :  { %13692 = vpow2.f32 %v1289_v11  ;;  %v14378_v11 = vpack.c.bf16 %v1683_v9, %v1682_v8  ;;  %20012 = vst [vmem:[#allocation22_spill] sm:$0xff] %v14502_v5  ;;  %v1741_v8 = vld [vmem:[%s20003_s30 + $0x2b8] sm:$0xff] }
 0x7eb   :  { %v14512_v9 = vpack.c.bf16 %v1741_v8, %v1740_v6  ;;  %v1588_v6 = vld [vmem:[%s19771_s13 + $0x20] sm:$0xff]  ;;  %v14616_v8 = vpack.c.bf16 %v1783_v1, %v1782_v0  ;;  %v1789_v0 = vld [vmem:[%s20003_s30 + $0x438] sm:$0xff] }
 0x7ec   :  { %v1636_v1 = vld [vmem:[%s19771_s13 + $0x1a0] sm:$0xff] }
 0x7ed   :  { %20013 = vst [vmem:[#allocation23_spill] sm:$0xff] %v14512_v9  ;;  %20024 = vst [vmem:[#allocation34_spill] sm:$0xff] %v14616_v8 }
 0x7f0   :  { %v13691_v12 = vpop.eup %13690 }
 0x7f1   :  { %v1127_v13 = vsel %vm445_vm4, %v13691_v12, 0.0 }
 0x7f2   :  { %1128 = vadd.xlane.f32.xlu0 %v1127_v13  ;;  %v1667_v13 = vld [vmem:[%s20003_s30 + $0x68] sm:$0xff] }
 0x7f4   :  { %v13693_v44 = vpop.eup %13692 }
 0x7f5   :  { %v1291_v14 = vsel %vm445_vm4, %v13693_v44, 0.0 }
 0x7f6   :  { %1292 = vadd.xlane.f32.xlu1 %v1291_v14  ;;  %v1685_v14 = vld [vmem:[%s20003_s30 + $0xf8] sm:$0xff] }
 0x807   :  { %1474 = vperm.xlu1 %13675, %v1464_v16  }
 0x808   :  { %1469 = vperm.xlu0 %13674, %v1463_v15  }
 0x80b   :  { %1479 = vperm.xlu1 %13675, %v1465_v18   ;;  %v1669_v18 = vld [vmem:[%s20003_s30 + $0x78] sm:$0xff] }
 0x80f   :  { %1484 = vperm.xlu1 %13675, %v1466_v19   ;;  %v14405_v19 = vpack.c.bf16 %v1669_v18, %v1668_v17  ;;  %v1743_v17 = vld [vmem:[%s20003_s30 + $0x2c8] sm:$0xff] }
 0x811   :  { %20006 = vst [vmem:[#allocation16_spill] sm:$0xff] %v14405_v19 }
 0x87f   :  { %v1129_v20 = vpop.xlane.xlu0 %1128 }
 0x880   :  { %13694 = vrcp.f32 %v1129_v20  ;;  %v1584_v20 = vld [vmem:[%s19771_s13] sm:$0xff] }
 0x883   :  { %v1293_v21 = vpop.xlane.xlu1 %1292 }
 0x884   :  { %13696 = vrcp.f32 %v1293_v21  ;;  %v8808_v21 = vld [vmem:[%s19767_s9 + $0x20] sm:$0xff] }
 0x88a   :  { %v13695_v22 = vpop.eup %13694 }
 0x88b   :  { %v1131_v23 = vmul.f32 %v13695_v22, %v13691_v12  ;;  %v1666_v12 = vld [vmem:[%s20003_s30 + $0x60] sm:$0xff]  ;;  %v8809_v22 = vld [vmem:[%s19767_s9 + $0x28] sm:$0xff] }
 0x88c   :  { %v14393_v15 = vpack.c.bf16 %v1667_v13, %v1666_v12  ;;  %v1724_v12 = vld [vmem:[%s20003_s30 + $0x230] sm:$0xff]  ;;  %v1725_v13 = vld [vmem:[%s20003_s30 + $0x238] sm:$0xff] }
 0x88d   :  { %11638 = vmatmul.mubr.msk.f32.vlgmr.msra.gmra.mrb[12].mxu1 %vm457_vm6, %v1131_v23  ;;  %v11815_v23 = vpack.c.bf16 %v8809_v22, %v8808_v21  ;;  %v1727_v21 = vld [vmem:[%s20003_s30 + $0x248] sm:$0xff] }
 0x88e   :  { %v13697_v24 = vpop.eup %13696  ;;  %11646 = vmatpush3.msra.mxu1 %v14205_v52  ;;  %11647 = vmatprep.mubr.msk.f32.mxu1 %vm13887_vm0, %v19791_v7  ;;  %v1676_v52 = vld [vmem:[%s20003_s30 + $0xb0] sm:$0xff]  ;;  %20004 = vst [vmem:[#allocation14_spill] sm:$0xff] %v14393_v15  ;;  %v1851_v7 = vld [vmem:[%s20003_s30 + $0x628] sm:$0xff] }
 0x88f   :  { %v1295_v25 = vmul.f32 %v13697_v24, %v13693_v44  ;;  %11661 = vmatprep.subr.msk.mxu1 %vm122_vm1, %v14075_v27  ;;  %v14324_v55 = vpack.c.bf16 %v1677_v53, %v1676_v52  ;;  %v1684_v44 = vld [vmem:[%s20003_s30 + $0xf0] sm:$0xff]  ;;  %11816 = vmatpush3.bf16.msra.mxu0 %v11815_v23  ;;  %v1601_v24 = vld [vmem:[%s19771_s13 + $0x88] sm:$0xff]  ;;  %v1737_v52 = vld [vmem:[%s20003_s30 + $0x298] sm:$0xff] }
 0x890   :  { %v14396_v16 = vpack.c.bf16 %v1685_v14, %v1684_v44  ;;  %11817 = vmatprep.subr.bf16.mxu0 %v19793_v4  ;;  %v14520_v44 = vpack.c.bf16 %v1725_v13, %v1724_v12  ;;  %v1742_v14 = vld [vmem:[%s20003_s30 + $0x2c0] sm:$0xff]  ;;  %v1744_v23 = vld [vmem:[%s20003_s30 + $0x2d0] sm:$0xff]  ;;  %v1801_v13 = vld [vmem:[%s20003_s30 + $0x498] sm:$0xff] }
 0x891   :  { %11648 = vmatmul.mubr.msk.f32.vlgmr.msra.gmra.mrb[14].mxu1 %vm457_vm6, %v1295_v25  ;;  %v1600_v25 = vld [vmem:[%s19771_s13 + $0x80] sm:$0xff]  ;;  %v14530_v18 = vpack.c.bf16 %v1743_v17, %v1742_v14  ;;  %v1800_v12 = vld [vmem:[%s20003_s30 + $0x490] sm:$0xff]  ;;  %v1605_v14 = vld [vmem:[%s19771_s13 + $0xa8] sm:$0xff] }
 0x892   :  { %11663 = vmatprep.mubr.msk.f32.mxu1 %vm122_vm1, %v1459_v26  ;;  %20005 = vst [vmem:[#allocation15_spill] sm:$0xff] %v14396_v16  ;;  %v8810_v26 = vld [vmem:[%s19767_s9 + $0x30] sm:$0xff]  ;;  %20014 = vst [vmem:[#allocation24_spill] sm:$0xff] %v14520_v44  ;;  %v14629_v17 = vpack.c.bf16 %v1801_v13, %v1800_v12  ;;  %v1806_v12 = vld [vmem:[%s20003_s30 + $0x4c0] sm:$0xff] }
 0x893   :  { %v11818_v29 = vpack.c.bf16 %v8811_v28, %v8810_v26  ;;  %20015 = vst [vmem:[#allocation25_spill] sm:$0xff] %v14530_v18  ;;  %v1728_v26 = vld [vmem:[%s20003_s30 + $0x250] sm:$0xff]  ;;  %v1729_v28 = vld [vmem:[%s20003_s30 + $0x258] sm:$0xff]  ;;  %v1807_v13 = vld [vmem:[%s20003_s30 + $0x4c8] sm:$0xff] }
 0x894   :  { %20025 = vst [vmem:[#allocation35_spill] sm:$0xff] %v14629_v17  ;;  %v1852_v4 = vld [vmem:[%s20003_s30 + $0x630] sm:$0xff] }
 0x895   :  { %11662 = vmatpush3.xpose.msk.msra.mxu1 %vm122_vm1, %v14075_v27  ;;  %11819 = vmatpush3.bf16.msra.mxu0 %v11818_v29  ;;  %v14556_v29 = vpack.c.bf16 %v1729_v28, %v1728_v26  ;;  %v1802_v26 = vld [vmem:[%s20003_s30 + $0x4a0] sm:$0xff]  ;;  %v1803_v28 = vld [vmem:[%s20003_s30 + $0x4a8] sm:$0xff] }
 0x896   :  { %11821 = vmatprep.subr.bf16.mxu1 %v14254_v30  ;;  %11853 = vmatprep.subr.bf16.mxu0 %v14440_v34 }
 0x897   :  { %20018 = vst [vmem:[#allocation28_spill] sm:$0xff] %v14556_v29 }
 0x898   :  { %11664 = vmatmul.mubr.msk.f32.vlgmr.msra.gmra.mrb[16].mxu1 %vm122_vm1, %v1460_v35  ;;  %v1616_v35 = vld [vmem:[%s19771_s13 + $0x100] sm:$0xff] }
 0x899   :  { %11666 = vmatprep.mubr.msk.f32.mxu1 %vm122_vm1, %v1461_v37  ;;  %11823 = vmatpush3.bf16.msra.mxu1 %v14273_v36  ;;  %v1734_v37 = vld [vmem:[%s20003_s30 + $0x280] sm:$0xff] }
 0x89a   :  { %11825 = vmatprep.subr.bf16.mxu1 %v14279_v38  ;;  %v14452_v40 = vpack.c.bf16 %v1735_v39, %v1734_v37  ;;  %v1731_v37 = vld [vmem:[%s20003_s30 + $0x268] sm:$0xff] }
 0x89c   :  { %11667 = vmatmul.mubr.msk.f32.gmra.mrb[18].mxu1 %vm122_vm1, %v1462_v46  ;;  %20007 = vst [vmem:[#allocation17_spill] sm:$0xff] %v14452_v40  ;;  %v1633_v46 = vld [vmem:[%s19771_s13 + $0x188] sm:$0xff] }
 0x89d   :  { %11827 = vmatpush3.bf16.msra.mxu1 %v14299_v47  ;;  %1994 = vmatprep.mubr.f32.mxu1 %v1585_v51  ;;  %v1736_v51 = vld [vmem:[%s20003_s30 + $0x290] sm:$0xff] }
 0x89e   :  { %11829 = vmatprep.subr.bf16.mxu1 %v14302_v48  ;;  %v14476_v53 = vpack.c.bf16 %v1737_v52, %v1736_v51  ;;  %v1733_v51 = vld [vmem:[%s20003_s30 + $0x278] sm:$0xff] }
 0x8a0   :  { %20009 = vst [vmem:[#allocation19_spill] sm:$0xff] %v14476_v53 }
 0x8a1   :  { %11831 = vmatpush3.bf16.msra.mxu1 %v14321_v54 }
 0x8a2   :  { %11833 = vmatprep.subr.bf16.mxu1 %v14324_v55 }
 0x8a5   :  { %11835 = vmatpush3.bf16.msra.mxu1 %v14339_v60 }
 0x8a6   :  { %11837 = vmatprep.subr.bf16.mxu1 %v14342_v61 }
 0x8a9   :  { %11839 = vmatpush3.bf16.msra.mxu1 %v14357_v2 }
 0x8aa   :  { %11841 = vmatprep.subr.bf16.mxu1 %v14360_v3 }
 0x8ad   :  { %11843 = vmatpush3.bf16.msra.mxu1 %v14375_v10 }
 0x8ae   :  { %11845 = vmatprep.subr.bf16.mxu1 %v14378_v11 }
 0x8b1   :  { %11847 = vmatpush3.bf16.msra.mxu1 %v14393_v15 }
 0x8b2   :  { %11849 = vmatprep.subr.bf16.mxu1 %v14396_v16 }
 0x8b5   :  { %11851 = vmatpush3.bf16.msra.mxu1 %v14405_v19 }
 0x8b6   :  { %11885 = vmatprep.subr.bf16.mxu1 %v14452_v40 }
 0x8b8   :  { %1995 = vmatmul.mubr.f32.vlgmr.msra.gmra.mrb[20].mxu1 %v1584_v20  ;;  %v1726_v20 = vld [vmem:[%s20003_s30 + $0x240] sm:$0xff] }
 0x8b9   :  { %1999 = vmatprep.mubr.f32.mxu1 %v1601_v24  ;;  %11887 = vmatpush3.bf16.msra.mxu1 %v14463_v49  ;;  %v14538_v22 = vpack.c.bf16 %v1727_v21, %v1726_v20  ;;  %v1745_v24 = vld [vmem:[%s20003_s30 + $0x2d8] sm:$0xff]  ;;  %v1784_v20 = vld [vmem:[%s20003_s30 + $0x410] sm:$0xff] }
 0x8ba   :  { %11889 = vmatprep.subr.bf16.mxu1 %v14476_v53  ;;  %v1785_v21 = vld [vmem:[%s20003_s30 + $0x418] sm:$0xff] }
 0x8bb   :  { %20016 = vst [vmem:[#allocation26_spill] sm:$0xff] %v14538_v22 }
 0x8bc   :  { %2000 = vmatmul.mubr.f32.gmra.mrb[22].mxu1 %v1600_v25  ;;  %v14548_v25 = vpack.c.bf16 %v1745_v24, %v1744_v23  ;;  %v1604_v23 = vld [vmem:[%s19771_s13 + $0xa0] sm:$0xff]  ;;  %v14640_v24 = vpack.c.bf16 %v1785_v21, %v1784_v20  ;;  %v1791_v21 = vld [vmem:[%s20003_s30 + $0x448] sm:$0xff] }
 0x8bd   :  { %2004 = vmatprep.mubr.f32.mxu1 %v1617_v33  ;;  %11891 = vmatpush3.bf16.msra.mxu1 %v14484_v58  ;;  %v14566_v33 = vpack.c.bf16 %v1747_v32, %v1746_v31  ;;  %v1621_v31 = vld [vmem:[%s19771_s13 + $0x128] sm:$0xff]  ;;  %v14653_v32 = vpack.c.bf16 %v1803_v28, %v1802_v26  ;;  %v1790_v20 = vld [vmem:[%s20003_s30 + $0x440] sm:$0xff]  ;;  %v1808_v26 = vld [vmem:[%s20003_s30 + $0x4d0] sm:$0xff] }
 0x8be   :  { %11893 = vmatprep.subr.bf16.mxu1 %v14494_v63  ;;  %20017 = vst [vmem:[#allocation27_spill] sm:$0xff] %v14548_v25  ;;  %20026 = vst [vmem:[#allocation36_spill] sm:$0xff] %v14640_v24  ;;  %v1809_v28 = vld [vmem:[%s20003_s30 + $0x4d8] sm:$0xff] }
 0x8bf   :  { %20019 = vst [vmem:[#allocation29_spill] sm:$0xff] %v14566_v33  ;;  %20027 = vst [vmem:[#allocation37_spill] sm:$0xff] %v14653_v32 }
 0x8c0   :  { %2005 = vmatmul.mubr.f32.gmra.mrb[24].mxu1 %v1616_v35  ;;  %v1730_v35 = vld [vmem:[%s20003_s30 + $0x260] sm:$0xff] }
 0x8c1   :  { %2009 = vmatprep.mubr.f32.mxu1 %v1633_v46  ;;  %11895 = vmatpush3.bf16.msra.mxu1 %v14502_v5  ;;  %v14574_v39 = vpack.c.bf16 %v1731_v37, %v1730_v35  ;;  %v14584_v46 = vpack.c.bf16 %v1749_v45, %v1748_v41  ;;  %v1786_v35 = vld [vmem:[%s20003_s30 + $0x420] sm:$0xff]  ;;  %v1787_v37 = vld [vmem:[%s20003_s30 + $0x428] sm:$0xff] }
 0x8c2   :  { %11897 = vmatprep.subr.bf16.mxu1 %v14512_v9  ;;  %v1620_v41 = vld [vmem:[%s19771_s13 + $0x120] sm:$0xff]  ;;  %v14664_v45 = vpack.c.bf16 %v1787_v37, %v1786_v35  ;;  %v1792_v35 = vld [vmem:[%s20003_s30 + $0x450] sm:$0xff]  ;;  %v1793_v37 = vld [vmem:[%s20003_s30 + $0x458] sm:$0xff] }
 0x8c3   :  { %20020 = vst [vmem:[#allocation30_spill] sm:$0xff] %v14574_v39  ;;  %20021 = vst [vmem:[#allocation31_spill] sm:$0xff] %v14584_v46  ;;  %v1829_v9 = vld [vmem:[%s20003_s30 + $0x578] sm:$0xff]  ;;  %v1878_v5 = vld [vmem:[%s20003_s30 + $0x700] sm:$0xff] }
 0x8c4   :  { %2010 = vmatmul.mubr.f32.gmra.mrb[26].mxu1 %v1632_v50  ;;  %v1732_v50 = vld [vmem:[%s20003_s30 + $0x270] sm:$0xff]  ;;  %20028 = vst [vmem:[#allocation38_spill] sm:$0xff] %v14664_v45 }
 0x8c5   :  { %11899 = vmatpush3.bf16.msra.mxu1 %v14520_v44  ;;  %v14592_v52 = vpack.c.bf16 %v1733_v51, %v1732_v50  ;;  %2164 = vmatprep.mubr.f32.mxu1 %v1589_v59  ;;  %v1804_v50 = vld [vmem:[%s20003_s30 + $0x4b0] sm:$0xff]  ;;  %v1805_v51 = vld [vmem:[%s20003_s30 + $0x4b8] sm:$0xff] }
 0x8c6   :  { %11901 = vmatprep.subr.bf16.mxu1 %v14530_v18  ;;  %v14677_v57 = vpack.c.bf16 %v1805_v51, %v1804_v50  ;;  %v1788_v59 = vld [vmem:[%s20003_s30 + $0x430] sm:$0xff]  ;;  %v1810_v50 = vld [vmem:[%s20003_s30 + $0x4e0] sm:$0xff]  ;;  %v1811_v51 = vld [vmem:[%s20003_s30 + $0x4e8] sm:$0xff] }
 0x8c7   :  { %20022 = vst [vmem:[#allocation32_spill] sm:$0xff] %v14592_v52  ;;  %v1760_v18 = vld [vmem:[%s20003_s30 + $0x350] sm:$0xff]  ;;  %v1761_v44 = vld [vmem:[%s20003_s30 + $0x358] sm:$0xff] }
 0x8c8   :  { %20029 = vst [vmem:[#allocation39_spill] sm:$0xff] %v14677_v57 }
 0x8c9   :  { %11903 = vmatpush3.bf16.msra.mxu1 %v14538_v22 }
 0x8ca   :  { %11905 = vmatprep.subr.bf16.mxu1 %v14548_v25  ;;  %v1635_v25 = vld [vmem:[%s19771_s13 + $0x198] sm:$0xff] }
 0x8cd   :  { %11907 = vmatpush3.bf16.msra.mxu1 %v14556_v29 }
 0x8ce   :  { %11909 = vmatprep.subr.bf16.mxu1 %v14566_v33 }
 0x8d1   :  { %11911 = vmatpush3.bf16.msra.mxu1 %v14574_v39 }
 0x8d2   :  { %11913 = vmatprep.subr.bf16.mxu1 %v14584_v46 }
 0x8d5   :  { %11915 = vmatpush3.bf16.msra.mxu1 %v14592_v52  ;;  %v1619_v52 = vld [vmem:[%s19771_s13 + $0x118] sm:$0xff] }
 0x8d6   :  { %11949 = vmatprep.subr.bf16.mxu1 %v14605_v62  ;;  %v1753_v62 = vld [vmem:[%s20003_s30 + $0x318] sm:$0xff] }
 0x8d8   :  { %2165 = vmatmul.mubr.f32.vlgmr.msra.gmra.mrb[28].mxu1 %v1588_v6  ;;  %v14688_v6 = vpack.c.bf16 %v1789_v0, %v1788_v59  ;;  %v1794_v59 = vld [vmem:[%s20003_s30 + $0x460] sm:$0xff]  ;;  %v1795_v0 = vld [vmem:[%s20003_s30 + $0x468] sm:$0xff] }
 0x8d9   :  { %11951 = vmatpush3.bf16.msra.mxu1 %v14616_v8  ;;  %2169 = vmatprep.mubr.f32.mxu1 %v1605_v14  ;;  %v14698_v14 = vpack.c.bf16 %v1807_v13, %v1806_v12  ;;  %v1812_v12 = vld [vmem:[%s20003_s30 + $0x4f0] sm:$0xff]  ;;  %v1813_v13 = vld [vmem:[%s20003_s30 + $0x4f8] sm:$0xff] }
 0x8da   :  { %11953 = vmatprep.subr.bf16.mxu1 %v14629_v17  ;;  %20030 = vst [vmem:[#allocation40_spill] sm:$0xff] %v14688_v6  ;;  %v1752_v8 = vld [vmem:[%s20003_s30 + $0x310] sm:$0xff] }
 0x8db   :  { %20031 = vst [vmem:[#allocation41_spill] sm:$0xff] %v14698_v14 }
 0x8dc   :  { %2170 = vmatmul.mubr.f32.gmra.mrb[30].mxu1 %v1604_v23  ;;  %v14706_v23 = vpack.c.bf16 %v1791_v21, %v1790_v20  ;;  %v14752_v20 = vpack.c.bf16 %v1813_v13, %v1812_v12  ;;  %v1796_v21 = vld [vmem:[%s20003_s30 + $0x470] sm:$0xff]  ;;  %v1592_v12 = vld [vmem:[%s19771_s13 + $0x40] sm:$0xff] }
 0x8dd   :  { %11955 = vmatpush3.bf16.msra.mxu1 %v14640_v24  ;;  %2174 = vmatprep.mubr.f32.mxu1 %v1621_v31  ;;  %v14716_v31 = vpack.c.bf16 %v1809_v28, %v1808_v26  ;;  %v1797_v26 = vld [vmem:[%s20003_s30 + $0x478] sm:$0xff]  ;;  %v1648_v13 = vld [vmem:[%s19772_s14] sm:$0xff]  ;;  %v1768_v24 = vld [vmem:[%s20003_s30 + $0x390] sm:$0xff] }
 0x8de   :  { %11957 = vmatprep.subr.bf16.mxu1 %v14653_v32  ;;  %20032 = vst [vmem:[#allocation42_spill] sm:$0xff] %v14706_v23  ;;  %20037 = vst [vmem:[#allocation47_spill] sm:$0xff] %v14752_v20  ;;  %v14760_v28 = vpack.c.bf16 %v1797_v26, %v1796_v21  ;;  %1912 = vperm.xlu1 %13675, %v1648_v13   ;;  %v1864_v26 = vld [vmem:[%s20003_s30 + $0x690] sm:$0xff]  ;;  %v1849_v13 = vld [vmem:[%s20003_s30 + $0x618] sm:$0xff] }
 0x8df   :  { %20033 = vst [vmem:[#allocation43_spill] sm:$0xff] %v14716_v31  ;;  %v1751_v32 = vld [vmem:[%s20003_s30 + $0x308] sm:$0xff] }
 0x8e0   :  { %2175 = vmatmul.mubr.f32.gmra.mrb[32].mxu1 %v1620_v41  ;;  %v14724_v41 = vpack.c.bf16 %v1793_v37, %v1792_v35  ;;  %20038 = vst [vmem:[#allocation48_spill] sm:$0xff] %v14760_v28  ;;  %v1862_v35 = vld [vmem:[%s20003_s30 + $0x680] sm:$0xff]  ;;  %v1863_v37 = vld [vmem:[%s20003_s30 + $0x688] sm:$0xff] }
 0x8e1   :  { %11959 = vmatpush3.bf16.msra.mxu1 %v14664_v45  ;;  %2179 = vmatprep.mubr.f32.mxu1 %v1637_v56  ;;  %v14734_v56 = vpack.c.bf16 %v1811_v51, %v1810_v50  ;;  %v1593_v50 = vld [vmem:[%s19771_s13 + $0x48] sm:$0xff]  ;;  %v14773_v51 = vpack.c.bf16 %v1863_v37, %v1862_v35  ;;  %v1865_v37 = vld [vmem:[%s20003_s30 + $0x698] sm:$0xff]  ;;  %v1766_v45 = vld [vmem:[%s20003_s30 + $0x380] sm:$0xff] }
 0x8e2   :  { %11961 = vmatprep.subr.bf16.mxu1 %v14677_v57  ;;  %20034 = vst [vmem:[#allocation44_spill] sm:$0xff] %v14724_v41  ;;  %v1609_v35 = vld [vmem:[%s19771_s13 + $0xc8] sm:$0xff]  ;;  %v1701_v57 = vld [vmem:[%s20003_s30 + $0x178] sm:$0xff] }
 0x8e3   :  { %20035 = vst [vmem:[#allocation45_spill] sm:$0xff] %v14734_v56  ;;  %20039 = vst [vmem:[#allocation49_spill] sm:$0xff] %v14773_v51 }
 0x8e4   :  { %2180 = vmatmul.mubr.f32.gmra.mrb[34].mxu1 %v1636_v1  ;;  %v14742_v1 = vpack.c.bf16 %v1795_v0, %v1794_v59  ;;  %v1846_v59 = vld [vmem:[%s20003_s30 + $0x600] sm:$0xff]  ;;  %v1847_v0 = vld [vmem:[%s20003_s30 + $0x608] sm:$0xff] }
 0x8e5   :  { %11963 = vmatpush3.bf16.msra.mxu1 %v14688_v6  ;;  %2334 = vmatprep.mubr.f32.mxu1 %v1593_v50  ;;  %v14787_v21 = vpack.c.bf16 %v1847_v0, %v1846_v59  ;;  %v1848_v50 = vld [vmem:[%s20003_s30 + $0x610] sm:$0xff]  ;;  %v1608_v59 = vld [vmem:[%s19771_s13 + $0xc0] sm:$0xff]  ;;  %v14806_v0 = vpack.c.bf16 %v1865_v37, %v1864_v26  ;;  %v1867_v37 = vld [vmem:[%s20003_s30 + $0x6a8] sm:$0xff] }
 0x8e6   :  { %11965 = vmatprep.subr.bf16.mxu1 %v14698_v14  ;;  %20036 = vst [vmem:[#allocation46_spill] sm:$0xff] %v14742_v1  ;;  %v14815_v43 = vpack.c.bf16 %v1849_v13, %v1848_v50  ;;  %v1866_v26 = vld [vmem:[%s20003_s30 + $0x6a0] sm:$0xff]  ;;  %v1695_v14 = vld [vmem:[%s20003_s30 + $0x148] sm:$0xff] }
 0x8e7   :  { %20040 = vst [vmem:[#allocation50_spill] sm:$0xff] %v14787_v21  ;;  %20041 = vst [vmem:[#allocation51_spill] sm:$0xff] %v14806_v0  ;;  %v1624_v50 = vld [vmem:[%s19771_s13 + $0x140] sm:$0xff]  ;;  %v1699_v6 = vld [vmem:[%s20003_s30 + $0x168] sm:$0xff] }
 0x8e8   :  { %20042 = vst [vmem:[#allocation52_spill] sm:$0xff] %v14815_v43  ;;  %v1850_v13 = vld [vmem:[%s20003_s30 + $0x620] sm:$0xff] }
 0x8e9   :  { %11967 = vmatpush3.bf16.msra.mxu1 %v14706_v23  ;;  %v1694_v23 = vld [vmem:[%s20003_s30 + $0x140] sm:$0xff] }
 0x8ea   :  { %11969 = vmatprep.subr.bf16.mxu1 %v14716_v31 }
 0x8ed   :  { %11971 = vmatpush3.bf16.msra.mxu1 %v14724_v41  ;;  %v1692_v41 = vld [vmem:[%s20003_s30 + $0x130] sm:$0xff] }
 0x8ee   :  { %11973 = vmatprep.subr.bf16.mxu1 %v14734_v56 }
 0x8f1   :  { %11975 = vmatpush3.bf16.msra.mxu1 %v14742_v1 }
 0x8f2   :  { %11977 = vmatprep.subr.bf16.mxu1 %v14752_v20 }
 0x8f5   :  { %11979 = vmatpush3.bf16.msra.mxu1 %v14760_v28 }
 0x8f6   :  { %12013 = vmatprep.subr.bf16.mxu1 %v14773_v51  ;;  %v1587_v51 = vld [vmem:[%s19771_s13 + $0x18] sm:$0xff] }
 0x8f8   :  { %2335 = vmatmul.mubr.f32.vlgmr.msra.gmra.mrb[36].mxu1 %v1592_v12  ;;  %v1649_v12 = vld [vmem:[%s19772_s14 + $0x8] sm:$0xff] }
 0x8f9   :  { %12015 = vmatpush3.bf16.msra.mxu1 %v14787_v21  ;;  %2339 = vmatprep.mubr.f32.mxu1 %v1609_v35  ;;  %v1625_v35 = vld [vmem:[%s19771_s13 + $0x148] sm:$0xff]  ;;  %v1689_v21 = vld [vmem:[%s20003_s30 + $0x118] sm:$0xff] }
 0x8fa   :  { %12017 = vmatprep.subr.bf16.mxu1 %v14806_v0  ;;  %1917 = vperm.xlu1 %13675, %v1649_v12   ;;  %v1650_v12 = vld [vmem:[%s19772_s14 + $0x10] sm:$0xff] }
 0x8fb   :  { %v1688_v0 = vld [vmem:[%s20003_s30 + $0x110] sm:$0xff] }
 0x8fc   :  { %2340 = vmatmul.mubr.f32.gmra.mrb[38].mxu1 %v1608_v59  ;;  %v14830_v59 = vpack.c.bf16 %v1867_v37, %v1866_v26  ;;  %v1641_v26 = vld [vmem:[%s19771_s13 + $0x1c8] sm:$0xff]  ;;  %v1868_v37 = vld [vmem:[%s20003_s30 + $0x6b0] sm:$0xff] }
 0x8fd   :  { %12019 = vmatpush3.bf16.msra.mxu1 %v14815_v43  ;;  %2344 = vmatprep.mubr.f32.mxu1 %v1625_v35  ;;  %v14842_v35 = vpack.c.bf16 %v1851_v7, %v1850_v13  ;;  %v1869_v7 = vld [vmem:[%s20003_s30 + $0x6b8] sm:$0xff] }
 0x8fe   :  { %20043 = vst [vmem:[#allocation53_spill] sm:$0xff] %v14830_v59  ;;  %12021 = vmatprep.subr.bf16.mxu1 %v14830_v59  ;;  %1922 = vperm.xlu1 %13675, %v1650_v12   ;;  %v1651_v12 = vld [vmem:[%s19772_s14 + $0x18] sm:$0xff]  ;;  %v14860_v13 = vpack.c.bf16 %v1869_v7, %v1868_v37  ;;  %v1871_v37 = vld [vmem:[%s20003_s30 + $0x6c8] sm:$0xff] }
 0x8ff   :  { %20044 = vst [vmem:[#allocation54_spill] sm:$0xff] %v14842_v35  ;;  %v14881_v7 = vpack.c.bf16 %v1871_v37, %v1870_v42  ;;  %v1856_v42 = vld [vmem:[%s20003_s30 + $0x650] sm:$0xff]  ;;  %v1857_v37 = vld [vmem:[%s20003_s30 + $0x658] sm:$0xff] }
 0x900   :  { %2345 = vmatmul.mubr.f32.gmra.mrb[40].mxu1 %v1624_v50  ;;  %v1640_v50 = vld [vmem:[%s19771_s13 + $0x1c0] sm:$0xff]  ;;  %20045 = vst [vmem:[#allocation55_spill] sm:$0xff] %v14860_v13 }
 0x901   :  { %12023 = vmatpush3.bf16.msra.mxu1 %v14842_v35  ;;  %2349 = vmatprep.mubr.f32.mxu1 %v1641_v26  ;;  %v1853_v26 = vld [vmem:[%s20003_s30 + $0x638] sm:$0xff]  ;;  %20047 = vst [vmem:[#allocation57_spill] sm:$0xff] %v14881_v7 }
 0x902   :  { %1927 = vperm.xlu1 %13675, %v1651_v12   ;;  %v14868_v27 = vpack.c.bf16 %v1853_v26, %v1852_v4  ;;  %12025 = vmatprep.subr.bf16.mxu1 %v14860_v13  ;;  %v1855_v4 = vld [vmem:[%s20003_s30 + $0x648] sm:$0xff]  ;;  %v1872_v26 = vld [vmem:[%s20003_s30 + $0x6d0] sm:$0xff]  ;;  %v1873_v13 = vld [vmem:[%s20003_s30 + $0x6d8] sm:$0xff] }
 0x903   :  { %v14895_v35 = vpack.c.bf16 %v1873_v13, %v1872_v26  ;;  %v1875_v13 = vld [vmem:[%s20003_s30 + $0x6e8] sm:$0xff] }
 0x904   :  { %2350 = vmatmul.mubr.f32.gmra.mrb[42].mxu1 %v1640_v50  ;;  %20046 = vst [vmem:[#allocation56_spill] sm:$0xff] %v14868_v27  ;;  %v1854_v50 = vld [vmem:[%s20003_s30 + $0x640] sm:$0xff] }
 0x905   :  { %12027 = vmatpush3.bf16.msra.mxu1 %v14868_v27  ;;  %v14886_v12 = vpack.c.bf16 %v1855_v4, %v1854_v50  ;;  %20049 = vst [vmem:[#allocation59_spill] sm:$0xff] %v14895_v35  ;;  %v14904_v50 = vpack.c.bf16 %v1857_v37, %v1856_v42  ;;  %v1874_v4 = vld [vmem:[%s20003_s30 + $0x6e0] sm:$0xff]  ;;  %v1859_v42 = vld [vmem:[%s20003_s30 + $0x668] sm:$0xff] }
 0x906   :  { %12029 = vmatprep.subr.bf16.mxu1 %v14881_v7  ;;  %v14913_v26 = vpack.c.bf16 %v1875_v13, %v1874_v4  ;;  %v1858_v7 = vld [vmem:[%s20003_s30 + $0x660] sm:$0xff]  ;;  %v1877_v4 = vld [vmem:[%s20003_s30 + $0x6f8] sm:$0xff] }
 0x907   :  { %20048 = vst [vmem:[#allocation58_spill] sm:$0xff] %v14886_v12  ;;  %20050 = vst [vmem:[#allocation60_spill] sm:$0xff] %v14904_v50  ;;  %v14922_v37 = vpack.c.bf16 %v1859_v42, %v1858_v7  ;;  %v1861_v7 = vld [vmem:[%s20003_s30 + $0x678] sm:$0xff] }
 0x908   :  { %20051 = vst [vmem:[#allocation61_spill] sm:$0xff] %v14913_v26 }
 0x909   :  { %12031 = vmatpush3.bf16.msra.mxu1 %v14886_v12  ;;  %20052 = vst [vmem:[#allocation62_spill] sm:$0xff] %v14922_v37  ;;  %v1860_v12 = vld [vmem:[%s20003_s30 + $0x670] sm:$0xff] }
 0x90a   :  { %12033 = vmatprep.subr.bf16.mxu1 %v14895_v35  ;;  %v1876_v35 = vld [vmem:[%s20003_s30 + $0x6f0] sm:$0xff]  ;;  %v14940_v42 = vpack.c.bf16 %v1861_v7, %v1860_v12  ;;  %v1613_v12 = vld [vmem:[%s19771_s13 + $0xe8] sm:$0xff]  ;;  %v1612_v7 = vld [vmem:[%s19771_s13 + $0xe0] sm:$0xff] }
 0x90b   :  { %v14931_v13 = vpack.c.bf16 %v1877_v4, %v1876_v35  ;;  %v1596_v35 = vld [vmem:[%s19771_s13 + $0x60] sm:$0xff]  ;;  %v20055_v4 = vmov 0.0|0.0  }
 0x90c   :  { %20054 = vst [vmem:[#allocation64_spill] sm:$0xff] %v14940_v42 }
 0x90d   :  { %12035 = vmatpush3.bf16.msra.mxu1 %v14904_v50  ;;  %20053 = vst [vmem:[#allocation63_spill] sm:$0xff] %v14931_v13  ;;  %v1475_v50 = vpop.permute.xlu1 %1474 }
 0x90e   :  { %12037 = vmatprep.subr.bf16.mxu1 %v14913_v26  ;;  %v1597_v26 = vld [vmem:[%s19771_s13 + $0x68] sm:$0xff] }
 0x90f   :  { %2504 = vmatprep.mubr.f32.mxu1 %v1597_v26  ;;  %v1629_v26 = vld [vmem:[%s19771_s13 + $0x168] sm:$0xff] }
 0x911   :  { %12039 = vmatpush3.bf16.msra.mxu1 %v14922_v37  ;;  %v1686_v37 = vld [vmem:[%s20003_s30 + $0x100] sm:$0xff] }
 0x912   :  { %12041 = vmatprep.subr.bf16.mxu1 %v14931_v13 }
 0x915   :  { %12043 = vmatpush3.bf16.msra.mxu1 %v14940_v42  ;;  %v1628_v42 = vld [vmem:[%s19771_s13 + $0x160] sm:$0xff] }
 0x916   :  { %12076 = vmatprep.subr.bf16.mxu1 %v20055_v4 }
 0x918   :  { %2505 = vmatmul.mubr.f32.vlgmr.msra.gmra.mrb[44].mxu1 %v1596_v35  ;;  %v1645_v35 = vld [vmem:[%s19771_s13 + $0x1e8] sm:$0xff] }
 0x919   :  { %2509 = vmatprep.mubr.f32.mxu1 %v1613_v12  ;;  %v1644_v12 = vld [vmem:[%s19771_s13 + $0x1e0] sm:$0xff] }
 0x91c   :  { %2510 = vmatmul.mubr.f32.gmra.mrb[46].mxu1 %v1612_v7  ;;  %v20056_v7 = vmov 0.0  }
 0x91d   :  { %2514 = vmatprep.mubr.f32.mxu1 %v1629_v26 }
 0x920   :  { %2515 = vmatmul.mubr.f32.gmra.mrb[48].mxu1 %v1628_v42  ;;  %v1687_v42 = vld [vmem:[%s20003_s30 + $0x108] sm:$0xff] }
 0x921   :  { %2519 = vmatprep.mubr.f32.mxu1 %v1645_v35  ;;  %v1704_v35 = vld [vmem:[%s20003_s30 + $0x190] sm:$0xff]  ;;  %v14983_v59 = vpack.c.bf16 %v1687_v42, %v1686_v37  ;;  %v1706_v37 = vld [vmem:[%s20003_s30 + $0x1a0] sm:$0xff]  ;;  %v15005_v42 = vpack.c.bf16 %v1689_v21, %v1688_v0 }
 0x924   :  { %2520 = vmatmul.mubr.f32.gmra.mrb[50].mxu1 %v1644_v12  ;;  %v1705_v12 = vld [vmem:[%s20003_s30 + $0x198] sm:$0xff] }
 0x925   :  { %11677 = vmatprep.mubr.msk.f32.mxu1 %vm13887_vm0, %v20056_v7  ;;  %v14985_v43 = vpack.c.bf16 %v1705_v12, %v1704_v35  ;;  %v1480_v35 = vpop.permute.xlu1 %1479 }
 0x929   :  { %v1485_v1 = vpop.permute.xlu1 %1484 }
 0x960   :  { %v1201_v13 = vpop.f32.mrb[12].mxu1 }
 0x961   :  { %v11639_v26 = vpop.f32.mrb[13].mxu1 }
 0x964   :  { %v1365_v7 = vpop.f32.mrb[14].mxu1 }
 0x965   :  { %v1370_v27 = vrot.slane %v1365_v7, 7  ;;  %v11649_v26 = vpop.f32.mrb[15].mxu1  ;;  %v1707_v7 = vld [vmem:[%s20003_s30 + $0x1a8] sm:$0xff] }
 0x966   :  { %v15008_v12 = vpack.c.bf16 %v1707_v7, %v1706_v37  ;;  %v1470_v26 = vpop.permute.xlu0 %1469 }
 0x967   :  { %v1372_v28 = vsel %vm104_vm2, %v1201_v13, %v1370_v27  ;;  %v1690_v27 = vld [vmem:[%s20003_s30 + $0x120] sm:$0xff]  ;;  %v1691_v13 = vld [vmem:[%s20003_s30 + $0x128] sm:$0xff] }
 0x968   :  { %11659 = vmatmul.mubr.msk.f32.vlgmr.msra.gmra.mrb[14].mxu0 %vm122_vm1, %v1372_v28  ;;  %v1708_v28 = vld [vmem:[%s20003_s30 + $0x1b0] sm:$0xff]  ;;  %v15025_v7 = vpack.c.bf16 %v1691_v13, %v1690_v27  ;;  %v1710_v27 = vld [vmem:[%s20003_s30 + $0x1c0] sm:$0xff]  ;;  %v1711_v13 = vld [vmem:[%s20003_s30 + $0x1c8] sm:$0xff] }
 0x969   :  { %11855 = vmatpush3.bf16.msra.mxu0 %v14983_v59  ;;  %2079 = vmatprep.mubr.f32.mxu0 %v1587_v51  ;;  %v1709_v51 = vld [vmem:[%s20003_s30 + $0x1b8] sm:$0xff]  ;;  %v15054_v31 = vpack.c.bf16 %v1711_v13, %v1710_v27  ;;  %v1696_v13 = vld [vmem:[%s20003_s30 + $0x150] sm:$0xff] }
 0x96a   :  { %11857 = vmatprep.subr.bf16.mxu0 %v14985_v43  ;;  %v15030_v56 = vpack.c.bf16 %v1709_v51, %v1708_v28 }
 0x96b   :  { %v11665_v21 = vpop.f32.mrb[16].mxu1 }
 0x96c   :  { %v1565_v0 = vpop.f32.mrb[17].mxu1  ;;  %v15022_v37 = vadd.f32 %v11665_v21, %v1475_v50  ;;  %v1693_v50 = vld [vmem:[%s20003_s30 + $0x138] sm:$0xff] }
 0x96d   :  { %11859 = vmatpush3.bf16.msra.mxu0 %v15005_v42  ;;  %v15027_v20 = vadd.f32 %v1565_v0, %v1470_v26  ;;  %v15049_v21 = vpack.c.bf16 %v1693_v50, %v1692_v41  ;;  %v1712_v41 = vld [vmem:[%s20003_s30 + $0x1d0] sm:$0xff]  ;;  %v15071_v50 = vpack.c.bf16 %v1695_v14, %v1694_v23  ;;  %v1715_v14 = vld [vmem:[%s20003_s30 + $0x1e8] sm:$0xff] }
 0x96e   :  { %20057 = vst [vmem:[#allocation65_spill] sm:$0xff] %v15022_v37  ;;  %11861 = vmatprep.subr.bf16.mxu0 %v15008_v12  ;;  %2617 = vperm.xlu0 %13674, %v15022_v37  }
 0x96f   :  { %v11668_v26 = vpop.f32.mrb[18].mxu1  ;;  %2612 = vperm.xlu1 %13675, %v15027_v20  }
 0x970   :  { %v1575_v28 = vpop.f32.mrb[19].mxu1  ;;  %v15046_v51 = vadd.f32 %v11668_v26, %v1485_v1  ;;  %v1713_v1 = vld [vmem:[%s20003_s30 + $0x1d8] sm:$0xff] }
 0x971   :  { %11863 = vmatpush3.bf16.msra.mxu0 %v15025_v7  ;;  %v15051_v0 = vadd.f32 %v1575_v28, %v1480_v35  ;;  %v1653_v35 = vld [vmem:[#allocation2] sm:$0x1]  ;;  %v15074_v27 = vpack.c.bf16 %v1713_v1, %v1712_v41  ;;  %v1697_v26 = vld [vmem:[%s20003_s30 + $0x158] sm:$0xff] }
 0x972   :  { %20058 = vst [vmem:[#allocation66_spill] sm:$0xff] %v15046_v51  ;;  %11865 = vmatprep.subr.bf16.mxu0 %v15030_v56  ;;  %2627 = vperm.xlu0 %13674, %v15046_v51   ;;  %v1714_v28 = vld [vmem:[%s20003_s30 + $0x1e0] sm:$0xff]  ;;  %v15089_v23 = vpack.c.bf16 %v1697_v26, %v1696_v13  ;;  %v1717_v13 = vld [vmem:[%s20003_s30 + $0x1f8] sm:$0xff] }
 0x973   :  { %20059 = vst [vmem:[#allocation67_spill] sm:$0xff] %v15051_v0  ;;  %2622 = vperm.xlu1 %13675, %v15051_v0   ;;  %v15092_v41 = vpack.c.bf16 %v1715_v14, %v1714_v28  ;;  %v1698_v1 = vld [vmem:[%s20003_s30 + $0x160] sm:$0xff]  ;;  %v1700_v14 = vld [vmem:[%s20003_s30 + $0x170] sm:$0xff] }
 0x974   :  { %v15107_v26 = vpack.c.bf16 %v1699_v6, %v1698_v1  ;;  %v1767_v6 = vld [vmem:[%s20003_s30 + $0x388] sm:$0xff]  ;;  %v15125_v1 = vpack.c.bf16 %v1701_v57, %v1700_v14  ;;  %v1769_v57 = vld [vmem:[%s20003_s30 + $0x398] sm:$0xff] }
 0x975   :  { %11867 = vmatpush3.bf16.msra.mxu0 %v15049_v21  ;;  %v15152_v17 = vpack.c.bf16 %v1769_v57, %v1768_v24  ;;  %v1602_v24 = vld [vmem:[%s19771_s13 + $0x90] sm:$0xff]  ;;  %v15170_v57 = vpack.c.bf16 %v1753_v62, %v1752_v8  ;;  %v1773_v8 = vld [vmem:[%s20003_s30 + $0x3b8] sm:$0xff] }
 0x976   :  { %11869 = vmatprep.subr.bf16.mxu0 %v15054_v31  ;;  %20060 = vst [vmem:[#allocation68_spill] sm:$0xff] %v15107_v26  ;;  %20062 = vst [vmem:[#allocation70_spill] sm:$0xff] %v15125_v1  ;;  %v1772_v62 = vld [vmem:[%s20003_s30 + $0x3b0] sm:$0xff] }
 0x977   :  { %2640 = vperm.xlu1 %13675, %v1653_v35   ;;  %v1716_v35 = vld [vmem:[%s20003_s30 + $0x1f0] sm:$0xff]  ;;  %20065 = vst [vmem:[#allocation73_spill] sm:$0xff] %v15152_v17  ;;  %20066 = vst [vmem:[#allocation74_spill] sm:$0xff] %v15170_v57  ;;  %v15202_v22 = vpack.c.bf16 %v1773_v8, %v1772_v62 }
 0x978   :  { %v15110_v28 = vpack.c.bf16 %v1717_v13, %v1716_v35  ;;  %v15128_v35 = vpack.c.bf16 %v1767_v6, %v1766_v45  ;;  %v1750_v13 = vld [vmem:[%s20003_s30 + $0x300] sm:$0xff]  ;;  %v1586_v45 = vld [vmem:[%s19771_s13 + $0x10] sm:$0xff]  ;;  %v1603_v6 = vld [vmem:[%s19771_s13 + $0x98] sm:$0xff] }
 0x979   :  { %11871 = vmatpush3.bf16.msra.mxu0 %v15071_v50  ;;  %v15146_v14 = vpack.c.bf16 %v1751_v32, %v1750_v13  ;;  %v1770_v32 = vld [vmem:[%s20003_s30 + $0x3a0] sm:$0xff]  ;;  %v1771_v13 = vld [vmem:[%s20003_s30 + $0x3a8] sm:$0xff]  ;;  %20069 = vst [vmem:[#allocation77_spill] sm:$0xff] %v15202_v22 }
 0x97a   :  { %11873 = vmatprep.subr.bf16.mxu0 %v15074_v27  ;;  %20061 = vst [vmem:[#allocation69_spill] sm:$0xff] %v15110_v28  ;;  %20063 = vst [vmem:[#allocation71_spill] sm:$0xff] %v15128_v35  ;;  %v15176_v46 = vpack.c.bf16 %v1771_v13, %v1770_v32  ;;  %v1618_v13 = vld [vmem:[%s19771_s13 + $0x110] sm:$0xff] }
 0x97b   :  { %20064 = vst [vmem:[#allocation72_spill] sm:$0xff] %v15146_v14 }
 0x97c   :  { %20067 = vst [vmem:[#allocation75_spill] sm:$0xff] %v15176_v46 }
 0x97d   :  { %11875 = vmatpush3.bf16.msra.mxu0 %v15089_v23 }
 0x97e   :  { %11877 = vmatprep.subr.bf16.mxu0 %v15092_v41 }
 0x981   :  { %11879 = vmatpush3.bf16.msra.mxu0 %v15107_v26 }
 0x982   :  { %11881 = vmatprep.subr.bf16.mxu0 %v15110_v28 }
 0x985   :  { %11883 = vmatpush3.bf16.msra.mxu0 %v15125_v1 }
 0x986   :  { %11917 = vmatprep.subr.bf16.mxu0 %v15128_v35 }
 0x988   :  { %2080 = vmatmul.mubr.f32.vlgmr.msra.gmra.mrb[16].mxu0 %v1586_v45  ;;  %v1754_v45 = vld [vmem:[%s20003_s30 + $0x320] sm:$0xff] }
 0x989   :  { %11919 = vmatpush3.bf16.msra.mxu0 %v15146_v14  ;;  %2084 = vmatprep.mubr.f32.mxu0 %v1603_v6  ;;  %v1755_v6 = vld [vmem:[%s20003_s30 + $0x328] sm:$0xff] }
 0x98a   :  { %11921 = vmatprep.subr.bf16.mxu0 %v15152_v17  ;;  %v15194_v33 = vpack.c.bf16 %v1755_v6, %v1754_v45  ;;  %v1775_v45 = vld [vmem:[%s20003_s30 + $0x3c8] sm:$0xff]  ;;  %v1634_v6 = vld [vmem:[%s19771_s13 + $0x190] sm:$0xff] }
 0x98b   :  { %v9712_v39 = vpop.f32.mrb[20].mxu1 }
 0x98c   :  { %2085 = vmatmul.mubr.f32.gmra.mrb[18].mxu0 %v1602_v24  ;;  %v9713_v32 = vpop.f32.mrb[21].mxu1  ;;  %20068 = vst [vmem:[#allocation76_spill] sm:$0xff] %v15194_v33  ;;  %v1757_v24 = vld [vmem:[%s20003_s30 + $0x338] sm:$0xff] }
 0x98d   :  { %11923 = vmatpush3.bf16.msra.mxu0 %v15170_v57  ;;  %2089 = vmatprep.mubr.f32.mxu0 %v1619_v52  ;;  %v15196_v29 = vadd.f32 %v9713_v32, %v9712_v39  ;;  %v1756_v52 = vld [vmem:[%s20003_s30 + $0x330] sm:$0xff]  ;;  %v1774_v39 = vld [vmem:[%s20003_s30 + $0x3c0] sm:$0xff] }
 0x98e   :  { %11925 = vmatprep.subr.bf16.mxu0 %v15176_v46  ;;  %v15220_v62 = vpack.c.bf16 %v1757_v24, %v1756_v52  ;;  %v15223_v8 = vpack.c.bf16 %v1775_v45, %v1774_v39  ;;  %v1758_v32 = vld [vmem:[%s20003_s30 + $0x340] sm:$0xff]  ;;  %v1776_v52 = vld [vmem:[%s20003_s30 + $0x3d0] sm:$0xff]  ;;  %v1777_v24 = vld [vmem:[%s20003_s30 + $0x3d8] sm:$0xff] }
 0x98f   :  { %v15244_v45 = vpack.c.bf16 %v1777_v24, %v1776_v52  ;;  %v1762_v52 = vld [vmem:[%s20003_s30 + $0x360] sm:$0xff]  ;;  %v1763_v24 = vld [vmem:[%s20003_s30 + $0x368] sm:$0xff] }
 0x990   :  { %2090 = vmatmul.mubr.f32.gmra.mrb[20].mxu0 %v1618_v13  ;;  %20070 = vst [vmem:[#allocation78_spill] sm:$0xff] %v15220_v62  ;;  %20071 = vst [vmem:[#allocation79_spill] sm:$0xff] %v15223_v8  ;;  %v1759_v13 = vld [vmem:[%s20003_s30 + $0x348] sm:$0xff] }
 0x991   :  { %11927 = vmatpush3.bf16.msra.mxu0 %v15194_v33  ;;  %2094 = vmatprep.mubr.f32.mxu0 %v1635_v25  ;;  %v1591_v25 = vld [vmem:[%s19771_s13 + $0x38] sm:$0xff]  ;;  %v15241_v39 = vpack.c.bf16 %v1759_v13, %v1758_v32  ;;  %20073 = vst [vmem:[#allocation81_spill] sm:$0xff] %v15244_v45  ;;  %v1779_v32 = vld [vmem:[%s20003_s30 + $0x3e8] sm:$0xff]  ;;  %v15259_v13 = vpack.c.bf16 %v1761_v44, %v1760_v18 }
 0x992   :  { %11929 = vmatprep.subr.bf16.mxu0 %v15202_v22  ;;  %v1781_v44 = vld [vmem:[%s20003_s30 + $0x3f8] sm:$0xff]  ;;  %v15277_v18 = vpack.c.bf16 %v1763_v24, %v1762_v52  ;;  %v1831_v52 = vld [vmem:[%s20003_s30 + $0x588] sm:$0xff]  ;;  %v9715_v22 = vpop.f32.mrb[22].mxu1 }
 0x993   :  { %20072 = vst [vmem:[#allocation80_spill] sm:$0xff] %v15241_v39  ;;  %20074 = vst [vmem:[#allocation82_spill] sm:$0xff] %v15259_v13 }
 0x994   :  { %2095 = vmatmul.mubr.f32.gmra.mrb[22].mxu0 %v1634_v6  ;;  %v1778_v6 = vld [vmem:[%s20003_s30 + $0x3e0] sm:$0xff]  ;;  %20076 = vst [vmem:[#allocation84_spill] sm:$0xff] %v15277_v18 }
 0x995   :  { %11931 = vmatpush3.bf16.msra.mxu0 %v15220_v62  ;;  %2249 = vmatprep.mubr.f32.mxu0 %v1591_v25  ;;  %v15262_v25 = vpack.c.bf16 %v1779_v32, %v1778_v6  ;;  %v1764_v32 = vld [vmem:[%s20003_s30 + $0x370] sm:$0xff] }
 0x996   :  { %11933 = vmatprep.subr.bf16.mxu0 %v15223_v8  ;;  %v1780_v8 = vld [vmem:[%s20003_s30 + $0x3f0] sm:$0xff] }
 0x997   :  { %20075 = vst [vmem:[#allocation83_spill] sm:$0xff] %v15262_v25  ;;  %v15280_v6 = vpack.c.bf16 %v1781_v44, %v1780_v8  ;;  %v1814_v44 = vld [vmem:[%s20003_s30 + $0x500] sm:$0xff] }
 0x999   :  { %11935 = vmatpush3.bf16.msra.mxu0 %v15241_v39  ;;  %20077 = vst [vmem:[#allocation85_spill] sm:$0xff] %v15280_v6  ;;  %v1830_v39 = vld [vmem:[%s20003_s30 + $0x580] sm:$0xff] }
 0x99a   :  { %11937 = vmatprep.subr.bf16.mxu0 %v15244_v45  ;;  %v1765_v45 = vld [vmem:[%s20003_s30 + $0x378] sm:$0xff]  ;;  %v15298_v24 = vpack.c.bf16 %v1831_v52, %v1830_v39  ;;  %v1590_v39 = vld [vmem:[%s19771_s13 + $0x30] sm:$0xff] }
 0x99b   :  { %v15295_v8 = vpack.c.bf16 %v1765_v45, %v1764_v32  ;;  %v1833_v45 = vld [vmem:[%s20003_s30 + $0x598] sm:$0xff] }
 0x99c   :  { %20079 = vst [vmem:[#allocation87_spill] sm:$0xff] %v15298_v24  ;;  %v1607_v52 = vld [vmem:[%s19771_s13 + $0xb8] sm:$0xff] }
 0x99d   :  { %11939 = vmatpush3.bf16.msra.mxu0 %v15259_v13  ;;  %20078 = vst [vmem:[#allocation86_spill] sm:$0xff] %v15295_v8  ;;  %v1832_v13 = vld [vmem:[%s20003_s30 + $0x590] sm:$0xff] }
 0x99e   :  { %11941 = vmatprep.subr.bf16.mxu0 %v15262_v25  ;;  %v1815_v25 = vld [vmem:[%s20003_s30 + $0x508] sm:$0xff] }
 0x99f   :  { %v15316_v32 = vpack.c.bf16 %v1815_v25, %v1814_v44  ;;  %v1834_v25 = vld [vmem:[%s20003_s30 + $0x5a0] sm:$0xff]  ;;  %v1835_v44 = vld [vmem:[%s20003_s30 + $0x5a8] sm:$0xff] }
 0x9a0   :  { %v15346_v62 = vpack.c.bf16 %v1835_v44, %v1834_v25  ;;  %v1622_v25 = vld [vmem:[%s19771_s13 + $0x130] sm:$0xff] }
 0x9a1   :  { %11943 = vmatpush3.bf16.msra.mxu0 %v15277_v18  ;;  %20080 = vst [vmem:[#allocation88_spill] sm:$0xff] %v15316_v32  ;;  %v1816_v18 = vld [vmem:[%s20003_s30 + $0x510] sm:$0xff] }
 0x9a2   :  { %11945 = vmatprep.subr.bf16.mxu0 %v15280_v6  ;;  %v15322_v6 = vpack.c.bf16 %v1833_v45, %v1832_v13  ;;  %v1606_v13 = vld [vmem:[%s19771_s13 + $0xb0] sm:$0xff]  ;;  %20083 = vst [vmem:[#allocation91_spill] sm:$0xff] %v15346_v62 }
 0x9a4   :  { %20081 = vst [vmem:[#allocation89_spill] sm:$0xff] %v15322_v6 }
 0x9a5   :  { %11947 = vmatpush3.bf16.msra.mxu0 %v15295_v8  ;;  %v1817_v8 = vld [vmem:[%s20003_s30 + $0x518] sm:$0xff] }
 0x9a6   :  { %11981 = vmatprep.subr.bf16.mxu0 %v15298_v24  ;;  %v15340_v45 = vpack.c.bf16 %v1817_v8, %v1816_v18  ;;  %v1623_v24 = vld [vmem:[%s19771_s13 + $0x138] sm:$0xff]  ;;  %v1836_v18 = vld [vmem:[%s20003_s30 + $0x5b0] sm:$0xff] }
 0x9a7   :  { %v1837_v8 = vld [vmem:[%s20003_s30 + $0x5b8] sm:$0xff] }
 0x9a8   :  { %2250 = vmatmul.mubr.f32.vlgmr.msra.gmra.mrb[24].mxu0 %v1590_v39  ;;  %20082 = vst [vmem:[#allocation90_spill] sm:$0xff] %v15340_v45  ;;  %v1818_v39 = vld [vmem:[%s20003_s30 + $0x520] sm:$0xff] }
 0x9a9   :  { %11983 = vmatpush3.bf16.msra.mxu0 %v15316_v32  ;;  %2254 = vmatprep.mubr.f32.mxu0 %v1607_v52  ;;  %v1819_v52 = vld [vmem:[%s20003_s30 + $0x528] sm:$0xff]  ;;  %v15370_v32 = vpack.c.bf16 %v1837_v8, %v1836_v18  ;;  %v1638_v18 = vld [vmem:[%s19771_s13 + $0x1b0] sm:$0xff] }
 0x9aa   :  { %11985 = vmatprep.subr.bf16.mxu0 %v15322_v6  ;;  %v15364_v44 = vpack.c.bf16 %v1819_v52, %v1818_v39  ;;  %v1639_v6 = vld [vmem:[%s19771_s13 + $0x1b8] sm:$0xff]  ;;  %v1838_v39 = vld [vmem:[%s20003_s30 + $0x5c0] sm:$0xff]  ;;  %v1839_v52 = vld [vmem:[%s20003_s30 + $0x5c8] sm:$0xff] }
 0x9ab   :  { %20085 = vst [vmem:[#allocation93_spill] sm:$0xff] %v15370_v32 }
 0x9ac   :  { %2255 = vmatmul.mubr.f32.gmra.mrb[26].mxu0 %v1606_v13  ;;  %20084 = vst [vmem:[#allocation92_spill] sm:$0xff] %v15364_v44  ;;  %v1820_v13 = vld [vmem:[%s20003_s30 + $0x530] sm:$0xff] }
 0x9ad   :  { %11987 = vmatpush3.bf16.msra.mxu0 %v15340_v45  ;;  %2259 = vmatprep.mubr.f32.mxu0 %v1623_v24  ;;  %v1821_v24 = vld [vmem:[%s20003_s30 + $0x538] sm:$0xff]  ;;  %v1822_v45 = vld [vmem:[%s20003_s30 + $0x540] sm:$0xff] }
 0x9ae   :  { %11989 = vmatprep.subr.bf16.mxu0 %v15346_v62  ;;  %v15388_v8 = vpack.c.bf16 %v1821_v24, %v1820_v13  ;;  %v15391_v62 = vpack.c.bf16 %v1839_v52, %v1838_v39  ;;  %v1840_v13 = vld [vmem:[%s20003_s30 + $0x5d0] sm:$0xff]  ;;  %v1841_v24 = vld [vmem:[%s20003_s30 + $0x5d8] sm:$0xff] }
 0x9af   :  { %v15412_v52 = vpack.c.bf16 %v1841_v24, %v1840_v13  ;;  %v1826_v13 = vld [vmem:[%s20003_s30 + $0x560] sm:$0xff]  ;;  %v1827_v24 = vld [vmem:[%s20003_s30 + $0x568] sm:$0xff] }
 0x9b0   :  { %2260 = vmatmul.mubr.f32.gmra.mrb[28].mxu0 %v1622_v25  ;;  %20086 = vst [vmem:[#allocation94_spill] sm:$0xff] %v15388_v8  ;;  %20087 = vst [vmem:[#allocation95_spill] sm:$0xff] %v15391_v62  ;;  %v1823_v25 = vld [vmem:[%s20003_s30 + $0x548] sm:$0xff] }
 0x9b1   :  { %11991 = vmatpush3.bf16.msra.mxu0 %v15364_v44  ;;  %2264 = vmatprep.mubr.f32.mxu0 %v1639_v6  ;;  %v1595_v6 = vld [vmem:[%s19771_s13 + $0x58] sm:$0xff]  ;;  %v15409_v39 = vpack.c.bf16 %v1823_v25, %v1822_v45  ;;  %20089 = vst [vmem:[#allocation97_spill] sm:$0xff] %v15412_v52  ;;  %v1843_v45 = vld [vmem:[%s20003_s30 + $0x5e8] sm:$0xff] }
 0x9b2   :  { %11993 = vmatprep.subr.bf16.mxu0 %v15370_v32  ;;  %v1824_v32 = vld [vmem:[%s20003_s30 + $0x550] sm:$0xff]  ;;  %v1825_v44 = vld [vmem:[%s20003_s30 + $0x558] sm:$0xff] }
 0x9b3   :  { %20088 = vst [vmem:[#allocation96_spill] sm:$0xff] %v15409_v39  ;;  %v15427_v25 = vpack.c.bf16 %v1825_v44, %v1824_v32  ;;  %v1845_v32 = vld [vmem:[%s20003_s30 + $0x5f8] sm:$0xff]  ;;  %v9716_v44 = vpop.f32.mrb[23].mxu1 }
 0x9b4   :  { %2265 = vmatmul.mubr.f32.gmra.mrb[30].mxu0 %v1638_v18  ;;  %v1842_v18 = vld [vmem:[%s20003_s30 + $0x5e0] sm:$0xff] }
 0x9b5   :  { %11995 = vmatpush3.bf16.msra.mxu0 %v15388_v8  ;;  %2419 = vmatprep.mubr.f32.mxu0 %v1595_v6  ;;  %20090 = vst [vmem:[#allocation98_spill] sm:$0xff] %v15427_v25  ;;  %v15430_v6 = vpack.c.bf16 %v1843_v45, %v1842_v18  ;;  %v15445_v18 = vpack.c.bf16 %v1827_v24, %v1826_v13  ;;  %v1828_v8 = vld [vmem:[%s20003_s30 + $0x570] sm:$0xff]  ;;  %v1894_v13 = vld [vmem:[%s20003_s30 + $0x780] sm:$0xff] }
 0x9b6   :  { %11997 = vmatprep.subr.bf16.mxu0 %v15391_v62  ;;  %v1844_v62 = vld [vmem:[%s20003_s30 + $0x5f0] sm:$0xff]  ;;  %v15447_v45 = vadd.f32 %v9716_v44, %v9715_v22  ;;  %v1895_v22 = vld [vmem:[%s20003_s30 + $0x788] sm:$0xff]  ;;  %v15467_v44 = vpack.c.bf16 %v1829_v9, %v1828_v8  ;;  %v1897_v9 = vld [vmem:[%s20003_s30 + $0x798] sm:$0xff] }
 0x9b7   :  { %20091 = vst [vmem:[#allocation99_spill] sm:$0xff] %v15430_v6  ;;  %20092 = vst [vmem:[#allocation100_spill] sm:$0xff] %v15445_v18  ;;  %v1594_v8 = vld [vmem:[%s19771_s13 + $0x50] sm:$0xff] }
 0x9b8   :  { %20094 = vst [vmem:[#allocation102_spill] sm:$0xff] %v15467_v44 }
 0x9b9   :  { %11999 = vmatpush3.bf16.msra.mxu0 %v15409_v39  ;;  %v15450_v39 = vpack.c.bf16 %v1845_v32, %v1844_v62 }
 0x9ba   :  { %12001 = vmatprep.subr.bf16.mxu0 %v15412_v52  ;;  %v9718_v52 = vpop.f32.mrb[24].mxu1 }
 0x9bb   :  { %20093 = vst [vmem:[#allocation101_spill] sm:$0xff] %v15450_v39  ;;  %v9719_v33 = vpop.f32.mrb[25].mxu1 }
 0x9bc   :  { %v15464_v24 = vadd.f32 %v9719_v33, %v9718_v52  ;;  %v9721_v62 = vpop.f32.mrb[26].mxu1  ;;  %v1879_v33 = vld [vmem:[%s20003_s30 + $0x708] sm:$0xff]  ;;  %v1896_v52 = vld [vmem:[%s20003_s30 + $0x790] sm:$0xff] }
 0x9bd   :  { %12003 = vmatpush3.bf16.msra.mxu0 %v15427_v25  ;;  %v9722_v32 = vpop.f32.mrb[27].mxu1  ;;  %v15472_v25 = vpack.c.bf16 %v1895_v22, %v1894_v13  ;;  %v15490_v13 = vpack.c.bf16 %v1879_v33, %v1878_v5  ;;  %v1611_v22 = vld [vmem:[%s19771_s13 + $0xd8] sm:$0xff]  ;;  %v1898_v5 = vld [vmem:[%s20003_s30 + $0x7a0] sm:$0xff]  ;;  %v1899_v33 = vld [vmem:[%s20003_s30 + $0x7a8] sm:$0xff] }
 0x9be   :  { %12005 = vmatprep.subr.bf16.mxu0 %v15430_v6  ;;  %v15469_v6 = vadd.f32 %v9722_v32, %v9721_v62  ;;  %v15496_v62 = vpack.c.bf16 %v1897_v9, %v1896_v52  ;;  %v1880_v32 = vld [vmem:[%s20003_s30 + $0x710] sm:$0xff] }
 0x9bf   :  { %20095 = vst [vmem:[#allocation103_spill] sm:$0xff] %v15472_v25  ;;  %20096 = vst [vmem:[#allocation104_spill] sm:$0xff] %v15490_v13  ;;  %v1610_v52 = vld [vmem:[%s19771_s13 + $0xd0] sm:$0xff] }
 0x9c0   :  { %20097 = vst [vmem:[#allocation105_spill] sm:$0xff] %v15496_v62 }
 0x9c1   :  { %12007 = vmatpush3.bf16.msra.mxu0 %v15445_v18 }
 0x9c2   :  { %12009 = vmatprep.subr.bf16.mxu0 %v15450_v39  ;;  %v15520_v39 = vpack.c.bf16 %v1899_v33, %v1898_v5  ;;  %v1626_v5 = vld [vmem:[%s19771_s13 + $0x150] sm:$0xff] }
 0x9c4   :  { %20099 = vst [vmem:[#allocation107_spill] sm:$0xff] %v15520_v39 }
 0x9c5   :  { %12011 = vmatpush3.bf16.msra.mxu0 %v15467_v44  ;;  %v1881_v44 = vld [vmem:[%s20003_s30 + $0x718] sm:$0xff] }
 0x9c6   :  { %12045 = vmatprep.subr.bf16.mxu0 %v15472_v25  ;;  %v15514_v9 = vpack.c.bf16 %v1881_v44, %v1880_v32  ;;  %v1627_v25 = vld [vmem:[%s19771_s13 + $0x158] sm:$0xff]  ;;  %v1900_v44 = vld [vmem:[%s20003_s30 + $0x7b0] sm:$0xff] }
 0x9c7   :  { %v1901_v32 = vld [vmem:[%s20003_s30 + $0x7b8] sm:$0xff] }
 0x9c8   :  { %2420 = vmatmul.mubr.f32.vlgmr.msra.gmra.mrb[32].mxu0 %v1594_v8  ;;  %20098 = vst [vmem:[#allocation106_spill] sm:$0xff] %v15514_v9  ;;  %v1882_v8 = vld [vmem:[%s20003_s30 + $0x720] sm:$0xff] }
 0x9c9   :  { %12047 = vmatpush3.bf16.msra.mxu0 %v15490_v13  ;;  %2424 = vmatprep.mubr.f32.mxu0 %v1611_v22  ;;  %v1883_v22 = vld [vmem:[%s20003_s30 + $0x728] sm:$0xff]  ;;  %v15544_v13 = vpack.c.bf16 %v1901_v32, %v1900_v44  ;;  %v1642_v44 = vld [vmem:[%s19771_s13 + $0x1d0] sm:$0xff] }
 0x9ca   :  { %12049 = vmatprep.subr.bf16.mxu0 %v15496_v62  ;;  %v15538_v33 = vpack.c.bf16 %v1883_v22, %v1882_v8  ;;  %v1643_v62 = vld [vmem:[%s19771_s13 + $0x1d8] sm:$0xff]  ;;  %v1902_v8 = vld [vmem:[%s20003_s30 + $0x7c0] sm:$0xff]  ;;  %v1903_v22 = vld [vmem:[%s20003_s30 + $0x7c8] sm:$0xff] }
 0x9cb   :  { %20101 = vst [vmem:[#allocation109_spill] sm:$0xff] %v15544_v13 }
 0x9cc   :  { %2425 = vmatmul.mubr.f32.gmra.mrb[34].mxu0 %v1610_v52  ;;  %20100 = vst [vmem:[#allocation108_spill] sm:$0xff] %v15538_v33  ;;  %v1884_v52 = vld [vmem:[%s20003_s30 + $0x730] sm:$0xff] }
 0x9cd   :  { %12051 = vmatpush3.bf16.msra.mxu0 %v15514_v9  ;;  %2429 = vmatprep.mubr.f32.mxu0 %v1627_v25  ;;  %v1885_v25 = vld [vmem:[%s20003_s30 + $0x738] sm:$0xff]  ;;  %v1886_v9 = vld [vmem:[%s20003_s30 + $0x740] sm:$0xff] }
 0x9ce   :  { %12053 = vmatprep.subr.bf16.mxu0 %v15520_v39  ;;  %v15562_v32 = vpack.c.bf16 %v1885_v25, %v1884_v52  ;;  %v15565_v39 = vpack.c.bf16 %v1903_v22, %v1902_v8  ;;  %v1904_v52 = vld [vmem:[%s20003_s30 + $0x7d0] sm:$0xff]  ;;  %v1905_v25 = vld [vmem:[%s20003_s30 + $0x7d8] sm:$0xff] }
 0x9cf   :  { %v15586_v22 = vpack.c.bf16 %v1905_v25, %v1904_v52  ;;  %v1890_v52 = vld [vmem:[%s20003_s30 + $0x760] sm:$0xff]  ;;  %v1891_v25 = vld [vmem:[%s20003_s30 + $0x768] sm:$0xff] }
 0x9d0   :  { %2430 = vmatmul.mubr.f32.gmra.mrb[36].mxu0 %v1626_v5  ;;  %20102 = vst [vmem:[#allocation110_spill] sm:$0xff] %v15562_v32  ;;  %20103 = vst [vmem:[#allocation111_spill] sm:$0xff] %v15565_v39  ;;  %v1887_v5 = vld [vmem:[%s20003_s30 + $0x748] sm:$0xff] }
 0x9d1   :  { %12055 = vmatpush3.bf16.msra.mxu0 %v15538_v33  ;;  %2434 = vmatprep.mubr.f32.mxu0 %v1643_v62  ;;  %v1599_v62 = vld [vmem:[%s19771_s13 + $0x78] sm:$0xff]  ;;  %v15583_v8 = vpack.c.bf16 %v1887_v5, %v1886_v9  ;;  %20105 = vst [vmem:[#allocation113_spill] sm:$0xff] %v15586_v22  ;;  %v1907_v9 = vld [vmem:[%s20003_s30 + $0x7e8] sm:$0xff] }
 0x9d2   :  { %12057 = vmatprep.subr.bf16.mxu0 %v15544_v13  ;;  %v1888_v13 = vld [vmem:[%s20003_s30 + $0x750] sm:$0xff]  ;;  %v1889_v33 = vld [vmem:[%s20003_s30 + $0x758] sm:$0xff] }
 0x9d3   :  { %20104 = vst [vmem:[#allocation112_spill] sm:$0xff] %v15583_v8  ;;  %v15601_v5 = vpack.c.bf16 %v1889_v33, %v1888_v13  ;;  %v1909_v13 = vld [vmem:[%s20003_s30 + $0x7f8] sm:$0xff]  ;;  %v15619_v33 = vpack.c.bf16 %v1891_v25, %v1890_v52 }
 0x9d4   :  { %2435 = vmatmul.mubr.f32.gmra.mrb[38].mxu0 %v1642_v44  ;;  %v1906_v44 = vld [vmem:[%s20003_s30 + $0x7e0] sm:$0xff] }
 0x9d5   :  { %12059 = vmatpush3.bf16.msra.mxu0 %v15562_v32  ;;  %2589 = vmatprep.mubr.f32.mxu0 %v1599_v62  ;;  %20106 = vst [vmem:[#allocation114_spill] sm:$0xff] %v15601_v5  ;;  %v15604_v62 = vpack.c.bf16 %v1907_v9, %v1906_v44  ;;  %20108 = vst [vmem:[#allocation116_spill] sm:$0xff] %v15619_v33  ;;  %v9800_v44 = vpop.f32.mrb[28].mxu1 }
 0x9d6   :  { %12061 = vmatprep.subr.bf16.mxu0 %v15565_v39  ;;  %v1908_v39 = vld [vmem:[%s20003_s30 + $0x7f0] sm:$0xff]  ;;  %v9801_v32 = vpop.f32.mrb[29].mxu1 }
 0x9d7   :  { %20107 = vst [vmem:[#allocation115_spill] sm:$0xff] %v15604_v62  ;;  %v15622_v9 = vpack.c.bf16 %v1909_v13, %v1908_v39  ;;  %v15630_v18 = vadd.f32 %v9801_v32, %v9800_v44  ;;  %v9803_v25 = vpop.f32.mrb[30].mxu1  ;;  %v1615_v32 = vld [vmem:[%s19771_s13 + $0xf8] sm:$0xff] }
 0x9d8   :  { %v9804_v39 = vpop.f32.mrb[31].mxu1 }
 0x9d9   :  { %12063 = vmatpush3.bf16.msra.mxu0 %v15583_v8  ;;  %20109 = vst [vmem:[#allocation117_spill] sm:$0xff] %v15622_v9  ;;  %v1893_v8 = vld [vmem:[%s20003_s30 + $0x778] sm:$0xff]  ;;  %v15636_v13 = vadd.f32 %v9804_v39, %v9803_v25 }
 0x9da   :  { %12065 = vmatprep.subr.bf16.mxu0 %v15586_v22  ;;  %v1892_v22 = vld [vmem:[%s20003_s30 + $0x770] sm:$0xff]  ;;  %v1631_v39 = vld [vmem:[%s19771_s13 + $0x178] sm:$0xff] }
 0x9db   :  { %v15633_v52 = vpack.c.bf16 %v1893_v8, %v1892_v22  ;;  %v1614_v22 = vld [vmem:[%s19771_s13 + $0xf0] sm:$0xff] }
 0x9dd   :  { %12067 = vmatpush3.bf16.msra.mxu0 %v15601_v5  ;;  %20110 = vst [vmem:[#allocation118_spill] sm:$0xff] %v15633_v52  ;;  %v9806_v5 = vpop.f32.mrb[32].mxu1 }
 0x9de   :  { %12069 = vmatprep.subr.bf16.mxu0 %v15604_v62  ;;  %v1598_v62 = vld [vmem:[%s19771_s13 + $0x70] sm:$0xff]  ;;  %v9807_v44 = vpop.f32.mrb[33].mxu1 }
 0x9df   :  { %v15645_v8 = vadd.f32 %v9807_v44, %v9806_v5  ;;  %v9809_v25 = vpop.f32.mrb[34].mxu1  ;;  %v1630_v5 = vld [vmem:[%s19771_s13 + $0x170] sm:$0xff] }
 0x9e1   :  { %12071 = vmatpush3.bf16.msra.mxu0 %v15619_v33 }
 0x9e2   :  { %12073 = vmatprep.subr.bf16.mxu0 %v15622_v9 }
 0x9e5   :  { %12075 = vmatpush3.bf16.msra.mxu0 %v15633_v52  ;;  %v9810_v52 = vpop.f32.mrb[35].mxu1 }
 0x9e6   :  { %v9811_v9 = vadd.f32 %v9810_v52, %v9809_v25  ;;  %v9888_v44 = vpop.f32.mrb[36].mxu1  ;;  %12084 = vmatprep.subr.msk.bf16.mxu0 %vm15708_vm11, %v14254_v30  ;;  %v20120_v30 = vld [vmem:[#allocation68_spill] sm:$0xff] }
 0x9e7   :  { %v9889_v33 = vpop.f32.mrb[37].mxu1 }
 0x9e8   :  { %2590 = vmatmul.mubr.f32.vlgmr.msra.gmra.mrb[40].mxu0 %v1598_v62  ;;  %v1647_v62 = vld [vmem:[%s19771_s13 + $0x1f8] sm:$0xff]  ;;  %v9890_v52 = vadd.f32 %v9889_v33, %v9888_v44 }
 0x9e9   :  { %2594 = vmatprep.mubr.f32.mxu0 %v1615_v32  ;;  %v1646_v32 = vld [vmem:[%s19771_s13 + $0x1f0] sm:$0xff] }
 0x9ec   :  { %2595 = vmatmul.mubr.f32.gmra.mrb[42].mxu0 %v1614_v22  ;;  %v9891_v22 = vpop.f32.mrb[38].mxu1 }
 0x9ed   :  { %2599 = vmatprep.mubr.f32.mxu0 %v1631_v39  ;;  %v9892_v25 = vpop.f32.mrb[39].mxu1 }
 0x9ee   :  { %v9893_v39 = vadd.f32 %v9892_v25, %v9891_v22  ;;  %v9894_v46 = vpop.f32.mrb[40].mxu1  ;;  %12087 = vmatpush3.bf16.xpose.msk.msra.mxu0 %vm15708_vm11, %v14273_v36  ;;  %v20121_v36 = vld [vmem:[#allocation15_spill] sm:$0xff] }
 0x9ef   :  { %v9895_v63 = vpop.f32.mrb[41].mxu1  ;;  %12090 = vmatprep.subr.msk.bf16.mxu0 %vm15708_vm11, %v14279_v38  ;;  %v20122_v38 = vld [vmem:[#allocation69_spill] sm:$0xff] }
 0x9f0   :  { %2600 = vmatmul.mubr.f32.gmra.mrb[44].mxu0 %v1630_v5  ;;  %v9896_v57 = vadd.f32 %v9895_v63, %v9894_v46  ;;  %v9897_v58 = vpop.f32.mrb[42].mxu1 }
 0x9f1   :  { %2604 = vmatprep.mubr.f32.mxu0 %v1647_v62  ;;  %v9898_v17 = vpop.f32.mrb[43].mxu1 }
 0x9f2   :  { %v9899_v53 = vadd.f32 %v9898_v17, %v9897_v58  ;;  %v9976_v14 = vpop.f32.mrb[44].mxu1  ;;  %v15672_v58 = vpop.permute.xlu1 %1912 }
 0x9f3   :  { %v9977_v5 = vpop.f32.mrb[45].mxu1  ;;  %20112 = vst [vmem:[#allocation120_spill] sm:$0xff] %v15672_v58 }
 0x9f4   :  { %2605 = vmatmul.mubr.f32.gmra.mrb[46].mxu0 %v1646_v32  ;;  %v15662_v62 = vadd.f32 %v9977_v5, %v9976_v14  ;;  %v9979_v49 = vpop.f32.mrb[46].mxu1 }
 0x9f5   :  { %v9980_v51 = vpop.f32.mrb[47].mxu1 }
 0x9f6   :  { %v15664_v0 = vadd.f32 %v9980_v51, %v9979_v49  ;;  %v9982_v32 = vpop.f32.mrb[48].mxu1  ;;  %v15674_v14 = vpop.permute.xlu1 %1917  ;;  %v1997_v49 = vadd.f32 %v15196_v29, %v15672_v58  ;;  %12093 = vmatpush3.bf16.xpose.msk.msra.mxu0 %vm15708_vm11, %v14299_v47  ;;  %v20123_v47 = vld [vmem:[#allocation16_spill] sm:$0xff] }
 0x9f7   :  { %v9983_v37 = vpop.f32.mrb[49].mxu1  ;;  %20113 = vst [vmem:[#allocation121_spill] sm:$0xff] %v15674_v14  ;;  %12096 = vmatprep.subr.msk.bf16.mxu0 %vm15708_vm11, %v14302_v48  ;;  %v20124_v48 = vld [vmem:[#allocation70_spill] sm:$0xff] }
 0x9f8   :  { %v15666_v33 = vadd.f32 %v9983_v37, %v9982_v32  ;;  %v9985_v44 = vpop.f32.mrb[50].mxu1 }
 0x9f9   :  { %v9986_v22 = vpop.f32.mrb[51].mxu1 }
 0x9fa   :  { %v15668_v25 = vadd.f32 %v9986_v22, %v9985_v44  ;;  %v2002_v44 = vadd.f32 %v15447_v45, %v15674_v14 }
 0x9fe   :  { %12099 = vmatpush3.bf16.xpose.msk.msra.mxu0 %vm15708_vm11, %v14321_v54  ;;  %v20125_v54 = vld [vmem:[#allocation17_spill] sm:$0xff] }
 0x9ff   :  { %12102 = vmatprep.subr.msk.bf16.mxu0 %vm15708_vm11, %v14324_v55  ;;  %v20126_v55 = vld [vmem:[#allocation71_spill] sm:$0xff] }
 0xa06   :  { %12105 = vmatpush3.bf16.xpose.msk.msra.mxu0 %vm15708_vm11, %v14339_v60 }
 0xa07   :  { %12108 = vmatprep.subr.msk.bf16.mxu0 %vm15708_vm11, %v14342_v61 }
 0xa0e   :  { %12111 = vmatpush3.bf16.xpose.msk.msra.mxu0 %vm15708_vm11, %v14357_v2 }
 0xa0f   :  { %12114 = vmatprep.subr.msk.bf16.mxu0 %vm15708_vm11, %v14360_v3 }
 0xa16   :  { %12117 = vmatpush3.bf16.xpose.msk.msra.mxu0 %vm15708_vm11, %v14375_v10 }
 0xa17   :  { %12120 = vmatprep.subr.msk.bf16.mxu0 %vm15708_vm11, %v14378_v11  ;;  %v20127_v11 = vld [vmem:[#allocation65_spill] sm:$0xff] }
 0xa3b   :  { %v15670_v63 = vpop.f32.mrb[14].mxu0 }
 0xa3c   :  { %20111 = vst [vmem:[#allocation119_spill] sm:$0xff] %v15670_v63  ;;  %v11660_v46 = vpop.f32.mrb[15].mxu0 }
 0xa3d   :  { %v15681_v46 = vpop.permute.xlu1 %1922 }
 0xa3e   :  { %20114 = vst [vmem:[#allocation122_spill] sm:$0xff] %v15681_v46  ;;  %v2007_v28 = vadd.f32 %v15464_v24, %v15681_v46 }
 0xa5b   :  { %v9756_v17 = vpop.f32.mrb[16].mxu0 }
 0xa5c   :  { %v9757_v5 = vpop.f32.mrb[17].mxu0 }
 0xa5d   :  { %v9758_v51 = vadd.f32 %v9757_v5, %v9756_v17 }
 0xa5f   :  { %v2082_v35 = vadd.f32 %v9758_v51, %v1997_v49  ;;  %v9759_v37 = vpop.f32.mrb[18].mxu0  ;;  %v15686_v51 = vpop.permute.xlu1 %1927 }
 0xa60   :  { %v9760_v32 = vpop.f32.mrb[19].mxu0  ;;  %20115 = vst [vmem:[#allocation123_spill] sm:$0xff] %v15686_v51 }
 0xa61   :  { %v2167_v22 = vadd.f32 %v15630_v18, %v2082_v35  ;;  %v9761_v63 = vadd.f32 %v9760_v32, %v9759_v37  ;;  %v2012_v35 = vadd.f32 %v15469_v6, %v15686_v51 }
 0xa63   :  { %v2087_v40 = vadd.f32 %v9761_v63, %v2002_v44  ;;  %v9762_v1 = vpop.f32.mrb[20].mxu0 }
 0xa64   :  { %v9763_v19 = vpop.f32.mrb[21].mxu0 }
 0xa65   :  { %v2172_v29 = vadd.f32 %v15636_v13, %v2087_v40  ;;  %v9764_v17 = vadd.f32 %v9763_v19, %v9762_v1 }
 0xa67   :  { %v2092_v5 = vadd.f32 %v9764_v17, %v2007_v28  ;;  %v9765_v49 = vpop.f32.mrb[22].mxu0 }
 0xa68   :  { %v9766_v58 = vpop.f32.mrb[23].mxu0 }
 0xa69   :  { %v2177_v18 = vadd.f32 %v15645_v8, %v2092_v5  ;;  %v9767_v45 = vadd.f32 %v9766_v58, %v9765_v49 }
 0xa6b   :  { %v2097_v63 = vadd.f32 %v9767_v45, %v2012_v35 }
 0xa6d   :  { %v2182_v37 = vadd.f32 %v9811_v9, %v2097_v63 }
 0xa7b   :  { %v9844_v32 = vpop.f32.mrb[24].mxu0 }
 0xa7c   :  { %v9845_v44 = vpop.f32.mrb[25].mxu0 }
 0xa7d   :  { %v9846_v14 = vadd.f32 %v9845_v44, %v9844_v32 }
 0xa7f   :  { %v2252_v24 = vadd.f32 %v9846_v14, %v2167_v22  ;;  %v9847_v46 = vpop.f32.mrb[26].mxu0 }
 0xa80   :  { %v9848_v40 = vpop.f32.mrb[27].mxu0 }
 0xa81   :  { %v2337_v19 = vadd.f32 %v9890_v52, %v2252_v24  ;;  %v9849_v28 = vadd.f32 %v9848_v40, %v9847_v46 }
 0xa83   :  { %v2257_v1 = vadd.f32 %v9849_v28, %v2172_v29  ;;  %v9850_v13 = vpop.f32.mrb[28].mxu0 }
 0xa84   :  { %v9851_v17 = vpop.f32.mrb[29].mxu0 }
 0xa85   :  { %v2342_v16 = vadd.f32 %v9893_v39, %v2257_v1  ;;  %v9852_v26 = vadd.f32 %v9851_v17, %v9850_v13  ;;  %v2613_v13 = vpop.permute.xlu1 %2612 }
 0xa87   :  { %v2262_v15 = vadd.f32 %v9852_v26, %v2177_v18  ;;  %v9853_v6 = vpop.f32.mrb[30].mxu0 }
 0xa88   :  { %v9854_v51 = vpop.f32.mrb[31].mxu0 }
 0xa89   :  { %v2347_v8 = vadd.f32 %v9896_v57, %v2262_v15  ;;  %v9855_v58 = vadd.f32 %v9854_v51, %v9853_v6 }
 0xa8b   :  { %v2267_v5 = vadd.f32 %v9855_v58, %v2182_v37 }
 0xa8d   :  { %v2352_v9 = vadd.f32 %v9899_v53, %v2267_v5 }
 0xa9b   :  { %v9932_v49 = vpop.f32.mrb[32].mxu0 }
 0xa9c   :  { %v9933_v35 = vpop.f32.mrb[33].mxu0 }
 0xa9d   :  { %v9934_v45 = vadd.f32 %v9933_v35, %v9932_v49 }
 0xa9f   :  { %v2422_v14 = vadd.f32 %v9934_v45, %v2337_v19  ;;  %v9935_v22 = vpop.f32.mrb[34].mxu0  ;;  %v2623_v45 = vpop.permute.xlu1 %2622 }
 0xaa0   :  { %v9936_v63 = vpop.f32.mrb[35].mxu0 }
 0xaa1   :  { %v2507_v52 = vadd.f32 %v15662_v62, %v2422_v14  ;;  %v9937_v46 = vadd.f32 %v9936_v63, %v9935_v22 }
 0xaa3   :  { %v2427_v29 = vadd.f32 %v9937_v46, %v2342_v16  ;;  %v9938_v32 = vpop.f32.mrb[36].mxu0 }
 0xaa4   :  { %v9939_v39 = vpop.f32.mrb[37].mxu0 }
 0xaa5   :  { %v2512_v26 = vadd.f32 %v15664_v0, %v2427_v29  ;;  %v9940_v18 = vadd.f32 %v9939_v39, %v9938_v32 }
 0xaa7   :  { %v2432_v44 = vadd.f32 %v9940_v18, %v2347_v8  ;;  %v9941_v15 = vpop.f32.mrb[38].mxu0  ;;  %v2618_v8 = vpop.permute.xlu0 %2617 }
 0xaa8   :  { %v9942_v57 = vpop.f32.mrb[39].mxu0 }
 0xaa9   :  { %v2517_v53 = vadd.f32 %v15666_v33, %v2432_v44  ;;  %v9943_v51 = vadd.f32 %v9942_v57, %v9941_v15  ;;  %v1652_v15 = vld [vmem:[%s19777_s19] sm:$0x1]  ;;  %v13890_v57 = vmov 1  }
 0xaaa   :  { %13676 = vset.pattern.permute.xlu0 %v13890_v57  ;;  %13677 = vset.pattern.permute.xlu1 %v13890_v57  ;;  %v20163_v57 = vld [vmem:[#allocation88_spill] sm:$0xff] }
 0xaab   :  { %v2437_v37 = vadd.f32 %v9943_v51, %v2352_v9 }
 0xaad   :  { %v2522_v24 = vadd.f32 %v15668_v25, %v2437_v37 }
 0xabb   :  { %v10020_v40 = vpop.f32.mrb[40].mxu0 }
 0xabc   :  { %v10021_v19 = vpop.f32.mrb[41].mxu0 }
 0xabd   :  { %v10022_v28 = vadd.f32 %v10021_v19, %v10020_v40 }
 0xabf   :  { %v2592_v62 = vadd.f32 %v10022_v28, %v2507_v52  ;;  %v10023_v1 = vpop.f32.mrb[42].mxu0  ;;  %v2628_v52 = vpop.permute.xlu0 %2627 }
 0xac0   :  { %v10024_v16 = vpop.f32.mrb[43].mxu0 }
 0xac1   :  { %v10025_v17 = vadd.f32 %v10024_v16, %v10023_v1  ;;  %v2630_v6 = vadd.f32 %v2613_v13, %v2592_v62  ;;  %v20138_v13 = vld [vmem:[#allocation22_spill] sm:$0xff] }
 0xac2   :  { %v6553_v16 = vld [vmem:[%s19773_s15 + $0x90] sm:$0xff] }
 0xac3   :  { %v2597_v0 = vadd.f32 %v10025_v17, %v2512_v26  ;;  %v10026_v58 = vpop.f32.mrb[44].mxu0  ;;  %13698 = vtanh.f32 %v2630_v6  ;;  %v20139_v17 = vld [vmem:[#allocation76_spill] sm:$0xff]  ;;  %v20140_v6 = vld [vmem:[#allocation23_spill] sm:$0xff] }
 0xac4   :  { %v10027_v5 = vpop.f32.mrb[45].mxu0 }
 0xac5   :  { %v2631_v49 = vadd.f32 %v2618_v8, %v2597_v0  ;;  %v10028_v35 = vadd.f32 %v10027_v5, %v10026_v58  ;;  %v20141_v0 = vld [vmem:[#allocation77_spill] sm:$0xff]  ;;  %v20142_v58 = vld [vmem:[#allocation24_spill] sm:$0xff]  ;;  %v20143_v8 = vld [vmem:[#allocation78_spill] sm:$0xff] }
 0xac6   :  { %v20144_v5 = vld [vmem:[#allocation25_spill] sm:$0xff] }
 0xac7   :  { %13700 = vtanh.f32 %v2631_v49  ;;  %v2602_v33 = vadd.f32 %v10028_v35, %v2517_v53  ;;  %v10029_v9 = vpop.f32.mrb[46].mxu0  ;;  %v20116_v53 = vlaneseq  ;;  %v20145_v49 = vld [vmem:[#allocation79_spill] sm:$0xff]  ;;  %v20146_v35 = vld [vmem:[#allocation26_spill] sm:$0xff] }
 0xac8   :  { %v10030_v25 = vpop.f32.mrb[47].mxu0 }
 0xac9   :  { %v10031_v14 = vadd.f32 %v10030_v25, %v10029_v9  ;;  %v2632_v22 = vadd.f32 %v2623_v45, %v2602_v33  ;;  %v2644_v51 = vshrl.u32 %v20116_v53, 7  ;;  %v20147_v33 = vld [vmem:[#allocation80_spill] sm:$0xff]  ;;  %v20148_v9 = vld [vmem:[#allocation27_spill] sm:$0xff]  ;;  %v20149_v25 = vld [vmem:[#allocation81_spill] sm:$0xff] }
 0xaca   :  { %v20150_v45 = vld [vmem:[#allocation28_spill] sm:$0xff]  ;;  %v20164_v53 = vld [vmem:[#allocation35_spill] sm:$0xff] }
 0xacb   :  { %v2607_v63 = vadd.f32 %v10031_v14, %v2522_v24  ;;  %13702 = vtanh.f32 %v2632_v22  ;;  %v2645_v37 = vsub.s32 0, %v2644_v51  ;;  %v2641_v24 = vpop.permute.xlu1 %2640  ;;  %v20151_v14 = vld [vmem:[#allocation82_spill] sm:$0xff]  ;;  %v20152_v22 = vld [vmem:[#allocation29_spill] sm:$0xff] }
 0xacc   :  { %v20165_v51 = vld [vmem:[#allocation89_spill] sm:$0xff] }
 0xacd   :  { %v2633_v46 = vadd.f32 %v2628_v52, %v2607_v63  ;;  %v13699_v29 = vpop.eup %13698  ;;  %v15701_v40 = vrot.slane %v2641_v24, %v2645_v37  ;;  %v20153_v63 = vld [vmem:[#allocation83_spill] sm:$0xff]  ;;  %v20154_v52 = vld [vmem:[#allocation30_spill] sm:$0xff]  ;;  %v20166_v37 = vld [vmem:[#allocation36_spill] sm:$0xff] }
 0xace   :  { %v20167_v24 = vld [vmem:[#allocation90_spill] sm:$0xff] }
 0xacf   :  { %13704 = vtanh.f32 %v2633_v46  ;;  %v20155_v46 = vld [vmem:[#allocation84_spill] sm:$0xff] }
 0xad1   :  { %v13701_v32 = vpop.eup %13700 }
 0xad2   :  { %v12077_v39 = vpack.c.bf16 %v13701_v32, %v13699_v29  ;;  %v20156_v29 = vld [vmem:[#allocation31_spill] sm:$0xff]  ;;  %v20157_v32 = vld [vmem:[#allocation85_spill] sm:$0xff] }
 0xad4   :  { %12078 = vmatpush3.bf16.msra.mxu1 %v12077_v39  ;;  %v20158_v39 = vld [vmem:[#allocation32_spill] sm:$0xff] }
 0xad5   :  { %12079 = vmatprep.subr.bf16.mxu1 %v20055_v4  ;;  %v13703_v26 = vpop.eup %13702 }
 0xad9   :  { %v13705_v18 = vpop.eup %13704 }
 0xada   :  { %v12080_v44 = vpack.c.bf16 %v13705_v18, %v13703_v26  ;;  %v20159_v26 = vld [vmem:[#allocation86_spill] sm:$0xff]  ;;  %v20160_v18 = vld [vmem:[#allocation33_spill] sm:$0xff] }
 0xadc   :  { %12081 = vmatpush3.bf16.msra.mxu1 %v12080_v44  ;;  %v20161_v44 = vld [vmem:[#allocation87_spill] sm:$0xff] }
 0xadd   :  { %12132 = vmatprep.subr.msk.bf16.mxu1 %vm15708_vm11, %v14440_v34  ;;  %v20128_v34 = vld [vmem:[#allocation67_spill] sm:$0xff] }
 0xadf   :  { %11678 = vmatmul.mubr.msk.f32.vlgmr.msra.gmra.mrb[52].mxu1 %vm122_vm1, %v1652_v15  ;;  %v20162_v15 = vld [vmem:[#allocation34_spill] sm:$0xff] }
 0xae5   :  { %12135 = vmatpush3.bf16.xpose.msk.msra.mxu1 %vm15708_vm11, %v14983_v59 }
 0xae6   :  { %12138 = vmatprep.subr.msk.bf16.mxu1 %vm15708_vm11, %v14985_v43  ;;  %v20119_v43 = vld [vmem:[#allocation14_spill] sm:$0xff] }
 0xae7   :  { %12123 = vmatpush3.bf16.xpose.msk.msra.mxu0 %vm15708_vm11, %v20119_v43  ;;  %v20172_v43 = vld [vmem:[#allocation39_spill] sm:$0xff] }
 0xae8   :  { %12126 = vmatprep.subr.msk.bf16.mxu0 %vm15708_vm11, %v20121_v36  ;;  %v20174_v36 = vld [vmem:[#allocation40_spill] sm:$0xff] }
 0xaed   :  { %12141 = vmatpush3.bf16.xpose.msk.msra.mxu1 %vm15708_vm11, %v15005_v42  ;;  %v20130_v42 = vld [vmem:[#allocation18_spill] sm:$0xff] }
 0xaee   :  { %12144 = vmatprep.subr.msk.bf16.mxu1 %vm15708_vm11, %v15008_v12  ;;  %v20131_v12 = vld [vmem:[#allocation72_spill] sm:$0xff] }
 0xaef   :  { %12129 = vmatpush3.bf16.xpose.msk.msra.mxu0 %vm15708_vm11, %v20123_v47  ;;  %v20176_v47 = vld [vmem:[#allocation41_spill] sm:$0xff] }
 0xaf0   :  { %12180 = vmatprep.subr.msk.bf16.mxu0 %vm15708_vm11, %v20125_v54  ;;  %v20178_v54 = vld [vmem:[#allocation42_spill] sm:$0xff] }
 0xaf5   :  { %12147 = vmatpush3.bf16.xpose.msk.msra.mxu1 %vm15708_vm11, %v15025_v7  ;;  %v20132_v7 = vld [vmem:[#allocation19_spill] sm:$0xff] }
 0xaf6   :  { %12150 = vmatprep.subr.msk.bf16.mxu1 %vm15708_vm11, %v15030_v56 }
 0xafd   :  { %12153 = vmatpush3.bf16.xpose.msk.msra.mxu1 %vm15708_vm11, %v15049_v21  ;;  %v20133_v21 = vld [vmem:[#allocation73_spill] sm:$0xff] }
 0xafe   :  { %12156 = vmatprep.subr.msk.bf16.mxu1 %vm15708_vm11, %v15054_v31  ;;  %v20129_v31 = vld [vmem:[#allocation66_spill] sm:$0xff] }
 0xb05   :  { %12159 = vmatpush3.bf16.xpose.msk.msra.mxu1 %vm15708_vm11, %v15071_v50  ;;  %v20134_v50 = vld [vmem:[#allocation20_spill] sm:$0xff] }
 0xb06   :  { %12162 = vmatprep.subr.msk.bf16.mxu1 %vm15708_vm11, %v15074_v27  ;;  %v20135_v27 = vld [vmem:[#allocation74_spill] sm:$0xff] }
 0xb0d   :  { %12165 = vmatpush3.bf16.xpose.msk.msra.mxu1 %vm15708_vm11, %v15089_v23  ;;  %v20136_v23 = vld [vmem:[#allocation21_spill] sm:$0xff] }
 0xb0e   :  { %12168 = vmatprep.subr.msk.bf16.mxu1 %vm15708_vm11, %v15092_v41  ;;  %v20137_v41 = vld [vmem:[#allocation75_spill] sm:$0xff] }
 0xb15   :  { %12171 = vmatpush3.bf16.xpose.msk.msra.mxu1 %vm15708_vm11, %v20120_v30  ;;  %v20173_v30 = vld [vmem:[#allocation93_spill] sm:$0xff] }
 0xb16   :  { %12174 = vmatprep.subr.msk.bf16.mxu1 %vm15708_vm11, %v20122_v38  ;;  %v20175_v38 = vld [vmem:[#allocation94_spill] sm:$0xff] }
 0xb1d   :  { %12177 = vmatpush3.bf16.xpose.msk.msra.mxu1 %vm15708_vm11, %v20124_v48  ;;  %v20177_v48 = vld [vmem:[#allocation95_spill] sm:$0xff] }
 0xb1e   :  { %12228 = vmatprep.subr.msk.bf16.mxu1 %vm15708_vm11, %v20126_v55  ;;  %v20179_v55 = vld [vmem:[#allocation96_spill] sm:$0xff] }
 0xbb2   :  { %v2716_v19 = vpop.f32.mrb[52].mxu1 }
 0xbb3   :  { %v2717_v28 = vadd.f32 %v2716_v19, %v15701_v40  ;;  %v11679_v62 = vpop.f32.mrb[53].mxu1  ;;  %v20168_v19 = vld [vmem:[#allocation37_spill] sm:$0xff] }
 0xbb4   :  { %v20170_v62 = vld [vmem:[#allocation38_spill] sm:$0xff] }
 0xbb5   :  { %v2721_v1 = vsel %vm2720_vm9, %v2717_v28, -inf }
 0xbb6   :  { %2722 = vmax.xlane.f32.xlu0 %v2721_v1  ;;  %v20171_v1 = vld [vmem:[#allocation92_spill] sm:$0xff] }
 0xbcc   :  { %5011 = vperm.xlu0 %13676, %v15027_v20  }
 0xc43   :  { %v2723_v60 = vpop.xlane.xlu0 %2722 }
 0xc44   :  { %v2724_v61 = vsub.f32 %v2717_v28, %v2723_v60  ;;  %v20169_v28 = vld [vmem:[#allocation91_spill] sm:$0xff] }
 0xc45   :  { %v20180_v60 = vld [vmem:[#allocation43_spill] sm:$0xff] }
 0xc46   :  { %v2725_v2 = vmul.f32 1.442695, %v2724_v61  ;;  %v20181_v61 = vld [vmem:[#allocation97_spill] sm:$0xff] }
 0xc48   :  { %13706 = vpow2.f32 %v2725_v2  ;;  %v20182_v2 = vld [vmem:[#allocation44_spill] sm:$0xff] }
 0xc52   :  { %v13707_v3 = vpop.eup %13706 }
 0xc53   :  { %v2727_v10 = vsel %vm2720_vm9, %v13707_v3, 0.0 }
 0xc54   :  { %2728 = vadd.xlane.f32.xlu1 %v2727_v10  ;;  %v20184_v10 = vld [vmem:[#allocation45_spill] sm:$0xff] }
 0xc65   :  { %5015 = vperm.xlu1 %13677, %v20127_v11   ;;  %v20185_v11 = vld [vmem:[#allocation99_spill] sm:$0xff] }
 0xc69   :  { %5019 = vperm.xlu1 %13677, %v20128_v34   ;;  %v20186_v34 = vld [vmem:[#allocation46_spill] sm:$0xff] }
 0xc6d   :  { %5023 = vperm.xlu1 %13677, %v20129_v31   ;;  %v20187_v31 = vld [vmem:[#allocation100_spill] sm:$0xff] }
 0xce1   :  { %v2729_v56 = vpop.xlane.xlu1 %2728 }
 0xce2   :  { %13708 = vrcp.f32 %v2729_v56  ;;  %v20188_v56 = vld [vmem:[#allocation47_spill] sm:$0xff] }
 0xcec   :  { %v13709_v20 = vpop.eup %13708 }
 0xced   :  { %v15818_v59 = vmul.f32 %v13709_v20, %v13707_v3  ;;  %v20183_v3 = vld [vmem:[#allocation98_spill] sm:$0xff]  ;;  %v20189_v20 = vld [vmem:[#allocation101_spill] sm:$0xff] }
 0xcef   :  { %2732 = vst.msk [vmem:[#allocation7] sm:$0x1] %vm2720_vm9, %v15818_v59  ;;  %10069 = vmatprep.mubr.msk.f32.mxu0 %vm2733_vm10, %v15818_v59  ;;  %10103 = vmatprep.mubr.msk.f32.mxu1 %vm2733_vm10, %v15818_v59 }
 0xcf0   :  { %10070 = vmatmul.mubr.msk.f32.vlgmr.msra.gmra.mrb[48].mxu0 %vm2733_vm10, %v15818_v59  ;;  %10104 = vmatmul.mubr.msk.f32.vlgmr.msra.gmra.mrb[54].mxu1 %vm2733_vm10, %v15818_v59 }
 0xcf1   :  { %12183 = vmatpush3.bf16.xpose.msk.msra.mxu0 %vm15708_vm11, %v20130_v42  ;;  %12231 = vmatpush3.bf16.xpose.msk.msra.mxu1 %vm15708_vm11, %v20131_v12  ;;  %v20190_v42 = vld [vmem:[#allocation48_spill] sm:$0xff]  ;;  %v20191_v12 = vld [vmem:[#allocation102_spill] sm:$0xff] }
 0xcf2   :  { %10137 = vmatprep.mubr.msk.f32.mxu0 %vm2733_vm10, %v15818_v59  ;;  %10171 = vmatprep.mubr.msk.f32.mxu1 %vm2733_vm10, %v15818_v59 }
 0xcf3   :  { %12186 = vmatprep.subr.msk.bf16.mxu0 %vm15708_vm11, %v20132_v7  ;;  %12234 = vmatprep.subr.msk.bf16.mxu1 %vm15708_vm11, %v20133_v21  ;;  %v20192_v7 = vld [vmem:[#allocation49_spill] sm:$0xff]  ;;  %v20193_v21 = vld [vmem:[#allocation103_spill] sm:$0xff] }
 0xcf9   :  { %12189 = vmatpush3.bf16.xpose.msk.msra.mxu0 %vm15708_vm11, %v20134_v50  ;;  %12237 = vmatpush3.bf16.xpose.msk.msra.mxu1 %vm15708_vm11, %v20135_v27  ;;  %v20194_v50 = vld [vmem:[#allocation50_spill] sm:$0xff]  ;;  %v20195_v27 = vld [vmem:[#allocation104_spill] sm:$0xff] }
 0xcfa   :  { %12192 = vmatprep.subr.msk.bf16.mxu0 %vm15708_vm11, %v20136_v23  ;;  %12240 = vmatprep.subr.msk.bf16.mxu1 %vm15708_vm11, %v20137_v41  ;;  %v20196_v23 = vld [vmem:[#allocation51_spill] sm:$0xff]  ;;  %v20197_v41 = vld [vmem:[#allocation105_spill] sm:$0xff] }
 0xd01   :  { %12195 = vmatpush3.bf16.xpose.msk.msra.mxu0 %vm15708_vm11, %v20138_v13  ;;  %12243 = vmatpush3.bf16.xpose.msk.msra.mxu1 %vm15708_vm11, %v20139_v17  ;;  %v20198_v13 = vld [vmem:[#allocation52_spill] sm:$0xff]  ;;  %v20199_v17 = vld [vmem:[#allocation106_spill] sm:$0xff] }
 0xd02   :  { %12198 = vmatprep.subr.msk.bf16.mxu0 %vm15708_vm11, %v20140_v6  ;;  %12246 = vmatprep.subr.msk.bf16.mxu1 %vm15708_vm11, %v20141_v0  ;;  %v20200_v6 = vld [vmem:[#allocation53_spill] sm:$0xff]  ;;  %v20201_v0 = vld [vmem:[#allocation107_spill] sm:$0xff] }
 0xd09   :  { %12201 = vmatpush3.bf16.xpose.msk.msra.mxu0 %vm15708_vm11, %v20142_v58  ;;  %12249 = vmatpush3.bf16.xpose.msk.msra.mxu1 %vm15708_vm11, %v20143_v8  ;;  %v20202_v58 = vld [vmem:[#allocation54_spill] sm:$0xff]  ;;  %v20203_v8 = vld [vmem:[#allocation108_spill] sm:$0xff] }
 0xd0a   :  { %12204 = vmatprep.subr.msk.bf16.mxu0 %vm15708_vm11, %v20144_v5  ;;  %12252 = vmatprep.subr.msk.bf16.mxu1 %vm15708_vm11, %v20145_v49  ;;  %v20204_v5 = vld [vmem:[#allocation55_spill] sm:$0xff]  ;;  %v20205_v49 = vld [vmem:[#allocation109_spill] sm:$0xff] }
 0xd11   :  { %12207 = vmatpush3.bf16.xpose.msk.msra.mxu0 %vm15708_vm11, %v20146_v35  ;;  %12255 = vmatpush3.bf16.xpose.msk.msra.mxu1 %vm15708_vm11, %v20147_v33  ;;  %v20206_v35 = vld [vmem:[#allocation56_spill] sm:$0xff]  ;;  %v20207_v33 = vld [vmem:[#allocation110_spill] sm:$0xff] }
 0xd12   :  { %12210 = vmatprep.subr.msk.bf16.mxu0 %vm15708_vm11, %v20148_v9  ;;  %12258 = vmatprep.subr.msk.bf16.mxu1 %vm15708_vm11, %v20149_v25  ;;  %v20208_v9 = vld [vmem:[#allocation57_spill] sm:$0xff]  ;;  %v20209_v25 = vld [vmem:[#allocation111_spill] sm:$0xff] }
 0xd19   :  { %12213 = vmatpush3.bf16.xpose.msk.msra.mxu0 %vm15708_vm11, %v20150_v45  ;;  %12261 = vmatpush3.bf16.xpose.msk.msra.mxu1 %vm15708_vm11, %v20151_v14  ;;  %v20210_v45 = vld [vmem:[#allocation58_spill] sm:$0xff]  ;;  %v20211_v14 = vld [vmem:[#allocation112_spill] sm:$0xff] }
 0xd1a   :  { %12216 = vmatprep.subr.msk.bf16.mxu0 %vm15708_vm11, %v20152_v22  ;;  %12264 = vmatprep.subr.msk.bf16.mxu1 %vm15708_vm11, %v20153_v63  ;;  %v20212_v22 = vld [vmem:[#allocation59_spill] sm:$0xff]  ;;  %v20213_v63 = vld [vmem:[#allocation113_spill] sm:$0xff] }
 0xd21   :  { %12219 = vmatpush3.bf16.xpose.msk.msra.mxu0 %vm15708_vm11, %v20154_v52  ;;  %12267 = vmatpush3.bf16.xpose.msk.msra.mxu1 %vm15708_vm11, %v20155_v46  ;;  %v20214_v52 = vld [vmem:[#allocation60_spill] sm:$0xff]  ;;  %v20215_v46 = vld [vmem:[#allocation114_spill] sm:$0xff] }
 0xd22   :  { %12222 = vmatprep.subr.msk.bf16.mxu0 %vm15708_vm11, %v20156_v29  ;;  %12270 = vmatprep.subr.msk.bf16.mxu1 %vm15708_vm11, %v20157_v32  ;;  %v20216_v29 = vld [vmem:[#allocation61_spill] sm:$0xff]  ;;  %v20217_v32 = vld [vmem:[#allocation115_spill] sm:$0xff] }
 0xd29   :  { %12225 = vmatpush3.bf16.xpose.msk.msra.mxu0 %vm15708_vm11, %v20158_v39  ;;  %12273 = vmatpush3.bf16.xpose.msk.msra.mxu1 %vm15708_vm11, %v20159_v26  ;;  %v20218_v39 = vld [vmem:[#allocation62_spill] sm:$0xff]  ;;  %v20219_v26 = vld [vmem:[#allocation116_spill] sm:$0xff] }
 0xd2a   :  { %12276 = vmatprep.subr.msk.bf16.mxu0 %vm15708_vm11, %v20160_v18  ;;  %12324 = vmatprep.subr.msk.bf16.mxu1 %vm15708_vm11, %v20161_v44  ;;  %v20220_v18 = vld [vmem:[#allocation63_spill] sm:$0xff]  ;;  %v20221_v44 = vld [vmem:[#allocation117_spill] sm:$0xff] }
 0xd30   :  { %10138 = vmatmul.mubr.msk.f32.vlgmr.msra.gmra.mrb[50].mxu0 %vm2733_vm10, %v15818_v59  ;;  %10172 = vmatmul.mubr.msk.f32.vlgmr.msra.gmra.mrb[56].mxu1 %vm2733_vm10, %v15818_v59 }
 0xd31   :  { %12279 = vmatpush3.bf16.xpose.msk.msra.mxu0 %vm15708_vm11, %v20162_v15  ;;  %10205 = vmatprep.mubr.msk.f32.mxu0 %vm2733_vm10, %v15818_v59  ;;  %v9101_v15 = vld [vmem:[%s20003_s30 + $0x880] sm:$0xff] }
 0xd32   :  { %12327 = vmatpush3.bf16.xpose.msk.msra.mxu1 %vm15708_vm11, %v20163_v57  ;;  %10239 = vmatprep.mubr.msk.f32.mxu1 %vm2733_vm10, %v15818_v59  ;;  %v9102_v57 = vld [vmem:[%s20003_s30 + $0x888] sm:$0xff] }
 0xd33   :  { %12282 = vmatprep.subr.msk.bf16.mxu0 %vm15708_vm11, %v20164_v53  ;;  %12330 = vmatprep.subr.msk.bf16.mxu1 %vm15708_vm11, %v20165_v51  ;;  %v9133_v53 = vld [vmem:[%s20003_s30 + $0x980] sm:$0xff]  ;;  %v9134_v51 = vld [vmem:[%s20003_s30 + $0x988] sm:$0xff] }
 0xd39   :  { %12285 = vmatpush3.bf16.xpose.msk.msra.mxu0 %vm15708_vm11, %v20166_v37  ;;  %v16138_v37 = vpack.c.bf16 %v9102_v57, %v9101_v15  ;;  %v9126_v15 = vld [vmem:[%s20003_s30 + $0x948] sm:$0xff]  ;;  %v9111_v57 = vld [vmem:[%s20003_s30 + $0x8d0] sm:$0xff] }
 0xd3a   :  { %12333 = vmatpush3.bf16.xpose.msk.msra.mxu1 %vm15708_vm11, %v20167_v24  ;;  %12288 = vmatprep.subr.msk.bf16.mxu0 %vm15708_vm11, %v20168_v19  ;;  %v16140_v24 = vpack.c.bf16 %v9134_v51, %v9133_v53  ;;  %v20222_v19 = vld [vmem:[#allocation64_spill] sm:$0xff]  ;;  %v9112_v53 = vld [vmem:[%s20003_s30 + $0x8d8] sm:$0xff]  ;;  %v9143_v51 = vld [vmem:[%s20003_s30 + $0x9d0] sm:$0xff] }
 0xd3b   :  { %12336 = vmatprep.subr.msk.bf16.mxu1 %vm15708_vm11, %v20169_v28  ;;  %v20223_v28 = vld [vmem:[#allocation118_spill] sm:$0xff] }
 0xd41   :  { %12291 = vmatpush3.bf16.xpose.msk.msra.mxu0 %vm15708_vm11, %v20170_v62  ;;  %v9085_v62 = vld [vmem:[%s20003_s30 + $0x800] sm:$0xff] }
 0xd42   :  { %12339 = vmatpush3.bf16.xpose.msk.msra.mxu1 %vm15708_vm11, %v20171_v1  ;;  %12294 = vmatprep.subr.msk.bf16.mxu0 %vm15708_vm11, %v20172_v43  ;;  %v9086_v1 = vld [vmem:[%s20003_s30 + $0x808] sm:$0xff]  ;;  %v9117_v43 = vld [vmem:[%s20003_s30 + $0x900] sm:$0xff] }
 0xd43   :  { %12342 = vmatprep.subr.msk.bf16.mxu1 %vm15708_vm11, %v20173_v30  ;;  %v9118_v30 = vld [vmem:[%s20003_s30 + $0x908] sm:$0xff] }
 0xd49   :  { %12297 = vmatpush3.bf16.xpose.msk.msra.mxu0 %vm15708_vm11, %v20174_v36  ;;  %v9103_v36 = vld [vmem:[%s20003_s30 + $0x890] sm:$0xff] }
 0xd4a   :  { %12345 = vmatpush3.bf16.xpose.msk.msra.mxu1 %vm15708_vm11, %v20175_v38  ;;  %12300 = vmatprep.subr.msk.bf16.mxu0 %vm15708_vm11, %v20176_v47  ;;  %v9104_v38 = vld [vmem:[%s20003_s30 + $0x898] sm:$0xff]  ;;  %v9135_v47 = vld [vmem:[%s20003_s30 + $0x990] sm:$0xff] }
 0xd4b   :  { %12348 = vmatprep.subr.msk.bf16.mxu1 %vm15708_vm11, %v20177_v48  ;;  %v9136_v48 = vld [vmem:[%s20003_s30 + $0x998] sm:$0xff] }
 0xd51   :  { %12303 = vmatpush3.bf16.xpose.msk.msra.mxu0 %vm15708_vm11, %v20178_v54  ;;  %v16174_v54 = vpack.c.bf16 %v9086_v1, %v9085_v62  ;;  %v16331_v1 = vpack.c.bf16 %v9112_v53, %v9111_v57  ;;  %v9198_v57 = vld [vmem:[%s20003_s30 + $0xb88] sm:$0xff] }
 0xd52   :  { %12351 = vmatpush3.bf16.xpose.msk.msra.mxu1 %vm15708_vm11, %v20179_v55  ;;  %12306 = vmatprep.subr.msk.bf16.mxu0 %vm15708_vm11, %v20180_v60  ;;  %v16176_v55 = vpack.c.bf16 %v9118_v30, %v9117_v43  ;;  %v16178_v60 = vpack.c.bf16 %v9104_v38, %v9103_v36  ;;  %v9095_v43 = vld [vmem:[%s20003_s30 + $0x850] sm:$0xff]  ;;  %v9096_v30 = vld [vmem:[%s20003_s30 + $0x858] sm:$0xff] }
 0xd53   :  { %12354 = vmatprep.subr.msk.bf16.mxu1 %vm15708_vm11, %v20181_v61  ;;  %v9087_v61 = vld [vmem:[%s20003_s30 + $0x810] sm:$0xff] }
 0xd54   :  { %v9127_v36 = vld [vmem:[%s20003_s30 + $0x950] sm:$0xff] }
 0xd59   :  { %12309 = vmatpush3.bf16.xpose.msk.msra.mxu0 %vm15708_vm11, %v20182_v2  ;;  %v9088_v2 = vld [vmem:[%s20003_s30 + $0x818] sm:$0xff] }
 0xd5a   :  { %12357 = vmatpush3.bf16.xpose.msk.msra.mxu1 %vm15708_vm11, %v20183_v3  ;;  %12312 = vmatprep.subr.msk.bf16.mxu0 %vm15708_vm11, %v20184_v10  ;;  %v9119_v3 = vld [vmem:[%s20003_s30 + $0x910] sm:$0xff]  ;;  %v16189_v10 = vpack.c.bf16 %v9136_v48, %v9135_v47  ;;  %v9128_v47 = vld [vmem:[%s20003_s30 + $0x958] sm:$0xff]  ;;  %v9113_v48 = vld [vmem:[%s20003_s30 + $0x8e0] sm:$0xff] }
 0xd5b   :  { %12360 = vmatprep.subr.msk.bf16.mxu1 %vm15708_vm11, %v20185_v11  ;;  %v9120_v11 = vld [vmem:[%s20003_s30 + $0x918] sm:$0xff] }
 0xd61   :  { %12315 = vmatpush3.bf16.xpose.msk.msra.mxu0 %vm15708_vm11, %v20186_v34  ;;  %v9105_v34 = vld [vmem:[%s20003_s30 + $0x8a0] sm:$0xff] }
 0xd62   :  { %12363 = vmatpush3.bf16.xpose.msk.msra.mxu1 %vm15708_vm11, %v20187_v31  ;;  %12318 = vmatprep.subr.msk.bf16.mxu0 %vm15708_vm11, %v20188_v56  ;;  %v9106_v31 = vld [vmem:[%s20003_s30 + $0x8a8] sm:$0xff]  ;;  %v9137_v56 = vld [vmem:[%s20003_s30 + $0x9a0] sm:$0xff] }
 0xd63   :  { %12366 = vmatprep.subr.msk.bf16.mxu1 %vm15708_vm11, %v20189_v20  ;;  %v9138_v20 = vld [vmem:[%s20003_s30 + $0x9a8] sm:$0xff] }
 0xd69   :  { %12321 = vmatpush3.bf16.xpose.msk.msra.mxu0 %vm15708_vm11, %v20190_v42  ;;  %v16211_v42 = vpack.c.bf16 %v9088_v2, %v9087_v61  ;;  %v9114_v61 = vld [vmem:[%s20003_s30 + $0x8e8] sm:$0xff]  ;;  %v9145_v2 = vld [vmem:[%s20003_s30 + $0x9e0] sm:$0xff] }
 0xd6a   :  { %12369 = vmatpush3.bf16.xpose.msk.msra.mxu1 %vm15708_vm11, %v20191_v12  ;;  %12372 = vmatprep.subr.msk.bf16.mxu0 %vm15708_vm11, %v20192_v7  ;;  %v16215_v12 = vpack.c.bf16 %v9120_v11, %v9119_v3  ;;  %v16217_v7 = vpack.c.bf16 %v9106_v31, %v9105_v34  ;;  %v9146_v3 = vld [vmem:[%s20003_s30 + $0x9e8] sm:$0xff]  ;;  %v16361_v11 = vpack.c.bf16 %v9096_v30, %v9095_v43  ;;  %v9149_v43 = vld [vmem:[%s20003_s30 + $0xa00] sm:$0xff] }
 0xd6b   :  { %12420 = vmatprep.subr.msk.bf16.mxu1 %vm15708_vm11, %v20193_v21  ;;  %v9089_v21 = vld [vmem:[%s20003_s30 + $0x820] sm:$0xff]  ;;  %v16365_v34 = vpack.c.bf16 %v9128_v47, %v9127_v36  ;;  %v16367_v31 = vpack.c.bf16 %v9114_v61, %v9113_v48  ;;  %v9150_v30 = vld [vmem:[%s20003_s30 + $0xa08] sm:$0xff]  ;;  %v9167_v61 = vld [vmem:[%s20003_s30 + $0xa90] sm:$0xff] }
 0xd6c   :  { %v9181_v47 = vld [vmem:[%s20003_s30 + $0xb00] sm:$0xff]  ;;  %v9182_v48 = vld [vmem:[%s20003_s30 + $0xb08] sm:$0xff] }
 0xd70   :  { %10206 = vmatmul.mubr.msk.f32.vlgmr.msra.gmra.mrb[52].mxu0 %vm2733_vm10, %v15818_v59 }
 0xd71   :  { %10240 = vmatmul.mubr.msk.f32.vlgmr.msra.gmra.mrb[58].mxu1 %vm2733_vm10, %v15818_v59  ;;  %12375 = vmatpush3.bf16.xpose.msk.msra.mxu0 %vm15708_vm11, %v20194_v50  ;;  %v9121_v50 = vld [vmem:[%s20003_s30 + $0x920] sm:$0xff] }
 0xd72   :  { %10273 = vmatprep.mubr.msk.f32.mxu0 %vm2733_vm10, %v15818_v59  ;;  %12423 = vmatpush3.bf16.xpose.msk.msra.mxu1 %vm15708_vm11, %v20195_v27  ;;  %v16229_v27 = vpack.c.bf16 %v9138_v20, %v9137_v56  ;;  %v9097_v56 = vld [vmem:[%s20003_s30 + $0x860] sm:$0xff]  ;;  %v9098_v20 = vld [vmem:[%s20003_s30 + $0x868] sm:$0xff] }
 0xd73   :  { %10307 = vmatprep.mubr.msk.f32.mxu1 %vm2733_vm10, %v15818_v59  ;;  %12378 = vmatprep.subr.msk.bf16.mxu0 %vm15708_vm11, %v20196_v23  ;;  %v9122_v23 = vld [vmem:[%s20003_s30 + $0x928] sm:$0xff] }
 0xd74   :  { %12426 = vmatprep.subr.msk.bf16.mxu1 %vm15708_vm11, %v20197_v41  ;;  %v9107_v41 = vld [vmem:[%s20003_s30 + $0x8b0] sm:$0xff] }
 0xd79   :  { %12381 = vmatpush3.bf16.xpose.msk.msra.mxu0 %vm15708_vm11, %v20198_v13  ;;  %v9108_v13 = vld [vmem:[%s20003_s30 + $0x8b8] sm:$0xff] }
 0xd7a   :  { %12429 = vmatpush3.bf16.xpose.msk.msra.mxu1 %vm15708_vm11, %v20199_v17  ;;  %12384 = vmatprep.subr.msk.bf16.mxu0 %vm15708_vm11, %v20200_v6  ;;  %v13758_v17 = vld [vmem:[%s19771_s13 + $0x8] sm:$0xff]  ;;  %v9139_v6 = vld [vmem:[%s20003_s30 + $0x9b0] sm:$0xff] }
 0xd7b   :  { %12432 = vmatprep.subr.msk.bf16.mxu1 %vm15708_vm11, %v20201_v0  ;;  %v9140_v0 = vld [vmem:[%s20003_s30 + $0x9b8] sm:$0xff] }
 0xd81   :  { %12387 = vmatpush3.bf16.xpose.msk.msra.mxu0 %vm15708_vm11, %v20202_v58  ;;  %v13759_v58 = vld [vmem:[%s19771_s13 + $0x18] sm:$0xff] }
 0xd82   :  { %12435 = vmatpush3.bf16.xpose.msk.msra.mxu1 %vm15708_vm11, %v20203_v8  ;;  %12390 = vmatprep.subr.msk.bf16.mxu0 %vm15708_vm11, %v20204_v5  ;;  %v16257_v5 = vpack.c.bf16 %v9122_v23, %v9121_v50  ;;  %v16383_v23 = vpack.c.bf16 %v9146_v3, %v9145_v2  ;;  %v9168_v2 = vld [vmem:[%s20003_s30 + $0xa98] sm:$0xff]  ;;  %v16471_v3 = vpack.c.bf16 %v9150_v30, %v9149_v43  ;;  %v13762_v43 = vld [vmem:[%s19771_s13 + $0x88] sm:$0xff] }
 0xd83   :  { %12438 = vmatprep.subr.msk.bf16.mxu1 %vm15708_vm11, %v20205_v49  ;;  %v16259_v49 = vpack.c.bf16 %v9108_v13, %v9107_v41  ;;  %v9130_v41 = vld [vmem:[%s20003_s30 + $0x968] sm:$0xff]  ;;  %v9115_v13 = vld [vmem:[%s20003_s30 + $0x8f0] sm:$0xff] }
 0xd89   :  { %12393 = vmatpush3.bf16.xpose.msk.msra.mxu0 %vm15708_vm11, %v20206_v35  ;;  %v9091_v35 = vld [vmem:[%s20003_s30 + $0x830] sm:$0xff] }
 0xd8a   :  { %12441 = vmatpush3.bf16.xpose.msk.msra.mxu1 %vm15708_vm11, %v20207_v33  ;;  %12396 = vmatprep.subr.msk.bf16.mxu0 %vm15708_vm11, %v20208_v9  ;;  %v9092_v33 = vld [vmem:[%s20003_s30 + $0x838] sm:$0xff]  ;;  %v9123_v9 = vld [vmem:[%s20003_s30 + $0x930] sm:$0xff] }
 0xd8b   :  { %12444 = vmatprep.subr.msk.bf16.mxu1 %vm15708_vm11, %v20209_v25  ;;  %v16271_v25 = vpack.c.bf16 %v9140_v0, %v9139_v6 }
 0xd91   :  { %12399 = vmatpush3.bf16.xpose.msk.msra.mxu0 %vm15708_vm11, %v20210_v45  ;;  %v9124_v45 = vld [vmem:[%s20003_s30 + $0x938] sm:$0xff] }
 0xd92   :  { %12447 = vmatpush3.bf16.xpose.msk.msra.mxu1 %vm15708_vm11, %v20211_v14  ;;  %12402 = vmatprep.subr.msk.bf16.mxu0 %vm15708_vm11, %v20212_v22  ;;  %v9109_v14 = vld [vmem:[%s20003_s30 + $0x8c0] sm:$0xff]  ;;  %v9110_v22 = vld [vmem:[%s20003_s30 + $0x8c8] sm:$0xff] }
 0xd93   :  { %12450 = vmatprep.subr.msk.bf16.mxu1 %vm15708_vm11, %v20213_v63  ;;  %v9141_v63 = vld [vmem:[%s20003_s30 + $0x9c0] sm:$0xff] }
 0xd99   :  { %12405 = vmatpush3.bf16.xpose.msk.msra.mxu0 %vm15708_vm11, %v20214_v52  ;;  %v9142_v52 = vld [vmem:[%s20003_s30 + $0x9c8] sm:$0xff] }
 0xd9a   :  { %12453 = vmatpush3.bf16.xpose.msk.msra.mxu1 %vm15708_vm11, %v20215_v46  ;;  %12408 = vmatprep.subr.msk.bf16.mxu0 %vm15708_vm11, %v20216_v29  ;;  %v16289_v46 = vpack.c.bf16 %v9092_v33, %v9091_v35  ;;  %v16293_v29 = vpack.c.bf16 %v9124_v45, %v9123_v9  ;;  %v9148_v35 = vld [vmem:[%s20003_s30 + $0x9f8] sm:$0xff]  ;;  %v16405_v33 = vpack.c.bf16 %v9098_v20, %v9097_v56  ;;  %v9199_v56 = vld [vmem:[%s20003_s30 + $0xb90] sm:$0xff] }
 0xd9b   :  { %12456 = vmatprep.subr.msk.bf16.mxu1 %vm15708_vm11, %v20217_v32  ;;  %v16295_v32 = vpack.c.bf16 %v9110_v22, %v9109_v14  ;;  %v9099_v14 = vld [vmem:[%s20003_s30 + $0x870] sm:$0xff]  ;;  %v9100_v22 = vld [vmem:[%s20003_s30 + $0x878] sm:$0xff] }
 0xd9c   :  { %v16441_v53 = vpack.c.bf16 %v9100_v22, %v9099_v14  ;;  %v9200_v20 = vld [vmem:[%s20003_s30 + $0xb98] sm:$0xff]  ;;  %v13760_v14 = vld [vmem:[%s19771_s13] sm:$0xff] }
 0xd9d   :  { %v16501_v22 = vpack.c.bf16 %v9200_v20, %v9199_v56  ;;  %v9185_v56 = vld [vmem:[%s20003_s30 + $0xb20] sm:$0xff]  ;;  %v9186_v20 = vld [vmem:[%s20003_s30 + $0xb28] sm:$0xff] }
 0xda1   :  { %12411 = vmatpush3.bf16.xpose.msk.msra.mxu0 %vm15708_vm11, %v20218_v39  ;;  %v9093_v39 = vld [vmem:[%s20003_s30 + $0x840] sm:$0xff] }
 0xda2   :  { %12459 = vmatpush3.bf16.xpose.msk.msra.mxu1 %vm15708_vm11, %v20219_v26  ;;  %12414 = vmatprep.subr.msk.bf16.mxu0 %vm15708_vm11, %v20220_v18  ;;  %v9094_v26 = vld [vmem:[%s20003_s30 + $0x848] sm:$0xff]  ;;  %v9125_v18 = vld [vmem:[%s20003_s30 + $0x940] sm:$0xff] }
 0xda3   :  { %12462 = vmatprep.subr.msk.bf16.mxu1 %vm15708_vm11, %v20221_v44  ;;  %v16307_v44 = vpack.c.bf16 %v9142_v52, %v9141_v63  ;;  %v16329_v62 = vpack.c.bf16 %v9126_v15, %v9125_v18  ;;  %v9131_v63 = vld [vmem:[%s20003_s30 + $0x970] sm:$0xff]  ;;  %v9166_v18 = vld [vmem:[%s20003_s30 + $0xa88] sm:$0xff]  ;;  %v9197_v15 = vld [vmem:[%s20003_s30 + $0xb80] sm:$0xff] }
 0xda4   :  { %v16456_v36 = vpack.c.bf16 %v9198_v57, %v9197_v15  ;;  %v9201_v15 = vld [vmem:[%s20003_s30 + $0xba0] sm:$0xff]  ;;  %v9202_v57 = vld [vmem:[%s20003_s30 + $0xba8] sm:$0xff] }
 0xda9   :  { %12417 = vmatpush3.bf16.xpose.msk.msra.mxu0 %vm15708_vm11, %v20222_v19  ;;  %v9144_v19 = vld [vmem:[%s20003_s30 + $0x9d8] sm:$0xff] }
 0xdaa   :  { %12465 = vmatpush3.bf16.xpose.msk.msra.mxu1 %vm15708_vm11, %v20223_v28  ;;  %12467 = vmatprep.subr.bf16.mxu0 %v16138_v37  ;;  %v16325_v28 = vpack.c.bf16 %v9094_v26, %v9093_v39  ;;  %v16343_v38 = vpack.c.bf16 %v9144_v19, %v9143_v51  ;;  %v9132_v39 = vld [vmem:[%s20003_s30 + $0x978] sm:$0xff]  ;;  %v9165_v26 = vld [vmem:[%s20003_s30 + $0xa80] sm:$0xff] }
 0xdab   :  { %12499 = vmatprep.subr.bf16.mxu1 %v16140_v24  ;;  %v16445_v51 = vpack.c.bf16 %v9132_v39, %v9131_v63  ;;  %v16447_v19 = vpack.c.bf16 %v9166_v18, %v9165_v26  ;;  %v9169_v63 = vld [vmem:[%s20003_s30 + $0xaa0] sm:$0xff]  ;;  %v9170_v39 = vld [vmem:[%s20003_s30 + $0xaa8] sm:$0xff]  ;;  %v13761_v26 = vld [vmem:[%s19771_s13 + $0x10] sm:$0xff] }
 0xdb0   :  { %10274 = vmatmul.mubr.msk.f32.vlgmr.msra.gmra.mrb[54].mxu0 %vm2733_vm10, %v15818_v59 }
 0xdb1   :  { %10308 = vmatmul.mubr.msk.f32.vlgmr.msra.gmra.mrb[60].mxu1 %vm2733_vm10, %v15818_v59  ;;  %12469 = vmatpush3.bf16.msra.mxu0 %v16174_v54  ;;  %v9090_v59 = vld [vmem:[%s20003_s30 + $0x828] sm:$0xff] }
 0xdb2   :  { %12501 = vmatpush3.bf16.msra.mxu1 %v16176_v55  ;;  %12471 = vmatprep.subr.bf16.mxu0 %v16178_v60  ;;  %v16253_v8 = vpack.c.bf16 %v9090_v59, %v9089_v21  ;;  %v9129_v21 = vld [vmem:[%s20003_s30 + $0x960] sm:$0xff] }
 0xdb3   :  { %12503 = vmatprep.subr.bf16.mxu1 %v16189_v10  ;;  %4394 = vmatprep.mubr.f32.mxu0 %v13758_v17  ;;  %v9116_v17 = vld [vmem:[%s20003_s30 + $0x8f8] sm:$0xff]  ;;  %v16409_v9 = vpack.c.bf16 %v9130_v41, %v9129_v21  ;;  %v16481_v21 = vpack.c.bf16 %v9182_v48, %v9181_v47  ;;  %v9151_v41 = vld [vmem:[%s20003_s30 + $0xa10] sm:$0xff]  ;;  %v9153_v47 = vld [vmem:[%s20003_s30 + $0xa20] sm:$0xff] }
 0xdb4   :  { %4479 = vmatprep.mubr.f32.mxu1 %v13759_v58  ;;  %v9147_v58 = vld [vmem:[%s20003_s30 + $0x9f0] sm:$0xff]  ;;  %v16411_v45 = vpack.c.bf16 %v9116_v17, %v9115_v13  ;;  %v9152_v13 = vld [vmem:[%s20003_s30 + $0xa18] sm:$0xff]  ;;  %v16490_v17 = vpack.c.bf16 %v9168_v2, %v9167_v61  ;;  %v9154_v48 = vld [vmem:[%s20003_s30 + $0xa28] sm:$0xff]  ;;  %v16537_v2 = vpack.c.bf16 %v9170_v39, %v9169_v63 }
 0xdb5   :  { %12473 = vmatpush3.bf16.msra.mxu0 %v16211_v42  ;;  %v16423_v52 = vpack.c.bf16 %v9148_v35, %v9147_v58  ;;  %v9183_v58 = vld [vmem:[%s20003_s30 + $0xb10] sm:$0xff]  ;;  %v9184_v35 = vld [vmem:[%s20003_s30 + $0xb18] sm:$0xff]  ;;  %v16513_v18 = vpack.c.bf16 %v9152_v13, %v9151_v41  ;;  %v13764_v41 = vld [vmem:[%s19771_s13 + $0x80] sm:$0xff]  ;;  %v16549_v13 = vpack.c.bf16 %v9202_v57, %v9201_v15  ;;  %v16561_v63 = vpack.c.bf16 %v9154_v48, %v9153_v47 }
 0xdb6   :  { %12505 = vmatpush3.bf16.msra.mxu1 %v16215_v12  ;;  %12475 = vmatprep.subr.bf16.mxu0 %v16217_v7  ;;  %v16525_v30 = vpack.c.bf16 %v9184_v35, %v9183_v58  ;;  %v13763_v61 = vld [vmem:[%s19771_s13 + $0x98] sm:$0xff]  ;;  %v9171_v58 = vld [vmem:[%s20003_s30 + $0xab0] sm:$0xff]  ;;  %v13766_v15 = vld [vmem:[%s19771_s13 + $0x108] sm:$0xff]  ;;  %v16573_v57 = vpack.c.bf16 %v9186_v20, %v9185_v56 }
 0xdb7   :  { %12507 = vmatprep.subr.bf16.mxu1 %v16229_v27  ;;  %v9172_v35 = vld [vmem:[%s20003_s30 + $0xab8] sm:$0xff]  ;;  %v9203_v39 = vld [vmem:[%s20003_s30 + $0xbb0] sm:$0xff] }
 0xdb8   :  { %v9156_v47 = vld [vmem:[%s20003_s30 + $0xa38] sm:$0xff]  ;;  %v9187_v48 = vld [vmem:[%s20003_s30 + $0xb30] sm:$0xff]  ;;  %v16588_v56 = vpack.c.bf16 %v9172_v35, %v9171_v58  ;;  %v9205_v35 = vld [vmem:[%s20003_s30 + $0xbc0] sm:$0xff] }
 0xdb9   :  { %12477 = vmatpush3.bf16.msra.mxu0 %v16253_v8  ;;  %v9188_v20 = vld [vmem:[%s20003_s30 + $0xb38] sm:$0xff] }
 0xdba   :  { %12509 = vmatpush3.bf16.msra.mxu1 %v16257_v5  ;;  %12479 = vmatprep.subr.bf16.mxu0 %v16259_v49  ;;  %20228 = vst [vmem:[#allocation16_spill] sm:$0xff] %v16588_v56 }
 0xdbb   :  { %12511 = vmatprep.subr.bf16.mxu1 %v16271_v25 }
 0xdbd   :  { %12481 = vmatpush3.bf16.msra.mxu0 %v16289_v46 }
 0xdbe   :  { %12513 = vmatpush3.bf16.msra.mxu1 %v16293_v29  ;;  %12483 = vmatprep.subr.bf16.mxu0 %v16295_v32 }
 0xdbf   :  { %12515 = vmatprep.subr.bf16.mxu1 %v16307_v44 }
 0xdc1   :  { %12485 = vmatpush3.bf16.msra.mxu0 %v16325_v28 }
 0xdc2   :  { %12517 = vmatpush3.bf16.msra.mxu1 %v16329_v62  ;;  %12487 = vmatprep.subr.bf16.mxu0 %v16331_v1 }
 0xdc3   :  { %v16378_v59 = vpop.f32.mrb[48].mxu0  ;;  %v16380_v50 = vpop.f32.mrb[54].mxu1  ;;  %12519 = vmatprep.subr.bf16.mxu1 %v16343_v38 }
 0xdc4   :  { %20224 = vst [vmem:[#allocation14_spill] sm:$0xff] %v16378_v59  ;;  %20225 = vst [vmem:[#allocation68_spill] sm:$0xff] %v16380_v50  ;;  %v16394_v6 = vpop.f32.mrb[49].mxu0  ;;  %v16396_v0 = vpop.f32.mrb[55].mxu1  ;;  %v9157_v50 = vld [vmem:[%s20003_s30 + $0xa40] sm:$0xff] }
 0xdc5   :  { %20226 = vst [vmem:[#allocation15_spill] sm:$0xff] %v16394_v6  ;;  %20227 = vst [vmem:[#allocation69_spill] sm:$0xff] %v16396_v0  ;;  %12489 = vmatpush3.bf16.msra.mxu0 %v16361_v11  ;;  %v13769_v0 = vld [vmem:[%s19771_s13 + $0x110] sm:$0xff] }
 0xdc6   :  { %12521 = vmatpush3.bf16.msra.mxu1 %v16365_v34  ;;  %12491 = vmatprep.subr.bf16.mxu0 %v16367_v31 }
 0xdc7   :  { %12523 = vmatprep.subr.bf16.mxu1 %v16383_v23 }
 0xdc9   :  { %12493 = vmatpush3.bf16.msra.mxu0 %v16405_v33 }
 0xdca   :  { %12525 = vmatpush3.bf16.msra.mxu1 %v16409_v9  ;;  %12495 = vmatprep.subr.bf16.mxu0 %v16411_v45 }
 0xdcb   :  { %12527 = vmatprep.subr.bf16.mxu1 %v16423_v52 }
 0xdcd   :  { %12497 = vmatpush3.bf16.msra.mxu0 %v16441_v53 }
 0xdce   :  { %12529 = vmatpush3.bf16.msra.mxu1 %v16445_v51  ;;  %12531 = vmatprep.subr.bf16.mxu0 %v16447_v19 }
 0xdcf   :  { %12563 = vmatprep.subr.bf16.mxu1 %v16456_v36 }
 0xdd0   :  { %4395 = vmatmul.mubr.f32.vlgmr.msra.gmra.mrb[56].mxu0 %v13760_v14  ;;  %v13765_v14 = vld [vmem:[%s19771_s13 + $0x90] sm:$0xff] }
 0xdd1   :  { %12533 = vmatpush3.bf16.msra.mxu0 %v16471_v3  ;;  %4480 = vmatmul.mubr.f32.vlgmr.msra.gmra.mrb[62].mxu1 %v13761_v26  ;;  %v9204_v26 = vld [vmem:[%s20003_s30 + $0xbb8] sm:$0xff] }
 0xdd2   :  { %12565 = vmatpush3.bf16.msra.mxu1 %v16481_v21  ;;  %4399 = vmatprep.mubr.f32.mxu0 %v13762_v43  ;;  %v9155_v43 = vld [vmem:[%s20003_s30 + $0xa30] sm:$0xff]  ;;  %v16603_v58 = vpack.c.bf16 %v9204_v26, %v9203_v39  ;;  %v13770_v39 = vld [vmem:[%s19771_s13 + $0x188] sm:$0xff]  ;;  %v16621_v26 = vpack.c.bf16 %v9188_v20, %v9187_v48 }
 0xdd3   :  { %12535 = vmatprep.subr.bf16.mxu0 %v16490_v17  ;;  %4484 = vmatprep.mubr.f32.mxu1 %v13763_v61  ;;  %v13767_v61 = vld [vmem:[%s19771_s13 + $0x118] sm:$0xff]  ;;  %v9190_v20 = vld [vmem:[%s20003_s30 + $0xb48] sm:$0xff] }
 0xdd4   :  { %4400 = vmatmul.mubr.f32.gmra.mrb[58].mxu0 %v13764_v41  ;;  %12567 = vmatprep.subr.bf16.mxu1 %v16501_v22  ;;  %v9173_v41 = vld [vmem:[%s20003_s30 + $0xac0] sm:$0xff]  ;;  %20229 = vst [vmem:[#allocation70_spill] sm:$0xff] %v16603_v58  ;;  %20231 = vst [vmem:[#allocation71_spill] sm:$0xff] %v16621_v26 }
 0xdd5   :  { %12537 = vmatpush3.bf16.msra.mxu0 %v16513_v18  ;;  %4485 = vmatmul.mubr.f32.gmra.mrb[64].mxu1 %v13765_v14  ;;  %v9174_v14 = vld [vmem:[%s20003_s30 + $0xac8] sm:$0xff] }
 0xdd6   :  { %12569 = vmatpush3.bf16.msra.mxu1 %v16525_v30  ;;  %4404 = vmatprep.mubr.f32.mxu0 %v13766_v15  ;;  %v13768_v15 = vld [vmem:[%s19771_s13 + $0x100] sm:$0xff]  ;;  %v16623_v6 = vpack.c.bf16 %v9174_v14, %v9173_v41  ;;  %v9175_v41 = vld [vmem:[%s20003_s30 + $0xad0] sm:$0xff]  ;;  %v9176_v14 = vld [vmem:[%s20003_s30 + $0xad8] sm:$0xff] }
 0xdd7   :  { %12539 = vmatprep.subr.bf16.mxu0 %v16537_v2  ;;  %4489 = vmatprep.mubr.f32.mxu1 %v13767_v61  ;;  %v9206_v61 = vld [vmem:[%s20003_s30 + $0xbc8] sm:$0xff] }
 0xdd8   :  { %4405 = vmatmul.mubr.f32.gmra.mrb[60].mxu0 %v13768_v15  ;;  %12571 = vmatprep.subr.bf16.mxu1 %v16549_v13  ;;  %v16615_v15 = vpack.c.bf16 %v9156_v47, %v9155_v43  ;;  %20232 = vst [vmem:[#allocation65_spill] sm:$0xff] %v16623_v6  ;;  %v9189_v43 = vld [vmem:[%s20003_s30 + $0xb40] sm:$0xff]  ;;  %v13771_v47 = vld [vmem:[%s19771_s13 + $0x198] sm:$0xff]  ;;  %v16638_v48 = vpack.c.bf16 %v9206_v61, %v9205_v35  ;;  %v9207_v35 = vld [vmem:[%s20003_s30 + $0xbd0] sm:$0xff] }
 0xdd9   :  { %12541 = vmatpush3.bf16.msra.mxu0 %v16561_v63  ;;  %4490 = vmatmul.mubr.f32.gmra.mrb[66].mxu1 %v13769_v0  ;;  %v9158_v0 = vld [vmem:[%s20003_s30 + $0xa48] sm:$0xff]  ;;  %v9208_v61 = vld [vmem:[%s20003_s30 + $0xbd8] sm:$0xff] }
 0xdda   :  { %20230 = vst [vmem:[#allocation17_spill] sm:$0xff] %v16615_v15  ;;  %12573 = vmatpush3.bf16.msra.mxu1 %v16573_v57  ;;  %4409 = vmatprep.mubr.f32.mxu0 %v13770_v39  ;;  %20233 = vst [vmem:[#allocation67_spill] sm:$0xff] %v16638_v48  ;;  %v13772_v39 = vld [vmem:[%s19771_s13 + $0x180] sm:$0xff]  ;;  %v16663_v59 = vpack.c.bf16 %v9158_v0, %v9157_v50  ;;  %v9191_v50 = vld [vmem:[%s20003_s30 + $0xb50] sm:$0xff]  ;;  %v16681_v0 = vpack.c.bf16 %v9208_v61, %v9207_v35 }
 0xddb   :  { %12543 = vmatprep.subr.bf16.mxu0 %v16588_v56  ;;  %4494 = vmatprep.mubr.f32.mxu1 %v13771_v47  ;;  %v13773_v47 = vld [vmem:[%s19771_s13 + $0x190] sm:$0xff]  ;;  %v9209_v35 = vld [vmem:[%s20003_s30 + $0xbe0] sm:$0xff]  ;;  %v9210_v61 = vld [vmem:[%s20003_s30 + $0xbe8] sm:$0xff] }
 0xddc   :  { %4410 = vmatmul.mubr.f32.gmra.mrb[62].mxu0 %v13772_v39  ;;  %12575 = vmatprep.subr.bf16.mxu1 %v16603_v58  ;;  %20234 = vst [vmem:[#allocation66_spill] sm:$0xff] %v16663_v59  ;;  %v16667_v39 = vpack.c.bf16 %v9190_v20, %v9189_v43  ;;  %v16669_v58 = vpack.c.bf16 %v9176_v14, %v9175_v41  ;;  %v9159_v56 = vld [vmem:[%s20003_s30 + $0xa50] sm:$0xff]  ;;  %20237 = vst [vmem:[#allocation19_spill] sm:$0xff] %v16681_v0  ;;  %v9192_v43 = vld [vmem:[%s20003_s30 + $0xb58] sm:$0xff] }
 0xddd   :  { %12545 = vmatpush3.bf16.msra.mxu0 %v16615_v15  ;;  %4495 = vmatmul.mubr.f32.gmra.mrb[68].mxu1 %v13773_v47  ;;  %v9160_v15 = vld [vmem:[%s20003_s30 + $0xa58] sm:$0xff]  ;;  %v9177_v20 = vld [vmem:[%s20003_s30 + $0xae0] sm:$0xff]  ;;  %v9178_v41 = vld [vmem:[%s20003_s30 + $0xae8] sm:$0xff] }
 0xdde   :  { %12577 = vmatpush3.bf16.msra.mxu1 %v16621_v26  ;;  %12547 = vmatprep.subr.bf16.mxu0 %v16623_v6  ;;  %20235 = vst [vmem:[#allocation18_spill] sm:$0xff] %v16667_v39  ;;  %20236 = vst [vmem:[#allocation72_spill] sm:$0xff] %v16669_v58  ;;  %v13774_v14 = vld [vmem:[%s19771_s13 + $0x28] sm:$0xff]  ;;  %v13775_v47 = vld [vmem:[%s19771_s13 + $0x38] sm:$0xff]  ;;  %v16711_v6 = vpack.c.bf16 %v9178_v41, %v9177_v20 }
 0xddf   :  { %12579 = vmatprep.subr.bf16.mxu1 %v16638_v48  ;;  %4564 = vmatprep.mubr.f32.mxu0 %v13774_v14  ;;  %v16705_v48 = vpack.c.bf16 %v9160_v15, %v9159_v56  ;;  %v16709_v14 = vpack.c.bf16 %v9192_v43, %v9191_v50  ;;  %v9161_v26 = vld [vmem:[%s20003_s30 + $0xa60] sm:$0xff]  ;;  %v16723_v15 = vpack.c.bf16 %v9210_v61, %v9209_v35  ;;  %v9194_v50 = vld [vmem:[%s20003_s30 + $0xb68] sm:$0xff]  ;;  %v9179_v43 = vld [vmem:[%s20003_s30 + $0xaf0] sm:$0xff] }
 0xde0   :  { %4649 = vmatprep.mubr.f32.mxu1 %v13775_v47  ;;  %20240 = vst [vmem:[#allocation74_spill] sm:$0xff] %v16711_v6  ;;  %v9162_v47 = vld [vmem:[%s20003_s30 + $0xa68] sm:$0xff]  ;;  %v9193_v56 = vld [vmem:[%s20003_s30 + $0xb60] sm:$0xff]  ;;  %v9180_v20 = vld [vmem:[%s20003_s30 + $0xaf8] sm:$0xff] }
 0xde1   :  { %12549 = vmatpush3.bf16.msra.mxu0 %v16663_v59  ;;  %20238 = vst [vmem:[#allocation73_spill] sm:$0xff] %v16705_v48  ;;  %20239 = vst [vmem:[#allocation20_spill] sm:$0xff] %v16709_v14  ;;  %v9211_v41 = vld [vmem:[%s20003_s30 + $0xbf0] sm:$0xff]  ;;  %v9212_v35 = vld [vmem:[%s20003_s30 + $0xbf8] sm:$0xff]  ;;  %v16741_v61 = vpack.c.bf16 %v9162_v47, %v9161_v26 }
 0xde2   :  { %12581 = vmatpush3.bf16.msra.mxu1 %v16667_v39  ;;  %12551 = vmatprep.subr.bf16.mxu0 %v16669_v58  ;;  %20241 = vst [vmem:[#allocation21_spill] sm:$0xff] %v16723_v15  ;;  %v16747_v58 = vpack.c.bf16 %v9180_v20, %v9179_v43  ;;  %v9163_v39 = vld [vmem:[%s20003_s30 + $0xa70] sm:$0xff]  ;;  %v9164_v59 = vld [vmem:[%s20003_s30 + $0xa78] sm:$0xff]  ;;  %v16759_v47 = vpack.c.bf16 %v9212_v35, %v9211_v41  ;;  %v9230_v43 = vld [vmem:[%s20003_s30 + $0xc88] sm:$0xff] }
 0xde3   :  { %12583 = vmatprep.subr.bf16.mxu1 %v16681_v0  ;;  %20242 = vst [vmem:[#allocation75_spill] sm:$0xff] %v16741_v61  ;;  %v16745_v0 = vpack.c.bf16 %v9194_v50, %v9193_v56  ;;  %v9195_v26 = vld [vmem:[%s20003_s30 + $0xb70] sm:$0xff]  ;;  %v9196_v56 = vld [vmem:[%s20003_s30 + $0xb78] sm:$0xff]  ;;  %v9229_v50 = vld [vmem:[%s20003_s30 + $0xc80] sm:$0xff]  ;;  %v16777_v35 = vpack.c.bf16 %v9164_v59, %v9163_v39 }
 0xde4   :  { %20244 = vst [vmem:[#allocation76_spill] sm:$0xff] %v16747_v58  ;;  %20245 = vst [vmem:[#allocation23_spill] sm:$0xff] %v16759_v47  ;;  %v9261_v20 = vld [vmem:[%s20003_s30 + $0xd80] sm:$0xff]  ;;  %v9262_v41 = vld [vmem:[%s20003_s30 + $0xd88] sm:$0xff] }
 0xde5   :  { %12553 = vmatpush3.bf16.msra.mxu0 %v16705_v48  ;;  %20243 = vst [vmem:[#allocation22_spill] sm:$0xff] %v16745_v0  ;;  %20246 = vst [vmem:[#allocation77_spill] sm:$0xff] %v16777_v35  ;;  %v9214_v48 = vld [vmem:[%s20003_s30 + $0xc08] sm:$0xff]  ;;  %v16792_v59 = vpack.c.bf16 %v9262_v41, %v9261_v20  ;;  %v9245_v39 = vld [vmem:[%s20003_s30 + $0xd00] sm:$0xff] }
 0xde6   :  { %12585 = vmatpush3.bf16.msra.mxu1 %v16709_v14  ;;  %12555 = vmatprep.subr.bf16.mxu0 %v16711_v6  ;;  %v16783_v6 = vpack.c.bf16 %v9230_v43, %v9229_v50  ;;  %v9213_v14 = vld [vmem:[%s20003_s30 + $0xc00] sm:$0xff]  ;;  %v9232_v50 = vld [vmem:[%s20003_s30 + $0xc98] sm:$0xff]  ;;  %v9263_v20 = vld [vmem:[%s20003_s30 + $0xd90] sm:$0xff] }
 0xde7   :  { %12587 = vmatprep.subr.bf16.mxu1 %v16723_v15  ;;  %v16781_v15 = vpack.c.bf16 %v9196_v56, %v9195_v26  ;;  %20249 = vst [vmem:[#allocation25_spill] sm:$0xff] %v16792_v59  ;;  %v9246_v26 = vld [vmem:[%s20003_s30 + $0xd08] sm:$0xff]  ;;  %v9231_v56 = vld [vmem:[%s20003_s30 + $0xc90] sm:$0xff]  ;;  %v16807_v43 = vpack.c.bf16 %v9214_v48, %v9213_v14  ;;  %v9264_v41 = vld [vmem:[%s20003_s30 + $0xd98] sm:$0xff] }
 0xde8   :  { %20248 = vst [vmem:[#allocation78_spill] sm:$0xff] %v16783_v6  ;;  %v9216_v48 = vld [vmem:[%s20003_s30 + $0xc18] sm:$0xff]  ;;  %v16826_v14 = vpack.c.bf16 %v9232_v50, %v9231_v56  ;;  %v9233_v56 = vld [vmem:[%s20003_s30 + $0xca0] sm:$0xff]  ;;  %v9234_v50 = vld [vmem:[%s20003_s30 + $0xca8] sm:$0xff] }
 0xde9   :  { %12557 = vmatpush3.bf16.msra.mxu0 %v16741_v61  ;;  %20247 = vst [vmem:[#allocation24_spill] sm:$0xff] %v16781_v15  ;;  %20250 = vst [vmem:[#allocation79_spill] sm:$0xff] %v16807_v43  ;;  %v13785_v61 = vld [vmem:[%s19771_s13 + $0x130] sm:$0xff] }
 0xdea   :  { %12589 = vmatpush3.bf16.msra.mxu1 %v16745_v0  ;;  %12559 = vmatprep.subr.bf16.mxu0 %v16747_v58  ;;  %20252 = vst [vmem:[#allocation80_spill] sm:$0xff] %v16826_v14  ;;  %v9238_v0 = vld [vmem:[%s20003_s30 + $0xcc8] sm:$0xff] }
 0xdeb   :  { %12591 = vmatprep.subr.bf16.mxu1 %v16759_v47  ;;  %v16817_v47 = vpack.c.bf16 %v9246_v26, %v9245_v39  ;;  %v9248_v39 = vld [vmem:[%s20003_s30 + $0xd18] sm:$0xff]  ;;  %v13776_v26 = vld [vmem:[%s19771_s13 + $0x20] sm:$0xff] }
 0xded   :  { %12561 = vmatpush3.bf16.msra.mxu0 %v16777_v35  ;;  %20251 = vst [vmem:[#allocation26_spill] sm:$0xff] %v16817_v47  ;;  %v9215_v35 = vld [vmem:[%s20003_s30 + $0xc10] sm:$0xff] }
 0xdee   :  { %12593 = vmatpush3.bf16.msra.mxu1 %v16781_v15  ;;  %12595 = vmatprep.subr.bf16.mxu0 %v16783_v6  ;;  %v9247_v15 = vld [vmem:[%s20003_s30 + $0xd10] sm:$0xff]  ;;  %v16837_v6 = vpack.c.bf16 %v9264_v41, %v9263_v20  ;;  %v16849_v58 = vpack.c.bf16 %v9216_v48, %v9215_v35  ;;  %v9265_v20 = vld [vmem:[%s20003_s30 + $0xda0] sm:$0xff]  ;;  %v9266_v41 = vld [vmem:[%s20003_s30 + $0xda8] sm:$0xff] }
 0xdef   :  { %12627 = vmatprep.subr.bf16.mxu1 %v16792_v59  ;;  %v13777_v59 = vld [vmem:[%s19771_s13 + $0x30] sm:$0xff]  ;;  %v9217_v35 = vld [vmem:[%s20003_s30 + $0xc20] sm:$0xff]  ;;  %v13779_v48 = vld [vmem:[%s19771_s13 + $0xb8] sm:$0xff] }
 0xdf0   :  { %4565 = vmatmul.mubr.f32.vlgmr.msra.gmra.mrb[64].mxu0 %v13776_v26  ;;  %20253 = vst [vmem:[#allocation27_spill] sm:$0xff] %v16837_v6  ;;  %20254 = vst [vmem:[#allocation81_spill] sm:$0xff] %v16849_v58  ;;  %v13778_v26 = vld [vmem:[%s19771_s13 + $0xa8] sm:$0xff] }
 0xdf1   :  { %12597 = vmatpush3.bf16.msra.mxu0 %v16807_v43  ;;  %4650 = vmatmul.mubr.f32.vlgmr.msra.gmra.mrb[70].mxu1 %v13777_v59  ;;  %v16861_v43 = vpack.c.bf16 %v9248_v39, %v9247_v15  ;;  %v9218_v59 = vld [vmem:[%s20003_s30 + $0xc28] sm:$0xff]  ;;  %v9249_v15 = vld [vmem:[%s20003_s30 + $0xd20] sm:$0xff] }
 0xdf2   :  { %12629 = vmatpush3.bf16.msra.mxu1 %v16817_v47  ;;  %4569 = vmatprep.mubr.f32.mxu0 %v13778_v26  ;;  %v16873_v47 = vpack.c.bf16 %v9234_v50, %v9233_v56  ;;  %v9250_v39 = vld [vmem:[%s20003_s30 + $0xd28] sm:$0xff]  ;;  %v13780_v26 = vld [vmem:[%s19771_s13 + $0xa0] sm:$0xff]  ;;  %v9235_v56 = vld [vmem:[%s20003_s30 + $0xcb0] sm:$0xff] }
 0xdf3   :  { %20255 = vst [vmem:[#allocation28_spill] sm:$0xff] %v16861_v43  ;;  %12599 = vmatprep.subr.bf16.mxu0 %v16826_v14  ;;  %4654 = vmatprep.mubr.f32.mxu1 %v13779_v48  ;;  %v16885_v14 = vpack.c.bf16 %v9266_v41, %v9265_v20  ;;  %v9236_v50 = vld [vmem:[%s20003_s30 + $0xcb8] sm:$0xff]  ;;  %v13781_v48 = vld [vmem:[%s19771_s13 + $0xb0] sm:$0xff] }
 0xdf4   :  { %20256 = vst [vmem:[#allocation82_spill] sm:$0xff] %v16873_v47  ;;  %4570 = vmatmul.mubr.f32.gmra.mrb[66].mxu0 %v13780_v26  ;;  %12631 = vmatprep.subr.bf16.mxu1 %v16837_v6  ;;  %v16897_v26 = vpack.c.bf16 %v9218_v59, %v9217_v35  ;;  %v9267_v20 = vld [vmem:[%s20003_s30 + $0xdb0] sm:$0xff]  ;;  %v9268_v41 = vld [vmem:[%s20003_s30 + $0xdb8] sm:$0xff]  ;;  %v16909_v6 = vpack.c.bf16 %v9250_v39, %v9249_v15 }
 0xdf5   :  { %20257 = vst [vmem:[#allocation29_spill] sm:$0xff] %v16885_v14  ;;  %12601 = vmatpush3.bf16.msra.mxu0 %v16849_v58  ;;  %4655 = vmatmul.mubr.f32.gmra.mrb[72].mxu1 %v13781_v48  ;;  %v13782_v58 = vld [vmem:[%s19771_s13 + $0x128] sm:$0xff]  ;;  %v9219_v35 = vld [vmem:[%s20003_s30 + $0xc30] sm:$0xff]  ;;  %v9220_v59 = vld [vmem:[%s20003_s30 + $0xc38] sm:$0xff]  ;;  %v16924_v15 = vpack.c.bf16 %v9236_v50, %v9235_v56  ;;  %v16939_v56 = vpack.c.bf16 %v9268_v41, %v9267_v20 }
 0xdf6   :  { %20258 = vst [vmem:[#allocation83_spill] sm:$0xff] %v16897_v26  ;;  %12633 = vmatpush3.bf16.msra.mxu1 %v16861_v43  ;;  %4574 = vmatprep.mubr.f32.mxu0 %v13782_v58  ;;  %20259 = vst [vmem:[#allocation30_spill] sm:$0xff] %v16909_v6  ;;  %v9251_v48 = vld [vmem:[%s20003_s30 + $0xd30] sm:$0xff]  ;;  %v13783_v58 = vld [vmem:[%s19771_s13 + $0x138] sm:$0xff] }
 0xdf7   :  { %12603 = vmatprep.subr.bf16.mxu0 %v16873_v47  ;;  %4659 = vmatprep.mubr.f32.mxu1 %v13783_v58  ;;  %20260 = vst [vmem:[#allocation84_spill] sm:$0xff] %v16924_v15  ;;  %v9252_v39 = vld [vmem:[%s20003_s30 + $0xd38] sm:$0xff]  ;;  %v9237_v43 = vld [vmem:[%s20003_s30 + $0xcc0] sm:$0xff]  ;;  %20261 = vst [vmem:[#allocation31_spill] sm:$0xff] %v16939_v56 }
 0xdf8   :  { %v13784_v47 = vld [vmem:[%s19771_s13 + $0x120] sm:$0xff]  ;;  %12635 = vmatprep.subr.bf16.mxu1 %v16885_v14  ;;  %v9270_v58 = vld [vmem:[%s20003_s30 + $0xdc8] sm:$0xff]  ;;  %v16957_v41 = vpack.c.bf16 %v9252_v39, %v9251_v48  ;;  %v16959_v14 = vpack.c.bf16 %v9238_v0, %v9237_v43  ;;  %v9239_v48 = vld [vmem:[%s20003_s30 + $0xcd0] sm:$0xff] }
 0xdf9   :  { %4575 = vmatmul.mubr.f32.gmra.mrb[68].mxu0 %v13784_v47  ;;  %v9269_v50 = vld [vmem:[%s20003_s30 + $0xdc0] sm:$0xff]  ;;  %4660 = vmatmul.mubr.f32.gmra.mrb[74].mxu1 %v13785_v61  ;;  %v16951_v47 = vpack.c.bf16 %v9220_v59, %v9219_v35  ;;  %v13786_v20 = vld [vmem:[%s19771_s13 + $0x1a8] sm:$0xff]  ;;  %v13787_v59 = vld [vmem:[%s19771_s13 + $0x1b8] sm:$0xff] }
 0xdfa   :  { %12605 = vmatpush3.bf16.msra.mxu0 %v16897_v26  ;;  %12637 = vmatpush3.bf16.msra.mxu1 %v16909_v6  ;;  %20263 = vst [vmem:[#allocation32_spill] sm:$0xff] %v16957_v41  ;;  %20264 = vst [vmem:[#allocation86_spill] sm:$0xff] %v16959_v14  ;;  %v9221_v26 = vld [vmem:[%s20003_s30 + $0xc40] sm:$0xff]  ;;  %v9222_v61 = vld [vmem:[%s20003_s30 + $0xc48] sm:$0xff]  ;;  %v16974_v0 = vpack.c.bf16 %v9270_v58, %v9269_v50 }
 0xdfb   :  { %20262 = vst [vmem:[#allocation85_spill] sm:$0xff] %v16951_v47  ;;  %4579 = vmatprep.mubr.f32.mxu0 %v13786_v20  ;;  %v9253_v35 = vld [vmem:[%s20003_s30 + $0xd40] sm:$0xff]  ;;  %12607 = vmatprep.subr.bf16.mxu0 %v16924_v15  ;;  %v9254_v43 = vld [vmem:[%s20003_s30 + $0xd48] sm:$0xff]  ;;  %v9240_v39 = vld [vmem:[%s20003_s30 + $0xcd8] sm:$0xff]  ;;  %v16999_v15 = vpack.c.bf16 %v9222_v61, %v9221_v26 }
 0xdfc   :  { %4664 = vmatprep.mubr.f32.mxu1 %v13787_v59  ;;  %20265 = vst [vmem:[#allocation33_spill] sm:$0xff] %v16974_v0  ;;  %v13788_v20 = vld [vmem:[%s19771_s13 + $0x1a0] sm:$0xff]  ;;  %12639 = vmatprep.subr.bf16.mxu1 %v16939_v56  ;;  %v9271_v50 = vld [vmem:[%s20003_s30 + $0xdd0] sm:$0xff]  ;;  %v9272_v58 = vld [vmem:[%s20003_s30 + $0xdd8] sm:$0xff]  ;;  %v17005_v56 = vpack.c.bf16 %v9240_v39, %v9239_v48 }
 0xdfd   :  { %4580 = vmatmul.mubr.f32.gmra.mrb[70].mxu0 %v13788_v20  ;;  %v13789_v59 = vld [vmem:[%s19771_s13 + $0x1b0] sm:$0xff]  ;;  %20266 = vst [vmem:[#allocation87_spill] sm:$0xff] %v16999_v15  ;;  %v17003_v20 = vpack.c.bf16 %v9254_v43, %v9253_v35  ;;  %v17017_v61 = vpack.c.bf16 %v9272_v58, %v9271_v50  ;;  %v9256_v35 = vld [vmem:[%s20003_s30 + $0xd58] sm:$0xff]  ;;  %v9241_v43 = vld [vmem:[%s20003_s30 + $0xce0] sm:$0xff] }
 0xdfe   :  { %12609 = vmatpush3.bf16.msra.mxu0 %v16951_v47  ;;  %4665 = vmatmul.mubr.f32.gmra.mrb[76].mxu1 %v13789_v59  ;;  %20268 = vst [vmem:[#allocation88_spill] sm:$0xff] %v17005_v56  ;;  %v9223_v6 = vld [vmem:[%s20003_s30 + $0xc50] sm:$0xff]  ;;  %v9224_v47 = vld [vmem:[%s20003_s30 + $0xc58] sm:$0xff]  ;;  %v9242_v48 = vld [vmem:[%s20003_s30 + $0xce8] sm:$0xff] }
 0xdff   :  { %12641 = vmatpush3.bf16.msra.mxu1 %v16957_v41  ;;  %12611 = vmatprep.subr.bf16.mxu0 %v16959_v14  ;;  %20267 = vst [vmem:[#allocation34_spill] sm:$0xff] %v17003_v20  ;;  %v9255_v26 = vld [vmem:[%s20003_s30 + $0xd50] sm:$0xff]  ;;  %20269 = vst [vmem:[#allocation35_spill] sm:$0xff] %v17017_v61  ;;  %v13790_v39 = vld [vmem:[%s19771_s13 + $0x48] sm:$0xff]  ;;  %v17047_v14 = vpack.c.bf16 %v9242_v48, %v9241_v43 }
 0xe00   :  { %12643 = vmatprep.subr.bf16.mxu1 %v16974_v0  ;;  %4734 = vmatprep.mubr.f32.mxu0 %v13790_v39  ;;  %v9273_v50 = vld [vmem:[%s20003_s30 + $0xde0] sm:$0xff]  ;;  %v9274_v58 = vld [vmem:[%s20003_s30 + $0xde8] sm:$0xff]  ;;  %v13791_v59 = vld [vmem:[%s19771_s13 + $0x58] sm:$0xff]  ;;  %v17041_v0 = vpack.c.bf16 %v9224_v47, %v9223_v6  ;;  %v17045_v39 = vpack.c.bf16 %v9256_v35, %v9255_v26 }
 0xe01   :  { %4819 = vmatprep.mubr.f32.mxu1 %v13791_v59  ;;  %20272 = vst [vmem:[#allocation90_spill] sm:$0xff] %v17047_v14  ;;  %v9225_v41 = vld [vmem:[%s20003_s30 + $0xc60] sm:$0xff]  ;;  %v9226_v59 = vld [vmem:[%s20003_s30 + $0xc68] sm:$0xff]  ;;  %v17063_v26 = vpack.c.bf16 %v9274_v58, %v9273_v50  ;;  %v9243_v43 = vld [vmem:[%s20003_s30 + $0xcf0] sm:$0xff] }
 0xe02   :  { %12613 = vmatpush3.bf16.msra.mxu0 %v16999_v15  ;;  %20270 = vst [vmem:[#allocation89_spill] sm:$0xff] %v17041_v0  ;;  %20271 = vst [vmem:[#allocation36_spill] sm:$0xff] %v17045_v39  ;;  %v9257_v6 = vld [vmem:[%s20003_s30 + $0xd60] sm:$0xff]  ;;  %v9258_v35 = vld [vmem:[%s20003_s30 + $0xd68] sm:$0xff] }
 0xe03   :  { %12645 = vmatpush3.bf16.msra.mxu1 %v17003_v20  ;;  %12615 = vmatprep.subr.bf16.mxu0 %v17005_v56  ;;  %v17058_v47 = vpop.f32.mrb[50].mxu0  ;;  %v17060_v20 = vpop.f32.mrb[56].mxu1  ;;  %20275 = vst [vmem:[#allocation38_spill] sm:$0xff] %v17063_v26  ;;  %v9244_v48 = vld [vmem:[%s20003_s30 + $0xcf8] sm:$0xff]  ;;  %v9275_v50 = vld [vmem:[%s20003_s30 + $0xdf0] sm:$0xff] }
 0xe04   :  { %20273 = vst [vmem:[#allocation37_spill] sm:$0xff] %v17058_v47  ;;  %20274 = vst [vmem:[#allocation91_spill] sm:$0xff] %v17060_v20  ;;  %12647 = vmatprep.subr.bf16.mxu1 %v17017_v61  ;;  %v17074_v56 = vpop.f32.mrb[51].mxu0  ;;  %v17076_v47 = vpop.f32.mrb[57].mxu1  ;;  %v9276_v58 = vld [vmem:[%s20003_s30 + $0xdf8] sm:$0xff]  ;;  %v17085_v20 = vpack.c.bf16 %v9226_v59, %v9225_v41  ;;  %v17089_v61 = vpack.c.bf16 %v9258_v35, %v9257_v6  ;;  %v9259_v41 = vld [vmem:[%s20003_s30 + $0xd70] sm:$0xff] }
 0xe05   :  { %20276 = vst [vmem:[#allocation92_spill] sm:$0xff] %v17074_v56  ;;  %20277 = vst [vmem:[#allocation39_spill] sm:$0xff] %v17076_v47  ;;  %v17091_v56 = vpack.c.bf16 %v9244_v48, %v9243_v43  ;;  %v9227_v47 = vld [vmem:[%s20003_s30 + $0xc70] sm:$0xff]  ;;  %v9228_v15 = vld [vmem:[%s20003_s30 + $0xc78] sm:$0xff]  ;;  %v17103_v59 = vpack.c.bf16 %v9276_v58, %v9275_v50 }
 0xe06   :  { %12617 = vmatpush3.bf16.msra.mxu0 %v17041_v0  ;;  %20278 = vst [vmem:[#allocation93_spill] sm:$0xff] %v17085_v20  ;;  %20279 = vst [vmem:[#allocation40_spill] sm:$0xff] %v17089_v61  ;;  %v9260_v6 = vld [vmem:[%s20003_s30 + $0xd78] sm:$0xff]  ;;  %v9293_v35 = vld [vmem:[%s20003_s30 + $0xe80] sm:$0xff]  ;;  %v17121_v58 = vpack.c.bf16 %v9228_v15, %v9227_v47 }
 0xe07   :  { %12649 = vmatpush3.bf16.msra.mxu1 %v17045_v39  ;;  %12619 = vmatprep.subr.bf16.mxu0 %v17047_v14  ;;  %20280 = vst [vmem:[#allocation94_spill] sm:$0xff] %v17091_v56  ;;  %20281 = vst [vmem:[#allocation41_spill] sm:$0xff] %v17103_v59  ;;  %v9294_v43 = vld [vmem:[%s20003_s30 + $0xe88] sm:$0xff]  ;;  %v9325_v48 = vld [vmem:[%s20003_s30 + $0xf80] sm:$0xff] }
 0xe08   :  { %12651 = vmatprep.subr.bf16.mxu1 %v17063_v26  ;;  %v9326_v50 = vld [vmem:[%s20003_s30 + $0xf88] sm:$0xff]  ;;  %20282 = vst [vmem:[#allocation95_spill] sm:$0xff] %v17121_v58  ;;  %v17125_v26 = vpack.c.bf16 %v9260_v6, %v9259_v41  ;;  %v17127_v14 = vpack.c.bf16 %v9294_v43, %v9293_v35  ;;  %v9277_v39 = vld [vmem:[%s20003_s30 + $0xe00] sm:$0xff]  ;;  %v9295_v6 = vld [vmem:[%s20003_s30 + $0xe90] sm:$0xff] }
 0xe09   :  { %v9278_v0 = vld [vmem:[%s20003_s30 + $0xe08] sm:$0xff]  ;;  %v17136_v15 = vpack.c.bf16 %v9326_v50, %v9325_v48  ;;  %v9309_v47 = vld [vmem:[%s20003_s30 + $0xf00] sm:$0xff]  ;;  %v9296_v35 = vld [vmem:[%s20003_s30 + $0xe98] sm:$0xff] }
 0xe0a   :  { %12621 = vmatpush3.bf16.msra.mxu0 %v17085_v20  ;;  %20283 = vst [vmem:[#allocation42_spill] sm:$0xff] %v17125_v26  ;;  %20284 = vst [vmem:[#allocation96_spill] sm:$0xff] %v17127_v14  ;;  %v9310_v41 = vld [vmem:[%s20003_s30 + $0xf08] sm:$0xff]  ;;  %v17151_v43 = vpack.c.bf16 %v9278_v0, %v9277_v39  ;;  %v9327_v48 = vld [vmem:[%s20003_s30 + $0xf90] sm:$0xff]  ;;  %v17170_v39 = vpack.c.bf16 %v9296_v35, %v9295_v6 }
 0xe0b   :  { %12653 = vmatpush3.bf16.msra.mxu1 %v17089_v61  ;;  %12623 = vmatprep.subr.bf16.mxu0 %v17091_v56  ;;  %20285 = vst [vmem:[#allocation43_spill] sm:$0xff] %v17136_v15  ;;  %v9328_v50 = vld [vmem:[%s20003_s30 + $0xf98] sm:$0xff]  ;;  %v9297_v6 = vld [vmem:[%s20003_s30 + $0xea0] sm:$0xff]  ;;  %v9298_v35 = vld [vmem:[%s20003_s30 + $0xea8] sm:$0xff] }
 0xe0c   :  { %12655 = vmatprep.subr.bf16.mxu1 %v17103_v59  ;;  %20286 = vst [vmem:[#allocation97_spill] sm:$0xff] %v17151_v43  ;;  %v17161_v59 = vpack.c.bf16 %v9310_v41, %v9309_v47  ;;  %v9280_v0 = vld [vmem:[%s20003_s30 + $0xe18] sm:$0xff]  ;;  %20288 = vst [vmem:[#allocation98_spill] sm:$0xff] %v17170_v39  ;;  %v13792_v41 = vld [vmem:[%s19771_s13 + $0x40] sm:$0xff] }
 0xe0d   :  { %v9312_v47 = vld [vmem:[%s20003_s30 + $0xf18] sm:$0xff]  ;;  %v9302_v61 = vld [vmem:[%s20003_s30 + $0xec8] sm:$0xff]  ;;  %v13801_v20 = vld [vmem:[%s19771_s13 + $0x150] sm:$0xff] }
 0xe0e   :  { %12625 = vmatpush3.bf16.msra.mxu0 %v17121_v58  ;;  %20287 = vst [vmem:[#allocation44_spill] sm:$0xff] %v17161_v59  ;;  %v9279_v58 = vld [vmem:[%s20003_s30 + $0xe10] sm:$0xff] }
 0xe0f   :  { %12657 = vmatpush3.bf16.msra.mxu1 %v17125_v26  ;;  %12659 = vmatprep.subr.bf16.mxu0 %v17127_v14  ;;  %v9311_v26 = vld [vmem:[%s20003_s30 + $0xf10] sm:$0xff]  ;;  %v17181_v14 = vpack.c.bf16 %v9328_v50, %v9327_v48  ;;  %v17193_v56 = vpack.c.bf16 %v9280_v0, %v9279_v58  ;;  %v9329_v48 = vld [vmem:[%s20003_s30 + $0xfa0] sm:$0xff]  ;;  %v9330_v50 = vld [vmem:[%s20003_s30 + $0xfa8] sm:$0xff] }
 0xe10   :  { %12691 = vmatprep.subr.bf16.mxu1 %v17136_v15  ;;  %v13793_v15 = vld [vmem:[%s19771_s13 + $0x50] sm:$0xff]  ;;  %v9281_v58 = vld [vmem:[%s20003_s30 + $0xe20] sm:$0xff]  ;;  %v13795_v0 = vld [vmem:[%s19771_s13 + $0xd8] sm:$0xff] }
 0xe11   :  { %4735 = vmatmul.mubr.f32.vlgmr.msra.gmra.mrb[72].mxu0 %v13792_v41  ;;  %20289 = vst [vmem:[#allocation45_spill] sm:$0xff] %v17181_v14  ;;  %20290 = vst [vmem:[#allocation99_spill] sm:$0xff] %v17193_v56  ;;  %v13794_v41 = vld [vmem:[%s19771_s13 + $0xc8] sm:$0xff] }
 0xe12   :  { %12661 = vmatpush3.bf16.msra.mxu0 %v17151_v43  ;;  %4820 = vmatmul.mubr.f32.vlgmr.msra.gmra.mrb[78].mxu1 %v13793_v15  ;;  %v17205_v43 = vpack.c.bf16 %v9312_v47, %v9311_v26  ;;  %v9282_v15 = vld [vmem:[%s20003_s30 + $0xe28] sm:$0xff]  ;;  %v9313_v26 = vld [vmem:[%s20003_s30 + $0xf20] sm:$0xff] }
 0xe13   :  { %12693 = vmatpush3.bf16.msra.mxu1 %v17161_v59  ;;  %4739 = vmatprep.mubr.f32.mxu0 %v13794_v41  ;;  %v17217_v59 = vpack.c.bf16 %v9298_v35, %v9297_v6  ;;  %v9314_v47 = vld [vmem:[%s20003_s30 + $0xf28] sm:$0xff]  ;;  %v13796_v41 = vld [vmem:[%s19771_s13 + $0xc0] sm:$0xff]  ;;  %v9299_v6 = vld [vmem:[%s20003_s30 + $0xeb0] sm:$0xff] }
 0xe14   :  { %20291 = vst [vmem:[#allocation46_spill] sm:$0xff] %v17205_v43  ;;  %12663 = vmatprep.subr.bf16.mxu0 %v17170_v39  ;;  %4824 = vmatprep.mubr.f32.mxu1 %v13795_v0  ;;  %v17229_v39 = vpack.c.bf16 %v9330_v50, %v9329_v48  ;;  %v9300_v35 = vld [vmem:[%s20003_s30 + $0xeb8] sm:$0xff]  ;;  %v13797_v0 = vld [vmem:[%s19771_s13 + $0xd0] sm:$0xff] }
 0xe15   :  { %20292 = vst [vmem:[#allocation100_spill] sm:$0xff] %v17217_v59  ;;  %4740 = vmatmul.mubr.f32.gmra.mrb[74].mxu0 %v13796_v41  ;;  %12695 = vmatprep.subr.bf16.mxu1 %v17181_v14  ;;  %v17241_v41 = vpack.c.bf16 %v9282_v15, %v9281_v58  ;;  %v9331_v48 = vld [vmem:[%s20003_s30 + $0xfb0] sm:$0xff]  ;;  %v9332_v50 = vld [vmem:[%s20003_s30 + $0xfb8] sm:$0xff]  ;;  %v17253_v14 = vpack.c.bf16 %v9314_v47, %v9313_v26 }
 0xe16   :  { %20293 = vst [vmem:[#allocation47_spill] sm:$0xff] %v17229_v39  ;;  %12665 = vmatpush3.bf16.msra.mxu0 %v17193_v56  ;;  %4825 = vmatmul.mubr.f32.gmra.mrb[80].mxu1 %v13797_v0  ;;  %v13798_v56 = vld [vmem:[%s19771_s13 + $0x148] sm:$0xff]  ;;  %v9283_v58 = vld [vmem:[%s20003_s30 + $0xe30] sm:$0xff]  ;;  %v9284_v15 = vld [vmem:[%s20003_s30 + $0xe38] sm:$0xff]  ;;  %v17268_v26 = vpack.c.bf16 %v9300_v35, %v9299_v6  ;;  %v17283_v6 = vpack.c.bf16 %v9332_v50, %v9331_v48 }
 0xe17   :  { %20294 = vst [vmem:[#allocation101_spill] sm:$0xff] %v17241_v41  ;;  %12697 = vmatpush3.bf16.msra.mxu1 %v17205_v43  ;;  %4744 = vmatprep.mubr.f32.mxu0 %v13798_v56  ;;  %20295 = vst [vmem:[#allocation48_spill] sm:$0xff] %v17253_v14  ;;  %v9315_v0 = vld [vmem:[%s20003_s30 + $0xf30] sm:$0xff]  ;;  %v13799_v56 = vld [vmem:[%s19771_s13 + $0x158] sm:$0xff] }
 0xe18   :  { %12667 = vmatprep.subr.bf16.mxu0 %v17217_v59  ;;  %4829 = vmatprep.mubr.f32.mxu1 %v13799_v56  ;;  %20296 = vst [vmem:[#allocation102_spill] sm:$0xff] %v17268_v26  ;;  %v9316_v47 = vld [vmem:[%s20003_s30 + $0xf38] sm:$0xff]  ;;  %v9301_v43 = vld [vmem:[%s20003_s30 + $0xec0] sm:$0xff]  ;;  %20297 = vst [vmem:[#allocation49_spill] sm:$0xff] %v17283_v6 }
 0xe19   :  { %v13800_v59 = vld [vmem:[%s19771_s13 + $0x140] sm:$0xff]  ;;  %12699 = vmatprep.subr.bf16.mxu1 %v17229_v39  ;;  %v9334_v56 = vld [vmem:[%s20003_s30 + $0xfc8] sm:$0xff]  ;;  %v17301_v50 = vpack.c.bf16 %v9316_v47, %v9315_v0  ;;  %v17303_v39 = vpack.c.bf16 %v9302_v61, %v9301_v43  ;;  %v9303_v0 = vld [vmem:[%s20003_s30 + $0xed0] sm:$0xff] }
 0xe1a   :  { %4745 = vmatmul.mubr.f32.gmra.mrb[76].mxu0 %v13800_v59  ;;  %v9333_v35 = vld [vmem:[%s20003_s30 + $0xfc0] sm:$0xff]  ;;  %4830 = vmatmul.mubr.f32.gmra.mrb[82].mxu1 %v13801_v20  ;;  %v17295_v59 = vpack.c.bf16 %v9284_v15, %v9283_v58  ;;  %v13802_v48 = vld [vmem:[%s19771_s13 + $0x1c8] sm:$0xff]  ;;  %v13803_v15 = vld [vmem:[%s19771_s13 + $0x1d8] sm:$0xff] }
 0xe1b   :  { %12669 = vmatpush3.bf16.msra.mxu0 %v17241_v41  ;;  %12701 = vmatpush3.bf16.msra.mxu1 %v17253_v14  ;;  %20299 = vst [vmem:[#allocation50_spill] sm:$0xff] %v17301_v50  ;;  %20300 = vst [vmem:[#allocation104_spill] sm:$0xff] %v17303_v39  ;;  %v9285_v41 = vld [vmem:[%s20003_s30 + $0xe40] sm:$0xff]  ;;  %v9286_v20 = vld [vmem:[%s20003_s30 + $0xe48] sm:$0xff]  ;;  %v17318_v61 = vpack.c.bf16 %v9334_v56, %v9333_v35 }
 0xe1c   :  { %20298 = vst [vmem:[#allocation103_spill] sm:$0xff] %v17295_v59  ;;  %4749 = vmatprep.mubr.f32.mxu0 %v13802_v48  ;;  %v9317_v58 = vld [vmem:[%s20003_s30 + $0xf40] sm:$0xff]  ;;  %12671 = vmatprep.subr.bf16.mxu0 %v17268_v26  ;;  %v9318_v43 = vld [vmem:[%s20003_s30 + $0xf48] sm:$0xff]  ;;  %v9304_v47 = vld [vmem:[%s20003_s30 + $0xed8] sm:$0xff]  ;;  %v17343_v26 = vpack.c.bf16 %v9286_v20, %v9285_v41 }
 0xe1d   :  { %4834 = vmatprep.mubr.f32.mxu1 %v13803_v15  ;;  %20301 = vst [vmem:[#allocation51_spill] sm:$0xff] %v17318_v61  ;;  %v13804_v48 = vld [vmem:[%s19771_s13 + $0x1c0] sm:$0xff]  ;;  %12703 = vmatprep.subr.bf16.mxu1 %v17283_v6  ;;  %v9335_v35 = vld [vmem:[%s20003_s30 + $0xfd0] sm:$0xff]  ;;  %v9336_v56 = vld [vmem:[%s20003_s30 + $0xfd8] sm:$0xff]  ;;  %v17349_v6 = vpack.c.bf16 %v9304_v47, %v9303_v0 }
 0xe1e   :  { %4750 = vmatmul.mubr.f32.gmra.mrb[78].mxu0 %v13804_v48  ;;  %v13805_v15 = vld [vmem:[%s19771_s13 + $0x1d0] sm:$0xff]  ;;  %20302 = vst [vmem:[#allocation105_spill] sm:$0xff] %v17343_v26  ;;  %v17347_v48 = vpack.c.bf16 %v9318_v43, %v9317_v58  ;;  %v17361_v20 = vpack.c.bf16 %v9336_v56, %v9335_v35  ;;  %v9320_v58 = vld [vmem:[%s20003_s30 + $0xf58] sm:$0xff]  ;;  %v9305_v43 = vld [vmem:[%s20003_s30 + $0xee0] sm:$0xff] }
 0xe1f   :  { %12673 = vmatpush3.bf16.msra.mxu0 %v17295_v59  ;;  %4835 = vmatmul.mubr.f32.gmra.mrb[84].mxu1 %v13805_v15  ;;  %20304 = vst [vmem:[#allocation106_spill] sm:$0xff] %v17349_v6  ;;  %v9287_v14 = vld [vmem:[%s20003_s30 + $0xe50] sm:$0xff]  ;;  %v9288_v59 = vld [vmem:[%s20003_s30 + $0xe58] sm:$0xff]  ;;  %v9306_v0 = vld [vmem:[%s20003_s30 + $0xee8] sm:$0xff] }
 0xe20   :  { %12705 = vmatpush3.bf16.msra.mxu1 %v17301_v50  ;;  %12675 = vmatprep.subr.bf16.mxu0 %v17303_v39  ;;  %20303 = vst [vmem:[#allocation52_spill] sm:$0xff] %v17347_v48  ;;  %v9319_v41 = vld [vmem:[%s20003_s30 + $0xf50] sm:$0xff]  ;;  %20305 = vst [vmem:[#allocation53_spill] sm:$0xff] %v17361_v20  ;;  %v13806_v47 = vld [vmem:[%s19771_s13 + $0x68] sm:$0xff]  ;;  %v17391_v39 = vpack.c.bf16 %v9306_v0, %v9305_v43 }
 0xe21   :  { %12707 = vmatprep.subr.bf16.mxu1 %v17318_v61  ;;  %4904 = vmatprep.mubr.f32.mxu0 %v13806_v47  ;;  %v9337_v35 = vld [vmem:[%s20003_s30 + $0xfe0] sm:$0xff]  ;;  %v9338_v56 = vld [vmem:[%s20003_s30 + $0xfe8] sm:$0xff]  ;;  %v13807_v15 = vld [vmem:[%s19771_s13 + $0x78] sm:$0xff]  ;;  %v17385_v61 = vpack.c.bf16 %v9288_v59, %v9287_v14  ;;  %v17389_v47 = vpack.c.bf16 %v9320_v58, %v9319_v41 }
 0xe22   :  { %4989 = vmatprep.mubr.f32.mxu1 %v13807_v15  ;;  %v9289_v50 = vld [vmem:[%s20003_s30 + $0xe60] sm:$0xff]  ;;  %v9290_v15 = vld [vmem:[%s20003_s30 + $0xe68] sm:$0xff]  ;;  %v17403_v59 = vpack.c.bf16 %v9338_v56, %v9337_v35  ;;  %v9307_v58 = vld [vmem:[%s20003_s30 + $0xef0] sm:$0xff] }
 0xe23   :  { %12677 = vmatpush3.bf16.msra.mxu0 %v17343_v26  ;;  %v9321_v14 = vld [vmem:[%s20003_s30 + $0xf60] sm:$0xff]  ;;  %v9322_v41 = vld [vmem:[%s20003_s30 + $0xf68] sm:$0xff]  ;;  %v9308_v43 = vld [vmem:[%s20003_s30 + $0xef8] sm:$0xff]  ;;  %v17421_v56 = vpack.c.bf16 %v9290_v15, %v9289_v50 }
 0xe24   :  { %12709 = vmatpush3.bf16.msra.mxu1 %v17347_v48  ;;  %12679 = vmatprep.subr.bf16.mxu0 %v17349_v6  ;;  %v9339_v0 = vld [vmem:[%s20003_s30 + $0xff0] sm:$0xff]  ;;  %v9340_v35 = vld [vmem:[%s20003_s30 + $0xff8] sm:$0xff]  ;;  %v17427_v6 = vpack.c.bf16 %v9308_v43, %v9307_v58  ;;  %v13810_v43 = vld [vmem:[%s19771_s13 + $0xe8] sm:$0xff] }
 0xe25   :  { %12711 = vmatprep.subr.bf16.mxu1 %v17361_v20  ;;  %v17425_v20 = vpack.c.bf16 %v9322_v41, %v9321_v14  ;;  %v9291_v48 = vld [vmem:[%s20003_s30 + $0xe70] sm:$0xff]  ;;  %v9292_v26 = vld [vmem:[%s20003_s30 + $0xe78] sm:$0xff]  ;;  %v17436_v50 = vpack.c.bf16 %v9340_v35, %v9339_v0 }
 0xe26   :  { %20306 = vst [vmem:[#allocation107_spill] sm:$0xff] %v17427_v6  ;;  %v9323_v15 = vld [vmem:[%s20003_s30 + $0xf70] sm:$0xff]  ;;  %v9324_v14 = vld [vmem:[%s20003_s30 + $0xf78] sm:$0xff]  ;;  %v17445_v41 = vpack.c.bf16 %v9292_v26, %v9291_v48  ;;  %v13808_v26 = vld [vmem:[%s19771_s13 + $0x60] sm:$0xff] }
 0xe27   :  { %12681 = vmatpush3.bf16.msra.mxu0 %v17385_v61  ;;  %20307 = vst [vmem:[#allocation54_spill] sm:$0xff] %v17436_v50  ;;  %v17449_v58 = vpack.c.bf16 %v9324_v14, %v9323_v15  ;;  %v13809_v48 = vld [vmem:[%s19771_s13 + $0x70] sm:$0xff]  ;;  %v13811_v0 = vld [vmem:[%s19771_s13 + $0xf8] sm:$0xff]  ;;  %v13814_v15 = vld [vmem:[%s19771_s13 + $0x168] sm:$0xff] }
 0xe28   :  { %12713 = vmatpush3.bf16.msra.mxu1 %v17389_v47  ;;  %12683 = vmatprep.subr.bf16.mxu0 %v17391_v39  ;;  %20308 = vst [vmem:[#allocation108_spill] sm:$0xff] %v17445_v41  ;;  %v13813_v35 = vld [vmem:[%s19771_s13 + $0xf0] sm:$0xff]  ;;  %v13815_v14 = vld [vmem:[%s19771_s13 + $0x178] sm:$0xff] }
 0xe29   :  { %12715 = vmatprep.subr.bf16.mxu1 %v17403_v59  ;;  %20309 = vst [vmem:[#allocation55_spill] sm:$0xff] %v17449_v58 }
 0xe2b   :  { %12685 = vmatpush3.bf16.msra.mxu0 %v17421_v56 }
 0xe2c   :  { %12717 = vmatpush3.bf16.msra.mxu1 %v17425_v20  ;;  %12687 = vmatprep.subr.bf16.mxu0 %v17427_v6 }
 0xe2d   :  { %12719 = vmatprep.subr.bf16.mxu1 %v17436_v50 }
 0xe2f   :  { %12689 = vmatpush3.bf16.msra.mxu0 %v17445_v41 }
 0xe30   :  { %12721 = vmatpush3.bf16.msra.mxu1 %v17449_v58  ;;  %12722 = vmatprep.subr.bf16.mxu0 %v20055_v4 }
 0xe31   :  { %12730 = vmatprep.subr.msk.bf16.mxu1 %vm15708_vm11, %v16138_v37  ;;  %v13812_v37 = vld [vmem:[%s19771_s13 + $0xe0] sm:$0xff] }
 0xe32   :  { %4905 = vmatmul.mubr.f32.vlgmr.msra.gmra.mrb[80].mxu0 %v13808_v26  ;;  %v13816_v26 = vld [vmem:[%s19771_s13 + $0x160] sm:$0xff] }
 0xe33   :  { %4990 = vmatmul.mubr.f32.vlgmr.msra.gmra.mrb[86].mxu1 %v13809_v48  ;;  %4909 = vmatprep.mubr.f32.mxu0 %v13810_v43  ;;  %v13817_v48 = vld [vmem:[%s19771_s13 + $0x170] sm:$0xff]  ;;  %v13818_v43 = vld [vmem:[%s19771_s13 + $0x1e8] sm:$0xff] }
 0xe34   :  { %4994 = vmatprep.mubr.f32.mxu1 %v13811_v0  ;;  %v13820_v0 = vld [vmem:[%s19771_s13 + $0x1e0] sm:$0xff] }
 0xe36   :  { %4910 = vmatmul.mubr.f32.gmra.mrb[82].mxu0 %v13812_v37  ;;  %v20310_v37 = vmov 0.0  }
 0xe37   :  { %4995 = vmatmul.mubr.f32.gmra.mrb[88].mxu1 %v13813_v35  ;;  %4914 = vmatprep.mubr.f32.mxu0 %v13814_v15 }
 0xe38   :  { %4999 = vmatprep.mubr.f32.mxu1 %v13815_v14 }
 0xe39   :  { %12733 = vmatpush3.bf16.xpose.msk.msra.mxu1 %vm15708_vm11, %v16174_v54  ;;  %v13819_v54 = vld [vmem:[%s19771_s13 + $0x1f8] sm:$0xff] }
 0xe3a   :  { %4915 = vmatmul.mubr.f32.gmra.mrb[84].mxu0 %v13816_v26  ;;  %12736 = vmatprep.subr.msk.bf16.mxu1 %vm15708_vm11, %v16178_v60  ;;  %v13821_v60 = vld [vmem:[%s19771_s13 + $0x1f0] sm:$0xff] }
 0xe3b   :  { %5000 = vmatmul.mubr.f32.gmra.mrb[90].mxu1 %v13817_v48  ;;  %4919 = vmatprep.mubr.f32.mxu0 %v13818_v43 }
 0xe3c   :  { %5004 = vmatprep.mubr.f32.mxu1 %v13819_v54 }
 0xe3e   :  { %4920 = vmatmul.mubr.f32.gmra.mrb[86].mxu0 %v13820_v0 }
 0xe3f   :  { %5005 = vmatmul.mubr.f32.gmra.mrb[92].mxu1 %v13821_v60  ;;  %11688 = vmatprep.mubr.msk.f32.mxu0 %vm13887_vm0, %v20310_v37  ;;  %v20320_v37 = vld [vmem:[#allocation121_spill] sm:$0xff] }
 0xe41   :  { %12739 = vmatpush3.bf16.xpose.msk.msra.mxu1 %vm15708_vm11, %v16211_v42 }
 0xe42   :  { %12742 = vmatprep.subr.msk.bf16.mxu1 %vm15708_vm11, %v16217_v7 }
 0xe43   :  { %v17514_v35 = vpop.f32.mrb[52].mxu0 }
 0xe44   :  { %20311 = vst [vmem:[#allocation109_spill] sm:$0xff] %v17514_v35  ;;  %v17516_v15 = vpop.f32.mrb[58].mxu1  ;;  %v17518_v14 = vpop.f32.mrb[53].mxu0 }
 0xe45   :  { %20312 = vst [vmem:[#allocation56_spill] sm:$0xff] %v17516_v15  ;;  %20313 = vst [vmem:[#allocation110_spill] sm:$0xff] %v17518_v14  ;;  %v17520_v26 = vpop.f32.mrb[59].mxu1 }
 0xe46   :  { %20314 = vst [vmem:[#allocation57_spill] sm:$0xff] %v17520_v26 }
 0xe49   :  { %12745 = vmatpush3.bf16.xpose.msk.msra.mxu1 %vm15708_vm11, %v16253_v8 }
 0xe4a   :  { %12748 = vmatprep.subr.msk.bf16.mxu1 %vm15708_vm11, %v16259_v49 }
 0xe51   :  { %12751 = vmatpush3.bf16.xpose.msk.msra.mxu1 %vm15708_vm11, %v16289_v46 }
 0xe52   :  { %12754 = vmatprep.subr.msk.bf16.mxu1 %vm15708_vm11, %v16295_v32 }
 0xe59   :  { %12757 = vmatpush3.bf16.xpose.msk.msra.mxu1 %vm15708_vm11, %v16325_v28 }
 0xe5a   :  { %12760 = vmatprep.subr.msk.bf16.mxu1 %vm15708_vm11, %v16331_v1 }
 0xe61   :  { %12763 = vmatpush3.bf16.xpose.msk.msra.mxu1 %vm15708_vm11, %v16361_v11 }
 0xe62   :  { %12766 = vmatprep.subr.msk.bf16.mxu1 %vm15708_vm11, %v16367_v31 }
 0xe69   :  { %12769 = vmatpush3.bf16.xpose.msk.msra.mxu1 %vm15708_vm11, %v16405_v33  ;;  %v20319_v33 = vld [vmem:[#allocation120_spill] sm:$0xff] }
 0xe6a   :  { %12772 = vmatprep.subr.msk.bf16.mxu1 %vm15708_vm11, %v16411_v45 }
 0xe71   :  { %12775 = vmatpush3.bf16.xpose.msk.msra.mxu1 %vm15708_vm11, %v16441_v53 }
 0xe72   :  { %12826 = vmatprep.subr.msk.bf16.mxu1 %vm15708_vm11, %v16447_v19 }
 0xe83   :  { %v17558_v42 = vpop.f32.mrb[54].mxu0 }
 0xe84   :  { %20315 = vst [vmem:[#allocation111_spill] sm:$0xff] %v17558_v42  ;;  %v17560_v7 = vpop.f32.mrb[60].mxu1  ;;  %v17562_v8 = vpop.f32.mrb[55].mxu0 }
 0xe85   :  { %20316 = vst [vmem:[#allocation58_spill] sm:$0xff] %v17560_v7  ;;  %20317 = vst [vmem:[#allocation112_spill] sm:$0xff] %v17562_v8  ;;  %v17564_v49 = vpop.f32.mrb[61].mxu1 }
 0xe86   :  { %20318 = vst [vmem:[#allocation59_spill] sm:$0xff] %v17564_v49 }
 0xea3   :  { %v10341_v46 = vpop.f32.mrb[56].mxu0 }
 0xea4   :  { %v10342_v32 = vpop.f32.mrb[57].mxu0  ;;  %v10385_v28 = vpop.f32.mrb[62].mxu1 }
 0xea5   :  { %v10343_v1 = vadd.f32 %v10342_v32, %v10341_v46  ;;  %v10386_v11 = vpop.f32.mrb[63].mxu1  ;;  %v20321_v32 = vld [vmem:[#allocation122_spill] sm:$0xff] }
 0xea6   :  { %v10387_v31 = vadd.f32 %v10386_v11, %v10385_v28 }
 0xea7   :  { %v4397_v45 = vadd.f32 %v10343_v1, %v20319_v33  ;;  %v10344_v53 = vpop.f32.mrb[58].mxu0 }
 0xea8   :  { %v10345_v48 = vpop.f32.mrb[59].mxu0  ;;  %v10388_v43 = vpop.f32.mrb[64].mxu1 }
 0xea9   :  { %v4482_v19 = vadd.f32 %v10387_v31, %v4397_v45  ;;  %v10346_v54 = vadd.f32 %v10345_v48, %v10344_v53  ;;  %v10389_v0 = vpop.f32.mrb[65].mxu1  ;;  %v20322_v53 = vld [vmem:[#allocation123_spill] sm:$0xff] }
 0xeaa   :  { %v10390_v60 = vadd.f32 %v10389_v0, %v10388_v43 }
 0xeab   :  { %v4402_v7 = vadd.f32 %v10346_v54, %v20320_v37  ;;  %v10347_v8 = vpop.f32.mrb[60].mxu0 }
 0xeac   :  { %v10348_v42 = vpop.f32.mrb[61].mxu0  ;;  %v10391_v49 = vpop.f32.mrb[66].mxu1 }
 0xead   :  { %v4487_v26 = vadd.f32 %v10390_v60, %v4402_v7  ;;  %v10349_v14 = vadd.f32 %v10348_v42, %v10347_v8  ;;  %v10392_v15 = vpop.f32.mrb[67].mxu1 }
 0xeae   :  { %v10393_v46 = vadd.f32 %v10392_v15, %v10391_v49 }
 0xeaf   :  { %v4407_v28 = vadd.f32 %v10349_v14, %v20321_v32  ;;  %v10350_v11 = vpop.f32.mrb[62].mxu0 }
 0xeb0   :  { %v10351_v1 = vpop.f32.mrb[63].mxu0  ;;  %v10394_v33 = vpop.f32.mrb[68].mxu1 }
 0xeb1   :  { %v4492_v35 = vadd.f32 %v10393_v46, %v4407_v28  ;;  %v10352_v58 = vadd.f32 %v10351_v1, %v10350_v11  ;;  %v10395_v31 = vpop.f32.mrb[69].mxu1 }
 0xeb2   :  { %v10396_v45 = vadd.f32 %v10395_v31, %v10394_v33 }
 0xeb3   :  { %v4412_v48 = vadd.f32 %v10352_v58, %v20322_v53 }
 0xeb5   :  { %v4497_v43 = vadd.f32 %v10396_v45, %v4412_v48 }
 0xec3   :  { %v10429_v37 = vpop.f32.mrb[64].mxu0 }
 0xec4   :  { %v10430_v54 = vpop.f32.mrb[65].mxu0  ;;  %v10473_v0 = vpop.f32.mrb[70].mxu1 }
 0xec5   :  { %v10431_v41 = vadd.f32 %v10430_v54, %v10429_v37  ;;  %v10474_v7 = vpop.f32.mrb[71].mxu1 }
 0xec6   :  { %v10475_v42 = vadd.f32 %v10474_v7, %v10473_v0 }
 0xec7   :  { %v4567_v8 = vadd.f32 %v10431_v41, %v4482_v19  ;;  %v10432_v15 = vpop.f32.mrb[66].mxu0 }
 0xec8   :  { %v10433_v49 = vpop.f32.mrb[67].mxu0  ;;  %v10476_v14 = vpop.f32.mrb[72].mxu1 }
 0xec9   :  { %v4652_v60 = vadd.f32 %v10475_v42, %v4567_v8  ;;  %v10434_v32 = vadd.f32 %v10433_v49, %v10432_v15  ;;  %v10477_v50 = vpop.f32.mrb[73].mxu1 }
 0xeca   :  { %v10478_v46 = vadd.f32 %v10477_v50, %v10476_v14 }
 0xecb   :  { %v4572_v28 = vadd.f32 %v10434_v32, %v4487_v26 }
 0xecc   :  { %v10435_v11 = vpop.f32.mrb[68].mxu0  ;;  %v10479_v33 = vpop.f32.mrb[74].mxu1 }
 0xecd   :  { %v10436_v1 = vpop.f32.mrb[69].mxu0  ;;  %v4657_v58 = vadd.f32 %v10478_v46, %v4572_v28  ;;  %v10480_v45 = vpop.f32.mrb[75].mxu1 }
 0xece   :  { %v10437_v31 = vadd.f32 %v10436_v1, %v10435_v11  ;;  %v10481_v53 = vadd.f32 %v10480_v45, %v10479_v33 }
 0xed0   :  { %v4577_v48 = vadd.f32 %v10437_v31, %v4492_v35  ;;  %v10438_v37 = vpop.f32.mrb[70].mxu0 }
 0xed1   :  { %v10439_v54 = vpop.f32.mrb[71].mxu0  ;;  %v10482_v0 = vpop.f32.mrb[76].mxu1 }
 0xed2   :  { %v4662_v41 = vadd.f32 %v10481_v53, %v4577_v48  ;;  %v10440_v19 = vadd.f32 %v10439_v54, %v10438_v37  ;;  %v10483_v7 = vpop.f32.mrb[77].mxu1 }
 0xed3   :  { %v10484_v6 = vadd.f32 %v10483_v7, %v10482_v0 }
 0xed4   :  { %v4582_v42 = vadd.f32 %v10440_v19, %v4497_v43 }
 0xed6   :  { %v4667_v8 = vadd.f32 %v10484_v6, %v4582_v42 }
 0xee4   :  { %v10517_v15 = vpop.f32.mrb[72].mxu0 }
 0xee5   :  { %v10518_v50 = vpop.f32.mrb[73].mxu0  ;;  %v10561_v26 = vpop.f32.mrb[78].mxu1 }
 0xee6   :  { %v10519_v49 = vadd.f32 %v10518_v50, %v10517_v15  ;;  %v10562_v14 = vpop.f32.mrb[79].mxu1 }
 0xee7   :  { %v10563_v32 = vadd.f32 %v10562_v14, %v10561_v26 }
 0xee8   :  { %v4737_v46 = vadd.f32 %v10519_v49, %v4652_v60  ;;  %v10520_v28 = vpop.f32.mrb[74].mxu0 }
 0xee9   :  { %v10521_v11 = vpop.f32.mrb[75].mxu0  ;;  %v10564_v1 = vpop.f32.mrb[80].mxu1 }
 0xeea   :  { %v4822_v35 = vadd.f32 %v10563_v32, %v4737_v46  ;;  %v10522_v33 = vadd.f32 %v10521_v11, %v10520_v28  ;;  %v10565_v31 = vpop.f32.mrb[81].mxu1 }
 0xeeb   :  { %v10566_v45 = vadd.f32 %v10565_v31, %v10564_v1 }
 0xeec   :  { %v4742_v53 = vadd.f32 %v10522_v33, %v4657_v58 }
 0xeed   :  { %v10523_v48 = vpop.f32.mrb[76].mxu0  ;;  %v10567_v54 = vpop.f32.mrb[82].mxu1 }
 0xeee   :  { %v10524_v37 = vpop.f32.mrb[77].mxu0  ;;  %v4827_v43 = vadd.f32 %v10566_v45, %v4742_v53  ;;  %v10568_v0 = vpop.f32.mrb[83].mxu1 }
 0xeef   :  { %v10525_v6 = vadd.f32 %v10524_v37, %v10523_v48  ;;  %v10569_v19 = vadd.f32 %v10568_v0, %v10567_v54 }
 0xef1   :  { %v4747_v7 = vadd.f32 %v10525_v6, %v4662_v41  ;;  %v10526_v42 = vpop.f32.mrb[78].mxu0  ;;  %v5016_v41 = vpop.permute.xlu1 %5015 }
 0xef2   :  { %v10527_v15 = vpop.f32.mrb[79].mxu0  ;;  %v10570_v50 = vpop.f32.mrb[84].mxu1 }
 0xef3   :  { %v4832_v60 = vadd.f32 %v10569_v19, %v4747_v7  ;;  %v10528_v26 = vadd.f32 %v10527_v15, %v10526_v42  ;;  %v10571_v49 = vpop.f32.mrb[85].mxu1  ;;  %v5012_v7 = vpop.permute.xlu0 %5011 }
 0xef4   :  { %v10572_v14 = vadd.f32 %v10571_v49, %v10570_v50 }
 0xef5   :  { %v4752_v32 = vadd.f32 %v10528_v26, %v4667_v8 }
 0xef7   :  { %v4837_v46 = vadd.f32 %v10572_v14, %v4752_v32 }
 0xf05   :  { %v10605_v28 = vpop.f32.mrb[80].mxu0 }
 0xf06   :  { %v10606_v11 = vpop.f32.mrb[81].mxu0  ;;  %v10649_v58 = vpop.f32.mrb[86].mxu1 }
 0xf07   :  { %v10607_v1 = vadd.f32 %v10606_v11, %v10605_v28  ;;  %v10650_v33 = vpop.f32.mrb[87].mxu1  ;;  %v5020_v11 = vpop.permute.xlu1 %5019 }
 0xf08   :  { %v10651_v31 = vadd.f32 %v10650_v33, %v10649_v58 }
 0xf09   :  { %v4907_v45 = vadd.f32 %v10607_v1, %v4822_v35  ;;  %v10608_v53 = vpop.f32.mrb[82].mxu0 }
 0xf0a   :  { %v10609_v48 = vpop.f32.mrb[83].mxu0  ;;  %v10652_v37 = vpop.f32.mrb[88].mxu1 }
 0xf0b   :  { %v4992_v54 = vadd.f32 %v10651_v31, %v4907_v45  ;;  %v10610_v6 = vadd.f32 %v10609_v48, %v10608_v53  ;;  %v10653_v0 = vpop.f32.mrb[89].mxu1 }
 0xf0c   :  { %v10654_v19 = vadd.f32 %v10653_v0, %v10652_v37  ;;  %v5024_v0 = vpop.permute.xlu1 %5023 }
 0xf0d   :  { %v4912_v42 = vadd.f32 %v10610_v6, %v4827_v43  ;;  %v10611_v15 = vpop.f32.mrb[84].mxu0  ;;  %v5026_v8 = vadd.f32 %v5012_v7, %v4992_v54 }
 0xf0e   :  { %v10612_v50 = vpop.f32.mrb[85].mxu0  ;;  %v10655_v26 = vpop.f32.mrb[90].mxu1 }
 0xf0f   :  { %v4997_v49 = vadd.f32 %v10654_v19, %v4912_v42  ;;  %v10613_v14 = vadd.f32 %v10612_v50, %v10611_v15  ;;  %v10656_v32 = vpop.f32.mrb[91].mxu1  ;;  %13710 = vtanh.f32 %v5026_v8  ;;  %v20339_v50 = vld [vmem:[#allocation76_spill] sm:$0xff] }
 0xf10   :  { %v10657_v28 = vadd.f32 %v10656_v32, %v10655_v26  ;;  %v20340_v26 = vld [vmem:[#allocation23_spill] sm:$0xff]  ;;  %v20343_v32 = vld [vmem:[#allocation78_spill] sm:$0xff] }
 0xf11   :  { %v5027_v35 = vadd.f32 %v5016_v41, %v4997_v49  ;;  %v4917_v58 = vadd.f32 %v10613_v14, %v4832_v60  ;;  %v10614_v1 = vpop.f32.mrb[86].mxu0  ;;  %v20341_v49 = vld [vmem:[#allocation77_spill] sm:$0xff]  ;;  %v20342_v14 = vld [vmem:[#allocation24_spill] sm:$0xff] }
 0xf12   :  { %v10615_v33 = vpop.f32.mrb[87].mxu0  ;;  %v10658_v31 = vpop.f32.mrb[92].mxu1 }
 0xf13   :  { %13712 = vtanh.f32 %v5027_v35  ;;  %v5002_v45 = vadd.f32 %v10657_v28, %v4917_v58  ;;  %v10616_v53 = vadd.f32 %v10615_v33, %v10614_v1  ;;  %v10659_v48 = vpop.f32.mrb[93].mxu1  ;;  %v20344_v28 = vld [vmem:[#allocation25_spill] sm:$0xff]  ;;  %v20346_v35 = vld [vmem:[#allocation26_spill] sm:$0xff]  ;;  %v20347_v58 = vld [vmem:[#allocation80_spill] sm:$0xff] }
 0xf14   :  { %v10660_v43 = vadd.f32 %v10659_v48, %v10658_v31  ;;  %v20348_v1 = vld [vmem:[#allocation27_spill] sm:$0xff]  ;;  %v20349_v33 = vld [vmem:[#allocation81_spill] sm:$0xff]  ;;  %v20350_v31 = vld [vmem:[#allocation28_spill] sm:$0xff] }
 0xf15   :  { %v4922_v37 = vadd.f32 %v10616_v53, %v4837_v46  ;;  %v5028_v54 = vadd.f32 %v5020_v11, %v5002_v45  ;;  %v13822_v46 = vld [vmem:[%s19777_s19] sm:$0x1]  ;;  %v20351_v45 = vld [vmem:[#allocation82_spill] sm:$0xff]  ;;  %v20352_v53 = vld [vmem:[#allocation29_spill] sm:$0xff] }
 0xf16   :  { %v20345_v11 = vld [vmem:[#allocation79_spill] sm:$0xff] }
 0xf17   :  { %v5007_v6 = vadd.f32 %v10660_v43, %v4922_v37  ;;  %13714 = vtanh.f32 %v5028_v54  ;;  %v20353_v48 = vld [vmem:[#allocation83_spill] sm:$0xff]  ;;  %v20354_v43 = vld [vmem:[#allocation30_spill] sm:$0xff]  ;;  %v20355_v37 = vld [vmem:[#allocation84_spill] sm:$0xff] }
 0xf18   :  { %v20356_v54 = vld [vmem:[#allocation31_spill] sm:$0xff] }
 0xf19   :  { %v5029_v19 = vadd.f32 %v5024_v0, %v5007_v6  ;;  %v13711_v7 = vpop.eup %13710  ;;  %v20357_v6 = vld [vmem:[#allocation85_spill] sm:$0xff]  ;;  %v20358_v0 = vld [vmem:[#allocation32_spill] sm:$0xff] }
 0xf1b   :  { %13716 = vtanh.f32 %v5029_v19  ;;  %v20359_v19 = vld [vmem:[#allocation86_spill] sm:$0xff] }
 0xf1d   :  { %v13713_v42 = vpop.eup %13712 }
 0xf1e   :  { %v12723_v41 = vpack.c.bf16 %v13713_v42, %v13711_v7  ;;  %v20360_v7 = vld [vmem:[#allocation33_spill] sm:$0xff]  ;;  %v20361_v42 = vld [vmem:[#allocation87_spill] sm:$0xff] }
 0xf20   :  { %12724 = vmatpush3.bf16.msra.mxu0 %v12723_v41  ;;  %v20362_v41 = vld [vmem:[#allocation34_spill] sm:$0xff] }
 0xf21   :  { %12725 = vmatprep.subr.bf16.mxu0 %v20055_v4  ;;  %v13715_v60 = vpop.eup %13714 }
 0xf25   :  { %v13717_v15 = vpop.eup %13716 }
 0xf26   :  { %v12726_v8 = vpack.c.bf16 %v13717_v15, %v13715_v60  ;;  %v20363_v60 = vld [vmem:[#allocation88_spill] sm:$0xff]  ;;  %v20364_v15 = vld [vmem:[#allocation35_spill] sm:$0xff] }
 0xf28   :  { %12727 = vmatpush3.bf16.msra.mxu0 %v12726_v8  ;;  %v20365_v8 = vld [vmem:[#allocation89_spill] sm:$0xff] }
 0xf29   :  { %12778 = vmatprep.subr.msk.bf16.mxu0 %vm15708_vm11, %v16140_v24 }
 0xf2b   :  { %11689 = vmatmul.mubr.msk.f32.vlgmr.msra.gmra.mrb[88].mxu0 %vm122_vm1, %v13822_v46  ;;  %v20366_v46 = vld [vmem:[#allocation36_spill] sm:$0xff] }
 0xf31   :  { %12781 = vmatpush3.bf16.xpose.msk.msra.mxu0 %vm15708_vm11, %v16176_v55 }
 0xf32   :  { %12784 = vmatprep.subr.msk.bf16.mxu0 %vm15708_vm11, %v16189_v10 }
 0xf39   :  { %12787 = vmatpush3.bf16.xpose.msk.msra.mxu0 %vm15708_vm11, %v16215_v12 }
 0xf3a   :  { %12790 = vmatprep.subr.msk.bf16.mxu0 %vm15708_vm11, %v16229_v27 }
 0xf41   :  { %12793 = vmatpush3.bf16.xpose.msk.msra.mxu0 %vm15708_vm11, %v16257_v5 }
 0xf42   :  { %12796 = vmatprep.subr.msk.bf16.mxu0 %vm15708_vm11, %v16271_v25 }
 0xf49   :  { %12799 = vmatpush3.bf16.xpose.msk.msra.mxu0 %vm15708_vm11, %v16293_v29 }
 0xf4a   :  { %12802 = vmatprep.subr.msk.bf16.mxu0 %vm15708_vm11, %v16307_v44 }
 0xf51   :  { %12805 = vmatpush3.bf16.xpose.msk.msra.mxu0 %vm15708_vm11, %v16329_v62 }
 0xf52   :  { %12808 = vmatprep.subr.msk.bf16.mxu0 %vm15708_vm11, %v16343_v38 }
 0xf59   :  { %12811 = vmatpush3.bf16.xpose.msk.msra.mxu0 %vm15708_vm11, %v16365_v34 }
 0xf5a   :  { %12814 = vmatprep.subr.msk.bf16.mxu0 %vm15708_vm11, %v16383_v23  ;;  %v20324_v23 = vld [vmem:[#allocation70_spill] sm:$0xff] }
 0xf61   :  { %12817 = vmatpush3.bf16.xpose.msk.msra.mxu0 %vm15708_vm11, %v16409_v9  ;;  %v20325_v9 = vld [vmem:[#allocation17_spill] sm:$0xff] }
 0xf62   :  { %12820 = vmatprep.subr.msk.bf16.mxu0 %vm15708_vm11, %v16423_v52  ;;  %v20326_v52 = vld [vmem:[#allocation71_spill] sm:$0xff] }
 0xf69   :  { %12823 = vmatpush3.bf16.xpose.msk.msra.mxu0 %vm15708_vm11, %v16445_v51  ;;  %v20327_v51 = vld [vmem:[#allocation65_spill] sm:$0xff] }
 0xf6a   :  { %12874 = vmatprep.subr.msk.bf16.mxu0 %vm15708_vm11, %v16456_v36  ;;  %v20328_v36 = vld [vmem:[#allocation67_spill] sm:$0xff] }
 0xffe   :  { %v5100_v24 = vpop.f32.mrb[88].mxu0 }
 0xfff   :  { %v5101_v55 = vadd.f32 %v5100_v24, %v15701_v40  ;;  %v11690_v10 = vpop.f32.mrb[89].mxu0  ;;  %v20323_v40 = vld [vmem:[#allocation16_spill] sm:$0xff]  ;;  %v20367_v24 = vld [vmem:[#allocation90_spill] sm:$0xff] }
0x1000   :  { %v20369_v10 = vld [vmem:[#allocation93_spill] sm:$0xff] }
0x1001   :  { %v5104_v12 = vsel %vm2720_vm9, %v5101_v55, -inf }
0x1002   :  { %5105 = vmax.xlane.f32.xlu1 %v5104_v12  ;;  %v20370_v12 = vld [vmem:[#allocation40_spill] sm:$0xff] }
0x108f   :  { %v5106_v27 = vpop.xlane.xlu1 %5105 }
0x1090   :  { %v5107_v5 = vsub.f32 %v5101_v55, %v5106_v27  ;;  %v20368_v55 = vld [vmem:[#allocation38_spill] sm:$0xff] }
0x1091   :  { %v20371_v27 = vld [vmem:[#allocation94_spill] sm:$0xff] }
0x1092   :  { %v5108_v25 = vmul.f32 1.442695, %v5107_v5  ;;  %v20372_v5 = vld [vmem:[#allocation41_spill] sm:$0xff] }
0x1094   :  { %13718 = vpow2.f32 %v5108_v25  ;;  %v20373_v25 = vld [vmem:[#allocation95_spill] sm:$0xff] }
0x109e   :  { %v13719_v29 = vpop.eup %13718 }
0x109f   :  { %v5110_v44 = vsel %vm2720_vm9, %v13719_v29, 0.0 }
0x10a0   :  { %5111 = vadd.xlane.f32.xlu0 %v5110_v44  ;;  %v20375_v44 = vld [vmem:[#allocation96_spill] sm:$0xff] }
0x112d   :  { %v5112_v62 = vpop.xlane.xlu0 %5111 }
0x112e   :  { %13720 = vrcp.f32 %v5112_v62  ;;  %v20376_v62 = vld [vmem:[#allocation43_spill] sm:$0xff] }
0x1138   :  { %v13721_v38 = vpop.eup %13720 }
0x1139   :  { %v17629_v34 = vmul.f32 %v13721_v38, %v13719_v29  ;;  %v20374_v29 = vld [vmem:[#allocation42_spill] sm:$0xff]  ;;  %v20377_v38 = vld [vmem:[#allocation97_spill] sm:$0xff] }
0x113b   :  { %5115 = vst.msk [vmem:[#allocation7 + $0x1] sm:$0x1] %vm2720_vm9, %v17629_v34  ;;  %10698 = vmatprep.mubr.msk.f32.mxu1 %vm2733_vm10, %v17629_v34  ;;  %10732 = vmatprep.mubr.msk.f32.mxu0 %vm2733_vm10, %v17629_v34 }
0x113c   :  { %10699 = vmatmul.mubr.msk.f32.vlgmr.msra.gmra.mrb[94].mxu1 %vm2733_vm10, %v17629_v34  ;;  %10733 = vmatmul.mubr.msk.f32.vlgmr.msra.gmra.mrb[90].mxu0 %vm2733_vm10, %v17629_v34 }
0x113d   :  { %12829 = vmatpush3.bf16.xpose.msk.msra.mxu1 %vm15708_vm11, %v16471_v3  ;;  %12877 = vmatpush3.bf16.xpose.msk.msra.mxu0 %vm15708_vm11, %v16481_v21  ;;  %v20329_v3 = vld [vmem:[#allocation66_spill] sm:$0xff] }
0x113e   :  { %10766 = vmatprep.mubr.msk.f32.mxu1 %vm2733_vm10, %v17629_v34  ;;  %10800 = vmatprep.mubr.msk.f32.mxu0 %vm2733_vm10, %v17629_v34  ;;  %v20330_v21 = vld [vmem:[#allocation18_spill] sm:$0xff] }
0x113f   :  { %12832 = vmatprep.subr.msk.bf16.mxu1 %vm15708_vm11, %v16490_v17  ;;  %12880 = vmatprep.subr.msk.bf16.mxu0 %vm15708_vm11, %v16501_v22  ;;  %v20331_v17 = vld [vmem:[#allocation72_spill] sm:$0xff]  ;;  %v20332_v22 = vld [vmem:[#allocation19_spill] sm:$0xff] }
0x1145   :  { %12835 = vmatpush3.bf16.xpose.msk.msra.mxu1 %vm15708_vm11, %v16513_v18  ;;  %12883 = vmatpush3.bf16.xpose.msk.msra.mxu0 %vm15708_vm11, %v16525_v30  ;;  %v20333_v18 = vld [vmem:[#allocation73_spill] sm:$0xff]  ;;  %v20334_v30 = vld [vmem:[#allocation20_spill] sm:$0xff] }
0x1146   :  { %12838 = vmatprep.subr.msk.bf16.mxu1 %vm15708_vm11, %v16537_v2  ;;  %12886 = vmatprep.subr.msk.bf16.mxu0 %vm15708_vm11, %v16549_v13  ;;  %v20335_v2 = vld [vmem:[#allocation74_spill] sm:$0xff]  ;;  %v20336_v13 = vld [vmem:[#allocation21_spill] sm:$0xff] }
0x114d   :  { %12841 = vmatpush3.bf16.xpose.msk.msra.mxu1 %vm15708_vm11, %v16561_v63  ;;  %12889 = vmatpush3.bf16.xpose.msk.msra.mxu0 %vm15708_vm11, %v16573_v57  ;;  %v20337_v63 = vld [vmem:[#allocation75_spill] sm:$0xff]  ;;  %v20338_v57 = vld [vmem:[#allocation22_spill] sm:$0xff] }
0x114e   :  { %12844 = vmatprep.subr.msk.bf16.mxu1 %vm15708_vm11, %v20323_v40  ;;  %12892 = vmatprep.subr.msk.bf16.mxu0 %vm15708_vm11, %v20324_v23  ;;  %v20378_v40 = vld [vmem:[#allocation44_spill] sm:$0xff]  ;;  %v20379_v23 = vld [vmem:[#allocation98_spill] sm:$0xff] }
0x1155   :  { %12847 = vmatpush3.bf16.xpose.msk.msra.mxu1 %vm15708_vm11, %v20325_v9  ;;  %12895 = vmatpush3.bf16.xpose.msk.msra.mxu0 %vm15708_vm11, %v20326_v52  ;;  %v20380_v9 = vld [vmem:[#allocation45_spill] sm:$0xff]  ;;  %v20381_v52 = vld [vmem:[#allocation99_spill] sm:$0xff] }
0x1156   :  { %12850 = vmatprep.subr.msk.bf16.mxu1 %vm15708_vm11, %v20327_v51  ;;  %12898 = vmatprep.subr.msk.bf16.mxu0 %vm15708_vm11, %v20328_v36  ;;  %v20382_v51 = vld [vmem:[#allocation46_spill] sm:$0xff]  ;;  %v20383_v36 = vld [vmem:[#allocation100_spill] sm:$0xff] }
0x115d   :  { %12853 = vmatpush3.bf16.xpose.msk.msra.mxu1 %vm15708_vm11, %v20329_v3  ;;  %12901 = vmatpush3.bf16.xpose.msk.msra.mxu0 %vm15708_vm11, %v20330_v21  ;;  %v20384_v3 = vld [vmem:[#allocation47_spill] sm:$0xff]  ;;  %v20385_v21 = vld [vmem:[#allocation101_spill] sm:$0xff] }
0x115e   :  { %12856 = vmatprep.subr.msk.bf16.mxu1 %vm15708_vm11, %v20331_v17  ;;  %12904 = vmatprep.subr.msk.bf16.mxu0 %vm15708_vm11, %v20332_v22  ;;  %v20386_v17 = vld [vmem:[#allocation48_spill] sm:$0xff]  ;;  %v20387_v22 = vld [vmem:[#allocation102_spill] sm:$0xff] }
0x1165   :  { %12859 = vmatpush3.bf16.xpose.msk.msra.mxu1 %vm15708_vm11, %v20333_v18  ;;  %12907 = vmatpush3.bf16.xpose.msk.msra.mxu0 %vm15708_vm11, %v20334_v30  ;;  %v20388_v18 = vld [vmem:[#allocation49_spill] sm:$0xff]  ;;  %v20389_v30 = vld [vmem:[#allocation103_spill] sm:$0xff] }
0x1166   :  { %12862 = vmatprep.subr.msk.bf16.mxu1 %vm15708_vm11, %v20335_v2  ;;  %12910 = vmatprep.subr.msk.bf16.mxu0 %vm15708_vm11, %v20336_v13  ;;  %v20390_v2 = vld [vmem:[#allocation50_spill] sm:$0xff]  ;;  %v20391_v13 = vld [vmem:[#allocation104_spill] sm:$0xff] }
0x116d   :  { %12865 = vmatpush3.bf16.xpose.msk.msra.mxu1 %vm15708_vm11, %v20337_v63  ;;  %12913 = vmatpush3.bf16.xpose.msk.msra.mxu0 %vm15708_vm11, %v20338_v57  ;;  %v20392_v63 = vld [vmem:[#allocation51_spill] sm:$0xff]  ;;  %v20393_v57 = vld [vmem:[#allocation105_spill] sm:$0xff] }
0x116e   :  { %12868 = vmatprep.subr.msk.bf16.mxu1 %vm15708_vm11, %v20339_v50  ;;  %12916 = vmatprep.subr.msk.bf16.mxu0 %vm15708_vm11, %v20340_v26  ;;  %v20394_v50 = vld [vmem:[#allocation52_spill] sm:$0xff]  ;;  %v20395_v26 = vld [vmem:[#allocation106_spill] sm:$0xff] }
0x1175   :  { %12871 = vmatpush3.bf16.xpose.msk.msra.mxu1 %vm15708_vm11, %v20341_v49  ;;  %12919 = vmatpush3.bf16.xpose.msk.msra.mxu0 %vm15708_vm11, %v20342_v14  ;;  %v20396_v49 = vld [vmem:[#allocation53_spill] sm:$0xff] }
0x1176   :  { %12922 = vmatprep.subr.msk.bf16.mxu1 %vm15708_vm11, %v20343_v32  ;;  %12970 = vmatprep.subr.msk.bf16.mxu0 %vm15708_vm11, %v20344_v28  ;;  %v20399_v28 = vld [vmem:[#allocation108_spill] sm:$0xff] }
0x117c   :  { %10767 = vmatmul.mubr.msk.f32.vlgmr.msra.gmra.mrb[96].mxu1 %vm2733_vm10, %v17629_v34  ;;  %10801 = vmatmul.mubr.msk.f32.vlgmr.msra.gmra.mrb[92].mxu0 %vm2733_vm10, %v17629_v34 }
0x117d   :  { %12925 = vmatpush3.bf16.xpose.msk.msra.mxu1 %vm15708_vm11, %v20345_v11  ;;  %10834 = vmatprep.mubr.msk.f32.mxu1 %vm2733_vm10, %v17629_v34  ;;  %v20400_v11 = vld [vmem:[#allocation55_spill] sm:$0xff] }
0x117e   :  { %12973 = vmatpush3.bf16.xpose.msk.msra.mxu0 %vm15708_vm11, %v20346_v35  ;;  %10868 = vmatprep.mubr.msk.f32.mxu0 %vm2733_vm10, %v17629_v34  ;;  %v6535_v35 = vld [vmem:[%s19773_s15] sm:$0xff] }
0x117f   :  { %12928 = vmatprep.subr.msk.bf16.mxu1 %vm15708_vm11, %v20347_v58  ;;  %12976 = vmatprep.subr.msk.bf16.mxu0 %vm15708_vm11, %v20348_v1  ;;  %v6536_v58 = vld [vmem:[%s19773_s15 + $0x8] sm:$0xff]  ;;  %v6567_v1 = vld [vmem:[%s19773_s15 + $0x100] sm:$0xff] }
0x1185   :  { %12931 = vmatpush3.bf16.xpose.msk.msra.mxu1 %vm15708_vm11, %v20349_v33  ;;  %v6568_v33 = vld [vmem:[%s19773_s15 + $0x108] sm:$0xff] }
0x1186   :  { %12979 = vmatpush3.bf16.xpose.msk.msra.mxu0 %vm15708_vm11, %v20350_v31  ;;  %12934 = vmatprep.subr.msk.bf16.mxu1 %vm15708_vm11, %v20351_v45  ;;  %v6554_v31 = vld [vmem:[%s19773_s15 + $0x98] sm:$0xff]  ;;  %v6585_v45 = vld [vmem:[%s19773_s15 + $0x190] sm:$0xff] }
0x1187   :  { %12982 = vmatprep.subr.msk.bf16.mxu0 %vm15708_vm11, %v20352_v53  ;;  %v6586_v53 = vld [vmem:[%s19773_s15 + $0x198] sm:$0xff] }
0x118d   :  { %12937 = vmatpush3.bf16.xpose.msk.msra.mxu1 %vm15708_vm11, %v20353_v48  ;;  %v13114_v48 = vpack.c.bf16 %v6536_v58, %v6535_v35  ;;  %v6578_v35 = vld [vmem:[%s19773_s15 + $0x158] sm:$0xff]  ;;  %v6563_v58 = vld [vmem:[%s19773_s15 + $0xe0] sm:$0xff] }
0x118e   :  { %12985 = vmatpush3.bf16.xpose.msk.msra.mxu0 %vm15708_vm11, %v20354_v43  ;;  %12940 = vmatprep.subr.msk.bf16.mxu1 %vm15708_vm11, %v20355_v37  ;;  %v13146_v43 = vpack.c.bf16 %v6568_v33, %v6567_v1  ;;  %v13116_v37 = vpack.c.bf16 %v6554_v31, %v6553_v16  ;;  %v6564_v1 = vld [vmem:[%s19773_s15 + $0xe8] sm:$0xff]  ;;  %v6595_v33 = vld [vmem:[%s19773_s15 + $0x1e0] sm:$0xff] }
0x118f   :  { %12988 = vmatprep.subr.msk.bf16.mxu0 %vm15708_vm11, %v20356_v54  ;;  %v6537_v54 = vld [vmem:[%s19773_s15 + $0x10] sm:$0xff]  ;;  %v6596_v16 = vld [vmem:[%s19773_s15 + $0x1e8] sm:$0xff] }
0x1195   :  { %12943 = vmatpush3.bf16.xpose.msk.msra.mxu1 %vm15708_vm11, %v20357_v6  ;;  %v6538_v6 = vld [vmem:[%s19773_s15 + $0x18] sm:$0xff] }
0x1196   :  { %12991 = vmatpush3.bf16.xpose.msk.msra.mxu0 %vm15708_vm11, %v20358_v0  ;;  %12946 = vmatprep.subr.msk.bf16.mxu1 %vm15708_vm11, %v20359_v19  ;;  %v6569_v0 = vld [vmem:[%s19773_s15 + $0x110] sm:$0xff]  ;;  %v13148_v19 = vpack.c.bf16 %v6586_v53, %v6585_v45  ;;  %v6547_v45 = vld [vmem:[%s19773_s15 + $0x60] sm:$0xff] }
0x1197   :  { %12994 = vmatprep.subr.msk.bf16.mxu0 %vm15708_vm11, %v20360_v7  ;;  %v6570_v7 = vld [vmem:[%s19773_s15 + $0x118] sm:$0xff] }
0x119d   :  { %12949 = vmatpush3.bf16.xpose.msk.msra.mxu1 %vm15708_vm11, %v20361_v42  ;;  %v6555_v42 = vld [vmem:[%s19773_s15 + $0xa0] sm:$0xff] }
0x119e   :  { %12997 = vmatpush3.bf16.xpose.msk.msra.mxu0 %vm15708_vm11, %v20362_v41  ;;  %12952 = vmatprep.subr.msk.bf16.mxu1 %vm15708_vm11, %v20363_v60  ;;  %v6556_v41 = vld [vmem:[%s19773_s15 + $0xa8] sm:$0xff]  ;;  %v6587_v60 = vld [vmem:[%s19773_s15 + $0x1a0] sm:$0xff] }
0x119f   :  { %13000 = vmatprep.subr.msk.bf16.mxu0 %vm15708_vm11, %v20364_v15  ;;  %v6588_v15 = vld [vmem:[%s19773_s15 + $0x1a8] sm:$0xff] }
0x11a5   :  { %12955 = vmatpush3.bf16.xpose.msk.msra.mxu1 %vm15708_vm11, %v20365_v8  ;;  %v13118_v8 = vpack.c.bf16 %v6538_v6, %v6537_v54  ;;  %v6580_v54 = vld [vmem:[%s19773_s15 + $0x168] sm:$0xff] }
0x11a6   :  { %13003 = vmatpush3.bf16.xpose.msk.msra.mxu0 %vm15708_vm11, %v20366_v46  ;;  %12958 = vmatprep.subr.msk.bf16.mxu1 %vm15708_vm11, %v20367_v24  ;;  %v13150_v46 = vpack.c.bf16 %v6570_v7, %v6569_v0  ;;  %v13120_v24 = vpack.c.bf16 %v6556_v41, %v6555_v42  ;;  %v6565_v7 = vld [vmem:[%s19773_s15 + $0xf0] sm:$0xff]  ;;  %v6566_v42 = vld [vmem:[%s19773_s15 + $0xf8] sm:$0xff] }
0x11a7   :  { %13006 = vmatprep.subr.msk.bf16.mxu0 %vm15708_vm11, %v20368_v55  ;;  %v6539_v55 = vld [vmem:[%s19773_s15 + $0x20] sm:$0xff] }
0x11ad   :  { %12961 = vmatpush3.bf16.xpose.msk.msra.mxu1 %vm15708_vm11, %v20369_v10  ;;  %v6540_v10 = vld [vmem:[%s19773_s15 + $0x28] sm:$0xff] }
0x11ae   :  { %13009 = vmatpush3.bf16.xpose.msk.msra.mxu0 %vm15708_vm11, %v20370_v12  ;;  %12964 = vmatprep.subr.msk.bf16.mxu1 %vm15708_vm11, %v20371_v27  ;;  %v6571_v12 = vld [vmem:[%s19773_s15 + $0x120] sm:$0xff]  ;;  %v6572_v27 = vld [vmem:[%s19773_s15 + $0x128] sm:$0xff] }
0x11af   :  { %13012 = vmatprep.subr.msk.bf16.mxu0 %vm15708_vm11, %v20372_v5  ;;  %v6557_v5 = vld [vmem:[%s19773_s15 + $0xb0] sm:$0xff] }
0x11b5   :  { %12967 = vmatpush3.bf16.xpose.msk.msra.mxu1 %vm15708_vm11, %v20373_v25  ;;  %v6558_v25 = vld [vmem:[%s19773_s15 + $0xb8] sm:$0xff] }
0x11b6   :  { %13015 = vmatpush3.bf16.xpose.msk.msra.mxu0 %vm15708_vm11, %v20374_v29  ;;  %13018 = vmatprep.subr.msk.bf16.mxu1 %vm15708_vm11, %v20375_v44  ;;  %v6589_v29 = vld [vmem:[%s19773_s15 + $0x1b0] sm:$0xff]  ;;  %v6590_v44 = vld [vmem:[%s19773_s15 + $0x1b8] sm:$0xff] }
0x11b7   :  { %13066 = vmatprep.subr.msk.bf16.mxu0 %vm15708_vm11, %v20376_v62  ;;  %v13122_v62 = vpack.c.bf16 %v6540_v10, %v6539_v55 }
0x11bc   :  { %10835 = vmatmul.mubr.msk.f32.vlgmr.msra.gmra.mrb[98].mxu1 %vm2733_vm10, %v17629_v34 }
0x11bd   :  { %10869 = vmatmul.mubr.msk.f32.vlgmr.msra.gmra.mrb[94].mxu0 %vm2733_vm10, %v17629_v34  ;;  %13021 = vmatpush3.bf16.xpose.msk.msra.mxu1 %vm15708_vm11, %v20377_v38  ;;  %v13154_v38 = vpack.c.bf16 %v6572_v27, %v6571_v12  ;;  %v20401_v27 = vld [vmem:[#allocation14_spill] sm:$0xff] }
0x11be   :  { %10902 = vmatprep.mubr.msk.f32.mxu1 %vm2733_vm10, %v17629_v34  ;;  %13069 = vmatpush3.bf16.xpose.msk.msra.mxu0 %vm15708_vm11, %v20378_v40  ;;  %v13124_v40 = vpack.c.bf16 %v6558_v25, %v6557_v5  ;;  %v20402_v25 = vld [vmem:[#allocation68_spill] sm:$0xff] }
0x11bf   :  { %10936 = vmatprep.mubr.msk.f32.mxu0 %vm2733_vm10, %v17629_v34  ;;  %13024 = vmatprep.subr.msk.bf16.mxu1 %vm15708_vm11, %v20379_v23  ;;  %v6541_v23 = vld [vmem:[%s19773_s15 + $0x30] sm:$0xff] }
0x11c0   :  { %13072 = vmatprep.subr.msk.bf16.mxu0 %vm15708_vm11, %v20380_v9  ;;  %v6542_v9 = vld [vmem:[%s19773_s15 + $0x38] sm:$0xff] }
0x11c5   :  { %13027 = vmatpush3.bf16.xpose.msk.msra.mxu1 %vm15708_vm11, %v20381_v52  ;;  %v6573_v52 = vld [vmem:[%s19773_s15 + $0x130] sm:$0xff] }
0x11c6   :  { %13075 = vmatpush3.bf16.xpose.msk.msra.mxu0 %vm15708_vm11, %v20382_v51  ;;  %13030 = vmatprep.subr.msk.bf16.mxu1 %vm15708_vm11, %v20383_v36  ;;  %v13156_v51 = vpack.c.bf16 %v6590_v44, %v6589_v29  ;;  %v6574_v36 = vld [vmem:[%s19773_s15 + $0x138] sm:$0xff]  ;;  %v13140_v44 = vpack.c.bf16 %v6566_v42, %v6565_v7  ;;  %v6635_v7 = vld [vmem:[%s19773_s15 + $0x320] sm:$0xff] }
0x11c7   :  { %13078 = vmatprep.subr.msk.bf16.mxu0 %vm15708_vm11, %v20384_v3  ;;  %v6559_v3 = vld [vmem:[%s19773_s15 + $0xc0] sm:$0xff] }
0x11cd   :  { %13033 = vmatpush3.bf16.xpose.msk.msra.mxu1 %vm15708_vm11, %v20385_v21  ;;  %v6560_v21 = vld [vmem:[%s19773_s15 + $0xc8] sm:$0xff] }
0x11ce   :  { %13081 = vmatpush3.bf16.xpose.msk.msra.mxu0 %vm15708_vm11, %v20386_v17  ;;  %13036 = vmatprep.subr.msk.bf16.mxu1 %vm15708_vm11, %v20387_v22  ;;  %v6591_v17 = vld [vmem:[%s19773_s15 + $0x1c0] sm:$0xff]  ;;  %v6592_v22 = vld [vmem:[%s19773_s15 + $0x1c8] sm:$0xff] }
0x11cf   :  { %13084 = vmatprep.subr.msk.bf16.mxu0 %vm15708_vm11, %v20388_v18  ;;  %v13126_v18 = vpack.c.bf16 %v6542_v9, %v6541_v23  ;;  %v20403_v23 = vld [vmem:[#allocation15_spill] sm:$0xff] }
0x11d5   :  { %13039 = vmatpush3.bf16.xpose.msk.msra.mxu1 %vm15708_vm11, %v20389_v30  ;;  %v13158_v30 = vpack.c.bf16 %v6574_v36, %v6573_v52  ;;  %v20404_v52 = vld [vmem:[#allocation69_spill] sm:$0xff] }
0x11d6   :  { %13087 = vmatpush3.bf16.xpose.msk.msra.mxu0 %vm15708_vm11, %v20390_v2  ;;  %13042 = vmatprep.subr.msk.bf16.mxu1 %vm15708_vm11, %v20391_v13  ;;  %v13128_v2 = vpack.c.bf16 %v6560_v21, %v6559_v3  ;;  %v6543_v13 = vld [vmem:[%s19773_s15 + $0x40] sm:$0xff]  ;;  %v6582_v3 = vld [vmem:[%s19773_s15 + $0x178] sm:$0xff] }
0x11d7   :  { %13090 = vmatprep.subr.msk.bf16.mxu0 %vm15708_vm11, %v20392_v63  ;;  %v6544_v63 = vld [vmem:[%s19773_s15 + $0x48] sm:$0xff]  ;;  %v6615_v21 = vld [vmem:[%s19773_s15 + $0x280] sm:$0xff] }
0x11dd   :  { %13045 = vmatpush3.bf16.xpose.msk.msra.mxu1 %vm15708_vm11, %v20393_v57  ;;  %v6575_v57 = vld [vmem:[%s19773_s15 + $0x140] sm:$0xff] }
0x11de   :  { %13093 = vmatpush3.bf16.xpose.msk.msra.mxu0 %vm15708_vm11, %v20394_v50  ;;  %13048 = vmatprep.subr.msk.bf16.mxu1 %vm15708_vm11, %v20395_v26  ;;  %v13160_v50 = vpack.c.bf16 %v6592_v22, %v6591_v17  ;;  %v6576_v26 = vld [vmem:[%s19773_s15 + $0x148] sm:$0xff]  ;;  %v6647_v22 = vld [vmem:[%s19773_s15 + $0x380] sm:$0xff] }
0x11df   :  { %13096 = vmatprep.subr.msk.bf16.mxu0 %vm15708_vm11, %v20396_v49  ;;  %v6561_v49 = vld [vmem:[%s19773_s15 + $0xd0] sm:$0xff]  ;;  %v6616_v17 = vld [vmem:[%s19773_s15 + $0x288] sm:$0xff] }
0x11e5   :  { %13051 = vmatpush3.bf16.xpose.msk.msra.mxu1 %vm15708_vm11, %v17385_v61  ;;  %v20397_v61 = vld [vmem:[#allocation107_spill] sm:$0xff] }
0x11e6   :  { %13099 = vmatpush3.bf16.xpose.msk.msra.mxu0 %vm15708_vm11, %v17389_v47  ;;  %13054 = vmatprep.subr.msk.bf16.mxu1 %vm15708_vm11, %v17391_v39  ;;  %v20398_v47 = vld [vmem:[#allocation54_spill] sm:$0xff]  ;;  %v6551_v39 = vld [vmem:[%s19773_s15 + $0x80] sm:$0xff] }
0x11e7   :  { %13102 = vmatprep.subr.msk.bf16.mxu0 %vm15708_vm11, %v17403_v59  ;;  %v6552_v59 = vld [vmem:[%s19773_s15 + $0x88] sm:$0xff] }
0x11e8   :  { %v13112_v14 = vpack.c.bf16 %v6552_v59, %v6551_v39  ;;  %v6594_v39 = vld [vmem:[%s19773_s15 + $0x1d8] sm:$0xff]  ;;  %v13130_v59 = vpack.c.bf16 %v6544_v63, %v6543_v13  ;;  %v13176_v13 = vpack.c.bf16 %v6616_v17, %v6615_v21  ;;  %v6607_v21 = vld [vmem:[%s19773_s15 + $0x240] sm:$0xff]  ;;  %v6608_v17 = vld [vmem:[%s19773_s15 + $0x248] sm:$0xff] }
0x11ed   :  { %13057 = vmatpush3.bf16.xpose.msk.msra.mxu1 %vm15708_vm11, %v17421_v56  ;;  %v6584_v56 = vld [vmem:[%s19773_s15 + $0x188] sm:$0xff] }
0x11ee   :  { %13105 = vmatpush3.bf16.xpose.msk.msra.mxu0 %vm15708_vm11, %v17425_v20  ;;  %13060 = vmatprep.subr.msk.bf16.mxu1 %vm15708_vm11, %v20397_v61  ;;  %v6583_v20 = vld [vmem:[%s19773_s15 + $0x180] sm:$0xff]  ;;  %v6562_v61 = vld [vmem:[%s19773_s15 + $0xd8] sm:$0xff] }
0x11ef   :  { %13108 = vmatprep.subr.msk.bf16.mxu0 %vm15708_vm11, %v20398_v47  ;;  %v13144_v32 = vpack.c.bf16 %v6584_v56, %v6583_v20  ;;  %v6593_v47 = vld [vmem:[%s19773_s15 + $0x1d0] sm:$0xff]  ;;  %v13162_v20 = vpack.c.bf16 %v6576_v26, %v6575_v57  ;;  %v13132_v56 = vpack.c.bf16 %v6562_v61, %v6561_v49  ;;  %v6599_v57 = vld [vmem:[%s19773_s15 + $0x200] sm:$0xff]  ;;  %v6632_v49 = vld [vmem:[%s19773_s15 + $0x308] sm:$0xff] }
0x11f0   :  { %v6631_v26 = vld [vmem:[%s19773_s15 + $0x300] sm:$0xff]  ;;  %v6617_v61 = vld [vmem:[%s19773_s15 + $0x290] sm:$0xff] }
0x11f5   :  { %13063 = vmatpush3.bf16.xpose.msk.msra.mxu1 %vm15708_vm11, %v20399_v28  ;;  %v6577_v28 = vld [vmem:[%s19773_s15 + $0x150] sm:$0xff] }
0x11f6   :  { %13111 = vmatpush3.bf16.xpose.msk.msra.mxu0 %vm15708_vm11, %v20400_v11  ;;  %13113 = vmatprep.subr.bf16.mxu1 %v13112_v14  ;;  %v6545_v14 = vld [vmem:[%s19773_s15 + $0x50] sm:$0xff]  ;;  %v13164_v11 = vpack.c.bf16 %v6594_v39, %v6593_v47  ;;  %v13166_v53 = vpack.c.bf16 %v6578_v35, %v6577_v28  ;;  %v6618_v47 = vld [vmem:[%s19773_s15 + $0x298] sm:$0xff] }
0x11f7   :  { %13145 = vmatprep.subr.bf16.mxu0 %v13144_v32  ;;  %v6546_v32 = vld [vmem:[%s19773_s15 + $0x58] sm:$0xff]  ;;  %v6649_v39 = vld [vmem:[%s19773_s15 + $0x390] sm:$0xff]  ;;  %v13180_v28 = vpack.c.bf16 %v6618_v47, %v6617_v61 }
0x11f8   :  { %v13134_v31 = vpack.c.bf16 %v6546_v32, %v6545_v14  ;;  %v13210_v32 = vpack.c.bf16 %v6632_v49, %v6631_v26  ;;  %v6602_v35 = vld [vmem:[%s19773_s15 + $0x218] sm:$0xff]  ;;  %v6609_v61 = vld [vmem:[%s19773_s15 + $0x250] sm:$0xff] }
0x11f9   :  { %v6610_v47 = vld [vmem:[%s19773_s15 + $0x258] sm:$0xff] }
0x11fc   :  { %10903 = vmatmul.mubr.msk.f32.vlgmr.msra.gmra.mrb[100].mxu1 %vm2733_vm10, %v17629_v34 }
0x11fd   :  { %10937 = vmatmul.mubr.msk.f32.vlgmr.msra.gmra.mrb[96].mxu0 %vm2733_vm10, %v17629_v34  ;;  %13115 = vmatpush3.bf16.msra.mxu1 %v13114_v48  ;;  %v13152_v34 = vpack.c.bf16 %v6588_v15, %v6587_v60  ;;  %v13136_v48 = vpack.c.bf16 %v6564_v1, %v6563_v58  ;;  %v6633_v58 = vld [vmem:[%s19773_s15 + $0x310] sm:$0xff] }
0x11fe   :  { %13147 = vmatpush3.bf16.msra.mxu0 %v13146_v43  ;;  %13117 = vmatprep.subr.bf16.mxu1 %v13116_v37  ;;  %v6548_v43 = vld [vmem:[%s19773_s15 + $0x68] sm:$0xff]  ;;  %v6579_v37 = vld [vmem:[%s19773_s15 + $0x160] sm:$0xff] }
0x11ff   :  { %13149 = vmatprep.subr.bf16.mxu0 %v13148_v19  ;;  %v13168_v19 = vpack.c.bf16 %v6596_v16, %v6595_v33  ;;  %v13138_v12 = vpack.c.bf16 %v6548_v43, %v6547_v45  ;;  %v6634_v16 = vld [vmem:[%s19773_s15 + $0x318] sm:$0xff]  ;;  %v6620_v45 = vld [vmem:[%s19773_s15 + $0x2a8] sm:$0xff] }
0x1200   :  { %v6652_v43 = vld [vmem:[%s19773_s15 + $0x3a8] sm:$0xff] }
0x1201   :  { %13119 = vmatpush3.bf16.msra.mxu1 %v13118_v8 }
0x1202   :  { %13151 = vmatpush3.bf16.msra.mxu0 %v13150_v46  ;;  %13121 = vmatprep.subr.bf16.mxu1 %v13120_v24  ;;  %v6597_v46 = vld [vmem:[%s19773_s15 + $0x1f0] sm:$0xff]  ;;  %v6598_v24 = vld [vmem:[%s19773_s15 + $0x1f8] sm:$0xff] }
0x1203   :  { %13153 = vmatprep.subr.bf16.mxu0 %v13152_v34  ;;  %v13170_v34 = vpack.c.bf16 %v6580_v54, %v6579_v37  ;;  %v13172_v36 = vpack.c.bf16 %v6598_v24, %v6597_v46  ;;  %v13214_v54 = vpack.c.bf16 %v6634_v16, %v6633_v58  ;;  %v6654_v46 = vld [vmem:[%s19773_s15 + $0x3b8] sm:$0xff]  ;;  %v6643_v16 = vld [vmem:[%s19773_s15 + $0x360] sm:$0xff] }
0x1205   :  { %13123 = vmatpush3.bf16.msra.mxu1 %v13122_v62  ;;  %v6549_v62 = vld [vmem:[%s19773_s15 + $0x70] sm:$0xff] }
0x1206   :  { %13155 = vmatpush3.bf16.msra.mxu0 %v13154_v38  ;;  %13125 = vmatprep.subr.bf16.mxu1 %v13124_v40  ;;  %v6550_v38 = vld [vmem:[%s19773_s15 + $0x78] sm:$0xff]  ;;  %v6581_v40 = vld [vmem:[%s19773_s15 + $0x170] sm:$0xff] }
0x1207   :  { %13157 = vmatprep.subr.bf16.mxu0 %v13156_v51 }
0x1209   :  { %13127 = vmatpush3.bf16.msra.mxu1 %v13126_v18  ;;  %v6648_v18 = vld [vmem:[%s19773_s15 + $0x388] sm:$0xff] }
0x120a   :  { %13159 = vmatpush3.bf16.msra.mxu0 %v13158_v30  ;;  %13129 = vmatprep.subr.bf16.mxu1 %v13128_v2  ;;  %v13142_v30 = vpack.c.bf16 %v6550_v38, %v6549_v62  ;;  %v13174_v2 = vpack.c.bf16 %v6582_v3, %v6581_v40  ;;  %v13208_v63 = vpack.c.bf16 %v6648_v18, %v6647_v22  ;;  %v6623_v62 = vld [vmem:[%s19773_s15 + $0x2c0] sm:$0xff]  ;;  %v6624_v38 = vld [vmem:[%s19773_s15 + $0x2c8] sm:$0xff] }
0x120b   :  { %13161 = vmatprep.subr.bf16.mxu0 %v13160_v50  ;;  %v6600_v50 = vld [vmem:[%s19773_s15 + $0x208] sm:$0xff]  ;;  %v6655_v40 = vld [vmem:[%s19773_s15 + $0x3c0] sm:$0xff]  ;;  %v13192_v3 = vpack.c.bf16 %v6624_v38, %v6623_v62 }
0x120c   :  { %v6639_v22 = vld [vmem:[%s19773_s15 + $0x340] sm:$0xff] }
0x120d   :  { %13131 = vmatpush3.bf16.msra.mxu1 %v13130_v59  ;;  %v6650_v59 = vld [vmem:[%s19773_s15 + $0x398] sm:$0xff] }
0x120e   :  { %13163 = vmatpush3.bf16.msra.mxu0 %v13162_v20  ;;  %13133 = vmatprep.subr.bf16.mxu1 %v13132_v56  ;;  %v13178_v56 = vpack.c.bf16 %v6600_v50, %v6599_v57  ;;  %v13212_v33 = vpack.c.bf16 %v6650_v59, %v6649_v39  ;;  %v6658_v57 = vld [vmem:[%s19773_s15 + $0x3d8] sm:$0xff]  ;;  %v13194_v50 = vpack.c.bf16 %v6608_v17, %v6607_v21  ;;  %v6641_v39 = vld [vmem:[%s19773_s15 + $0x350] sm:$0xff] }
0x120f   :  { %v5953_v6 = vpop.f32.mrb[94].mxu1  ;;  %v6024_v0 = vpop.f32.mrb[90].mxu0  ;;  %13165 = vmatprep.subr.bf16.mxu0 %v13164_v11  ;;  %v6601_v11 = vld [vmem:[%s19773_s15 + $0x210] sm:$0xff]  ;;  %v20406_v21 = vld [vmem:[#allocation91_spill] sm:$0xff] }
0x1210   :  { %v6471_v41 = vrot.slane %v5953_v6, 7  ;;  %v6473_v60 = vrot.slane %v6024_v0, 7  ;;  %v5955_v15 = vpop.f32.mrb[95].mxu1  ;;  %v6026_v8 = vpop.f32.mrb[91].mxu0  ;;  %v13182_v37 = vpack.c.bf16 %v6602_v35, %v6601_v11  ;;  %v6603_v0 = vld [vmem:[%s19773_s15 + $0x220] sm:$0xff]  ;;  %v13198_v11 = vpack.c.bf16 %v6610_v47, %v6609_v61  ;;  %v6713_v61 = vld [vmem:[%s19773_s15 + $0x590] sm:$0xff] }
0x1211   :  { %v6472_v55 = vrot.slane %v5955_v15, 7  ;;  %v6474_v10 = vrot.slane %v6026_v8, 7  ;;  %13135 = vmatpush3.bf16.msra.mxu1 %v13134_v31  ;;  %v6619_v31 = vld [vmem:[%s19773_s15 + $0x2a0] sm:$0xff]  ;;  %v6622_v15 = vld [vmem:[%s19773_s15 + $0x2b8] sm:$0xff]  ;;  %v6653_v8 = vld [vmem:[%s19773_s15 + $0x3b0] sm:$0xff] }
0x1212   :  { %v18129_v5 = vsel %vm104_vm2, %v20401_v27, %v6471_v41  ;;  %v18133_v29 = vsel %vm104_vm2, %v20402_v25, %v6473_v60  ;;  %13167 = vmatpush3.bf16.msra.mxu0 %v13166_v53  ;;  %13137 = vmatprep.subr.bf16.mxu1 %v13136_v48  ;;  %v6651_v48 = vld [vmem:[%s19773_s15 + $0x3a0] sm:$0xff]  ;;  %v13184_v6 = vpack.c.bf16 %v6620_v45, %v6619_v31  ;;  %v6636_v41 = vld [vmem:[%s19773_s15 + $0x328] sm:$0xff]  ;;  %v6621_v60 = vld [vmem:[%s19773_s15 + $0x2b0] sm:$0xff] }
0x1213   :  { %v18146_v9 = vsel %vm104_vm2, %v20403_v23, %v6472_v55  ;;  %v18150_v51 = vsel %vm104_vm2, %v20404_v52, %v6474_v10  ;;  %13169 = vmatprep.subr.bf16.mxu0 %v13168_v19  ;;  %13722 = vtanh.f32 %v18129_v5  ;;  %v6604_v19 = vld [vmem:[%s19773_s15 + $0x228] sm:$0xff]  ;;  %v13216_v42 = vpack.c.bf16 %v6652_v43, %v6651_v48  ;;  %v6637_v27 = vld [vmem:[%s19773_s15 + $0x330] sm:$0xff]  ;;  %v6630_v48 = vld [vmem:[%s19773_s15 + $0x2f8] sm:$0xff] }
0x1214   :  { %13724 = vtanh.f32 %v18146_v9  ;;  %v13186_v24 = vpack.c.bf16 %v6604_v19, %v6603_v0  ;;  %v13218_v55 = vpack.c.bf16 %v6636_v41, %v6635_v7  ;;  %v13188_v10 = vpack.c.bf16 %v6622_v15, %v6621_v60  ;;  %v6656_v23 = vld [vmem:[%s19773_s15 + $0x3c8] sm:$0xff]  ;;  %v6661_v43 = vld [vmem:[%s19773_s15 + $0x3f0] sm:$0xff]  ;;  %v6614_v7 = vld [vmem:[%s19773_s15 + $0x278] sm:$0xff] }
0x1215   :  { %13139 = vmatpush3.bf16.msra.mxu1 %v13138_v12  ;;  %13726 = vtanh.f32 %v18150_v51  ;;  %v6605_v12 = vld [vmem:[%s19773_s15 + $0x230] sm:$0xff]  ;;  %v13220_v25 = vpack.c.bf16 %v6654_v46, %v6653_v8  ;;  %v13224_v18 = vpack.c.bf16 %v6656_v23, %v6655_v40  ;;  %v6644_v45 = vld [vmem:[%s19773_s15 + $0x368] sm:$0xff]  ;;  %v6646_v60 = vld [vmem:[%s19773_s15 + $0x378] sm:$0xff] }
0x1216   :  { %13171 = vmatpush3.bf16.msra.mxu0 %v13170_v34  ;;  %13141 = vmatprep.subr.bf16.mxu1 %v13140_v44  ;;  %13728 = vtanh.f32 %v18133_v29  ;;  %v6606_v34 = vld [vmem:[%s19773_s15 + $0x238] sm:$0xff]  ;;  %v6613_v19 = vld [vmem:[%s19773_s15 + $0x270] sm:$0xff]  ;;  %v6679_v15 = vld [vmem:[%s19773_s15 + $0x480] sm:$0xff] }
0x1217   :  { %13173 = vmatprep.subr.bf16.mxu0 %v13172_v36  ;;  %v6638_v44 = vld [vmem:[%s19773_s15 + $0x338] sm:$0xff]  ;;  %v13190_v52 = vpack.c.bf16 %v6606_v34, %v6605_v12  ;;  %v6680_v8 = vld [vmem:[%s19773_s15 + $0x488] sm:$0xff]  ;;  %v6711_v46 = vld [vmem:[%s19773_s15 + $0x580] sm:$0xff] }
0x1218   :  { %v13222_v36 = vpack.c.bf16 %v6638_v44, %v6637_v27  ;;  %v13240_v12 = vpack.c.bf16 %v6680_v8, %v6679_v15  ;;  %v6714_v47 = vld [vmem:[%s19773_s15 + $0x598] sm:$0xff] }
0x1219   :  { %13143 = vmatpush3.bf16.msra.mxu1 %v13142_v30  ;;  %v6640_v30 = vld [vmem:[%s19773_s15 + $0x348] sm:$0xff]  ;;  %v6718_v15 = vld [vmem:[%s19773_s15 + $0x5b8] sm:$0xff] }
0x121a   :  { %13175 = vmatpush3.bf16.msra.mxu0 %v13174_v2  ;;  %13177 = vmatprep.subr.bf16.mxu1 %v13176_v13  ;;  %v6625_v2 = vld [vmem:[%s19773_s15 + $0x2d0] sm:$0xff]  ;;  %v6626_v13 = vld [vmem:[%s19773_s15 + $0x2d8] sm:$0xff]  ;;  %v13226_v26 = vpack.c.bf16 %v6640_v30, %v6639_v22  ;;  %v20407_v22 = vld [vmem:[#allocation92_spill] sm:$0xff] }
0x121b   :  { %13209 = vmatprep.subr.bf16.mxu0 %v13208_v63  ;;  %v6657_v63 = vld [vmem:[%s19773_s15 + $0x3d0] sm:$0xff]  ;;  %v13196_v49 = vpack.c.bf16 %v6626_v13, %v6625_v2  ;;  %v20408_v30 = vld [vmem:[#allocation39_spill] sm:$0xff] }
0x121c   :  { %v13228_v59 = vpack.c.bf16 %v6658_v57, %v6657_v63  ;;  %v6663_v13 = vld [vmem:[%s19773_s15 + $0x400] sm:$0xff]  ;;  %v6664_v63 = vld [vmem:[%s19773_s15 + $0x408] sm:$0xff] }
0x121d   :  { %v13723_v20 = vpop.eup %13722  ;;  %v6695_v57 = vld [vmem:[%s19773_s15 + $0x500] sm:$0xff] }
0x121e   :  { %v13725_v14 = vpop.eup %13724 }
0x121f   :  { %v13727_v1 = vpop.eup %13726  ;;  %6862 = vmatprep.mubr.f32.mxu1 %v13725_v14  ;;  %v6628_v14 = vld [vmem:[%s19773_s15 + $0x2e8] sm:$0xff] }
0x1220   :  { %v13729_v53 = vpop.eup %13728  ;;  %6932 = vmatprep.mubr.f32.mxu0 %v13727_v1  ;;  %6863 = vmatmul.mubr.f32.vlgmr.msra.gmra.mrb[102].mxu1 %v13723_v20  ;;  %v6642_v20 = vld [vmem:[%s19773_s15 + $0x358] sm:$0xff]  ;;  %v6611_v1 = vld [vmem:[%s19773_s15 + $0x260] sm:$0xff] }
0x1221   :  { %6933 = vmatmul.mubr.f32.vlgmr.msra.gmra.mrb[98].mxu0 %v13729_v53  ;;  %13179 = vmatpush3.bf16.msra.mxu1 %v13178_v56  ;;  %v6627_v56 = vld [vmem:[%s19773_s15 + $0x2e0] sm:$0xff]  ;;  %v13230_v35 = vpack.c.bf16 %v6642_v20, %v6641_v39  ;;  %v6629_v53 = vld [vmem:[%s19773_s15 + $0x2f0] sm:$0xff] }
0x1222   :  { %13211 = vmatpush3.bf16.msra.mxu0 %v13210_v32  ;;  %13181 = vmatprep.subr.bf16.mxu1 %v13180_v28  ;;  %v6659_v32 = vld [vmem:[%s19773_s15 + $0x3e0] sm:$0xff]  ;;  %v6660_v28 = vld [vmem:[%s19773_s15 + $0x3e8] sm:$0xff]  ;;  %v13200_v58 = vpack.c.bf16 %v6628_v14, %v6627_v56  ;;  %v13204_v0 = vpack.c.bf16 %v6630_v48, %v6629_v53 }
0x1223   :  { %13213 = vmatprep.subr.bf16.mxu0 %v13212_v33  ;;  %v6612_v33 = vld [vmem:[%s19773_s15 + $0x268] sm:$0xff]  ;;  %v13232_v31 = vpack.c.bf16 %v6660_v28, %v6659_v32  ;;  %v6665_v32 = vld [vmem:[%s19773_s15 + $0x410] sm:$0xff]  ;;  %v6666_v28 = vld [vmem:[%s19773_s15 + $0x418] sm:$0xff] }
0x1224   :  { %v6716_v53 = vld [vmem:[%s19773_s15 + $0x5a8] sm:$0xff]  ;;  %v13246_v48 = vpack.c.bf16 %v6666_v28, %v6665_v32  ;;  %v6691_v32 = vld [vmem:[%s19773_s15 + $0x4e0] sm:$0xff] }
0x1225   :  { %13183 = vmatpush3.bf16.msra.mxu1 %v13182_v37  ;;  %v6662_v37 = vld [vmem:[%s19773_s15 + $0x3f8] sm:$0xff]  ;;  %v6692_v28 = vld [vmem:[%s19773_s15 + $0x4e8] sm:$0xff] }
0x1226   :  { %13215 = vmatpush3.bf16.msra.mxu0 %v13214_v54  ;;  %13185 = vmatprep.subr.bf16.mxu1 %v13184_v6  ;;  %v13202_v54 = vpack.c.bf16 %v6612_v33, %v6611_v1  ;;  %v13234_v6 = vpack.c.bf16 %v6644_v45, %v6643_v16  ;;  %v13236_v41 = vpack.c.bf16 %v6662_v37, %v6661_v43  ;;  %v6698_v1 = vld [vmem:[%s19773_s15 + $0x518] sm:$0xff]  ;;  %v6683_v33 = vld [vmem:[%s19773_s15 + $0x4a0] sm:$0xff]  ;;  %v6684_v16 = vld [vmem:[%s19773_s15 + $0x4a8] sm:$0xff] }
0x1227   :  { %13217 = vmatprep.subr.bf16.mxu0 %v13216_v42  ;;  %v6645_v42 = vld [vmem:[%s19773_s15 + $0x370] sm:$0xff]  ;;  %v6715_v45 = vld [vmem:[%s19773_s15 + $0x5a0] sm:$0xff]  ;;  %v13248_v37 = vpack.c.bf16 %v6684_v16, %v6683_v33  ;;  %v13264_v33 = vpack.c.bf16 %v6692_v28, %v6691_v32  ;;  %v6778_v32 = vld [vmem:[%s19773_s15 + $0x798] sm:$0xff] }
0x1228   :  { %v6675_v16 = vld [vmem:[%s19773_s15 + $0x460] sm:$0xff] }
0x1229   :  { %13187 = vmatpush3.bf16.msra.mxu1 %v13186_v24  ;;  %v6712_v24 = vld [vmem:[%s19773_s15 + $0x588] sm:$0xff] }
0x122a   :  { %13219 = vmatpush3.bf16.msra.mxu0 %v13218_v55  ;;  %13189 = vmatprep.subr.bf16.mxu1 %v13188_v10  ;;  %v13206_v55 = vpack.c.bf16 %v6614_v7, %v6613_v19  ;;  %v13238_v10 = vpack.c.bf16 %v6646_v60, %v6645_v42  ;;  %v13272_v34 = vpack.c.bf16 %v6712_v24, %v6711_v46  ;;  %v6700_v7 = vld [vmem:[%s19773_s15 + $0x528] sm:$0xff]  ;;  %v6685_v42 = vld [vmem:[%s19773_s15 + $0x4b0] sm:$0xff] }
0x122b   :  { %13221 = vmatprep.subr.bf16.mxu0 %v13220_v25  ;;  %v13280_v19 = vpack.c.bf16 %v6716_v53, %v6715_v45  ;;  %v6717_v60 = vld [vmem:[%s19773_s15 + $0x5b0] sm:$0xff]  ;;  %v6707_v45 = vld [vmem:[%s19773_s15 + $0x560] sm:$0xff] }
0x122d   :  { %13191 = vmatpush3.bf16.msra.mxu1 %v13190_v52 }
0x122e   :  { %13223 = vmatpush3.bf16.msra.mxu0 %v13222_v36  ;;  %13193 = vmatprep.subr.bf16.mxu1 %v13192_v3  ;;  %v20405_v36 = vld [vmem:[#allocation37_spill] sm:$0xff] }
0x122f   :  { %13225 = vmatprep.subr.bf16.mxu0 %v13224_v18 }
0x1231   :  { %13195 = vmatpush3.bf16.msra.mxu1 %v13194_v50  ;;  %v6696_v50 = vld [vmem:[%s19773_s15 + $0x508] sm:$0xff] }
0x1232   :  { %13227 = vmatpush3.bf16.msra.mxu0 %v13226_v26  ;;  %13197 = vmatprep.subr.bf16.mxu1 %v13196_v49  ;;  %v6681_v26 = vld [vmem:[%s19773_s15 + $0x490] sm:$0xff]  ;;  %v6682_v49 = vld [vmem:[%s19773_s15 + $0x498] sm:$0xff]  ;;  %v13274_v56 = vpack.c.bf16 %v6696_v50, %v6695_v57 }
0x1233   :  { %13229 = vmatprep.subr.bf16.mxu0 %v13228_v59  ;;  %v13242_v59 = vpack.c.bf16 %v6664_v63, %v6663_v13  ;;  %v13244_v14 = vpack.c.bf16 %v6682_v49, %v6681_v26  ;;  %v6704_v13 = vld [vmem:[%s19773_s15 + $0x548] sm:$0xff]  ;;  %v6689_v63 = vld [vmem:[%s19773_s15 + $0x4d0] sm:$0xff]  ;;  %v6690_v57 = vld [vmem:[%s19773_s15 + $0x4d8] sm:$0xff] }
0x1234   :  { %v6721_v50 = vld [vmem:[%s19773_s15 + $0x5d0] sm:$0xff]  ;;  %v6722_v26 = vld [vmem:[%s19773_s15 + $0x5d8] sm:$0xff] }
0x1235   :  { %13199 = vmatpush3.bf16.msra.mxu1 %v13198_v11  ;;  %v6697_v11 = vld [vmem:[%s19773_s15 + $0x510] sm:$0xff] }
0x1236   :  { %13231 = vmatpush3.bf16.msra.mxu0 %v13230_v35  ;;  %13201 = vmatprep.subr.bf16.mxu1 %v13200_v58  ;;  %v13276_v58 = vpack.c.bf16 %v6714_v47, %v6713_v61  ;;  %v13278_v43 = vpack.c.bf16 %v6698_v1, %v6697_v11  ;;  %v13260_v47 = vpack.c.bf16 %v6690_v57, %v6689_v63  ;;  %v6723_v11 = vld [vmem:[%s19773_s15 + $0x5e0] sm:$0xff]  ;;  %v20411_v57 = vld [vmem:[#allocation110_spill] sm:$0xff] }
0x1237   :  { %13233 = vmatprep.subr.bf16.mxu0 %v13232_v31 }
0x1239   :  { %13203 = vmatpush3.bf16.msra.mxu1 %v13202_v54  ;;  %v6667_v54 = vld [vmem:[%s19773_s15 + $0x420] sm:$0xff] }
0x123a   :  { %13235 = vmatpush3.bf16.msra.mxu0 %v13234_v6  ;;  %13205 = vmatprep.subr.bf16.mxu1 %v13204_v0  ;;  %v6668_v6 = vld [vmem:[%s19773_s15 + $0x428] sm:$0xff]  ;;  %v6699_v0 = vld [vmem:[%s19773_s15 + $0x520] sm:$0xff] }
0x123b   :  { %13237 = vmatprep.subr.bf16.mxu0 %v13236_v41  ;;  %v6686_v41 = vld [vmem:[%s19773_s15 + $0x4b8] sm:$0xff]  ;;  %v13250_v8 = vpack.c.bf16 %v6668_v6, %v6667_v54  ;;  %v13282_v46 = vpack.c.bf16 %v6700_v7, %v6699_v0  ;;  %v6725_v54 = vld [vmem:[%s19773_s15 + $0x5f0] sm:$0xff] }
0x123c   :  { %v13252_v24 = vpack.c.bf16 %v6686_v41, %v6685_v42  ;;  %v6726_v6 = vld [vmem:[%s19773_s15 + $0x5f8] sm:$0xff]  ;;  %v6677_v42 = vld [vmem:[%s19773_s15 + $0x470] sm:$0xff] }
0x123d   :  { %13207 = vmatpush3.bf16.msra.mxu1 %v13206_v55  ;;  %v6669_v55 = vld [vmem:[%s19773_s15 + $0x430] sm:$0xff]  ;;  %v6678_v41 = vld [vmem:[%s19773_s15 + $0x478] sm:$0xff] }
0x123e   :  { %13239 = vmatpush3.bf16.msra.mxu0 %v13238_v10  ;;  %13241 = vmatprep.subr.bf16.mxu1 %v13240_v12  ;;  %v6670_v10 = vld [vmem:[%s19773_s15 + $0x438] sm:$0xff]  ;;  %v6701_v12 = vld [vmem:[%s19773_s15 + $0x530] sm:$0xff] }
0x123f   :  { %13273 = vmatprep.subr.bf16.mxu0 %v13272_v34  ;;  %v13284_v34 = vpack.c.bf16 %v6718_v15, %v6717_v60  ;;  %v6709_v60 = vld [vmem:[%s19773_s15 + $0x570] sm:$0xff]  ;;  %v13300_v15 = vpack.c.bf16 %v6726_v6, %v6725_v54  ;;  %v6779_v6 = vld [vmem:[%s19773_s15 + $0x7a0] sm:$0xff] }
0x124f   :  { %v6095_v27 = vpop.f32.mrb[96].mxu1  ;;  %v6166_v25 = vpop.f32.mrb[92].mxu0 }
0x1250   :  { %v6475_v44 = vrot.slane %v6095_v27, 7  ;;  %v6477_v62 = vrot.slane %v6166_v25, 7  ;;  %v6097_v38 = vpop.f32.mrb[97].mxu1  ;;  %v6168_v40 = vpop.f32.mrb[93].mxu0  ;;  %v6702_v27 = vld [vmem:[%s19773_s15 + $0x538] sm:$0xff]  ;;  %v6687_v25 = vld [vmem:[%s19773_s15 + $0x4c0] sm:$0xff] }
0x1251   :  { %v6476_v23 = vrot.slane %v6097_v38, 7  ;;  %v6478_v52 = vrot.slane %v6168_v40, 7  ;;  %v6720_v38 = vld [vmem:[%s19773_s15 + $0x5c8] sm:$0xff]  ;;  %v13254_v40 = vpack.c.bf16 %v6670_v10, %v6669_v55  ;;  %v6775_v55 = vld [vmem:[%s19773_s15 + $0x780] sm:$0xff] }
0x1252   :  { %v18365_v3 = vsel %vm104_vm2, %v20405_v36, %v6475_v44  ;;  %v18369_v17 = vsel %vm104_vm2, %v20406_v21, %v6477_v62  ;;  %v6688_v44 = vld [vmem:[%s19773_s15 + $0x4c8] sm:$0xff]  ;;  %v6719_v62 = vld [vmem:[%s19773_s15 + $0x5c0] sm:$0xff] }
0x1253   :  { %v18373_v18 = vsel %vm104_vm2, %v20407_v22, %v6476_v23  ;;  %v18377_v2 = vsel %vm104_vm2, %v20408_v30, %v6478_v52  ;;  %13730 = vtanh.f32 %v18365_v3  ;;  %v13286_v23 = vpack.c.bf16 %v6702_v27, %v6701_v12  ;;  %v6671_v36 = vld [vmem:[%s19773_s15 + $0x440] sm:$0xff]  ;;  %v6672_v21 = vld [vmem:[%s19773_s15 + $0x448] sm:$0xff] }
0x1254   :  { %13732 = vtanh.f32 %v18373_v18  ;;  %v13256_v52 = vpack.c.bf16 %v6688_v44, %v6687_v25  ;;  %v6703_v22 = vld [vmem:[%s19773_s15 + $0x540] sm:$0xff]  ;;  %v13288_v30 = vpack.c.bf16 %v6720_v38, %v6719_v62  ;;  %v13258_v49 = vpack.c.bf16 %v6672_v21, %v6671_v36  ;;  %v6776_v10 = vld [vmem:[%s19773_s15 + $0x788] sm:$0xff] }
0x1255   :  { %13734 = vtanh.f32 %v18377_v2  ;;  %v13290_v61 = vpack.c.bf16 %v6704_v13, %v6703_v22  ;;  %v13270_v12 = vpack.c.bf16 %v6678_v41, %v6677_v42  ;;  %v13336_v25 = vpack.c.bf16 %v6776_v10, %v6775_v55  ;;  %v20409_v21 = vld [vmem:[#allocation109_spill] sm:$0xff]  ;;  %v20410_v13 = vld [vmem:[#allocation56_spill] sm:$0xff]  ;;  %v6750_v55 = vld [vmem:[%s19773_s15 + $0x6b8] sm:$0xff] }
0x1256   :  { %13736 = vtanh.f32 %v18369_v17  ;;  %v6731_v41 = vld [vmem:[%s19773_s15 + $0x620] sm:$0xff]  ;;  %v6781_v10 = vld [vmem:[%s19773_s15 + $0x7b0] sm:$0xff] }
0x125d   :  { %v13731_v39 = vpop.eup %13730 }
0x125e   :  { %v13733_v20 = vpop.eup %13732 }
0x125f   :  { %v13735_v35 = vpop.eup %13734  ;;  %7002 = vmatprep.mubr.f32.mxu1 %v13733_v20  ;;  %v6705_v20 = vld [vmem:[%s19773_s15 + $0x550] sm:$0xff] }
0x1260   :  { %v13737_v31 = vpop.eup %13736  ;;  %7072 = vmatprep.mubr.f32.mxu0 %v13735_v35  ;;  %7003 = vmatmul.mubr.f32.vlgmr.msra.gmra.mrb[104].mxu1 %v13731_v39  ;;  %v6673_v39 = vld [vmem:[%s19773_s15 + $0x450] sm:$0xff]  ;;  %v6724_v35 = vld [vmem:[%s19773_s15 + $0x5e8] sm:$0xff] }
0x1261   :  { %7073 = vmatmul.mubr.f32.vlgmr.msra.gmra.mrb[100].mxu0 %v13737_v31  ;;  %13243 = vmatpush3.bf16.msra.mxu1 %v13242_v59  ;;  %v6674_v59 = vld [vmem:[%s19773_s15 + $0x458] sm:$0xff]  ;;  %v6676_v31 = vld [vmem:[%s19773_s15 + $0x468] sm:$0xff]  ;;  %v13296_v53 = vpack.c.bf16 %v6724_v35, %v6723_v11 }
0x1262   :  { %13275 = vmatpush3.bf16.msra.mxu0 %v13274_v56  ;;  %13245 = vmatprep.subr.bf16.mxu1 %v13244_v14  ;;  %v13292_v56 = vpack.c.bf16 %v6722_v26, %v6721_v50  ;;  %v6706_v14 = vld [vmem:[%s19773_s15 + $0x558] sm:$0xff]  ;;  %v13266_v0 = vpack.c.bf16 %v6676_v31, %v6675_v16  ;;  %v20412_v26 = vld [vmem:[#allocation57_spill] sm:$0xff] }
0x1263   :  { %13277 = vmatprep.subr.bf16.mxu0 %v13276_v58  ;;  %v13262_v58 = vpack.c.bf16 %v6674_v59, %v6673_v39  ;;  %v13294_v1 = vpack.c.bf16 %v6706_v14, %v6705_v20  ;;  %v6759_v39 = vld [vmem:[%s19773_s15 + $0x700] sm:$0xff]  ;;  %v6760_v59 = vld [vmem:[%s19773_s15 + $0x708] sm:$0xff]  ;;  %v6745_v20 = vld [vmem:[%s19773_s15 + $0x690] sm:$0xff] }
0x1264   :  { %v6777_v14 = vld [vmem:[%s19773_s15 + $0x790] sm:$0xff]  ;;  %v6730_v16 = vld [vmem:[%s19773_s15 + $0x618] sm:$0xff] }
0x1265   :  { %13247 = vmatpush3.bf16.msra.mxu1 %v13246_v48  ;;  %v6708_v48 = vld [vmem:[%s19773_s15 + $0x568] sm:$0xff]  ;;  %v6761_v31 = vld [vmem:[%s19773_s15 + $0x710] sm:$0xff] }
0x1266   :  { %13279 = vmatpush3.bf16.msra.mxu0 %v13278_v43  ;;  %13249 = vmatprep.subr.bf16.mxu1 %v13248_v37  ;;  %v6693_v43 = vld [vmem:[%s19773_s15 + $0x4f0] sm:$0xff]  ;;  %v6694_v37 = vld [vmem:[%s19773_s15 + $0x4f8] sm:$0xff] }
0x1267   :  { %13281 = vmatprep.subr.bf16.mxu0 %v13280_v19  ;;  %v13298_v19 = vpack.c.bf16 %v6708_v48, %v6707_v45  ;;  %v13268_v7 = vpack.c.bf16 %v6694_v37, %v6693_v43  ;;  %v6762_v48 = vld [vmem:[%s19773_s15 + $0x718] sm:$0xff]  ;;  %v6747_v43 = vld [vmem:[%s19773_s15 + $0x6a0] sm:$0xff]  ;;  %v6748_v37 = vld [vmem:[%s19773_s15 + $0x6a8] sm:$0xff] }
0x1268   :  { %v13312_v42 = vpack.c.bf16 %v6748_v37, %v6747_v43  ;;  %v6787_v43 = vld [vmem:[%s19773_s15 + $0x7e0] sm:$0xff]  ;;  %v6788_v37 = vld [vmem:[%s19773_s15 + $0x7e8] sm:$0xff] }
0x1269   :  { %13251 = vmatpush3.bf16.msra.mxu1 %v13250_v8  ;;  %v6710_v8 = vld [vmem:[%s19773_s15 + $0x578] sm:$0xff] }
0x126a   :  { %13283 = vmatpush3.bf16.msra.mxu0 %v13282_v46  ;;  %13253 = vmatprep.subr.bf16.mxu1 %v13252_v24  ;;  %v6743_v46 = vld [vmem:[%s19773_s15 + $0x680] sm:$0xff]  ;;  %v6744_v24 = vld [vmem:[%s19773_s15 + $0x688] sm:$0xff] }
0x126b   :  { %13285 = vmatprep.subr.bf16.mxu0 %v13284_v34  ;;  %v13302_v34 = vpack.c.bf16 %v6710_v8, %v6709_v60  ;;  %v13304_v27 = vpack.c.bf16 %v6744_v24, %v6743_v46  ;;  %v6732_v60 = vld [vmem:[%s19773_s15 + $0x628] sm:$0xff]  ;;  %v6749_v24 = vld [vmem:[%s19773_s15 + $0x6b0] sm:$0xff] }
0x126c   :  { %v6764_v46 = vld [vmem:[%s19773_s15 + $0x728] sm:$0xff] }
0x126d   :  { %13255 = vmatpush3.bf16.msra.mxu1 %v13254_v40 }
0x126e   :  { %13287 = vmatpush3.bf16.msra.mxu0 %v13286_v23  ;;  %13257 = vmatprep.subr.bf16.mxu1 %v13256_v52 }
0x126f   :  { %13289 = vmatprep.subr.bf16.mxu0 %v13288_v30 }
0x1271   :  { %13259 = vmatpush3.bf16.msra.mxu1 %v13258_v49 }
0x1272   :  { %13291 = vmatpush3.bf16.msra.mxu0 %v13290_v61  ;;  %13261 = vmatprep.subr.bf16.mxu1 %v13260_v47  ;;  %v6727_v61 = vld [vmem:[%s19773_s15 + $0x600] sm:$0xff]  ;;  %v6728_v47 = vld [vmem:[%s19773_s15 + $0x608] sm:$0xff] }
0x1273   :  { %13293 = vmatprep.subr.bf16.mxu0 %v13292_v56  ;;  %v6746_v56 = vld [vmem:[%s19773_s15 + $0x698] sm:$0xff]  ;;  %v13306_v11 = vpack.c.bf16 %v6728_v47, %v6727_v61  ;;  %v6735_v61 = vld [vmem:[%s19773_s15 + $0x640] sm:$0xff]  ;;  %v6736_v47 = vld [vmem:[%s19773_s15 + $0x648] sm:$0xff] }
0x1275   :  { %13263 = vmatpush3.bf16.msra.mxu1 %v13262_v58  ;;  %v13338_v58 = vpack.c.bf16 %v6760_v59, %v6759_v39  ;;  %v6767_v39 = vld [vmem:[%s19773_s15 + $0x740] sm:$0xff] }
0x1276   :  { %13295 = vmatpush3.bf16.msra.mxu0 %v13294_v1  ;;  %13265 = vmatprep.subr.bf16.mxu1 %v13264_v33  ;;  %v13308_v1 = vpack.c.bf16 %v6746_v56, %v6745_v20  ;;  %v6729_v33 = vld [vmem:[%s19773_s15 + $0x610] sm:$0xff]  ;;  %v6768_v20 = vld [vmem:[%s19773_s15 + $0x748] sm:$0xff] }
0x1277   :  { %13297 = vmatprep.subr.bf16.mxu0 %v13296_v53  ;;  %v13340_v53 = vpack.c.bf16 %v6778_v32, %v6777_v14  ;;  %v6753_v56 = vld [vmem:[%s19773_s15 + $0x6d0] sm:$0xff]  ;;  %v6754_v14 = vld [vmem:[%s19773_s15 + $0x6d8] sm:$0xff] }
0x1278   :  { %v6785_v32 = vld [vmem:[%s19773_s15 + $0x7d0] sm:$0xff] }
0x1279   :  { %13267 = vmatpush3.bf16.msra.mxu1 %v13266_v0  ;;  %v6780_v0 = vld [vmem:[%s19773_s15 + $0x7a8] sm:$0xff] }
0x127a   :  { %13299 = vmatpush3.bf16.msra.mxu0 %v13298_v19  ;;  %13269 = vmatprep.subr.bf16.mxu1 %v13268_v7  ;;  %v13310_v19 = vpack.c.bf16 %v6730_v16, %v6729_v33  ;;  %v13342_v7 = vpack.c.bf16 %v6762_v48, %v6761_v31  ;;  %v13344_v8 = vpack.c.bf16 %v6780_v0, %v6779_v6  ;;  %v6738_v33 = vld [vmem:[%s19773_s15 + $0x658] sm:$0xff]  ;;  %v6769_v16 = vld [vmem:[%s19773_s15 + $0x750] sm:$0xff]  ;;  %v6756_v48 = vld [vmem:[%s19773_s15 + $0x6e8] sm:$0xff] }
0x127b   :  { %13301 = vmatprep.subr.bf16.mxu0 %v13300_v15  ;;  %v6763_v15 = vld [vmem:[%s19773_s15 + $0x720] sm:$0xff] }
0x127d   :  { %13271 = vmatpush3.bf16.msra.mxu1 %v13270_v12  ;;  %v6782_v12 = vld [vmem:[%s19773_s15 + $0x7b8] sm:$0xff] }
0x127e   :  { %13303 = vmatpush3.bf16.msra.mxu0 %v13302_v34  ;;  %13305 = vmatprep.subr.bf16.mxu1 %v13304_v27  ;;  %v13314_v34 = vpack.c.bf16 %v6732_v60, %v6731_v41  ;;  %v13346_v27 = vpack.c.bf16 %v6764_v46, %v6763_v15  ;;  %v13360_v41 = vpack.c.bf16 %v6788_v37, %v6787_v43  ;;  %v6772_v60 = vld [vmem:[%s19773_s15 + $0x768] sm:$0xff]  ;;  %v6757_v15 = vld [vmem:[%s19773_s15 + $0x6f0] sm:$0xff]  ;;  %v7361_v37 = vld [vmem:[%s19775_s17 + $0x18] sm:$0xff] }
0x127f   :  { %13337 = vmatprep.subr.bf16.mxu0 %v13336_v25  ;;  %v13316_v25 = vpack.c.bf16 %v6750_v55, %v6749_v24  ;;  %v6789_v46 = vld [vmem:[%s19773_s15 + $0x7f0] sm:$0xff]  ;;  %v6790_v24 = vld [vmem:[%s19773_s15 + $0x7f8] sm:$0xff] }
0x1280   :  { %v7360_v43 = vld [vmem:[%s19775_s17 + $0x10] sm:$0xff] }
0x128f   :  { %v6237_v44 = vpop.f32.mrb[98].mxu1 }
0x1290   :  { %v6479_v62 = vrot.slane %v6237_v44, 7  ;;  %v6308_v38 = vpop.f32.mrb[94].mxu0  ;;  %v6239_v40 = vpop.f32.mrb[99].mxu1  ;;  %v6733_v44 = vld [vmem:[%s19773_s15 + $0x630] sm:$0xff] }
0x1291   :  { %v6481_v23 = vrot.slane %v6308_v38, 7  ;;  %v6480_v52 = vrot.slane %v6239_v40, 7  ;;  %v6310_v36 = vpop.f32.mrb[95].mxu0  ;;  %v6765_v38 = vld [vmem:[%s19773_s15 + $0x730] sm:$0xff]  ;;  %v13348_v40 = vpack.c.bf16 %v6782_v12, %v6781_v10 }
0x1292   :  { %v18577_v22 = vsel %vm104_vm2, %v20409_v21, %v6479_v62  ;;  %v6482_v30 = vrot.slane %v6310_v36, 7  ;;  %v6734_v62 = vld [vmem:[%s19773_s15 + $0x638] sm:$0xff]  ;;  %v6752_v36 = vld [vmem:[%s19773_s15 + $0x6c8] sm:$0xff]  ;;  %v6783_v21 = vld [vmem:[%s19773_s15 + $0x7c0] sm:$0xff] }
0x1293   :  { %v18581_v63 = vsel %vm104_vm2, %v20410_v13, %v6481_v23  ;;  %v18585_v50 = vsel %vm104_vm2, %v20411_v57, %v6480_v52  ;;  %13738 = vtanh.f32 %v18577_v22  ;;  %v6766_v23 = vld [vmem:[%s19773_s15 + $0x738] sm:$0xff]  ;;  %v6751_v52 = vld [vmem:[%s19773_s15 + $0x6c0] sm:$0xff]  ;;  %v13318_v13 = vpack.c.bf16 %v6734_v62, %v6733_v44  ;;  %v6773_v44 = vld [vmem:[%s19773_s15 + $0x770] sm:$0xff] }
0x1294   :  { %v18590_v49 = vsel %vm104_vm2, %v20412_v26, %v6482_v30  ;;  %13740 = vtanh.f32 %v18585_v50  ;;  %v6784_v30 = vld [vmem:[%s19773_s15 + $0x7c8] sm:$0xff]  ;;  %v13350_v57 = vpack.c.bf16 %v6766_v23, %v6765_v38  ;;  %v13320_v26 = vpack.c.bf16 %v6752_v36, %v6751_v52  ;;  %v6774_v62 = vld [vmem:[%s19773_s15 + $0x778] sm:$0xff] }
0x1295   :  { %13742 = vtanh.f32 %v18590_v49  ;;  %v13352_v59 = vpack.c.bf16 %v6784_v30, %v6783_v21 }
0x1296   :  { %13744 = vtanh.f32 %v18581_v63 }
0x129d   :  { %v13739_v28 = vpop.eup %13738 }
0x129e   :  { %v13741_v35 = vpop.eup %13740 }
0x129f   :  { %v13743_v45 = vpop.eup %13742  ;;  %7142 = vmatprep.mubr.f32.mxu1 %v13741_v35  ;;  %v13354_v35 = vpack.c.bf16 %v6768_v20, %v6767_v39  ;;  %v20414_v39 = vld [vmem:[#allocation58_spill] sm:$0xff]  ;;  %v20415_v20 = vld [vmem:[#allocation112_spill] sm:$0xff] }
0x12a0   :  { %v13745_v54 = vpop.eup %13744  ;;  %7212 = vmatprep.mubr.f32.mxu0 %v13743_v45  ;;  %7143 = vmatmul.mubr.f32.vlgmr.msra.gmra.mrb[106].mxu1 %v13739_v28  ;;  %v6786_v28 = vld [vmem:[%s19773_s15 + $0x7d8] sm:$0xff] }
0x12a1   :  { %7213 = vmatmul.mubr.f32.vlgmr.msra.gmra.mrb[102].mxu0 %v13745_v54  ;;  %13307 = vmatpush3.bf16.msra.mxu1 %v13306_v11  ;;  %v13322_v11 = vpack.c.bf16 %v6736_v47, %v6735_v61  ;;  %v13356_v31 = vpack.c.bf16 %v6786_v28, %v6785_v32  ;;  %v6770_v45 = vld [vmem:[%s19773_s15 + $0x758] sm:$0xff]  ;;  %v7362_v28 = vld [vmem:[%s19775_s17 + $0x20] sm:$0xff] }
0x12a2   :  { %13339 = vmatpush3.bf16.msra.mxu0 %v13338_v58  ;;  %13309 = vmatprep.subr.bf16.mxu1 %v13308_v1  ;;  %v13324_v58 = vpack.c.bf16 %v6754_v14, %v6753_v56  ;;  %v6737_v1 = vld [vmem:[%s19773_s15 + $0x650] sm:$0xff]  ;;  %v13358_v6 = vpack.c.bf16 %v6770_v45, %v6769_v16  ;;  %v20416_v14 = vld [vmem:[#allocation59_spill] sm:$0xff] }
0x12a3   :  { %13341 = vmatprep.subr.bf16.mxu0 %v13340_v53  ;;  %v6755_v53 = vld [vmem:[%s19773_s15 + $0x6e0] sm:$0xff]  ;;  %v13326_v54 = vpack.c.bf16 %v6738_v33, %v6737_v1  ;;  %v7364_v45 = vld [vmem:[%s19775_s17 + $0x30] sm:$0xff] }
0x12a4   :  { %v13328_v0 = vpack.c.bf16 %v6756_v48, %v6755_v53  ;;  %v7365_v53 = vld [vmem:[%s19775_s17 + $0x38] sm:$0xff] }
0x12a5   :  { %13311 = vmatpush3.bf16.msra.mxu1 %v13310_v19  ;;  %v6739_v19 = vld [vmem:[%s19773_s15 + $0x660] sm:$0xff] }
0x12a6   :  { %13343 = vmatpush3.bf16.msra.mxu0 %v13342_v7  ;;  %13313 = vmatprep.subr.bf16.mxu1 %v13312_v42  ;;  %v6740_v7 = vld [vmem:[%s19773_s15 + $0x668] sm:$0xff]  ;;  %v6771_v42 = vld [vmem:[%s19773_s15 + $0x760] sm:$0xff] }
0x12a7   :  { %13345 = vmatprep.subr.bf16.mxu0 %v13344_v8  ;;  %v6758_v8 = vld [vmem:[%s19773_s15 + $0x6f8] sm:$0xff]  ;;  %v13330_v55 = vpack.c.bf16 %v6740_v7, %v6739_v19  ;;  %v13362_v10 = vpack.c.bf16 %v6772_v60, %v6771_v42  ;;  %v13372_v19 = vpack.c.bf16 %v7365_v53, %v7364_v45  ;;  %v13378_v7 = vpack.c.bf16 %v7361_v37, %v7360_v43  ;;  %v7512_v42 = vld [vmem:[%s19775_s17 + $0x40] sm:$0xff]  ;;  %v7621_v43 = vld [vmem:[%s19775_s17 + $0x170] sm:$0xff] }
0x12a8   :  { %v13332_v12 = vpack.c.bf16 %v6758_v8, %v6757_v15  ;;  %v8813_v60 = vld [vmem:[%s19768_s10 + $0x1] ss:$0 sm:$0xff]  ;;  %v20417_v15 = vmov 0.0   ;;  %v7622_v37 = vld [vmem:[%s19775_s17 + $0x178] sm:$0xff] }
0x12a9   :  { %13315 = vmatpush3.bf16.msra.mxu1 %v13314_v34  ;;  %v6741_v34 = vld [vmem:[%s19773_s15 + $0x670] sm:$0xff] }
0x12aa   :  { %13347 = vmatpush3.bf16.msra.mxu0 %v13346_v27  ;;  %13317 = vmatprep.subr.bf16.mxu1 %v13316_v25  ;;  %v6742_v27 = vld [vmem:[%s19773_s15 + $0x678] sm:$0xff]  ;;  %v13364_v25 = vpack.c.bf16 %v6790_v24, %v6789_v46  ;;  %v7587_v46 = vld [vmem:[%s19775_s17 + $0x60] sm:$0xff]  ;;  %v7588_v24 = vld [vmem:[%s19775_s17 + $0x68] sm:$0xff] }
0x12ab   :  { %13349 = vmatprep.subr.bf16.mxu0 %v13348_v40  ;;  %v13334_v38 = vpack.c.bf16 %v6742_v27, %v6741_v34  ;;  %v13366_v40 = vpack.c.bf16 %v6774_v62, %v6773_v44  ;;  %v20418_v27 = vld [vmem:[#allocation119_spill] sm:$0xff]  ;;  %v13388_v44 = vpack.c.bf16 %v7588_v24, %v7587_v46  ;;  %v7514_v62 = vld [vmem:[%s19775_s17 + $0x50] sm:$0xff] }
0x12ac   :  { %v7595_v24 = vld [vmem:[%s19775_s17 + $0xa0] sm:$0xff] }
0x12ad   :  { %13319 = vmatpush3.bf16.msra.mxu1 %v13318_v13 }
0x12ae   :  { %13351 = vmatpush3.bf16.msra.mxu0 %v13350_v57  ;;  %13321 = vmatprep.subr.bf16.mxu1 %v13320_v26  ;;  %v20413_v26 = vld [vmem:[#allocation111_spill] sm:$0xff] }
0x12af   :  { %13353 = vmatprep.subr.bf16.mxu0 %v13352_v59 }
0x12b1   :  { %13323 = vmatpush3.bf16.msra.mxu1 %v13322_v11  ;;  %v7363_v11 = vld [vmem:[%s19775_s17 + $0x28] sm:$0xff] }
0x12b2   :  { %13355 = vmatpush3.bf16.msra.mxu0 %v13354_v35  ;;  %13325 = vmatprep.subr.bf16.mxu1 %v13324_v58  ;;  %v7358_v35 = vld [vmem:[%s19775_s17] sm:$0xff]  ;;  %v7359_v58 = vld [vmem:[%s19775_s17 + $0x8] sm:$0xff]  ;;  %v13369_v33 = vpack.c.bf16 %v7363_v11, %v7362_v28 }
0x12b3   :  { %13357 = vmatprep.subr.bf16.mxu0 %v13356_v31  ;;  %v13375_v31 = vpack.c.bf16 %v7359_v58, %v7358_v35  ;;  %v7619_v28 = vld [vmem:[%s19775_s17 + $0x160] sm:$0xff]  ;;  %v7620_v11 = vld [vmem:[%s19775_s17 + $0x168] sm:$0xff]  ;;  %v7637_v58 = vld [vmem:[%s19775_s17 + $0x1f0] sm:$0xff] }
0x12b5   :  { %13327 = vmatpush3.bf16.msra.mxu1 %v13326_v54 }
0x12b6   :  { %13359 = vmatpush3.bf16.msra.mxu0 %v13358_v6  ;;  %13329 = vmatprep.subr.bf16.mxu1 %v13328_v0  ;;  %v7603_v6 = vld [vmem:[%s19775_s17 + $0xe0] sm:$0xff]  ;;  %v7604_v0 = vld [vmem:[%s19775_s17 + $0xe8] sm:$0xff] }
0x12b7   :  { %13361 = vmatprep.subr.bf16.mxu0 %v13360_v41  ;;  %v7513_v41 = vld [vmem:[%s19775_s17 + $0x48] sm:$0xff]  ;;  %v13386_v8 = vpack.c.bf16 %v7604_v0, %v7603_v6  ;;  %v7594_v6 = vld [vmem:[%s19775_s17 + $0x98] sm:$0xff]  ;;  %v7639_v0 = vld [vmem:[%s19775_s17 + $0x200] sm:$0xff] }
0x12b8   :  { %v13381_v34 = vpack.c.bf16 %v7513_v41, %v7512_v42  ;;  %v7611_v42 = vld [vmem:[%s19775_s17 + $0x120] sm:$0xff]  ;;  %v7612_v41 = vld [vmem:[%s19775_s17 + $0x128] sm:$0xff] }
0x12b9   :  { %13331 = vmatpush3.bf16.msra.mxu1 %v13330_v55  ;;  %v8776_v55 = vld [vmem:[%s19768_s10] ss:$0 sm:$0xff] }
0x12ba   :  { %13363 = vmatpush3.bf16.msra.mxu0 %v13362_v10  ;;  %13333 = vmatprep.subr.bf16.mxu1 %v13332_v12  ;;  %v7605_v10 = vld [vmem:[%s19775_s17 + $0xf0] sm:$0xff]  ;;  %v7606_v12 = vld [vmem:[%s19775_s17 + $0xf8] sm:$0xff] }
0x12bb   :  { %13365 = vmatprep.subr.bf16.mxu0 %v13364_v25  ;;  %v18858_v25 = vadd.f32 %v8813_v60, %v20418_v27  ;;  %v13424_v60 = vpack.c.bf16 %v7622_v37, %v7621_v43  ;;  %v7641_v27 = vld [vmem:[%s19775_s17 + $0x210] sm:$0xff]  ;;  %v7627_v43 = vld [vmem:[%s19775_s17 + $0x1a0] sm:$0xff]  ;;  %v7628_v37 = vld [vmem:[%s19775_s17 + $0x1a8] sm:$0xff] }
0x12bd   :  { %13335 = vmatpush3.bf16.msra.mxu1 %v13334_v38  ;;  %v7515_v38 = vld [vmem:[%s19775_s17 + $0x58] sm:$0xff] }
0x12be   :  { %13367 = vmatpush3.bf16.msra.mxu0 %v13366_v40  ;;  %13368 = vmatprep.subr.bf16.mxu1 %v20055_v4  ;;  %v7589_v40 = vld [vmem:[%s19775_s17 + $0x70] sm:$0xff] }
0x12bf   :  { %13374 = vmatprep.subr.bf16.mxu0 %v20055_v4 }
0x12cf   :  { %v6379_v23 = vpop.f32.mrb[100].mxu1 }
0x12d0   :  { %v6483_v52 = vrot.slane %v6379_v23, 7  ;;  %v6450_v36 = vpop.f32.mrb[96].mxu0  ;;  %v6381_v21 = vpop.f32.mrb[101].mxu1  ;;  %v20419_v23 = vld [vmem:[#allocation13_spill] sm:$0xff] }
0x12d1   :  { %v6485_v30 = vrot.slane %v6450_v36, 7  ;;  %v6484_v13 = vrot.slane %v6381_v21, 7  ;;  %v6452_v57 = vpop.f32.mrb[97].mxu0  ;;  %v13390_v36 = vpack.c.bf16 %v7606_v12, %v7605_v10  ;;  %v7590_v21 = vld [vmem:[%s19775_s17 + $0x78] sm:$0xff]  ;;  %v7624_v10 = vld [vmem:[%s19775_s17 + $0x188] sm:$0xff] }
0x12d2   :  { %v18779_v61 = vsel %vm104_vm2, %v20413_v26, %v6483_v52  ;;  %v6486_v47 = vrot.slane %v6452_v57, 7  ;;  %v18871_v52 = vadd.f32 %v8776_v55, %v20419_v23  ;;  %v7607_v57 = vld [vmem:[%s19775_s17 + $0x100] sm:$0xff]  ;;  %v7608_v26 = vld [vmem:[%s19775_s17 + $0x108] sm:$0xff]  ;;  %v7613_v23 = vld [vmem:[%s19775_s17 + $0x130] sm:$0xff] }
0x12d3   :  { %v18783_v59 = vsel %vm104_vm2, %v20414_v39, %v6485_v30  ;;  %v18787_v56 = vsel %vm104_vm2, %v20415_v20, %v6484_v13  ;;  %13746 = vtanh.f32 %v18779_v61  ;;  %v7635_v30 = vld [vmem:[%s19775_s17 + $0x1e0] sm:$0xff]  ;;  %v7636_v13 = vld [vmem:[%s19775_s17 + $0x1e8] sm:$0xff]  ;;  %v13392_v39 = vpack.c.bf16 %v7590_v21, %v7589_v40 }
0x12d4   :  { %v18792_v32 = vsel %vm104_vm2, %v20416_v14, %v6486_v47  ;;  %13748 = vtanh.f32 %v18787_v56  ;;  %v13384_v47 = vpack.c.bf16 %v7515_v38, %v7514_v62  ;;  %v13418_v20 = vpack.c.bf16 %v7636_v13, %v7635_v30  ;;  %v7591_v14 = vld [vmem:[%s19775_s17 + $0x80] sm:$0xff] }
0x12d5   :  { %13750 = vtanh.f32 %v18792_v32  ;;  %v13394_v35 = vpack.c.bf16 %v7608_v26, %v7607_v57  ;;  %v7623_v55 = vld [vmem:[%s19775_s17 + $0x180] sm:$0xff] }
0x12d6   :  { %13752 = vtanh.f32 %v18783_v59  ;;  %v9606_v38 = vld [vmem:[%s19774_s16] ss:$0 sm:$0xff]  ;;  %v13428_v13 = vpack.c.bf16 %v7624_v10, %v7623_v55  ;;  %v7629_v55 = vld [vmem:[%s19775_s17 + $0x1b0] sm:$0xff]  ;;  %v7630_v10 = vld [vmem:[%s19775_s17 + $0x1b8] sm:$0xff] }
0x12dd   :  { %v13747_v1 = vpop.eup %13746 }
0x12de   :  { %v13749_v16 = vpop.eup %13748 }
0x12df   :  { %v13751_v48 = vpop.eup %13750  ;;  %7282 = vmatprep.mubr.f32.mxu1 %v13749_v16  ;;  %v7610_v16 = vld [vmem:[%s19775_s17 + $0x118] sm:$0xff] }
0x12e0   :  { %v13753_v54 = vpop.eup %13752  ;;  %7352 = vmatprep.mubr.f32.mxu0 %v13751_v48  ;;  %7283 = vmatmul.mubr.f32.vlgmr.msra.gmra.mrb[108].mxu1 %v13747_v1  ;;  %v7638_v1 = vld [vmem:[%s19775_s17 + $0x1f8] sm:$0xff]  ;;  %v7593_v48 = vld [vmem:[%s19775_s17 + $0x90] sm:$0xff] }
0x12e1   :  { %7353 = vmatmul.mubr.f32.vlgmr.msra.gmra.mrb[104].mxu0 %v13753_v54  ;;  %13370 = vmatpush3.bf16.msra.mxu1 %v13369_v33  ;;  %v7609_v33 = vld [vmem:[%s19775_s17 + $0x110] sm:$0xff]  ;;  %v13422_v53 = vpack.c.bf16 %v7638_v1, %v7637_v58  ;;  %v7644_v58 = vld [vmem:[%s19775_s17 + $0x228] sm:$0xff]  ;;  %v7615_v1 = vld [vmem:[%s19775_s17 + $0x140] sm:$0xff] }
0x12e2   :  { %13376 = vmatpush3.bf16.msra.mxu0 %v13375_v31  ;;  %13371 = vmatprep.subr.bf16.mxu1 %v20055_v4  ;;  %v13420_v31 = vpack.c.bf16 %v7620_v11, %v7619_v28  ;;  %v13398_v54 = vpack.c.bf16 %v7610_v16, %v7609_v33  ;;  %v7616_v33 = vld [vmem:[%s19775_s17 + $0x148] sm:$0xff] }
0x12e3   :  { %13377 = vmatprep.subr.bf16.mxu0 %v20055_v4  ;;  %11699 = vmatprep.mubr.msk.f32.mxu1 %vm13887_vm0, %v20417_v15 }
0x12e4   :  { %11710 = vmatprep.mubr.msk.f32.mxu0 %vm13887_vm0, %v20417_v15 }
0x12e5   :  { %13373 = vmatpush3.bf16.msra.mxu1 %v13372_v19  ;;  %v7640_v19 = vld [vmem:[%s19775_s17 + $0x208] sm:$0xff] }
0x12e6   :  { %13379 = vmatpush3.bf16.msra.mxu0 %v13378_v7  ;;  %13380 = vmatprep.subr.bf16.mxu1 %v20055_v4  ;;  %v20420_v7 = vld [vmem:[#allocation12_spill] sm:$0xff]  ;;  %v13426_v46 = vpack.c.bf16 %v7640_v19, %v7639_v0  ;;  %v7645_v0 = vld [vmem:[%s19775_s17 + $0x230] sm:$0xff]  ;;  %v7646_v19 = vld [vmem:[%s19775_s17 + $0x238] sm:$0xff] }
0x12e7   :  { %13387 = vmatprep.subr.bf16.mxu0 %v13386_v8  ;;  %v13400_v8 = vpack.c.bf16 %v7594_v6, %v7593_v48  ;;  %v7599_v48 = vld [vmem:[%s19775_s17 + $0xc0] sm:$0xff]  ;;  %v7600_v6 = vld [vmem:[%s19775_s17 + $0xc8] sm:$0xff] }
0x12e8   :  { %11700 = vmatmul.mubr.msk.f32.vlgmr.msra.gmra.mrb[110].mxu1 %vm122_vm1, %v18858_v25 }
0x12e9   :  { %11711 = vmatmul.mubr.msk.f32.vlgmr.msra.gmra.mrb[106].mxu0 %vm122_vm1, %v18871_v52  ;;  %13382 = vmatpush3.bf16.msra.mxu1 %v13381_v34  ;;  %v7596_v34 = vld [vmem:[%s19775_s17 + $0xa8] sm:$0xff] }
0x12ea   :  { %13389 = vmatpush3.bf16.msra.mxu0 %v13388_v44  ;;  %7907 = vmatprep.mubr.f32.mxu0 %v18146_v9  ;;  %v7592_v9 = vld [vmem:[%s19775_s17 + $0x88] sm:$0xff]  ;;  %v7642_v44 = vld [vmem:[%s19775_s17 + $0x218] sm:$0xff]  ;;  %v13404_v26 = vpack.c.bf16 %v7596_v34, %v7595_v24  ;;  %v7601_v24 = vld [vmem:[%s19775_s17 + $0xd0] sm:$0xff] }
0x12eb   :  { %13383 = vmatprep.subr.bf16.mxu1 %v20055_v4  ;;  %13391 = vmatprep.subr.bf16.mxu0 %v13390_v36  ;;  %v13396_v45 = vpack.c.bf16 %v7592_v9, %v7591_v14  ;;  %v7614_v36 = vld [vmem:[%s19775_s17 + $0x138] sm:$0xff]  ;;  %v7643_v9 = vld [vmem:[%s19775_s17 + $0x220] sm:$0xff] }
0x12ec   :  { %11721 = vmatprep.mubr.msk.f32.mxu1 %vm13887_vm0, %v20417_v15  ;;  %v7626_v14 = vld [vmem:[%s19775_s17 + $0x198] sm:$0xff]  ;;  %v13406_v11 = vpack.c.bf16 %v7614_v36, %v7613_v23  ;;  %v7647_v34 = vld [vmem:[%s19775_s17 + $0x240] sm:$0xff] }
0x12ed   :  { %13385 = vmatpush3.bf16.msra.mxu1 %v13384_v47  ;;  %v13430_v47 = vpack.c.bf16 %v7642_v44, %v7641_v27  ;;  %v7648_v27 = vld [vmem:[%s19775_s17 + $0x248] sm:$0xff]  ;;  %v7667_v44 = vld [vmem:[%s19775_s17 + $0x2e0] sm:$0xff] }
0x12ee   :  { %13393 = vmatpush3.bf16.msra.mxu0 %v13392_v39  ;;  %13419 = vmatprep.subr.bf16.mxu1 %v13418_v20  ;;  %v7597_v39 = vld [vmem:[%s19775_s17 + $0xb0] sm:$0xff]  ;;  %v13442_v23 = vpack.c.bf16 %v7648_v27, %v7647_v34  ;;  %v7631_v36 = vld [vmem:[%s19775_s17 + $0x1c0] sm:$0xff]  ;;  %v7658_v27 = vld [vmem:[%s19775_s17 + $0x298] sm:$0xff] }
0x12ef   :  { %13395 = vmatprep.subr.bf16.mxu0 %v13394_v35  ;;  %v7625_v20 = vld [vmem:[%s19775_s17 + $0x190] sm:$0xff]  ;;  %v7598_v35 = vld [vmem:[%s19775_s17 + $0xb8] sm:$0xff] }
0x12f0   :  { %11722 = vmatmul.mubr.msk.f32.vlgmr.msra.gmra.mrb[112].mxu1 %vm122_vm1, %v20420_v7 }
0x12f1   :  { %13421 = vmatpush3.bf16.msra.mxu1 %v13420_v31  ;;  %7977 = vmatprep.mubr.f32.mxu1 %v18150_v51  ;;  %v13402_v51 = vpack.c.bf16 %v7612_v41, %v7611_v42  ;;  %v13432_v31 = vpack.c.bf16 %v7626_v14, %v7625_v20  ;;  %v7617_v42 = vld [vmem:[%s19775_s17 + $0x150] sm:$0xff]  ;;  %v7618_v41 = vld [vmem:[%s19775_s17 + $0x158] sm:$0xff] }
0x12f2   :  { %13397 = vmatpush3.bf16.msra.mxu0 %v13396_v45  ;;  %13423 = vmatprep.subr.bf16.mxu1 %v13422_v53  ;;  %v13408_v45 = vpack.c.bf16 %v7598_v35, %v7597_v39  ;;  %v13434_v53 = vpack.c.bf16 %v7644_v58, %v7643_v9  ;;  %v7669_v39 = vld [vmem:[%s19775_s17 + $0x2f0] sm:$0xff]  ;;  %v7670_v20 = vld [vmem:[%s19775_s17 + $0x2f8] sm:$0xff] }
0x12f3   :  { %13399 = vmatprep.subr.bf16.mxu0 %v13398_v54  ;;  %v10970_v12 = vpop.f32.mrb[102].mxu1  ;;  %v13410_v54 = vpack.c.bf16 %v7616_v33, %v7615_v1  ;;  %v7634_v35 = vld [vmem:[%s19775_s17 + $0x1d8] sm:$0xff]  ;;  %v7653_v9 = vld [vmem:[%s19775_s17 + $0x270] sm:$0xff]  ;;  %v13454_v1 = vpack.c.bf16 %v7670_v20, %v7669_v39 }
0x12f4   :  { %v11005_v62 = vpop.f32.mrb[98].mxu0  ;;  %v10971_v40 = vpop.f32.mrb[103].mxu1  ;;  %v7654_v33 = vld [vmem:[%s19775_s17 + $0x278] sm:$0xff]  ;;  %v7677_v39 = vld [vmem:[%s19775_s17 + $0x330] sm:$0xff] }
0x12f5   :  { %13425 = vmatpush3.bf16.msra.mxu1 %v13424_v60  ;;  %v10972_v21 = vadd.f32 %v10971_v40, %v10970_v12  ;;  %v11006_v30 = vpop.f32.mrb[99].mxu0  ;;  %v13436_v60 = vpack.c.bf16 %v7628_v37, %v7627_v43  ;;  %v13414_v12 = vpack.c.bf16 %v7618_v41, %v7617_v42  ;;  %v13456_v37 = vpack.c.bf16 %v7654_v33, %v7653_v9  ;;  %v7701_v42 = vld [vmem:[%s19775_s17 + $0x3f0] sm:$0xff]  ;;  %v7702_v41 = vld [vmem:[%s19775_s17 + $0x3f8] sm:$0xff] }
0x12f6   :  { %13401 = vmatpush3.bf16.msra.mxu0 %v13400_v8  ;;  %v11007_v57 = vadd.f32 %v11006_v30, %v11005_v62  ;;  %13427 = vmatprep.subr.bf16.mxu1 %v13426_v46  ;;  %v13412_v8 = vpack.c.bf16 %v7600_v6, %v7599_v48  ;;  %v13438_v46 = vpack.c.bf16 %v7646_v19, %v7645_v0  ;;  %v7668_v62 = vld [vmem:[%s19775_s17 + $0x2e8] sm:$0xff]  ;;  %v7655_v6 = vld [vmem:[%s19775_s17 + $0x280] sm:$0xff]  ;;  %v7678_v20 = vld [vmem:[%s19775_s17 + $0x338] sm:$0xff] }
0x12f7   :  { %v6865_v28 = vadd.f32 %v10972_v21, %v9606_v38  ;;  %13403 = vmatprep.subr.bf16.mxu0 %v13402_v51  ;;  %v7602_v51 = vld [vmem:[%s19775_s17 + $0xd8] sm:$0xff]  ;;  %v13440_v38 = vpack.c.bf16 %v7630_v10, %v7629_v55  ;;  %v7632_v21 = vld [vmem:[%s19775_s17 + $0x1c8] sm:$0xff]  ;;  %v13450_v30 = vpack.c.bf16 %v7668_v62, %v7667_v44  ;;  %v7683_v0 = vld [vmem:[%s19775_s17 + $0x360] sm:$0xff]  ;;  %v13486_v55 = vpack.c.bf16 %v7702_v41, %v7701_v42 }
0x12f8   :  { %v13416_v40 = vpack.c.bf16 %v7602_v51, %v7601_v24  ;;  %v13444_v14 = vpack.c.bf16 %v7632_v21, %v7631_v36  ;;  %v7672_v48 = vld [vmem:[%s19775_s17 + $0x308] sm:$0xff]  ;;  %v7657_v10 = vld [vmem:[%s19775_s17 + $0x290] sm:$0xff]  ;;  %v7686_v51 = vld [vmem:[%s19775_s17 + $0x378] sm:$0xff] }
0x12f9   :  { %v18998_v16 = vadd.f32 %v11007_v57, %v6865_v28  ;;  %13429 = vmatpush3.bf16.msra.mxu1 %v13428_v13  ;;  %v7651_v13 = vld [vmem:[%s19775_s17 + $0x260] sm:$0xff]  ;;  %v7652_v57 = vld [vmem:[%s19775_s17 + $0x268] sm:$0xff]  ;;  %v13464_v36 = vpack.c.bf16 %v7658_v27, %v7657_v10  ;;  %v7689_v9 = vld [vmem:[%s19775_s17 + $0x390] sm:$0xff] }
0x12fa   :  { %13405 = vmatpush3.bf16.msra.mxu0 %v13404_v26  ;;  %13431 = vmatprep.subr.bf16.mxu1 %v13430_v47  ;;  %v7649_v26 = vld [vmem:[%s19775_s17 + $0x250] sm:$0xff]  ;;  %v7650_v47 = vld [vmem:[%s19775_s17 + $0x258] sm:$0xff]  ;;  %v13452_v28 = vpack.c.bf16 %v7652_v57, %v7651_v13  ;;  %v7684_v19 = vld [vmem:[%s19775_s17 + $0x368] sm:$0xff] }
0x12fb   :  { %13407 = vmatprep.subr.bf16.mxu0 %v13406_v11  ;;  %v7633_v11 = vld [vmem:[%s19775_s17 + $0x1d0] sm:$0xff]  ;;  %v13446_v58 = vpack.c.bf16 %v7650_v47, %v7649_v26  ;;  %v7703_v44 = vld [vmem:[%s19775_s17 + $0x400] sm:$0xff]  ;;  %v7704_v62 = vld [vmem:[%s19775_s17 + $0x408] sm:$0xff] }
0x12fc   :  { %v13448_v43 = vpack.c.bf16 %v7634_v35, %v7633_v11  ;;  %v13490_v21 = vpack.c.bf16 %v7704_v62, %v7703_v44  ;;  %v7688_v13 = vld [vmem:[%s19775_s17 + $0x388] sm:$0xff]  ;;  %v7705_v26 = vld [vmem:[%s19775_s17 + $0x410] sm:$0xff]  ;;  %v7706_v47 = vld [vmem:[%s19775_s17 + $0x418] sm:$0xff] }
0x12fd   :  { %13433 = vmatpush3.bf16.msra.mxu1 %v13432_v31  ;;  %v7699_v31 = vld [vmem:[%s19775_s17 + $0x3e0] sm:$0xff]  ;;  %v13494_v11 = vpack.c.bf16 %v7706_v47, %v7705_v26  ;;  %v7661_v35 = vld [vmem:[%s19775_s17 + $0x2b0] sm:$0xff]  ;;  %v7662_v33 = vld [vmem:[%s19775_s17 + $0x2b8] sm:$0xff] }
0x12fe   :  { %13409 = vmatpush3.bf16.msra.mxu0 %v13408_v45  ;;  %13435 = vmatprep.subr.bf16.mxu1 %v13434_v53  ;;  %v7700_v45 = vld [vmem:[%s19775_s17 + $0x3e8] sm:$0xff]  ;;  %v7671_v53 = vld [vmem:[%s19775_s17 + $0x300] sm:$0xff]  ;;  %v7709_v42 = vld [vmem:[%s19775_s17 + $0x430] sm:$0xff] }
0x12ff   :  { %13411 = vmatprep.subr.bf16.mxu0 %v13410_v54  ;;  %v13482_v54 = vpack.c.bf16 %v7700_v45, %v7699_v31  ;;  %v7707_v31 = vld [vmem:[%s19775_s17 + $0x420] sm:$0xff]  ;;  %v7708_v45 = vld [vmem:[%s19775_s17 + $0x428] sm:$0xff]  ;;  %v7710_v41 = vld [vmem:[%s19775_s17 + $0x438] sm:$0xff] }
0x1300   :  { %v7665_v10 = vld [vmem:[%s19775_s17 + $0x2d0] sm:$0xff]  ;;  %v7666_v27 = vld [vmem:[%s19775_s17 + $0x2d8] sm:$0xff]  ;;  %v7711_v44 = vld [vmem:[%s19775_s17 + $0x440] sm:$0xff] }
0x1301   :  { %13437 = vmatpush3.bf16.msra.mxu1 %v13436_v60  ;;  %v7673_v60 = vld [vmem:[%s19775_s17 + $0x310] sm:$0xff]  ;;  %v7712_v62 = vld [vmem:[%s19775_s17 + $0x448] sm:$0xff]  ;;  %v7714_v47 = vld [vmem:[%s19775_s17 + $0x458] sm:$0xff] }
0x1302   :  { %13413 = vmatpush3.bf16.msra.mxu0 %v13412_v8  ;;  %13439 = vmatprep.subr.bf16.mxu1 %v13438_v46  ;;  %v7674_v8 = vld [vmem:[%s19775_s17 + $0x318] sm:$0xff]  ;;  %v13484_v46 = vpack.c.bf16 %v7684_v19, %v7683_v0  ;;  %v7691_v0 = vld [vmem:[%s19775_s17 + $0x3a0] sm:$0xff]  ;;  %v7692_v19 = vld [vmem:[%s19775_s17 + $0x3a8] sm:$0xff] }
0x1303   :  { %13415 = vmatprep.subr.bf16.mxu0 %v13414_v12  ;;  %v7685_v12 = vld [vmem:[%s19775_s17 + $0x370] sm:$0xff]  ;;  %v13462_v34 = vpack.c.bf16 %v7674_v8, %v7673_v60  ;;  %v7682_v8 = vld [vmem:[%s19775_s17 + $0x358] sm:$0xff] }
0x1304   :  { %v7681_v60 = vld [vmem:[%s19775_s17 + $0x350] sm:$0xff] }
0x1305   :  { %13441 = vmatpush3.bf16.msra.mxu1 %v13440_v38  ;;  %v7675_v38 = vld [vmem:[%s19775_s17 + $0x320] sm:$0xff]  ;;  %v7713_v26 = vld [vmem:[%s19775_s17 + $0x450] sm:$0xff] }
0x1306   :  { %13417 = vmatpush3.bf16.msra.mxu0 %v13416_v40  ;;  %13443 = vmatprep.subr.bf16.mxu1 %v13442_v23  ;;  %v7676_v40 = vld [vmem:[%s19775_s17 + $0x328] sm:$0xff]  ;;  %v13488_v23 = vpack.c.bf16 %v7686_v51, %v7685_v12  ;;  %v7693_v12 = vld [vmem:[%s19775_s17 + $0x3b0] sm:$0xff]  ;;  %v7694_v51 = vld [vmem:[%s19775_s17 + $0x3b8] sm:$0xff] }
0x1307   :  { %13451 = vmatprep.subr.bf16.mxu0 %v13450_v30  ;;  %v7687_v30 = vld [vmem:[%s19775_s17 + $0x380] sm:$0xff]  ;;  %v13466_v57 = vpack.c.bf16 %v7676_v40, %v7675_v38  ;;  %v7732_v40 = vld [vmem:[%s19775_s17 + $0x4e8] sm:$0xff] }
0x1308   :  { %v7731_v38 = vld [vmem:[%s19775_s17 + $0x4e0] sm:$0xff] }
0x1309   :  { %7908 = vmatmul.mubr.f32.vlgmr.msra.gmra.mrb[108].mxu0 %v18129_v5  ;;  %13445 = vmatpush3.bf16.msra.mxu1 %v13444_v14  ;;  %v13458_v5 = vpack.c.bf16 %v7672_v48, %v7671_v53  ;;  %v13492_v14 = vpack.c.bf16 %v7688_v13, %v7687_v30  ;;  %v7679_v53 = vld [vmem:[%s19775_s17 + $0x340] sm:$0xff]  ;;  %v7680_v48 = vld [vmem:[%s19775_s17 + $0x348] sm:$0xff]  ;;  %v13514_v13 = vpack.c.bf16 %v7732_v40, %v7731_v38 }
0x130a   :  { %13453 = vmatpush3.bf16.msra.mxu0 %v13452_v28  ;;  %8047 = vmatprep.mubr.f32.mxu0 %v18373_v18  ;;  %v7656_v18 = vld [vmem:[%s19775_s17 + $0x288] sm:$0xff] }
0x130b   :  { %13447 = vmatprep.subr.bf16.mxu1 %v13446_v58  ;;  %13455 = vmatprep.subr.bf16.mxu0 %v13454_v1  ;;  %v13460_v24 = vpack.c.bf16 %v7656_v18, %v7655_v6  ;;  %v7690_v58 = vld [vmem:[%s19775_s17 + $0x398] sm:$0xff]  ;;  %v13470_v1 = vpack.c.bf16 %v7678_v20, %v7677_v39  ;;  %v7663_v6 = vld [vmem:[%s19775_s17 + $0x2c0] sm:$0xff]  ;;  %v7664_v18 = vld [vmem:[%s19775_s17 + $0x2c8] sm:$0xff] }
0x130c   :  { %v7696_v30 = vld [vmem:[%s19775_s17 + $0x3c8] sm:$0xff]  ;;  %v7733_v39 = vld [vmem:[%s19775_s17 + $0x4f0] sm:$0xff]  ;;  %v7734_v20 = vld [vmem:[%s19775_s17 + $0x4f8] sm:$0xff] }
0x130d   :  { %13449 = vmatpush3.bf16.msra.mxu1 %v13448_v43  ;;  %v13496_v43 = vpack.c.bf16 %v7690_v58, %v7689_v9  ;;  %v7717_v9 = vld [vmem:[%s19775_s17 + $0x470] sm:$0xff]  ;;  %v13510_v58 = vpack.c.bf16 %v7714_v47, %v7713_v26 }
0x130e   :  { %13457 = vmatpush3.bf16.msra.mxu0 %v13456_v37  ;;  %13483 = vmatprep.subr.bf16.mxu1 %v13482_v54  ;;  %v13472_v37 = vpack.c.bf16 %v7662_v33, %v7661_v35  ;;  %v13498_v54 = vpack.c.bf16 %v7708_v45, %v7707_v31  ;;  %v7698_v35 = vld [vmem:[%s19775_s17 + $0x3d8] sm:$0xff]  ;;  %v7763_v31 = vld [vmem:[%s19775_s17 + $0x5e0] sm:$0xff]  ;;  %v7764_v45 = vld [vmem:[%s19775_s17 + $0x5e8] sm:$0xff] }
0x130f   :  { %13459 = vmatprep.subr.bf16.mxu0 %v13458_v5  ;;  %v13474_v5 = vpack.c.bf16 %v7680_v48, %v7679_v53  ;;  %v7718_v33 = vld [vmem:[%s19775_s17 + $0x478] sm:$0xff]  ;;  %v7735_v53 = vld [vmem:[%s19775_s17 + $0x500] sm:$0xff]  ;;  %v7736_v48 = vld [vmem:[%s19775_s17 + $0x508] sm:$0xff] }
0x1310   :  { %7978 = vmatmul.mubr.f32.vlgmr.msra.gmra.mrb[114].mxu1 %v18133_v29  ;;  %v7659_v29 = vld [vmem:[%s19775_s17 + $0x2a0] sm:$0xff]  ;;  %v7741_v47 = vld [vmem:[%s19775_s17 + $0x530] sm:$0xff] }
0x1311   :  { %13485 = vmatpush3.bf16.msra.mxu1 %v13484_v46  ;;  %8117 = vmatprep.mubr.f32.mxu1 %v18377_v2  ;;  %v7660_v2 = vld [vmem:[%s19775_s17 + $0x2a8] sm:$0xff]  ;;  %v13500_v46 = vpack.c.bf16 %v7692_v19, %v7691_v0  ;;  %v7747_v0 = vld [vmem:[%s19775_s17 + $0x560] sm:$0xff] }
0x1312   :  { %13461 = vmatpush3.bf16.msra.mxu0 %v13460_v24  ;;  %13487 = vmatprep.subr.bf16.mxu1 %v13486_v55  ;;  %v13468_v28 = vpack.c.bf16 %v7660_v2, %v7659_v29  ;;  %v13476_v24 = vpack.c.bf16 %v7664_v18, %v7663_v6  ;;  %v13502_v55 = vpack.c.bf16 %v7710_v41, %v7709_v42  ;;  %v7695_v29 = vld [vmem:[%s19775_s17 + $0x3c0] sm:$0xff]  ;;  %v7716_v2 = vld [vmem:[%s19775_s17 + $0x468] sm:$0xff]  ;;  %v7766_v18 = vld [vmem:[%s19775_s17 + $0x5f8] sm:$0xff] }
0x1313   :  { %13463 = vmatprep.subr.bf16.mxu0 %v13462_v34  ;;  %v13478_v34 = vpack.c.bf16 %v7682_v8, %v7681_v60  ;;  %v7719_v6 = vld [vmem:[%s19775_s17 + $0x480] sm:$0xff]  ;;  %v7748_v19 = vld [vmem:[%s19775_s17 + $0x568] sm:$0xff]  ;;  %v7737_v42 = vld [vmem:[%s19775_s17 + $0x510] sm:$0xff] }
0x1314   :  { %v7738_v41 = vld [vmem:[%s19775_s17 + $0x518] sm:$0xff]  ;;  %v13548_v60 = vpack.c.bf16 %v7748_v19, %v7747_v0 }
0x1315   :  { %13489 = vmatpush3.bf16.msra.mxu1 %v13488_v23  ;;  %v13504_v23 = vpack.c.bf16 %v7694_v51, %v7693_v12  ;;  %v13526_v12 = vpack.c.bf16 %v7738_v41, %v7737_v42  ;;  %v7722_v51 = vld [vmem:[%s19775_s17 + $0x498] sm:$0xff]  ;;  %v7728_v42 = vld [vmem:[%s19775_s17 + $0x4c8] sm:$0xff]  ;;  %v7773_v41 = vld [vmem:[%s19775_s17 + $0x630] sm:$0xff] }
0x1316   :  { %13465 = vmatpush3.bf16.msra.mxu0 %v13464_v36  ;;  %13491 = vmatprep.subr.bf16.mxu1 %v13490_v21  ;;  %v13480_v36 = vpack.c.bf16 %v7666_v27, %v7665_v10  ;;  %v13506_v21 = vpack.c.bf16 %v7712_v62, %v7711_v44  ;;  %v7750_v10 = vld [vmem:[%s19775_s17 + $0x578] sm:$0xff]  ;;  %v7768_v27 = vld [vmem:[%s19775_s17 + $0x608] sm:$0xff]  ;;  %v7739_v44 = vld [vmem:[%s19775_s17 + $0x520] sm:$0xff] }
0x1317   :  { %13467 = vmatprep.subr.bf16.mxu0 %v13466_v57  ;;  %v7715_v57 = vld [vmem:[%s19775_s17 + $0x460] sm:$0xff]  ;;  %v7740_v62 = vld [vmem:[%s19775_s17 + $0x528] sm:$0xff] }
0x1319   :  { %13493 = vmatpush3.bf16.msra.mxu1 %v13492_v14  ;;  %v13508_v14 = vpack.c.bf16 %v7696_v30, %v7695_v29  ;;  %v7724_v30 = vld [vmem:[%s19775_s17 + $0x4a8] sm:$0xff] }
0x131a   :  { %13469 = vmatpush3.bf16.msra.mxu0 %v13468_v28  ;;  %13495 = vmatprep.subr.bf16.mxu1 %v13494_v11  ;;  %v13516_v28 = vpack.c.bf16 %v7716_v2, %v7715_v57  ;;  %v7697_v11 = vld [vmem:[%s19775_s17 + $0x3d0] sm:$0xff]  ;;  %v7770_v57 = vld [vmem:[%s19775_s17 + $0x618] sm:$0xff] }
0x131b   :  { %13471 = vmatprep.subr.bf16.mxu0 %v13470_v1  ;;  %v13518_v1 = vpack.c.bf16 %v7734_v20, %v7733_v39  ;;  %v7742_v39 = vld [vmem:[%s19775_s17 + $0x538] sm:$0xff] }
0x131d   :  { %13497 = vmatpush3.bf16.msra.mxu1 %v13496_v43  ;;  %v13512_v43 = vpack.c.bf16 %v7698_v35, %v7697_v11 }
0x131e   :  { %13473 = vmatpush3.bf16.msra.mxu0 %v13472_v37  ;;  %13499 = vmatprep.subr.bf16.mxu1 %v13498_v54  ;;  %v13520_v37 = vpack.c.bf16 %v7718_v33, %v7717_v9  ;;  %v13546_v54 = vpack.c.bf16 %v7764_v45, %v7763_v31  ;;  %v7754_v33 = vld [vmem:[%s19775_s17 + $0x598] sm:$0xff]  ;;  %v13534_v45 = vpack.c.bf16 %v7742_v39, %v7741_v47  ;;  %v7797_v47 = vld [vmem:[%s19775_s17 + $0x6f0] sm:$0xff] }
0x131f   :  { %13475 = vmatprep.subr.bf16.mxu0 %v13474_v5  ;;  %v7765_v5 = vld [vmem:[%s19775_s17 + $0x5f0] sm:$0xff]  ;;  %v7798_v39 = vld [vmem:[%s19775_s17 + $0x6f8] sm:$0xff] }
0x1321   :  { %13501 = vmatpush3.bf16.msra.mxu1 %v13500_v46  ;;  %v13550_v46 = vpack.c.bf16 %v7766_v18, %v7765_v5  ;;  %v7756_v5 = vld [vmem:[%s19775_s17 + $0x5a8] sm:$0xff] }
0x1322   :  { %13477 = vmatpush3.bf16.msra.mxu0 %v13476_v24  ;;  %13503 = vmatprep.subr.bf16.mxu1 %v13502_v55  ;;  %v7721_v24 = vld [vmem:[%s19775_s17 + $0x490] sm:$0xff] }
0x1323   :  { %13479 = vmatprep.subr.bf16.mxu0 %v13478_v34  ;;  %v7749_v55 = vld [vmem:[%s19775_s17 + $0x570] sm:$0xff]  ;;  %v7767_v34 = vld [vmem:[%s19775_s17 + $0x600] sm:$0xff]  ;;  %v13528_v40 = vpack.c.bf16 %v7722_v51, %v7721_v24 }
0x1324   :  { %v13552_v38 = vpack.c.bf16 %v7750_v10, %v7749_v55  ;;  %v7757_v51 = vld [vmem:[%s19775_s17 + $0x5b0] sm:$0xff] }
0x1325   :  { %13505 = vmatpush3.bf16.msra.mxu1 %v13504_v23  ;;  %v13554_v23 = vpack.c.bf16 %v7768_v27, %v7767_v34  ;;  %v7758_v34 = vld [vmem:[%s19775_s17 + $0x5b8] sm:$0xff] }
0x1326   :  { %13481 = vmatpush3.bf16.msra.mxu0 %v13480_v36  ;;  %13507 = vmatprep.subr.bf16.mxu1 %v13506_v21  ;;  %v7751_v36 = vld [vmem:[%s19775_s17 + $0x580] sm:$0xff]  ;;  %v7752_v21 = vld [vmem:[%s19775_s17 + $0x588] sm:$0xff] }
0x1327   :  { %13515 = vmatprep.subr.bf16.mxu0 %v13514_v13  ;;  %v7769_v13 = vld [vmem:[%s19775_s17 + $0x610] sm:$0xff] }
0x1328   :  { %v13558_v9 = vpack.c.bf16 %v7770_v57, %v7769_v13  ;;  %v7779_v13 = vld [vmem:[%s19775_s17 + $0x660] sm:$0xff]  ;;  %v7780_v57 = vld [vmem:[%s19775_s17 + $0x668] sm:$0xff] }
0x1329   :  { %8048 = vmatmul.mubr.f32.vlgmr.msra.gmra.mrb[110].mxu0 %v18365_v3  ;;  %13509 = vmatpush3.bf16.msra.mxu1 %v13508_v14  ;;  %v13522_v3 = vpack.c.bf16 %v7736_v48, %v7735_v53  ;;  %v7726_v53 = vld [vmem:[%s19775_s17 + $0x4b8] sm:$0xff]  ;;  %v7771_v48 = vld [vmem:[%s19775_s17 + $0x620] sm:$0xff] }
0x132a   :  { %13517 = vmatpush3.bf16.msra.mxu0 %v13516_v28  ;;  %8187 = vmatprep.mubr.f32.mxu0 %v18585_v50  ;;  %v7720_v50 = vld [vmem:[%s19775_s17 + $0x488] sm:$0xff]  ;;  %v13556_v28 = vpack.c.bf16 %v7752_v21, %v7751_v36 }
0x132b   :  { %13511 = vmatprep.subr.bf16.mxu1 %v13510_v58  ;;  %13519 = vmatprep.subr.bf16.mxu0 %v13518_v1  ;;  %v13524_v8 = vpack.c.bf16 %v7720_v50, %v7719_v6  ;;  %v7725_v58 = vld [vmem:[%s19775_s17 + $0x4b0] sm:$0xff]  ;;  %v7755_v50 = vld [vmem:[%s19775_s17 + $0x5a0] sm:$0xff] }
0x132c   :  { %v7753_v1 = vld [vmem:[%s19775_s17 + $0x590] sm:$0xff]  ;;  %v13536_v0 = vpack.c.bf16 %v7726_v53, %v7725_v58  ;;  %v13564_v24 = vpack.c.bf16 %v7756_v5, %v7755_v50  ;;  %v13582_v58 = vpack.c.bf16 %v7798_v39, %v7797_v47  ;;  %v7800_v53 = vld [vmem:[%s19775_s17 + $0x708] sm:$0xff]  ;;  %v7802_v5 = vld [vmem:[%s19775_s17 + $0x718] sm:$0xff] }
0x132d   :  { %13513 = vmatpush3.bf16.msra.mxu1 %v13512_v43  ;;  %v7772_v43 = vld [vmem:[%s19775_s17 + $0x628] sm:$0xff]  ;;  %v13560_v6 = vpack.c.bf16 %v7754_v33, %v7753_v1  ;;  %v7782_v1 = vld [vmem:[%s19775_s17 + $0x678] sm:$0xff]  ;;  %v7827_v33 = vld [vmem:[%s19775_s17 + $0x7e0] sm:$0xff] }
0x132e   :  { %13521 = vmatpush3.bf16.msra.mxu0 %v13520_v37  ;;  %13547 = vmatprep.subr.bf16.mxu1 %v13546_v54  ;;  %v7743_v37 = vld [vmem:[%s19775_s17 + $0x540] sm:$0xff]  ;;  %v13562_v19 = vpack.c.bf16 %v7772_v43, %v7771_v48  ;;  %v7801_v50 = vld [vmem:[%s19775_s17 + $0x710] sm:$0xff]  ;;  %v7790_v39 = vld [vmem:[%s19775_s17 + $0x6b8] sm:$0xff] }
0x132f   :  { %13523 = vmatprep.subr.bf16.mxu0 %v13522_v3  ;;  %v7727_v3 = vld [vmem:[%s19775_s17 + $0x4c0] sm:$0xff] }
0x1330   :  { %8118 = vmatmul.mubr.f32.vlgmr.msra.gmra.mrb[116].mxu1 %v18369_v17  ;;  %v7723_v17 = vld [vmem:[%s19775_s17 + $0x4a0] sm:$0xff]  ;;  %v13540_v55 = vpack.c.bf16 %v7728_v42, %v7727_v3  ;;  %v7830_v3 = vld [vmem:[%s19775_s17 + $0x7f8] sm:$0xff] }
0x1331   :  { %13549 = vmatpush3.bf16.msra.mxu1 %v13548_v60  ;;  %8257 = vmatprep.mubr.f32.mxu1 %v18590_v49  ;;  %v13530_v49 = vpack.c.bf16 %v7740_v62, %v7739_v44  ;;  %v13532_v35 = vpack.c.bf16 %v7724_v30, %v7723_v17  ;;  %v7774_v60 = vld [vmem:[%s19775_s17 + $0x638] sm:$0xff]  ;;  %v7775_v62 = vld [vmem:[%s19775_s17 + $0x640] sm:$0xff]  ;;  %v13568_v17 = vpack.c.bf16 %v7758_v34, %v7757_v51  ;;  %v7804_v34 = vld [vmem:[%s19775_s17 + $0x728] sm:$0xff] }
0x1332   :  { %13525 = vmatpush3.bf16.msra.mxu0 %v13524_v8  ;;  %13551 = vmatprep.subr.bf16.mxu1 %v13550_v46  ;;  %v7745_v8 = vld [vmem:[%s19775_s17 + $0x550] sm:$0xff]  ;;  %v7746_v46 = vld [vmem:[%s19775_s17 + $0x558] sm:$0xff]  ;;  %v13566_v10 = vpack.c.bf16 %v7774_v60, %v7773_v41  ;;  %v7803_v51 = vld [vmem:[%s19775_s17 + $0x720] sm:$0xff] }
0x1333   :  { %v11040_v29 = vpop.f32.mrb[104].mxu1  ;;  %13527 = vmatprep.subr.bf16.mxu0 %v13526_v12  ;;  %v7729_v12 = vld [vmem:[%s19775_s17 + $0x4d0] sm:$0xff]  ;;  %v13542_v27 = vpack.c.bf16 %v7746_v46, %v7745_v8  ;;  %v7730_v44 = vld [vmem:[%s19775_s17 + $0x4d8] sm:$0xff] }
0x1334   :  { %v11075_v2 = vpop.f32.mrb[100].mxu0  ;;  %v11041_v26 = vpop.f32.mrb[105].mxu1  ;;  %v13544_v36 = vpack.c.bf16 %v7730_v44, %v7729_v12  ;;  %v7785_v60 = vld [vmem:[%s19775_s17 + $0x690] sm:$0xff]  ;;  %v7814_v46 = vld [vmem:[%s19775_s17 + $0x778] sm:$0xff]  ;;  %v7832_v12 = vld [vmem:[%s19775_s17 + $0x808] sm:$0xff] }
0x1335   :  { %v11042_v20 = vadd.f32 %v11041_v26, %v11040_v29  ;;  %v11076_v14 = vpop.f32.mrb[101].mxu0  ;;  %13553 = vmatpush3.bf16.msra.mxu1 %v13552_v38  ;;  %v7776_v38 = vld [vmem:[%s19775_s17 + $0x648] sm:$0xff]  ;;  %v7759_v29 = vld [vmem:[%s19775_s17 + $0x5c0] sm:$0xff]  ;;  %v7778_v26 = vld [vmem:[%s19775_s17 + $0x658] sm:$0xff] }
0x1336   :  { %v11077_v11 = vadd.f32 %v11076_v14, %v11075_v2  ;;  %13529 = vmatpush3.bf16.msra.mxu0 %v13528_v40  ;;  %13555 = vmatprep.subr.bf16.mxu1 %v13554_v23  ;;  %v7795_v40 = vld [vmem:[%s19775_s17 + $0x6e0] sm:$0xff]  ;;  %v7796_v23 = vld [vmem:[%s19775_s17 + $0x6e8] sm:$0xff]  ;;  %v13570_v21 = vpack.c.bf16 %v7776_v38, %v7775_v62  ;;  %v7777_v2 = vld [vmem:[%s19775_s17 + $0x650] sm:$0xff]  ;;  %v13580_v14 = vpack.c.bf16 %v7780_v57, %v7779_v13 }
0x1337   :  { %v7005_v31 = vadd.f32 %v11042_v20, %v18998_v16  ;;  %13531 = vmatprep.subr.bf16.mxu0 %v13530_v49  ;;  %v7744_v16 = vld [vmem:[%s19775_s17 + $0x548] sm:$0xff]  ;;  %v13578_v30 = vpack.c.bf16 %v7796_v23, %v7795_v40  ;;  %v7813_v8 = vld [vmem:[%s19775_s17 + $0x770] sm:$0xff]  ;;  %v7815_v38 = vld [vmem:[%s19775_s17 + $0x780] sm:$0xff]  ;;  %v13594_v23 = vpack.c.bf16 %v7804_v34, %v7803_v51 }
0x1338   :  { %v13538_v18 = vpack.c.bf16 %v7744_v16, %v7743_v37  ;;  %v7760_v49 = vld [vmem:[%s19775_s17 + $0x5c8] sm:$0xff]  ;;  %v7783_v16 = vld [vmem:[%s19775_s17 + $0x680] sm:$0xff]  ;;  %v7789_v57 = vld [vmem:[%s19775_s17 + $0x6b0] sm:$0xff] }
0x1339   :  { %v19393_v54 = vadd.f32 %v11077_v11, %v7005_v31  ;;  %13557 = vmatpush3.bf16.msra.mxu1 %v13556_v28  ;;  %v13572_v20 = vpack.c.bf16 %v7760_v49, %v7759_v29  ;;  %v7761_v28 = vld [vmem:[%s19775_s17 + $0x5d0] sm:$0xff]  ;;  %v7762_v11 = vld [vmem:[%s19775_s17 + $0x5d8] sm:$0xff]  ;;  %v7828_v31 = vld [vmem:[%s19775_s17 + $0x7e8] sm:$0xff] }
0x133a   :  { %13533 = vmatpush3.bf16.msra.mxu0 %v13532_v35  ;;  %13559 = vmatprep.subr.bf16.mxu1 %v13558_v9  ;;  %v7781_v35 = vld [vmem:[%s19775_s17 + $0x670] sm:$0xff]  ;;  %v13574_v9 = vpack.c.bf16 %v7778_v26, %v7777_v2  ;;  %v13576_v48 = vpack.c.bf16 %v7762_v11, %v7761_v28  ;;  %v13610_v37 = vpack.c.bf16 %v7828_v31, %v7827_v33  ;;  %v7816_v40 = vld [vmem:[%s19775_s17 + $0x788] sm:$0xff]  ;;  %v7806_v29 = vld [vmem:[%s19775_s17 + $0x738] sm:$0xff] }
0x133b   :  { %13535 = vmatprep.subr.bf16.mxu0 %v13534_v45  ;;  %v7799_v45 = vld [vmem:[%s19775_s17 + $0x700] sm:$0xff]  ;;  %v13584_v43 = vpack.c.bf16 %v7782_v1, %v7781_v35  ;;  %v13620_v49 = vpack.c.bf16 %v7816_v40, %v7815_v38  ;;  %v7817_v2 = vld [vmem:[%s19775_s17 + $0x790] sm:$0xff]  ;;  %v7818_v26 = vld [vmem:[%s19775_s17 + $0x798] sm:$0xff] }
0x133c   :  { %v7807_v28 = vld [vmem:[%s19775_s17 + $0x740] sm:$0xff]  ;;  %v7808_v11 = vld [vmem:[%s19775_s17 + $0x748] sm:$0xff]  ;;  %v13624_v35 = vpack.c.bf16 %v7818_v26, %v7817_v2  ;;  %v7842_v51 = vld [vmem:[%s19775_s17 + $0x858] sm:$0xff] }
0x133d   :  { %13561 = vmatpush3.bf16.msra.mxu1 %v13560_v6  ;;  %v7811_v6 = vld [vmem:[%s19775_s17 + $0x760] sm:$0xff]  ;;  %v7820_v31 = vld [vmem:[%s19775_s17 + $0x7a8] sm:$0xff]  ;;  %v8425_v38 = vld [vmem:[%s19779_s21 + $0x30] sm:$0xff] }
0x133e   :  { %13537 = vmatpush3.bf16.msra.mxu0 %v13536_v0  ;;  %13563 = vmatprep.subr.bf16.mxu1 %v13562_v19  ;;  %v7812_v0 = vld [vmem:[%s19775_s17 + $0x768] sm:$0xff]  ;;  %v7829_v19 = vld [vmem:[%s19775_s17 + $0x7f0] sm:$0xff]  ;;  %v7791_v1 = vld [vmem:[%s19775_s17 + $0x6c0] sm:$0xff] }
0x133f   :  { %13539 = vmatprep.subr.bf16.mxu0 %v13538_v18  ;;  %v13612_v18 = vpack.c.bf16 %v7812_v0, %v7811_v6  ;;  %v13614_v41 = vpack.c.bf16 %v7830_v3, %v7829_v19  ;;  %v7819_v33 = vld [vmem:[%s19775_s17 + $0x7a0] sm:$0xff]  ;;  %v7821_v19 = vld [vmem:[%s19775_s17 + $0x7b0] sm:$0xff]  ;;  %v7822_v3 = vld [vmem:[%s19775_s17 + $0x7b8] sm:$0xff] }
0x1340   :  { %v13628_v6 = vpack.c.bf16 %v7820_v31, %v7819_v33  ;;  %v8426_v40 = vld [vmem:[%s19779_s21 + $0x38] sm:$0xff] }
0x1341   :  { %13565 = vmatpush3.bf16.msra.mxu1 %v13564_v24  ;;  %v13590_v24 = vpack.c.bf16 %v7802_v5, %v7801_v50  ;;  %v7794_v5 = vld [vmem:[%s19775_s17 + $0x6d8] sm:$0xff] }
0x1342   :  { %13541 = vmatpush3.bf16.msra.mxu0 %v13540_v55  ;;  %13567 = vmatprep.subr.bf16.mxu1 %v13566_v10  ;;  %v7786_v55 = vld [vmem:[%s19775_s17 + $0x698] sm:$0xff]  ;;  %v7831_v10 = vld [vmem:[%s19775_s17 + $0x800] sm:$0xff] }
0x1343   :  { %13543 = vmatprep.subr.bf16.mxu0 %v13542_v27  ;;  %v13616_v27 = vpack.c.bf16 %v7814_v46, %v7813_v8  ;;  %v13592_v44 = vpack.c.bf16 %v7786_v55, %v7785_v60  ;;  %v13618_v62 = vpack.c.bf16 %v7832_v12, %v7831_v10  ;;  %v7823_v46 = vld [vmem:[%s19775_s17 + $0x7c0] sm:$0xff]  ;;  %v8424_v10 = vld [vmem:[%s19779_s21 + $0x28] sm:$0xff]  ;;  %v7841_v12 = vld [vmem:[%s19775_s17 + $0x850] sm:$0xff] }
0x1344   :  { %v8423_v55 = vld [vmem:[%s19779_s21 + $0x20] sm:$0xff]  ;;  %v8570_v2 = vld [vmem:[%s19779_s21 + $0x58] sm:$0xff] }
0x1345   :  { %13569 = vmatpush3.bf16.msra.mxu1 %v13568_v17  ;;  %v7833_v17 = vld [vmem:[%s19775_s17 + $0x810] sm:$0xff] }
0x1346   :  { %13545 = vmatpush3.bf16.msra.mxu0 %v13544_v36  ;;  %13571 = vmatprep.subr.bf16.mxu1 %v13570_v21  ;;  %v7834_v36 = vld [vmem:[%s19775_s17 + $0x818] sm:$0xff]  ;;  %v7805_v21 = vld [vmem:[%s19775_s17 + $0x730] sm:$0xff] }
0x1347   :  { %13579 = vmatprep.subr.bf16.mxu0 %v13578_v30  ;;  %v13622_v13 = vpack.c.bf16 %v7834_v36, %v7833_v17  ;;  %v13598_v47 = vpack.c.bf16 %v7806_v29, %v7805_v21  ;;  %v8419_v17 = vld [vmem:[%s19779_s21] sm:$0xff]  ;;  %v8420_v36 = vld [vmem:[%s19779_s21 + $0x8] sm:$0xff] }
0x1348   :  { %v8568_v21 = vld [vmem:[%s19779_s21 + $0x48] sm:$0xff]  ;;  %v13649_v29 = vpack.c.bf16 %v8420_v36, %v8419_v17 }
0x1349   :  { %8188 = vmatmul.mubr.f32.vlgmr.msra.gmra.mrb[112].mxu0 %v18577_v22  ;;  %13573 = vmatpush3.bf16.msra.mxu1 %v13572_v20  ;;  %v13586_v22 = vpack.c.bf16 %v7800_v53, %v7799_v45  ;;  %v7835_v20 = vld [vmem:[%s19775_s17 + $0x820] sm:$0xff]  ;;  %v13602_v45 = vpack.c.bf16 %v7808_v11, %v7807_v28  ;;  %v7792_v53 = vld [vmem:[%s19775_s17 + $0x6c8] sm:$0xff] }
0x134a   :  { %13581 = vmatpush3.bf16.msra.mxu0 %v13580_v14  ;;  %8327 = vmatprep.mubr.f32.mxu0 %v18787_v56  ;;  %v7784_v56 = vld [vmem:[%s19775_s17 + $0x688] sm:$0xff]  ;;  %v13604_v0 = vpack.c.bf16 %v7792_v53, %v7791_v1 }
0x134b   :  { %13575 = vmatprep.subr.bf16.mxu1 %v13574_v9  ;;  %13583 = vmatprep.subr.bf16.mxu0 %v13582_v58  ;;  %v13588_v42 = vpack.c.bf16 %v7784_v56, %v7783_v16  ;;  %v7836_v14 = vld [vmem:[%s19775_s17 + $0x828] sm:$0xff]  ;;  %v13600_v9 = vpack.c.bf16 %v7790_v39, %v7789_v57  ;;  %v7810_v16 = vld [vmem:[%s19775_s17 + $0x758] sm:$0xff]  ;;  %v7793_v56 = vld [vmem:[%s19775_s17 + $0x6d0] sm:$0xff] }
0x134c   :  { %v13626_v58 = vpack.c.bf16 %v7836_v14, %v7835_v20  ;;  %v13608_v60 = vpack.c.bf16 %v7794_v5, %v7793_v56  ;;  %v8569_v57 = vld [vmem:[%s19779_s21 + $0x50] sm:$0xff]  ;;  %v8643_v56 = vld [vmem:[%s19779_s21 + $0x68] sm:$0xff]  ;;  %v8645_v5 = vld [vmem:[%s19779_s21 + $0x78] sm:$0xff] }
0x134d   :  { %13577 = vmatpush3.bf16.msra.mxu1 %v13576_v48  ;;  %v7837_v48 = vld [vmem:[%s19775_s17 + $0x830] sm:$0xff] }
0x134e   :  { %13585 = vmatpush3.bf16.msra.mxu0 %v13584_v43  ;;  %13611 = vmatprep.subr.bf16.mxu1 %v13610_v37  ;;  %v7838_v43 = vld [vmem:[%s19775_s17 + $0x838] sm:$0xff]  ;;  %v7809_v37 = vld [vmem:[%s19775_s17 + $0x750] sm:$0xff] }
0x134f   :  { %13587 = vmatprep.subr.bf16.mxu0 %v13586_v22  ;;  %v13630_v22 = vpack.c.bf16 %v7838_v43, %v7837_v48  ;;  %v13606_v50 = vpack.c.bf16 %v7810_v16, %v7809_v37 }
0x1350   :  { %8258 = vmatmul.mubr.f32.vlgmr.msra.gmra.mrb[118].mxu1 %v18581_v63  ;;  %v7787_v63 = vld [vmem:[%s19775_s17 + $0x6a0] sm:$0xff] }
0x1351   :  { %13613 = vmatpush3.bf16.msra.mxu1 %v13612_v18  ;;  %8397 = vmatprep.mubr.f32.mxu1 %v18792_v32  ;;  %v7788_v32 = vld [vmem:[%s19775_s17 + $0x6a8] sm:$0xff]  ;;  %v7839_v18 = vld [vmem:[%s19775_s17 + $0x840] sm:$0xff] }
0x1352   :  { %13589 = vmatpush3.bf16.msra.mxu0 %v13588_v42  ;;  %13615 = vmatprep.subr.bf16.mxu1 %v13614_v41  ;;  %v13596_v30 = vpack.c.bf16 %v7788_v32, %v7787_v63  ;;  %v7840_v42 = vld [vmem:[%s19775_s17 + $0x848] sm:$0xff]  ;;  %v13632_v41 = vpack.c.bf16 %v7822_v3, %v7821_v19  ;;  %v7826_v63 = vld [vmem:[%s19775_s17 + $0x7d8] sm:$0xff]  ;;  %v13646_v32 = vpack.c.bf16 %v8426_v40, %v8425_v38  ;;  %v8644_v19 = vld [vmem:[%s19779_s21 + $0x70] sm:$0xff] }
0x1353   :  { %13591 = vmatprep.subr.bf16.mxu0 %v13590_v24  ;;  %v13634_v8 = vpack.c.bf16 %v7840_v42, %v7839_v18  ;;  %v7824_v24 = vld [vmem:[%s19775_s17 + $0x7c8] sm:$0xff]  ;;  %v13664_v42 = vpack.c.bf16 %v8645_v5, %v8644_v19 }
0x1354   :  { %v13636_v34 = vpack.c.bf16 %v7824_v24, %v7823_v46 }
0x1355   :  { %13617 = vmatpush3.bf16.msra.mxu1 %v13616_v27  ;;  %v13643_v27 = vpack.c.bf16 %v8424_v10, %v8423_v55 }
0x1356   :  { %13593 = vmatpush3.bf16.msra.mxu0 %v13592_v44  ;;  %13619 = vmatprep.subr.bf16.mxu1 %v13618_v62  ;;  %v13638_v44 = vpack.c.bf16 %v7842_v51, %v7841_v12  ;;  %v7825_v62 = vld [vmem:[%s19775_s17 + $0x7d0] sm:$0xff] }
0x1357   :  { %13595 = vmatprep.subr.bf16.mxu0 %v13594_v23  ;;  %v13640_v23 = vpack.c.bf16 %v7826_v63, %v7825_v62 }
0x1359   :  { %13621 = vmatpush3.bf16.msra.mxu1 %v13620_v49 }
0x135a   :  { %13597 = vmatpush3.bf16.msra.mxu0 %v13596_v30  ;;  %13623 = vmatprep.subr.bf16.mxu1 %v13622_v13  ;;  %v8421_v30 = vld [vmem:[%s19779_s21 + $0x10] sm:$0xff]  ;;  %v8422_v13 = vld [vmem:[%s19779_s21 + $0x18] sm:$0xff] }
0x135b   :  { %13599 = vmatprep.subr.bf16.mxu0 %v13598_v47  ;;  %v13652_v26 = vpack.c.bf16 %v8422_v13, %v8421_v30  ;;  %v13658_v47 = vpack.c.bf16 %v8570_v2, %v8569_v57 }
0x135d   :  { %13625 = vmatpush3.bf16.msra.mxu1 %v13624_v35 }
0x135e   :  { %13601 = vmatpush3.bf16.msra.mxu0 %v13600_v9  ;;  %13627 = vmatprep.subr.bf16.mxu1 %v13626_v58 }
0x135f   :  { %13603 = vmatprep.subr.bf16.mxu0 %v13602_v45 }
0x1361   :  { %13629 = vmatpush3.bf16.msra.mxu1 %v13628_v6 }
0x1362   :  { %13605 = vmatpush3.bf16.msra.mxu0 %v13604_v0  ;;  %13631 = vmatprep.subr.bf16.mxu1 %v13630_v22 }
0x1363   :  { %13607 = vmatprep.subr.bf16.mxu0 %v13606_v50 }
0x1365   :  { %13633 = vmatpush3.bf16.msra.mxu1 %v13632_v41 }
0x1366   :  { %13609 = vmatpush3.bf16.msra.mxu0 %v13608_v60  ;;  %13635 = vmatprep.subr.bf16.mxu1 %v13634_v8 }
0x1367   :  { %13642 = vmatprep.subr.bf16.mxu0 %v20055_v4 }
0x1369   :  { %8328 = vmatmul.mubr.f32.vlgmr.msra.gmra.mrb[114].mxu0 %v18779_v61  ;;  %13637 = vmatpush3.bf16.msra.mxu1 %v13636_v34  ;;  %v8567_v61 = vld [vmem:[%s19779_s21 + $0x40] sm:$0xff] }
0x136a   :  { %13644 = vmatpush3.bf16.msra.mxu0 %v13643_v27  ;;  %13639 = vmatprep.subr.bf16.mxu1 %v13638_v44  ;;  %v13655_v49 = vpack.c.bf16 %v8568_v21, %v8567_v61 }
0x136b   :  { %13645 = vmatprep.subr.bf16.mxu0 %v20055_v4  ;;  %11732 = vmatprep.mubr.msk.f32.mxu0 %vm13887_vm0, %v20417_v15 }
0x136d   :  { %13641 = vmatpush3.bf16.msra.mxu1 %v13640_v23 }
0x136e   :  { %13647 = vmatpush3.bf16.msra.mxu0 %v13646_v32  ;;  %13648 = vmatprep.subr.bf16.mxu1 %v20055_v4 }
0x136f   :  { %13654 = vmatprep.subr.bf16.mxu0 %v20055_v4 }
0x1370   :  { %8398 = vmatmul.mubr.f32.vlgmr.msra.gmra.mrb[120].mxu1 %v18783_v59 }
0x1371   :  { %11733 = vmatmul.mubr.msk.f32.vlgmr.msra.gmra.mrb[116].mxu0 %vm122_vm1, %v18858_v25  ;;  %13650 = vmatpush3.bf16.msra.mxu1 %v13649_v29 }
0x1372   :  { %13656 = vmatpush3.bf16.msra.mxu0 %v13655_v49  ;;  %13651 = vmatprep.subr.bf16.mxu1 %v20055_v4 }
0x1373   :  { %v11110_v39 = vpop.f32.mrb[106].mxu1  ;;  %13657 = vmatprep.subr.bf16.mxu0 %v20055_v4  ;;  %11743 = vmatprep.mubr.msk.f32.mxu1 %vm13887_vm0, %v20417_v15 }
0x1374   :  { %v11145_v20 = vpop.f32.mrb[102].mxu0  ;;  %v11111_v14 = vpop.f32.mrb[107].mxu1  ;;  %11754 = vmatprep.mubr.msk.f32.mxu0 %vm13887_vm0, %v20417_v15 }
0x1375   :  { %v11112_v59 = vadd.f32 %v11111_v14, %v11110_v39  ;;  %v11146_v28 = vpop.f32.mrb[103].mxu0  ;;  %13653 = vmatpush3.bf16.msra.mxu1 %v13652_v26 }
0x1376   :  { %v11147_v25 = vadd.f32 %v11146_v28, %v11145_v20  ;;  %13659 = vmatpush3.bf16.msra.mxu0 %v13658_v47  ;;  %13660 = vmatprep.subr.bf16.mxu1 %v20055_v4  ;;  %v9610_v47 = vld [vmem:[%s19776_s18] ss:$0 sm:$0xff]  ;;  %s8746_s18 = sshll.u32 %s13891_s6, 4  ;;  %s8747_s18 = int_to_ptr.vmem [resolvable:$true] %s8746_s18 }
0x1377   :  { %v7145_v11 = vadd.f32 %v11112_v59, %v19393_v54  ;;  %s13835_s7 = scalar_lea.vmem %s8747_s18, 32  ;;  %p13840_p6 = scmp.lt.s32.totalorder %s8747_s18, %s8747_s18 }
0x1378   :  { %11744 = vmatmul.mubr.msk.f32.vlgmr.msra.gmra.mrb[122].mxu1 %vm122_vm1, %v18871_v52  ;;  %p13836_p5 = scmp.ne.s32.totalorder %s8747_s18, %s13835_s7  ;;  %p13841_p7 = scmp.lt.s32.totalorder %s13835_s7, %s13835_s7 }
0x1379   :  { %v7215_v35 = vadd.f32 %v11147_v25, %v7145_v11  ;;  %11755 = vmatmul.mubr.msk.f32.vlgmr.msra.gmra.mrb[118].mxu0 %vm122_vm1, %v20420_v7  ;;  %11765 = vmatprep.mubr.msk.f32.mxu1 %vm13887_vm0, %v20417_v15  ;;  %v8642_v15 = vld [vmem:[%s19779_s21 + $0x60] sm:$0xff] }
0x137a   :  { %v13661_v50 = vpack.c.bf16 %v8643_v56, %v8642_v15  ;;  %p13842_p8 = por %p13841_p7, %p13840_p6 }
0x137c   :  { %13662 = vmatpush3.bf16.msra.mxu1 %v13661_v50  ;;  %p13843_p9 = pnand %p13842_p8, %p13836_p5 }
0x137d   :  { %13663 = vmatprep.subr.bf16.mxu1 %v20055_v4 }
0x1380   :  { %13665 = vmatpush3.bf16.msra.mxu1 %v13664_v42 }
0x13b3   :  { %v11180_v9 = vpop.f32.mrb[108].mxu1 }
0x13b4   :  { %v11215_v58 = vpop.f32.mrb[104].mxu0  ;;  %v11181_v1 = vpop.f32.mrb[109].mxu1 }
0x13b5   :  { %v11182_v33 = vadd.f32 %v11181_v1, %v11180_v9  ;;  %v11216_v31 = vpop.f32.mrb[105].mxu0 }
0x13b6   :  { %v11217_v45 = vadd.f32 %v11216_v31, %v11215_v58 }
0x13b7   :  { %v7285_v53 = vadd.f32 %v11182_v33, %v7215_v35 }
0x13b9   :  { %v19711_v48 = vadd.f32 %v11217_v45, %v7285_v53 }
0x13bb   :  { %v7435_v54 = vpop.f32.mrb[110].mxu1 }
0x13bc   :  { %v7508_v43 = vpop.f32.mrb[106].mxu0  ;;  %v11701_v37 = vpop.f32.mrb[111].mxu1 }
0x13bd   :  { %v7509_v52 = vadd.f32 %v7508_v43, %v7435_v54  ;;  %v11712_v16 = vpop.f32.mrb[107].mxu0 }
0x13c3   :  { %v7582_v6 = vpop.f32.mrb[112].mxu1 }
0x13c4   :  { %v7586_v0 = vadd.f32 %v7582_v6, %v7509_v52  ;;  %v11723_v7 = vpop.f32.mrb[113].mxu1 }
0x13dc   :  { %v11265_v22 = vpop.f32.mrb[108].mxu0 }
0x13dd   :  { %v11266_v3 = vpop.f32.mrb[109].mxu0 }
0x13de   :  { %v11267_v18 = vadd.f32 %v11266_v3, %v11265_v22 }
0x13e3   :  { %v11300_v41 = vpop.f32.mrb[114].mxu1 }
0x13e4   :  { %v11301_v60 = vpop.f32.mrb[115].mxu1 }
0x13e5   :  { %v11302_v8 = vadd.f32 %v11301_v60, %v11300_v41 }
0x13e7   :  { %v7980_v46 = vadd.f32 %v11302_v8, %v11267_v18 }
0x13fc   :  { %v11335_v24 = vpop.f32.mrb[110].mxu0 }
0x13fd   :  { %v11336_v55 = vpop.f32.mrb[111].mxu0 }
0x13fe   :  { %v11337_v10 = vadd.f32 %v11336_v55, %v11335_v24 }
0x1400   :  { %v8050_v12 = vadd.f32 %v11337_v10, %v7980_v46 }
0x1403   :  { %v11370_v51 = vpop.f32.mrb[116].mxu1 }
0x1404   :  { %v11371_v34 = vpop.f32.mrb[117].mxu1 }
0x1405   :  { %v11372_v27 = vadd.f32 %v11371_v34, %v11370_v51 }
0x1407   :  { %v8120_v44 = vadd.f32 %v11372_v27, %v8050_v12 }
0x141c   :  { %v11405_v62 = vpop.f32.mrb[112].mxu0 }
0x141d   :  { %v11406_v63 = vpop.f32.mrb[113].mxu0 }
0x141e   :  { %v11407_v38 = vadd.f32 %v11406_v63, %v11405_v62 }
0x1420   :  { %v8190_v40 = vadd.f32 %v11407_v38, %v8120_v44 }
0x1423   :  { %v11440_v23 = vpop.f32.mrb[118].mxu1 }
0x1424   :  { %v11441_v32 = vpop.f32.mrb[119].mxu1 }
0x1425   :  { %v11442_v4 = vadd.f32 %v11441_v32, %v11440_v23 }
0x1427   :  { %v8260_v17 = vadd.f32 %v11442_v4, %v8190_v40 }
0x143c   :  { %v11475_v36 = vpop.f32.mrb[114].mxu0 }
0x143d   :  { %v11476_v61 = vpop.f32.mrb[115].mxu0 }
0x143e   :  { %v11477_v21 = vadd.f32 %v11476_v61, %v11475_v36 }
0x1440   :  { %v8330_v29 = vadd.f32 %v11477_v21, %v8260_v17 }
0x1443   :  { %v11510_v49 = vpop.f32.mrb[120].mxu1 }
0x1444   :  { %v8493_v30 = vpop.f32.mrb[116].mxu0  ;;  %v11511_v13 = vpop.f32.mrb[121].mxu1 }
0x1445   :  { %v11512_v57 = vadd.f32 %v11511_v13, %v11510_v49  ;;  %v11734_v2 = vpop.f32.mrb[117].mxu0 }
0x1447   :  { %v8400_v26 = vadd.f32 %v11512_v57, %v8330_v29 }
0x1449   :  { %v8403_v39 = vadd.f32 %v8400_v26, %v7586_v0 }
0x144b   :  { %v8411_v20 = vadd.f32 %v9610_v47, %v8403_v39  ;;  %v8563_v14 = vpop.f32.mrb[122].mxu1 }
0x144c   :  { %v8564_v59 = vadd.f32 %v8563_v14, %v8493_v30  ;;  %v11745_v28 = vpop.f32.mrb[123].mxu1  ;;  %v8637_v25 = vpop.f32.mrb[118].mxu0 }
0x144d   :  { %v9611_v11 = vmul.f32 -1.442695, %v8411_v20  ;;  %v11756_v35 = vpop.f32.mrb[119].mxu0 }
0x144e   :  { %v8641_v9 = vadd.f32 %v8637_v25, %v8564_v59 }
0x144f   :  { %13754 = vpow2.f32 %v9611_v11 }
0x1459   :  { %v13755_v58 = vpop.eup %13754 }
0x145a   :  { %v8415_v1 = vadd.f32 1.0, %v13755_v58 }
0x145c   :  { %13756 = vrcp.f32 %v8415_v1 }
0x1466   :  { %v13757_v33 = vpop.eup %13756 }
0x1467   :  { %v8418_v31 = vmul.f32 %v13757_v33, %v19711_v48 }
0x1469   :  { %11766 = vmatmul.mubr.msk.f32.vlgmr.msra.gmra.mrb[124].mxu1 %vm122_vm1, %v8418_v31 }
0x146a   :  { %13846 = shalt.err (!%p13843_p9)
}
0x146b   :  { %s13847_s30 = scalar_lea.hbm %s19782_s24, 32 }
0x146c   :  { %p13848_p10 = scmp.ne.s32.totalorder %s19782_s24, %s13847_s30  ;;  %p13851_p11 = scmp.lt.u32.totalorder %s13847_s30, %s19782_s24 }
0x146e   :  { %p13853_p12 = pnand %p13851_p11, %p13848_p10 }
0x1470   :  { %13856 = shalt.err (!%p13853_p12)
}
0x1471   :  { %8749 = dma.vmem_to_hbm [thread:$0]  %s8747_s18, 32, %s19782_s24, [#allocation8]   ;;  %v9616_v53 = vld [vmem:[%s19780_s22] ss:$0 sm:$0xff]  ;;  %vm8728_vm12 = vcmask 17408  }
0x1472   :  { %s13892_s8 = smov [#allocation6]  }
0x1473   :  { %s8736_s13 = sshll.u32 %s13892_s8, 4  ;;  %s8737_s13 = int_to_ptr.vmem [resolvable:$true] %s8736_s13 }
0x1474   :  { %s13857_s2 = scalar_lea.vmem %s8737_s13, 32  ;;  %p13862_p0 = scmp.lt.s32.totalorder %s8737_s13, %s8737_s13 }
0x1475   :  { %p13858_p13 = scmp.ne.s32.totalorder %s8737_s13, %s13857_s2  ;;  %p13863_p1 = scmp.lt.s32.totalorder %s13857_s2, %s13857_s2 }
0x1477   :  { %p13864_p2 = por %p13863_p1, %p13862_p0 }
0x1479   :  { %p13865_p3 = pnand %p13864_p2, %p13858_p13 }
0x153c   :  { %v8715_v45 = vpop.f32.mrb[124].mxu1 }
0x153d   :  { %v8719_v48 = vadd.f32 %v8715_v45, %v8641_v9  ;;  %v11767_v54 = vpop.f32.mrb[125].mxu1 }
0x153f   :  { %v8727_v43 = vadd.f32 %v9616_v53, %v8719_v48 }
0x1541   :  { %8729 = vst.msk [vmem:[#allocation6] sm:$0x3] %vm8728_vm12, %v8727_v43 }
0x1542   :  { %13868 = shalt.err (!%p13865_p3)
}
0x1543   :  { %s13869_s4 = scalar_lea.hbm %s19781_s23, 32 }
0x1544   :  { %p13870_p4 = scmp.ne.s32.totalorder %s19781_s23, %s13869_s4  ;;  %p13873_p5 = scmp.lt.u32.totalorder %s13869_s4, %s19781_s23 }
0x1546   :  { %p13875_p6 = pnand %p13873_p5, %p13870_p4 }
0x1548   :  { %13878 = shalt.err (!%p13875_p6)
}
0x1549   :  { %8739 = dma.vmem_to_hbm [thread:$0]  %s8737_s13, 32, %s19781_s23, [#allocation4]  }
0x154a   :  { %13881 = dma.done.wait [#allocation4], 32  }
0x154b   :  { %13882 = vsyncadd [#allocation4], 4294967264 }
0x154c   :  { %13883 = dma.done.wait [#allocation8], 32  }
0x154d   :  { %13884 = vsyncadd [#allocation8], 4294967264 }
0x154e   :  { %8756 = vsyncpa [#allocation4], 1 }
0x154f   :  { %8757 = vsyncpa [#allocation8], 1 }
0x1550   :  { %8758 = vsyncpa [#allocation5], 1 }

</bundles_post_ra>
